<compile_context>
chip_gen: v5e
topology: v5e:2x2
jax: 0.10.0
libtpu: 0.0.40
codegen_flags: <defaults>
</compile_context>

<pallas_src>
import functools

import jax
import jax.numpy as jnp
from jax.experimental import pallas as pl
from jax.experimental.pallas import tpu as pltpu

EPS = 1e-5  # PyTorch BatchNorm1d default


def gat_kernel(x_ref, xt_ref, adjt_ref, wfc_ref, welt_ref, wer_ref, wres_ref,
               scale_ref, shift_ref, out_ref, *, num_heads, head_dim, block_n):
    j = pl.program_id(0)
    row0 = pl.multiple_of(j * block_n, block_n)

    x_all = x_ref[...]                                                    # (N, F)
    # Source-node projection (x_all / weights are VMEM-resident across grid steps).
    feat_src = jnp.dot(x_all, wfc_ref[...],
                       preferred_element_type=jnp.float32)                # (N, H*D)
    # el in lane-major layout (heads on sublanes, nodes on lanes): no in-kernel transpose.
    el_rows = jnp.dot(welt_ref[...], xt_ref[...],
                      preferred_element_type=jnp.float32)                 # (H, N)

    # Destination-node tile.
    x_dst = x_ref[pl.ds(row0, block_n), :]                                # (Bn, F)
    er = jnp.dot(x_dst, wer_ref[...], preferred_element_type=jnp.float32)   # (Bn, H)
    res = jnp.dot(x_dst, wres_ref[...], preferred_element_type=jnp.float32) # (Bn, H*D)

    edge_mask = adjt_ref[...] != 0.0                                      # (Bn, N): edge u->v
    neg = jnp.float32(-1e30)
    scale = scale_ref[...]                                                # (1, H*D)
    shift = shift_ref[...]                                                # (1, H*D)

    for h in range(num_heads):
        lo = h * head_dim
        # Attention logits for this head: s[v, u] = LeakyReLU(el[u] + er[v], 0.2).
        s = er[:, h:h + 1] + el_rows[h:h + 1, :]                          # (Bn, N)
        s = jnp.where(s >= 0, s, 0.2 * s)
        s = jnp.where(edge_mask, s, neg)
        # Masked softmax over incoming edges (zero in-degree -> all-zero weights).
        m = jnp.max(s, axis=-1, keepdims=True)
        p = jnp.where(edge_mask, jnp.exp(s - m), 0.0)
        denom = jnp.sum(p, axis=-1, keepdims=True)
        a = p / jnp.maximum(denom, jnp.float32(1e-30))
        # Message aggregation for this head (MXU).
        agg = jnp.dot(a, feat_src[:, lo:lo + head_dim],
                      preferred_element_type=jnp.float32)                 # (Bn, D)
        # Residual + folded (bias + BatchNorm eval) + fused LeakyReLU(0.01)∘LeakyReLU(0.2).
        y = (agg + res[:, lo:lo + head_dim]) * scale[:, lo:lo + head_dim] \
            + shift[:, lo:lo + head_dim]
        out_ref[:, lo:lo + head_dim] = jnp.where(y >= 0, y, 0.002 * y).astype(out_ref.dtype)


def gat_forward(features, adj, params, *, block_n=128):
    """adj[u, v] != 0  <=>  there is an edge u -> v (messages flow u -> v)."""
    n, f_in = features.shape
    num_heads, head_dim = params["attn_l"].shape
    hd = num_heads * head_dim
    assert params["w_fc"].shape == (f_in, hd)

    # ---- host-side constant folds (done once, outside the kernel) ----
    w_fc = params["w_fc"]
    w_fc_r = w_fc.reshape(f_in, num_heads, head_dim)
    w_el = jnp.einsum("fhd,hd->fh", w_fc_r, params["attn_l"])             # (F, H)
    w_er = jnp.einsum("fhd,hd->fh", w_fc_r, params["attn_r"])             # (F, H)
    w_elt = w_el.T                                                        # (H, F)
    inv_std = jax.lax.rsqrt(params["var"] + EPS)
    scale = params["gamma"] * inv_std                                     # (1, H*D)
    shift = (params["bias"] - params["mean"]) * scale + params["beta"]    # (1, H*D)

    # ---- pad node count to a multiple of block_n (padded rows have no edges) ----
    n_pad = block_n * pl.cdiv(n, block_n)
    pad = n_pad - n
    x = jnp.pad(features, ((0, pad), (0, 0)))
    adj_t = jnp.pad(adj.T, ((0, pad), (0, pad)))                          # (dst, src)
    xt = x.T                                                              # (F, N_pad)

    const = lambda j: (0, 0)
    kernel = functools.partial(gat_kernel, num_heads=num_heads,
                               head_dim=head_dim, block_n=block_n)
    out = pl.pallas_call(
        kernel,
        out_shape=jax.ShapeDtypeStruct((n_pad, hd), features.dtype),
        grid_spec=pl.GridSpec(
            grid=(n_pad // block_n,),
            in_specs=[
                pl.BlockSpec((n_pad, f_in), const),                 # X (all nodes, resident)
                pl.BlockSpec((f_in, n_pad), const),                 # X^T (lane-major node axis)
                pl.BlockSpec((block_n, n_pad), lambda j: (j, 0)),   # adj^T tile (dst rows)
                pl.BlockSpec((f_in, hd), const),                    # W_fc
                pl.BlockSpec((num_heads, f_in), const),             # W_el^T (attn_l folded)
                pl.BlockSpec((f_in, num_heads), const),             # W_er   (attn_r folded)
                pl.BlockSpec((f_in, hd), const),                    # W_res
                pl.BlockSpec((1, hd), const),                       # BN scale (folded)
                pl.BlockSpec((1, hd), const),                       # BN shift + bias (folded)
            ],
            out_specs=pl.BlockSpec((block_n, hd), lambda j: (j, 0)),
        ),
        compiler_params=pltpu.CompilerParams(
            dimension_semantics=("parallel",)),
    )(x, xt, adj_t, w_fc, w_elt, w_er, params["w_res"], scale, shift)
    return out[:n]


def init_params(key, in_feats, out_feats, num_heads):
    head_dim = out_feats // num_heads
    hd = num_heads * head_dim
    ks = jax.random.split(key, 9)
    gain = jnp.sqrt(2.0)
    std_fc = gain * jnp.sqrt(2.0 / (in_feats + hd))
    std_attn = gain * jnp.sqrt(2.0 / (head_dim + hd))
    return {
        "w_fc":   std_fc * jax.random.normal(ks[0], (in_feats, hd), jnp.float32),
        "attn_l": std_attn * jax.random.normal(ks[1], (num_heads, head_dim), jnp.float32),
        "attn_r": std_attn * jax.random.normal(ks[2], (num_heads, head_dim), jnp.float32),
        "w_res":  std_fc * jax.random.normal(ks[3], (in_feats, hd), jnp.float32),
        "bias":   jax.random.uniform(ks[4], (1, hd), jnp.float32, -0.1, 0.1),
        "gamma":  jax.random.uniform(ks[5], (1, hd), jnp.float32, 0.5, 1.5),
        "beta":   jax.random.uniform(ks[6], (1, hd), jnp.float32, -0.1, 0.1),
        "mean":   jax.random.uniform(ks[7], (1, hd), jnp.float32, -0.5, 0.5),
        "var":    jax.random.uniform(ks[8], (1, hd), jnp.float32, 0.5, 1.5),
    }


def gat_reference(features, adj, params):
    """Pure-JAX reference mirroring the PyTorch/DGL eval-mode forward."""
    num_heads, head_dim = params["attn_l"].shape
    hd = num_heads * head_dim
    feat = (features @ params["w_fc"]).reshape(-1, num_heads, head_dim)   # (N, H, D)
    el = jnp.einsum("nhd,hd->nh", feat, params["attn_l"])
    er = jnp.einsum("nhd,hd->nh", feat, params["attn_r"])
    e = el[:, None, :] + er[None, :, :]                                   # (src, dst, H)
    e = jnp.where(e >= 0, e, 0.2 * e)                                     # LeakyReLU(0.2)
    mask = (adj > 0)[:, :, None]
    e = jnp.where(mask, e, -1e30)
    p = jnp.where(mask, jnp.exp(e - jnp.max(e, axis=0, keepdims=True)), 0.0)
    a = p / jnp.maximum(jnp.sum(p, axis=0, keepdims=True), 1e-30)         # edge softmax by dst
    agg = jnp.einsum("uvh,uhd->vhd", a, feat).reshape(-1, hd)
    rst = agg + features @ params["w_res"] + params["bias"]
    rst = (rst - params["mean"]) * (params["gamma"] / jnp.sqrt(params["var"] + EPS)) \
        + params["beta"]
    rst = jnp.where(rst >= 0, rst, 0.01 * rst)                            # GATConv activation
    return jnp.where(rst >= 0, rst, 0.2 * rst)                            # GAT outer LeakyReLU


if __name__ == "__main__":
    in_feats = 128
    out_feats = 128         # = num_heads * head_dim (lane-dense output)
    num_heads = 4
    n_nodes = 200           # not a multiple of 128 on purpose (exercises padding)

    key = jax.random.PRNGKey(0)
    k_feat, k_adj, k_param = jax.random.split(key, 3)
    features = jax.random.normal(k_feat, (n_nodes, in_feats), jnp.float32)
    adj = (jax.random.uniform(k_adj, (n_nodes, n_nodes)) < 0.05).astype(jnp.float32)
    adj = jnp.maximum(adj, jnp.eye(n_nodes, dtype=jnp.float32))   # self-loops
    params = init_params(k_param, in_feats, out_feats, num_heads)

    out = gat_forward(features, adj, params, block_n=128)
    out = jax.block_until_ready(out)

    ref = gat_reference(features, adj, params)
    assert out.shape == (n_nodes, out_feats)
    err = float(jnp.max(jnp.abs(out - ref)))
    assert jnp.allclose(out, ref, atol=1e-3, rtol=1e-3), err

    print("KERNEL_OK")
</pallas_src>

<mosaic_0001>
module attributes {stable_mosaic.version = 11 : i64} {
  func.func @gat_kernel(%arg0: i32, %arg1: memref<256x128xf32, #tpu.memory_space<vmem>>, %arg2: memref<128x256xf32, #tpu.memory_space<vmem>>, %arg3: memref<128x256xf32, #tpu.memory_space<vmem>>, %arg4: memref<128x128xf32, #tpu.memory_space<vmem>>, %arg5: memref<4x128xf32, #tpu.memory_space<vmem>>, %arg6: memref<128x4xf32, #tpu.memory_space<vmem>>, %arg7: memref<128x128xf32, #tpu.memory_space<vmem>>, %arg8: memref<1x128xf32, #tpu.memory_space<vmem>>, %arg9: memref<1x128xf32, #tpu.memory_space<vmem>>, %arg10: memref<128x128xf32, #tpu.memory_space<vmem>>) attributes {dimension_semantics = [#tpu.dimension_semantics<parallel>], iteration_bounds = array<i64: 2>, scalar_prefetch = 0 : i64, scratch_operands = 0 : i64, tpu.core_type = #tpu.core_type<tc>, window_params = [{pipeline_mode = #tpu.pipeline_mode<synchronous>, transform_indices = @transform_0, window_bounds = array<i64: 256, 128>}, {pipeline_mode = #tpu.pipeline_mode<synchronous>, transform_indices = @transform_1, window_bounds = array<i64: 128, 256>}, {transform_indices = @transform_2, window_bounds = array<i64: 128, 256>}, {pipeline_mode = #tpu.pipeline_mode<synchronous>, transform_indices = @transform_3, window_bounds = array<i64: 128, 128>}, {pipeline_mode = #tpu.pipeline_mode<synchronous>, transform_indices = @transform_4, window_bounds = array<i64: 4, 128>}, {pipeline_mode = #tpu.pipeline_mode<synchronous>, transform_indices = @transform_5, window_bounds = array<i64: 128, 4>}, {pipeline_mode = #tpu.pipeline_mode<synchronous>, transform_indices = @transform_6, window_bounds = array<i64: 128, 128>}, {pipeline_mode = #tpu.pipeline_mode<synchronous>, transform_indices = @transform_7, window_bounds = array<i64: 1, 128>}, {pipeline_mode = #tpu.pipeline_mode<synchronous>, transform_indices = @transform_8, window_bounds = array<i64: 1, 128>}, {transform_indices = @transform_9, window_bounds = array<i64: 128, 128>}]} {
    %c128_i32 = arith.constant 128 : i32
    %0 = arith.muli %arg0, %c128_i32 : i32
    %1 = tpu.assume_multiple %0, 128 : i32
    %c0 = arith.constant 0 : index
    %c0_0 = arith.constant 0 : index
    %2 = vector.load %arg1[%c0, %c0_0] : memref<256x128xf32, #tpu.memory_space<vmem>>, vector<256x128xf32>
    %c0_1 = arith.constant 0 : index
    %c0_2 = arith.constant 0 : index
    %3 = vector.load %arg4[%c0_1, %c0_2] : memref<128x128xf32, #tpu.memory_space<vmem>>, vector<128x128xf32>
    %cst = arith.constant dense<0.000000e+00> : vector<256x128xf32>
    %4 = tpu.matmul %2, %3, %cst {dimension_numbers = #tpu.dot_dimension_numbers<[1], [0], [0], [1], [0, 0, 1, 1], [], []>} : vector<256x128xf32>, vector<128x128xf32>, vector<256x128xf32> -> vector<256x128xf32>
    %c0_3 = arith.constant 0 : index
    %c0_4 = arith.constant 0 : index
    %5 = vector.load %arg5[%c0_3, %c0_4] : memref<4x128xf32, #tpu.memory_space<vmem>>, vector<4x128xf32>
    %c0_5 = arith.constant 0 : index
    %c0_6 = arith.constant 0 : index
    %6 = vector.load %arg2[%c0_5, %c0_6] : memref<128x256xf32, #tpu.memory_space<vmem>>, vector<128x256xf32>
    %cst_7 = arith.constant dense<0.000000e+00> : vector<4x256xf32>
    %7 = tpu.matmul %5, %6, %cst_7 {dimension_numbers = #tpu.dot_dimension_numbers<[1], [0], [0], [1], [0, 0, 1, 1], [], []>} : vector<4x128xf32>, vector<128x256xf32>, vector<4x256xf32> -> vector<4x256xf32>
    %8 = arith.index_cast %1 : i32 to index
    %c0_8 = arith.constant 0 : index
    %9 = vector.load %arg1[%8, %c0_8] : memref<256x128xf32, #tpu.memory_space<vmem>>, vector<128x128xf32>
    %c0_9 = arith.constant 0 : index
    %c0_10 = arith.constant 0 : index
    %10 = vector.load %arg6[%c0_9, %c0_10] : memref<128x4xf32, #tpu.memory_space<vmem>>, vector<128x4xf32>
    %cst_11 = arith.constant dense<0.000000e+00> : vector<128x4xf32>
    %11 = tpu.matmul %9, %10, %cst_11 {dimension_numbers = #tpu.dot_dimension_numbers<[1], [0], [0], [1], [0, 0, 1, 1], [], []>} : vector<128x128xf32>, vector<128x4xf32>, vector<128x4xf32> -> vector<128x4xf32>
    %c0_12 = arith.constant 0 : index
    %c0_13 = arith.constant 0 : index
    %12 = vector.load %arg7[%c0_12, %c0_13] : memref<128x128xf32, #tpu.memory_space<vmem>>, vector<128x128xf32>
    %cst_14 = arith.constant dense<0.000000e+00> : vector<128x128xf32>
    %13 = tpu.matmul %9, %12, %cst_14 {dimension_numbers = #tpu.dot_dimension_numbers<[1], [0], [0], [1], [0, 0, 1, 1], [], []>} : vector<128x128xf32>, vector<128x128xf32>, vector<128x128xf32> -> vector<128x128xf32>
    %c0_15 = arith.constant 0 : index
    %c0_16 = arith.constant 0 : index
    %14 = vector.load %arg3[%c0_15, %c0_16] : memref<128x256xf32, #tpu.memory_space<vmem>>, vector<128x256xf32>
    %cst_17 = arith.constant 0.000000e+00 : f32
    %15 = vector.broadcast %cst_17 : f32 to vector<128x256xf32>
    %16 = arith.cmpf one, %14, %15 : vector<128x256xf32>
    %c0_18 = arith.constant 0 : index
    %c0_19 = arith.constant 0 : index
    %17 = vector.load %arg8[%c0_18, %c0_19] : memref<1x128xf32, #tpu.memory_space<vmem>>, vector<1x128xf32>
    %c0_20 = arith.constant 0 : index
    %c0_21 = arith.constant 0 : index
    %18 = vector.load %arg9[%c0_20, %c0_21] : memref<1x128xf32, #tpu.memory_space<vmem>>, vector<1x128xf32>
    %19 = vector.extract_strided_slice %11 {offsets = [0, 0], sizes = [128, 1], strides = [1, 1]} : vector<128x4xf32> to vector<128x1xf32>
    %20 = vector.extract_strided_slice %7 {offsets = [0, 0], sizes = [1, 256], strides = [1, 1]} : vector<4x256xf32> to vector<1x256xf32>
    %21 = vector.broadcast %19 : vector<128x1xf32> to vector<128x256xf32>
    %22 = vector.broadcast %20 : vector<1x256xf32> to vector<128x256xf32>
    %23 = arith.addf %21, %22 : vector<128x256xf32>
    %cst_22 = arith.constant 0.000000e+00 : f32
    %24 = vector.broadcast %cst_22 : f32 to vector<128x256xf32>
    %25 = arith.cmpf oge, %23, %24 : vector<128x256xf32>
    %cst_23 = arith.constant 2.000000e-01 : f32
    %26 = vector.broadcast %cst_23 : f32 to vector<128x256xf32>
    %27 = arith.mulf %26, %23 : vector<128x256xf32>
    %28 = arith.select %25, %23, %27 : vector<128x256xi1>, vector<128x256xf32>
    %cst_24 = arith.constant -1.000000e+30 : f32
    %29 = vector.broadcast %cst_24 : f32 to vector<128x256xf32>
    %30 = arith.select %16, %28, %29 : vector<128x256xi1>, vector<128x256xf32>
    %cst_25 = arith.constant dense<0xFF800000> : vector<128xf32>
    %31 = vector.multi_reduction <maximumf>, %30, %cst_25 [1] : vector<128x256xf32> to vector<128xf32>
    %32 = vector.shape_cast %31 : vector<128xf32> to vector<128x1xf32>
    %33 = vector.broadcast %32 : vector<128x1xf32> to vector<128x256xf32>
    %34 = arith.subf %30, %33 : vector<128x256xf32>
    %35 = math.exp %34 : vector<128x256xf32>
    %cst_26 = arith.constant 0.000000e+00 : f32
    %36 = vector.broadcast %cst_26 : f32 to vector<128x256xf32>
    %37 = arith.select %16, %35, %36 : vector<128x256xi1>, vector<128x256xf32>
    %cst_27 = arith.constant dense<0.000000e+00> : vector<128xf32>
    %38 = vector.multi_reduction <add>, %37, %cst_27 [1] : vector<128x256xf32> to vector<128xf32>
    %39 = vector.shape_cast %38 : vector<128xf32> to vector<128x1xf32>
    %cst_28 = arith.constant 1.000000e-30 : f32
    %40 = vector.broadcast %cst_28 : f32 to vector<128x1xf32>
    %41 = arith.maximumf %39, %40 : vector<128x1xf32>
    %42 = vector.broadcast %41 : vector<128x1xf32> to vector<128x256xf32>
    %43 = arith.divf %37, %42 : vector<128x256xf32>
    %44 = vector.extract_strided_slice %4 {offsets = [0, 0], sizes = [256, 32], strides = [1, 1]} : vector<256x128xf32> to vector<256x32xf32>
    %cst_29 = arith.constant dense<0.000000e+00> : vector<128x32xf32>
    %45 = tpu.matmul %43, %44, %cst_29 {dimension_numbers = #tpu.dot_dimension_numbers<[1], [0], [0], [1], [0, 0, 1, 1], [], []>} : vector<128x256xf32>, vector<256x32xf32>, vector<128x32xf32> -> vector<128x32xf32>
    %46 = vector.extract_strided_slice %13 {offsets = [0, 0], sizes = [128, 32], strides = [1, 1]} : vector<128x128xf32> to vector<128x32xf32>
    %47 = arith.addf %45, %46 : vector<128x32xf32>
    %48 = vector.extract_strided_slice %17 {offsets = [0, 0], sizes = [1, 32], strides = [1, 1]} : vector<1x128xf32> to vector<1x32xf32>
    %49 = vector.broadcast %48 : vector<1x32xf32> to vector<128x32xf32>
    %50 = arith.mulf %47, %49 : vector<128x32xf32>
    %51 = vector.extract_strided_slice %18 {offsets = [0, 0], sizes = [1, 32], strides = [1, 1]} : vector<1x128xf32> to vector<1x32xf32>
    %52 = vector.broadcast %51 : vector<1x32xf32> to vector<128x32xf32>
    %53 = arith.addf %50, %52 : vector<128x32xf32>
    %cst_30 = arith.constant 0.000000e+00 : f32
    %54 = vector.broadcast %cst_30 : f32 to vector<128x32xf32>
    %55 = arith.cmpf oge, %53, %54 : vector<128x32xf32>
    %cst_31 = arith.constant 2.000000e-03 : f32
    %56 = vector.broadcast %cst_31 : f32 to vector<128x32xf32>
    %57 = arith.mulf %56, %53 : vector<128x32xf32>
    %58 = arith.select %55, %53, %57 : vector<128x32xi1>, vector<128x32xf32>
    %c0_32 = arith.constant 0 : index
    %c0_33 = arith.constant 0 : index
    %59 = vector.load %arg10[%c0_32, %c0_33] : memref<128x128xf32, #tpu.memory_space<vmem>>, vector<128x32xf32>
    tpu.vector_store %arg10[%c0_32, %c0_33], %58 {strides = array<i32>} : memref<128x128xf32, #tpu.memory_space<vmem>>, vector<128x32xf32>,
    %60 = vector.extract_strided_slice %11 {offsets = [0, 1], sizes = [128, 1], strides = [1, 1]} : vector<128x4xf32> to vector<128x1xf32>
    %61 = vector.extract_strided_slice %7 {offsets = [1, 0], sizes = [1, 256], strides = [1, 1]} : vector<4x256xf32> to vector<1x256xf32>
    %62 = vector.broadcast %60 : vector<128x1xf32> to vector<128x256xf32>
    %63 = vector.broadcast %61 : vector<1x256xf32> to vector<128x256xf32>
    %64 = arith.addf %62, %63 : vector<128x256xf32>
    %cst_34 = arith.constant 0.000000e+00 : f32
    %65 = vector.broadcast %cst_34 : f32 to vector<128x256xf32>
    %66 = arith.cmpf oge, %64, %65 : vector<128x256xf32>
    %cst_35 = arith.constant 2.000000e-01 : f32
    %67 = vector.broadcast %cst_35 : f32 to vector<128x256xf32>
    %68 = arith.mulf %67, %64 : vector<128x256xf32>
    %69 = arith.select %66, %64, %68 : vector<128x256xi1>, vector<128x256xf32>
    %cst_36 = arith.constant -1.000000e+30 : f32
    %70 = vector.broadcast %cst_36 : f32 to vector<128x256xf32>
    %71 = arith.select %16, %69, %70 : vector<128x256xi1>, vector<128x256xf32>
    %cst_37 = arith.constant dense<0xFF800000> : vector<128xf32>
    %72 = vector.multi_reduction <maximumf>, %71, %cst_37 [1] : vector<128x256xf32> to vector<128xf32>
    %73 = vector.shape_cast %72 : vector<128xf32> to vector<128x1xf32>
    %74 = vector.broadcast %73 : vector<128x1xf32> to vector<128x256xf32>
    %75 = arith.subf %71, %74 : vector<128x256xf32>
    %76 = math.exp %75 : vector<128x256xf32>
    %cst_38 = arith.constant 0.000000e+00 : f32
    %77 = vector.broadcast %cst_38 : f32 to vector<128x256xf32>
    %78 = arith.select %16, %76, %77 : vector<128x256xi1>, vector<128x256xf32>
    %cst_39 = arith.constant dense<0.000000e+00> : vector<128xf32>
    %79 = vector.multi_reduction <add>, %78, %cst_39 [1] : vector<128x256xf32> to vector<128xf32>
    %80 = vector.shape_cast %79 : vector<128xf32> to vector<128x1xf32>
    %cst_40 = arith.constant 1.000000e-30 : f32
    %81 = vector.broadcast %cst_40 : f32 to vector<128x1xf32>
    %82 = arith.maximumf %80, %81 : vector<128x1xf32>
    %83 = vector.broadcast %82 : vector<128x1xf32> to vector<128x256xf32>
    %84 = arith.divf %78, %83 : vector<128x256xf32>
    %85 = vector.extract_strided_slice %4 {offsets = [0, 32], sizes = [256, 32], strides = [1, 1]} : vector<256x128xf32> to vector<256x32xf32>
    %cst_41 = arith.constant dense<0.000000e+00> : vector<128x32xf32>
    %86 = tpu.matmul %84, %85, %cst_41 {dimension_numbers = #tpu.dot_dimension_numbers<[1], [0], [0], [1], [0, 0, 1, 1], [], []>} : vector<128x256xf32>, vector<256x32xf32>, vector<128x32xf32> -> vector<128x32xf32>
    %87 = vector.extract_strided_slice %13 {offsets = [0, 32], sizes = [128, 32], strides = [1, 1]} : vector<128x128xf32> to vector<128x32xf32>
    %88 = arith.addf %86, %87 : vector<128x32xf32>
    %89 = vector.extract_strided_slice %17 {offsets = [0, 32], sizes = [1, 32], strides = [1, 1]} : vector<1x128xf32> to vector<1x32xf32>
    %90 = vector.broadcast %89 : vector<1x32xf32> to vector<128x32xf32>
    %91 = arith.mulf %88, %90 : vector<128x32xf32>
    %92 = vector.extract_strided_slice %18 {offsets = [0, 32], sizes = [1, 32], strides = [1, 1]} : vector<1x128xf32> to vector<1x32xf32>
    %93 = vector.broadcast %92 : vector<1x32xf32> to vector<128x32xf32>
    %94 = arith.addf %91, %93 : vector<128x32xf32>
    %cst_42 = arith.constant 0.000000e+00 : f32
    %95 = vector.broadcast %cst_42 : f32 to vector<128x32xf32>
    %96 = arith.cmpf oge, %94, %95 : vector<128x32xf32>
    %cst_43 = arith.constant 2.000000e-03 : f32
    %97 = vector.broadcast %cst_43 : f32 to vector<128x32xf32>
    %98 = arith.mulf %97, %94 : vector<128x32xf32>
    %99 = arith.select %96, %94, %98 : vector<128x32xi1>, vector<128x32xf32>
    %c0_44 = arith.constant 0 : index
    %c32 = arith.constant 32 : index
    %100 = vector.load %arg10[%c0_44, %c32] : memref<128x128xf32, #tpu.memory_space<vmem>>, vector<128x32xf32>
    tpu.vector_store %arg10[%c0_44, %c32], %99 {strides = array<i32>} : memref<128x128xf32, #tpu.memory_space<vmem>>, vector<128x32xf32>,
    %101 = vector.extract_strided_slice %11 {offsets = [0, 2], sizes = [128, 1], strides = [1, 1]} : vector<128x4xf32> to vector<128x1xf32>
    %102 = vector.extract_strided_slice %7 {offsets = [2, 0], sizes = [1, 256], strides = [1, 1]} : vector<4x256xf32> to vector<1x256xf32>
    %103 = vector.broadcast %101 : vector<128x1xf32> to vector<128x256xf32>
    %104 = vector.broadcast %102 : vector<1x256xf32> to vector<128x256xf32>
    %105 = arith.addf %103, %104 : vector<128x256xf32>
    %cst_45 = arith.constant 0.000000e+00 : f32
    %106 = vector.broadcast %cst_45 : f32 to vector<128x256xf32>
    %107 = arith.cmpf oge, %105, %106 : vector<128x256xf32>
    %cst_46 = arith.constant 2.000000e-01 : f32
    %108 = vector.broadcast %cst_46 : f32 to vector<128x256xf32>
    %109 = arith.mulf %108, %105 : vector<128x256xf32>
    %110 = arith.select %107, %105, %109 : vector<128x256xi1>, vector<128x256xf32>
    %cst_47 = arith.constant -1.000000e+30 : f32
    %111 = vector.broadcast %cst_47 : f32 to vector<128x256xf32>
    %112 = arith.select %16, %110, %111 : vector<128x256xi1>, vector<128x256xf32>
    %cst_48 = arith.constant dense<0xFF800000> : vector<128xf32>
    %113 = vector.multi_reduction <maximumf>, %112, %cst_48 [1] : vector<128x256xf32> to vector<128xf32>
    %114 = vector.shape_cast %113 : vector<128xf32> to vector<128x1xf32>
    %115 = vector.broadcast %114 : vector<128x1xf32> to vector<128x256xf32>
    %116 = arith.subf %112, %115 : vector<128x256xf32>
    %117 = math.exp %116 : vector<128x256xf32>
    %cst_49 = arith.constant 0.000000e+00 : f32
    %118 = vector.broadcast %cst_49 : f32 to vector<128x256xf32>
    %119 = arith.select %16, %117, %118 : vector<128x256xi1>, vector<128x256xf32>
    %cst_50 = arith.constant dense<0.000000e+00> : vector<128xf32>
    %120 = vector.multi_reduction <add>, %119, %cst_50 [1] : vector<128x256xf32> to vector<128xf32>
    %121 = vector.shape_cast %120 : vector<128xf32> to vector<128x1xf32>
    %cst_51 = arith.constant 1.000000e-30 : f32
    %122 = vector.broadcast %cst_51 : f32 to vector<128x1xf32>
    %123 = arith.maximumf %121, %122 : vector<128x1xf32>
    %124 = vector.broadcast %123 : vector<128x1xf32> to vector<128x256xf32>
    %125 = arith.divf %119, %124 : vector<128x256xf32>
    %126 = vector.extract_strided_slice %4 {offsets = [0, 64], sizes = [256, 32], strides = [1, 1]} : vector<256x128xf32> to vector<256x32xf32>
    %cst_52 = arith.constant dense<0.000000e+00> : vector<128x32xf32>
    %127 = tpu.matmul %125, %126, %cst_52 {dimension_numbers = #tpu.dot_dimension_numbers<[1], [0], [0], [1], [0, 0, 1, 1], [], []>} : vector<128x256xf32>, vector<256x32xf32>, vector<128x32xf32> -> vector<128x32xf32>
    %128 = vector.extract_strided_slice %13 {offsets = [0, 64], sizes = [128, 32], strides = [1, 1]} : vector<128x128xf32> to vector<128x32xf32>
    %129 = arith.addf %127, %128 : vector<128x32xf32>
    %130 = vector.extract_strided_slice %17 {offsets = [0, 64], sizes = [1, 32], strides = [1, 1]} : vector<1x128xf32> to vector<1x32xf32>
    %131 = vector.broadcast %130 : vector<1x32xf32> to vector<128x32xf32>
    %132 = arith.mulf %129, %131 : vector<128x32xf32>
    %133 = vector.extract_strided_slice %18 {offsets = [0, 64], sizes = [1, 32], strides = [1, 1]} : vector<1x128xf32> to vector<1x32xf32>
    %134 = vector.broadcast %133 : vector<1x32xf32> to vector<128x32xf32>
    %135 = arith.addf %132, %134 : vector<128x32xf32>
    %cst_53 = arith.constant 0.000000e+00 : f32
    %136 = vector.broadcast %cst_53 : f32 to vector<128x32xf32>
    %137 = arith.cmpf oge, %135, %136 : vector<128x32xf32>
    %cst_54 = arith.constant 2.000000e-03 : f32
    %138 = vector.broadcast %cst_54 : f32 to vector<128x32xf32>
    %139 = arith.mulf %138, %135 : vector<128x32xf32>
    %140 = arith.select %137, %135, %139 : vector<128x32xi1>, vector<128x32xf32>
    %c0_55 = arith.constant 0 : index
    %c64 = arith.constant 64 : index
    %141 = vector.load %arg10[%c0_55, %c64] : memref<128x128xf32, #tpu.memory_space<vmem>>, vector<128x32xf32>
    tpu.vector_store %arg10[%c0_55, %c64], %140 {strides = array<i32>} : memref<128x128xf32, #tpu.memory_space<vmem>>, vector<128x32xf32>,
    %142 = vector.extract_strided_slice %11 {offsets = [0, 3], sizes = [128, 1], strides = [1, 1]} : vector<128x4xf32> to vector<128x1xf32>
    %143 = vector.extract_strided_slice %7 {offsets = [3, 0], sizes = [1, 256], strides = [1, 1]} : vector<4x256xf32> to vector<1x256xf32>
    %144 = vector.broadcast %142 : vector<128x1xf32> to vector<128x256xf32>
    %145 = vector.broadcast %143 : vector<1x256xf32> to vector<128x256xf32>
    %146 = arith.addf %144, %145 : vector<128x256xf32>
    %cst_56 = arith.constant 0.000000e+00 : f32
    %147 = vector.broadcast %cst_56 : f32 to vector<128x256xf32>
    %148 = arith.cmpf oge, %146, %147 : vector<128x256xf32>
    %cst_57 = arith.constant 2.000000e-01 : f32
    %149 = vector.broadcast %cst_57 : f32 to vector<128x256xf32>
    %150 = arith.mulf %149, %146 : vector<128x256xf32>
    %151 = arith.select %148, %146, %150 : vector<128x256xi1>, vector<128x256xf32>
    %cst_58 = arith.constant -1.000000e+30 : f32
    %152 = vector.broadcast %cst_58 : f32 to vector<128x256xf32>
    %153 = arith.select %16, %151, %152 : vector<128x256xi1>, vector<128x256xf32>
    %cst_59 = arith.constant dense<0xFF800000> : vector<128xf32>
    %154 = vector.multi_reduction <maximumf>, %153, %cst_59 [1] : vector<128x256xf32> to vector<128xf32>
    %155 = vector.shape_cast %154 : vector<128xf32> to vector<128x1xf32>
    %156 = vector.broadcast %155 : vector<128x1xf32> to vector<128x256xf32>
    %157 = arith.subf %153, %156 : vector<128x256xf32>
    %158 = math.exp %157 : vector<128x256xf32>
    %cst_60 = arith.constant 0.000000e+00 : f32
    %159 = vector.broadcast %cst_60 : f32 to vector<128x256xf32>
    %160 = arith.select %16, %158, %159 : vector<128x256xi1>, vector<128x256xf32>
    %cst_61 = arith.constant dense<0.000000e+00> : vector<128xf32>
    %161 = vector.multi_reduction <add>, %160, %cst_61 [1] : vector<128x256xf32> to vector<128xf32>
    %162 = vector.shape_cast %161 : vector<128xf32> to vector<128x1xf32>
    %cst_62 = arith.constant 1.000000e-30 : f32
    %163 = vector.broadcast %cst_62 : f32 to vector<128x1xf32>
    %164 = arith.maximumf %162, %163 : vector<128x1xf32>
    %165 = vector.broadcast %164 : vector<128x1xf32> to vector<128x256xf32>
    %166 = arith.divf %160, %165 : vector<128x256xf32>
    %167 = vector.extract_strided_slice %4 {offsets = [0, 96], sizes = [256, 32], strides = [1, 1]} : vector<256x128xf32> to vector<256x32xf32>
    %cst_63 = arith.constant dense<0.000000e+00> : vector<128x32xf32>
    %168 = tpu.matmul %166, %167, %cst_63 {dimension_numbers = #tpu.dot_dimension_numbers<[1], [0], [0], [1], [0, 0, 1, 1], [], []>} : vector<128x256xf32>, vector<256x32xf32>, vector<128x32xf32> -> vector<128x32xf32>
    %169 = vector.extract_strided_slice %13 {offsets = [0, 96], sizes = [128, 32], strides = [1, 1]} : vector<128x128xf32> to vector<128x32xf32>
    %170 = arith.addf %168, %169 : vector<128x32xf32>
    %171 = vector.extract_strided_slice %17 {offsets = [0, 96], sizes = [1, 32], strides = [1, 1]} : vector<1x128xf32> to vector<1x32xf32>
    %172 = vector.broadcast %171 : vector<1x32xf32> to vector<128x32xf32>
    %173 = arith.mulf %170, %172 : vector<128x32xf32>
    %174 = vector.extract_strided_slice %18 {offsets = [0, 96], sizes = [1, 32], strides = [1, 1]} : vector<1x128xf32> to vector<1x32xf32>
    %175 = vector.broadcast %174 : vector<1x32xf32> to vector<128x32xf32>
    %176 = arith.addf %173, %175 : vector<128x32xf32>
    %cst_64 = arith.constant 0.000000e+00 : f32
    %177 = vector.broadcast %cst_64 : f32 to vector<128x32xf32>
    %178 = arith.cmpf oge, %176, %177 : vector<128x32xf32>
    %cst_65 = arith.constant 2.000000e-03 : f32
    %179 = vector.broadcast %cst_65 : f32 to vector<128x32xf32>
    %180 = arith.mulf %179, %176 : vector<128x32xf32>
    %181 = arith.select %178, %176, %180 : vector<128x32xi1>, vector<128x32xf32>
    %c0_66 = arith.constant 0 : index
    %c96 = arith.constant 96 : index
    %182 = vector.load %arg10[%c0_66, %c96] : memref<128x128xf32, #tpu.memory_space<vmem>>, vector<128x32xf32>
    tpu.vector_store %arg10[%c0_66, %c96], %181 {strides = array<i32>} : memref<128x128xf32, #tpu.memory_space<vmem>>, vector<128x32xf32>,
    return
  }
  func.func @transform_0(%arg0: i32) -> (i32, i32) {
    %c0_i32 = arith.constant 0 : i32
    %c0_i32_0 = arith.constant 0 : i32
    %c0_i32_1 = arith.constant 0 : i32
    return %c0_i32, %c0_i32_0 : i32, i32
  }
  func.func @transform_1(%arg0: i32) -> (i32, i32) {
    %c0_i32 = arith.constant 0 : i32
    %c0_i32_0 = arith.constant 0 : i32
    %c0_i32_1 = arith.constant 0 : i32
    return %c0_i32, %c0_i32_0 : i32, i32
  }
  func.func @transform_2(%arg0: i32) -> (i32, i32) {
    %c0_i32 = arith.constant 0 : i32
    %c0_i32_0 = arith.constant 0 : i32
    return %arg0, %c0_i32 : i32, i32
  }
  func.func @transform_3(%arg0: i32) -> (i32, i32) {
    %c0_i32 = arith.constant 0 : i32
    %c0_i32_0 = arith.constant 0 : i32
    %c0_i32_1 = arith.constant 0 : i32
    return %c0_i32, %c0_i32_0 : i32, i32
  }
  func.func @transform_4(%arg0: i32) -> (i32, i32) {
    %c0_i32 = arith.constant 0 : i32
    %c0_i32_0 = arith.constant 0 : i32
    %c0_i32_1 = arith.constant 0 : i32
    return %c0_i32, %c0_i32_0 : i32, i32
  }
  func.func @transform_5(%arg0: i32) -> (i32, i32) {
    %c0_i32 = arith.constant 0 : i32
    %c0_i32_0 = arith.constant 0 : i32
    %c0_i32_1 = arith.constant 0 : i32
    return %c0_i32, %c0_i32_0 : i32, i32
  }
  func.func @transform_6(%arg0: i32) -> (i32, i32) {
    %c0_i32 = arith.constant 0 : i32
    %c0_i32_0 = arith.constant 0 : i32
    %c0_i32_1 = arith.constant 0 : i32
    return %c0_i32, %c0_i32_0 : i32, i32
  }
  func.func @transform_7(%arg0: i32) -> (i32, i32) {
    %c0_i32 = arith.constant 0 : i32
    %c0_i32_0 = arith.constant 0 : i32
    %c0_i32_1 = arith.constant 0 : i32
    return %c0_i32, %c0_i32_0 : i32, i32
  }
  func.func @transform_8(%arg0: i32) -> (i32, i32) {
    %c0_i32 = arith.constant 0 : i32
    %c0_i32_0 = arith.constant 0 : i32
    %c0_i32_1 = arith.constant 0 : i32
    return %c0_i32, %c0_i32_0 : i32, i32
  }
  func.func @transform_9(%arg0: i32) -> (i32, i32) {
    %c0_i32 = arith.constant 0 : i32
    %c0_i32_0 = arith.constant 0 : i32
    return %arg0, %c0_i32 : i32, i32
  }
}

</mosaic_0001>

<bundles_post_ra>
// kernel: tpu_custom_call.1
= control target key start
LH: loop header
LB: loop body
LE: loop exit
PB: predicated region body
PF: predicated region fallthrough
CT: control target
= control target key end

     0   :  { %s11704_s0 = inlined_call_operand.hbm [shape: f32[256,128], index: 0, kind: input, shape index: {}]   ;;  %s11705_s1 = inlined_call_operand.hbm [shape: f32[128,256], index: 1, kind: input, shape index: {}]   ;;  %s11706_s2 = inlined_call_operand.hbm [shape: f32[256,256], index: 2, kind: input, shape index: {}]   ;;  %s11707_s3 = inlined_call_operand.vmem [shape: f32[128,128], index: 3, kind: input, shape index: {}]   ;;  %s11708_s4 = inlined_call_operand.vmem [shape: f32[4,128], index: 4, kind: input, shape index: {}]   ;;  %s11709_s5 = inlined_call_operand.vmem [shape: f32[128,4], index: 5, kind: input, shape index: {}]   ;;  %s11710_s6 = inlined_call_operand.hbm [shape: f32[128,128], index: 6, kind: input, shape index: {}]   ;;  %s11711_s7 = inlined_call_operand.vmem [shape: f32[1,128], index: 7, kind: input, shape index: {}]   ;;  %s11712_s8 = inlined_call_operand.vmem [shape: f32[1,128], index: 8, kind: input, shape index: {}]   ;;  %s11713_s9 = inlined_call_operand.hbm [shape: f32[256,128], index: 9, kind: output, shape index: {}]  }
   0x1   :  { %12125 = sst [smem:[#allocation226_spill]] %s11704_s0 }
   0x2   :  { %12126 = sst [smem:[#allocation227_spill]] %s11705_s1 }
   0x3   :  { %12127 = sst [smem:[#allocation228_spill]] %s11710_s6 }
   0x4   :  { %14 = vsyncpa [#allocation3], 0 }
   0x5   :  { %15 = vsyncpa [#allocation6], 0 }
   0x6   :  { %16 = vsyncpa [#allocation4], 0 }
   0x7   :  { %18 = vsyncpa [#allocation4 + $0x1], 0  ;;  %s6602_s30 = smov 0   ;;  %s6604_s10 = smov 0  }
   0x8   :  { %s6606_s11 = smov 0   ;;  %s6608_s12 = smov 0  }
   0x9 LB: > { %s6623_s13 = sadd.s32 4294967295, %s6534_s12   ;;  %s5510_s14 = sadd.s32 4294967294, %s6534_s12   ;;  %s6534_s12 = sphi %s6608_s12, %s13139_s12   ;;  %s6530_s11 = sphi %s6606_s11, %s13138_s11   ;;  %s6526_s10 = sphi %s6604_s10, %s13137_s10   ;;  %s6522_s30 = sphi %s6602_s30, %s13136_s30  }
   0xa   : > { %p86_p0 = scmp.ne.s32.totalorder %s6526_s10, %s6522_s30  ;;  %p87_p1 = scmp.eq.s32.totalorder %s6623_s13, 0 }
   0xb   : > { %p236_p2 = scmp.eq.s32.totalorder %s6623_s13, 1  ;;  %p242_p3 = scmp.eq.s32.totalorder %s5510_s14, 1 }
   0xc   : > { %p6632_p4 = por %p87_p1, %p86_p0  ;;  %p5511_p5 = scmp.ge.s32.totalorder %s6534_s12, 1 }
   0xd   : > { %p6637_p6 = por %p242_p3, %p86_p0  ;;  %p249_p7 = scmp.lt.s32.totalorder %s6534_s12, 3 }
   0xe   : > { %s12130_s0 = sld [smem:[#allocation226_spill]]  ;;  %s6536_s21 = smov [#allocation2]  }
   0xf   : > { %p6645_p8 = pnand %p5511_p5, %p249_p7  ;;  %s262_s22 = sshll.u32 %s6536_s21, 4  ;;  %s263_s22 = int_to_ptr.vmem [resolvable:$true] %s262_s22 }
  0x10   : > { %s12133_s1 = sld [smem:[#allocation227_spill]]  ;;  %s6537_s27 = smov 128  }
  0x11   : > { %p5583_p9 = pneg %p6645_p8  ;;  %s6538_s28 = smov 8  }
  0x12   : > { %s6539_s29 = smov [#allocation5]   ;;  %s11714_s17 = smov 256  }
  0x13   : > { %p6653_p10 = pnand %p5583_p9, %p87_p1  ;;  %s276_s14 = sshll.u32 %s6539_s29, 4  ;;  %s277_s14 = int_to_ptr.vmem [resolvable:$true] %s276_s14 }
  0x14   : > { %s260_s19 = sshll.u32 %s12130_s0, 4  ;;  %s11715_s18 = smov 16   ;;  %s261_s19 = int_to_ptr.hbm [resolvable:$true] %s260_s19 }
  0x15   : > { %5586 = dma.hbm_to_vmem [thread:$0]  (!%p6653_p10), %s261_s19, 4096, %s263_s22, [#allocation3], %s6537_s27, %s6537_s27, %s6538_s28  }
  0x16   : > { %s274_s26 = sshll.u32 %s12133_s1, 4  ;;  %s12134_s6 = sld [smem:[#allocation228_spill]]  ;;  %s275_s26 = int_to_ptr.hbm [resolvable:$true] %s274_s26 }
  0x17   : > { %5589 = dma.hbm_to_vmem [thread:$0]  (!%p6653_p10), %s275_s26, 4096, %s277_s14, [#allocation6], %s11714_s17, %s11714_s17, %s11715_s18  }
  0x18   : > { %s6542_s22 = smov [#allocation8]   ;;  %s6674_s29 = sadd.s32 1, %s6534_s12  }
  0x19   : > { %s299_s25 = sshll.u32 %s6542_s22, 4  ;;  %s70_s0 = ssub.s32 %s6534_s12, %s6674_s29  ;;  %s300_s25 = int_to_ptr.vmem [resolvable:$true] %s299_s25 }
  0x1a   : > { %s73_s1 = sadd.s32 1, %s6530_s11  ;;  %p71_p12 = scmp.eq.s32.totalorder %s70_s0, 0 }
  0x1b   : > { %p80_p13 = scmp.ne.s32.totalorder %s6530_s11, %s6526_s10  ;;  %p81_p0 = scmp.eq.s32.totalorder %s6534_s12, 0 }
  0x1c   : > { %s297_s19 = sshll.u32 %s12134_s6, 4  ;;  %p5604_p3 = scmp.lt.s32.totalorder %s6534_s12, 2  ;;  %s298_s19 = int_to_ptr.hbm [resolvable:$true] %s297_s19 }
  0x1d   : > { %5592 = dma.hbm_to_vmem [thread:$0]  (!%p6653_p10), %s298_s19, 2048, %s300_s25, [#allocation6], %s6537_s27, %s6537_s27, %s6538_s28  }
  0x1e   : > { %s6684_s26 = scalar_select %p71_p12, %s6530_s11, %s73_s1  }
  0x1f   : > { %p82_p5 = por %p81_p0, %p80_p13  ;;  %p6688_p7 = por %p236_p2, %p80_p13 }
  0x20   : > { %s319_s23 = sand.u32 1, %s6534_s12   ;;  %s321_s27 = sand.u32 1, %s6530_s11  }
  0x21   : > { %s5516_s28 = sshll.u32 %s321_s27, 8  ;;  %s5533_s21 = sshll.u32 %s6534_s12, 8 }
  0x22   : > { %s329_s0 = scalar_lea.hbm %s11706_s2, %s5533_s21  ;;  %s323_s22 = scalar_lea.vmem [#allocation7], %s5516_s28 }
  0x23   : > { %s332_s25 = sshll.u32 %s323_s22, 4  ;;  %s330_s17 = sshll.u32 %s329_s0, 4  ;;  %s333_s25 = int_to_ptr.vmem [resolvable:$true] %s332_s25  ;;  %s331_s17 = int_to_ptr.hbm [resolvable:$true] %s330_s17 }
  0x24   : > { %p6700_p9 = pnand %p5604_p3, %p82_p5  ;;  %s320_s18 = scalar_lea.sflag [#allocation3], %s319_s23 }
  0x25   : > { %s6426_s6 = sshra.s32 %s331_s17, 4  ;;  %s6433_s24 = scalar_lea.hbm %s11706_s2, 512  ;;  %s6427_s6 = int_to_ptr.hbm [resolvable:$true] %s6426_s6 }
  0x26   : > { %s6428_s27 = scalar_lea.hbm %s6427_s6, 256  ;;  %p6430_p10 = pneg %p6700_p9 }
  0x27   : > { %p6429_p2 = scmp.ne.s32.totalorder %s6427_s6, %s6428_s27  ;;  %p6434_p0 = scmp.lt.s32.totalorder %s6427_s6, %s11706_s2 }
  0x28   : > { %p6435_p3 = scmp.lt.s32.totalorder %s6433_s24, %s6428_s27 }
  0x29   : > { %p6431_p12 = pnand %p6430_p10, %p6429_p2 }
  0x2a   : > { %p6436_p5 = por %p6435_p3, %p6434_p0 }
  0x2b   : > { %p6432_p13 = pneg %p6431_p12 }
  0x2d   : > { %p6437_p11 = pnand %p6436_p5, %p6432_p13 }
  0x2f   : > { %6440 = shalt.err (!%p6437_p11)
}
  0x30   : > { %s12137_s23 = smov 16   ;;  %s12138_s22 = smov 256  }
  0x31   : > { %5596 = dma.hbm_to_vmem [thread:$0]  (!%p6700_p9), %s331_s17, 4096, %s333_s25, %s320_s18, %s12138_s22, %s12138_s22, %s12137_s23  }
  0x32   : > { %344 = sbr.rel (%p6645_p8) target bundleno = 2537 (0x9e9), region = 56 }
  0x37   : > { %6501 = dma.done.wait (%p87_p1), [#allocation3], 4096  }
  0x38   : > { %6503 = vsyncadd (%p87_p1), [#allocation3], 4294963200 }
  0x39   : > { %6505 = dma.done.wait (%p87_p1), [#allocation6], 4096  }
  0x3a   : > { %6507 = vsyncadd (%p87_p1), [#allocation6], 4294963200  ;;  %s356_s6 = sand.u32 1, %s6623_s13   ;;  %s6729_s17 = sand.u32 1, %s6526_s10  }
  0x3b   : > { %s5523_s20 = sshll.u32 %s6729_s17, 8  ;;  %s357_s18 = scalar_lea.sflag [#allocation3], %s356_s6 }
  0x3c   : > { %s6732_s25 = scalar_lea.vmem [#allocation7], %s5523_s20 }
  0x3d   : > { %6509 = dma.done.wait (%p6632_p4), %s357_s18, 4096  }
  0x3e   : > { %6511 = vsyncadd (%p6632_p4), %s357_s18, 4294963200 }
  0x3f   : > { %6513 = dma.done.wait (%p87_p1), [#allocation6], 2048  }
  0x40   : > { %6515 = vsyncadd (%p87_p1), [#allocation6], 4294965248  ;;  %v451_v0 = vld [vmem:[%s11707_s3 + $0x78] sm:$0xff]  ;;  %v596_v1 = vld [vmem:[#allocation5 + $0xf0] sm:$0xff]  ;;  %s5526_s28 = sshll.u32 %s6623_s13, 7  ;;  %s6543_s19 = smov 96  }
  0x41   : > { %v670_v2 = vld [vmem:[%s11709_s5 + $0x78] sm:$0xff]  ;;  %452 = vmatpush.msra.mxu0 %v451_v0  ;;  %598 = vmatpush.msra.mxu1 %v596_v1  ;;  %v450_v3 = vld [vmem:[%s11707_s3 + $0x70] sm:$0xff]  ;;  %v594_v4 = vld [vmem:[#allocation5 + $0xe0] sm:$0xff]  ;;  %s6841_s1 = scalar_lea.vmem [#allocation2], %s5526_s28  ;;  %s5525_s6 = sshll.u32 %s6729_s17, 7 }
  0x42   : > { %v669_v5 = vld [vmem:[%s11709_s5 + $0x70] sm:$0xff]  ;;  %671 = vmatpush.msra.mxu3 %v670_v2  ;;  %v449_v6 = vld [vmem:[%s11707_s3 + $0x68] sm:$0xff]  ;;  %v448_v9 = vld [vmem:[%s11707_s3 + $0x60] sm:$0xff]  ;;  %s6547_s27 = smov 64   ;;  %s6549_s23 = smov 32  }
  0x43   : > { %v592_v7 = vld [vmem:[#allocation5 + $0xd0] sm:$0xff]  ;;  %453 = vmatpush.msra.mxu0 %v450_v3  ;;  %599 = vmatpush.msra.mxu1 %v594_v4  ;;  %v668_v8 = vld [vmem:[%s11709_s5 + $0x68] sm:$0xff]  ;;  %v590_v10 = vld [vmem:[#allocation5 + $0xc0] sm:$0xff]  ;;  %s5392_s15 = scalar_lea.sflag [#allocation4], %s6729_s17  ;;  %s6476_s22 = scalar_lea.hbm %s11713_s9, 256 }
  0x44   : > { %672 = vmatpush.msra.mxu3 %v669_v5  ;;  %v667_v11 = vld [vmem:[%s11709_s5 + $0x60] sm:$0xff]  ;;  %v447_v12 = vld [vmem:[%s11707_s3 + $0x58] sm:$0xff]  ;;  %v588_v13 = vld [vmem:[#allocation5 + $0xb0] sm:$0xff] }
  0x45   : > { %454 = vmatpush.msra.mxu0 %v449_v6  ;;  %600 = vmatpush.msra.mxu1 %v592_v7  ;;  %v666_v14 = vld [vmem:[%s11709_s5 + $0x58] sm:$0xff]  ;;  %v446_v15 = vld [vmem:[%s11707_s3 + $0x50] sm:$0xff]  ;;  %v586_v16 = vld [vmem:[#allocation5 + $0xa0] sm:$0xff] }
  0x46   : > { %673 = vmatpush.msra.mxu3 %v668_v8  ;;  %v665_v17 = vld [vmem:[%s11709_s5 + $0x50] sm:$0xff]  ;;  %v445_v18 = vld [vmem:[%s11707_s3 + $0x48] sm:$0xff]  ;;  %v444_v21 = vld [vmem:[%s11707_s3 + $0x40] sm:$0xff] }
  0x47   : > { %455 = vmatpush.msra.mxu0 %v448_v9  ;;  %601 = vmatpush.msra.mxu1 %v590_v10  ;;  %v584_v19 = vld [vmem:[#allocation5 + $0x90] sm:$0xff]  ;;  %v664_v20 = vld [vmem:[%s11709_s5 + $0x48] sm:$0xff]  ;;  %v582_v22 = vld [vmem:[#allocation5 + $0x80] sm:$0xff] }
  0x48   : > { %674 = vmatpush.msra.mxu3 %v667_v11  ;;  %v663_v23 = vld [vmem:[%s11709_s5 + $0x40] sm:$0xff]  ;;  %v443_v24 = vld [vmem:[%s11707_s3 + $0x38] sm:$0xff]  ;;  %v580_v25 = vld [vmem:[#allocation5 + $0x70] sm:$0xff] }
  0x49   : > { %456 = vmatpush.msra.mxu0 %v447_v12  ;;  %602 = vmatpush.msra.mxu1 %v588_v13  ;;  %v662_v26 = vld [vmem:[%s11709_s5 + $0x38] sm:$0xff]  ;;  %v442_v27 = vld [vmem:[%s11707_s3 + $0x30] sm:$0xff]  ;;  %v578_v28 = vld [vmem:[#allocation5 + $0x60] sm:$0xff] }
  0x4a   : > { %675 = vmatpush.msra.mxu3 %v666_v14  ;;  %v661_v29 = vld [vmem:[%s11709_s5 + $0x30] sm:$0xff]  ;;  %v441_v30 = vld [vmem:[%s11707_s3 + $0x28] sm:$0xff]  ;;  %v440_v33 = vld [vmem:[%s11707_s3 + $0x20] sm:$0xff] }
  0x4b   : > { %457 = vmatpush.msra.mxu0 %v446_v15  ;;  %603 = vmatpush.msra.mxu1 %v586_v16  ;;  %v576_v31 = vld [vmem:[#allocation5 + $0x50] sm:$0xff]  ;;  %v660_v32 = vld [vmem:[%s11709_s5 + $0x28] sm:$0xff]  ;;  %v574_v34 = vld [vmem:[#allocation5 + $0x40] sm:$0xff] }
  0x4c   : > { %676 = vmatpush.msra.mxu3 %v665_v17  ;;  %v659_v35 = vld [vmem:[%s11709_s5 + $0x20] sm:$0xff]  ;;  %v439_v36 = vld [vmem:[%s11707_s3 + $0x18] sm:$0xff]  ;;  %v572_v37 = vld [vmem:[#allocation5 + $0x30] sm:$0xff] }
  0x4d   : > { %458 = vmatpush.msra.mxu0 %v445_v18  ;;  %604 = vmatpush.msra.mxu1 %v584_v19  ;;  %v658_v38 = vld [vmem:[%s11709_s5 + $0x18] sm:$0xff]  ;;  %v438_v39 = vld [vmem:[%s11707_s3 + $0x10] sm:$0xff]  ;;  %v570_v40 = vld [vmem:[#allocation5 + $0x20] sm:$0xff] }
  0x4e   : > { %677 = vmatpush.msra.mxu3 %v664_v20  ;;  %v657_v41 = vld [vmem:[%s11709_s5 + $0x10] sm:$0xff]  ;;  %v437_v42 = vld [vmem:[%s11707_s3 + $0x8] sm:$0xff]  ;;  %v436_v45 = vld [vmem:[%s11707_s3] sm:$0xff] }
  0x4f   : > { %459 = vmatpush.msra.mxu0 %v444_v21  ;;  %605 = vmatpush.msra.mxu1 %v582_v22  ;;  %v568_v43 = vld [vmem:[#allocation5 + $0x10] sm:$0xff]  ;;  %v656_v44 = vld [vmem:[%s11709_s5 + $0x8] sm:$0xff]  ;;  %v566_v46 = vld [vmem:[#allocation5] sm:$0xff] }
  0x50   : > { %678 = vmatpush.msra.mxu3 %v663_v23  ;;  %v655_v47 = vld [vmem:[%s11709_s5] sm:$0xff]  ;;  %v751_v50 = vld [vmem:[#allocation8 + $0x78] sm:$0xff]  ;;  %v750_v52 = vld [vmem:[#allocation8 + $0x70] sm:$0xff] }
  0x51   : > { %460 = vmatpush.msra.mxu0 %v443_v24  ;;  %606 = vmatpush.msra.mxu1 %v580_v25  ;;  %v404_v48 = vld [vmem:[#allocation2] sm:$0xff]  ;;  %v749_v53 = vld [vmem:[#allocation8 + $0x68] sm:$0xff]  ;;  %v747_v56 = vld [vmem:[#allocation8 + $0x58] sm:$0xff] }
  0x52   : > { %679 = vmatpush.msra.mxu3 %v662_v26  ;;  %v639_v49 = vld [vmem:[%s6841_s1] sm:$0xff]  ;;  %v405_v55 = vld [vmem:[#allocation2 + $0x8] sm:$0xff]  ;;  %v746_v58 = vld [vmem:[#allocation8 + $0x50] sm:$0xff] }
  0x53   : > { %461 = vmatpush.msra.mxu0 %v442_v27  ;;  %607 = vmatpush.msra.mxu1 %v578_v28  ;;  %v6847_v51 = vld [vmem:[%s11708_s4] sm:$0xf]  ;;  %v640_v57 = vld [vmem:[%s6841_s1 + $0x8] sm:$0xff]  ;;  %v406_v61 = vld [vmem:[#allocation2 + $0x10] sm:$0xff] }
  0x54   : > { %680 = vmatpush.msra.mxu3 %v661_v29  ;;  %v748_v54 = vld [vmem:[#allocation8 + $0x60] sm:$0xff]  ;;  %v745_v59 = vld [vmem:[#allocation8 + $0x48] sm:$0xff]  ;;  %v743_v62 = vld [vmem:[#allocation8 + $0x38] sm:$0xff] }
  0x55   : > { %462 = vmatpush.msra.mxu0 %v441_v30  ;;  %608 = vmatpush.msra.mxu1 %v576_v31  ;;  %v744_v60 = vld [vmem:[#allocation8 + $0x40] sm:$0xff]  ;;  %v641_v63 = vld [vmem:[%s6841_s1 + $0x10] sm:$0xff]  ;;  %v741_v1 = vld [vmem:[#allocation8 + $0x28] sm:$0xff] }
  0x56   : > { %681 = vmatpush.msra.mxu3 %v660_v32  ;;  %v742_v0 = vld [vmem:[#allocation8 + $0x30] sm:$0xff]  ;;  %v740_v2 = vld [vmem:[#allocation8 + $0x20] sm:$0xff]  ;;  %v407_v3 = vld [vmem:[#allocation2 + $0x18] sm:$0xff] }
  0x57   : > { %463 = vmatpush.msra.mxu0 %v440_v33  ;;  %609 = vmatpush.msra.mxu1 %v574_v34  ;;  %v739_v4 = vld [vmem:[#allocation8 + $0x18] sm:$0xff]  ;;  %v738_v6 = vld [vmem:[#allocation8 + $0x10] sm:$0xff]  ;;  %v595_v8 = vld [vmem:[#allocation5 + $0xe8] sm:$0xff] }
  0x58   : > { %682 = vmatpush.msra.mxu3 %v659_v35  ;;  %v642_v5 = vld [vmem:[%s6841_s1 + $0x18] sm:$0xff]  ;;  %v737_v9 = vld [vmem:[#allocation8 + $0x8] sm:$0xff]  ;;  %v736_v11 = vld [vmem:[#allocation8] sm:$0xff] }
  0x59   : > { %464 = vmatpush.msra.mxu0 %v439_v36  ;;  %610 = vmatpush.msra.mxu1 %v572_v37  ;;  %v597_v7 = vld [vmem:[#allocation5 + $0xf8] sm:$0xff]  ;;  %v408_v12 = vld [vmem:[#allocation2 + $0x20] sm:$0xff]  ;;  %v591_v14 = vld [vmem:[#allocation5 + $0xc8] sm:$0xff] }
  0x5a   : > { %683 = vmatpush.msra.mxu3 %v658_v38  ;;  %618 = vmatpush.msra.mxu2 %v597_v7  ;;  %v593_v10 = vld [vmem:[#allocation5 + $0xd8] sm:$0xff]  ;;  %v643_v13 = vld [vmem:[%s6841_s1 + $0x20] sm:$0xff]  ;;  %v587_v16 = vld [vmem:[#allocation5 + $0xa8] sm:$0xff] }
  0x5b   : > { %465 = vmatpush.msra.mxu0 %v438_v39  ;;  %611 = vmatpush.msra.mxu1 %v570_v40  ;;  %v589_v15 = vld [vmem:[#allocation5 + $0xb8] sm:$0xff]  ;;  %v409_v18 = vld [vmem:[#allocation2 + $0x28] sm:$0xff]  ;;  %v410_v24 = vld [vmem:[#allocation2 + $0x30] sm:$0xff] }
  0x5c   : > { %684 = vmatpush.msra.mxu3 %v657_v41  ;;  %619 = vmatpush.msra.mxu2 %v595_v8  ;;  %v585_v17 = vld [vmem:[#allocation5 + $0x98] sm:$0xff]  ;;  %v644_v19 = vld [vmem:[%s6841_s1 + $0x28] sm:$0xff]  ;;  %v645_v25 = vld [vmem:[%s6841_s1 + $0x30] sm:$0xff] }
  0x5d   : > { %466 = vmatpush.msra.mxu0 %v437_v42  ;;  %612 = vmatpush.msra.mxu1 %v568_v43  ;;  %v583_v20 = vld [vmem:[#allocation5 + $0x88] sm:$0xff]  ;;  %v581_v21 = vld [vmem:[#allocation5 + $0x78] sm:$0xff]  ;;  %v412_v33 = vld [vmem:[#allocation2 + $0x40] sm:$0xff]  ;;  %v11718_v42 = vmov 1   ;;  %v11724_v43 = vmov 0  }
  0x5e   : > { %685 = vmatpush.msra.mxu3 %v656_v44  ;;  %620 = vmatpush.msra.mxu2 %v593_v10  ;;  %v579_v22 = vld [vmem:[#allocation5 + $0x68] sm:$0xff]  ;;  %v577_v23 = vld [vmem:[#allocation5 + $0x58] sm:$0xff]  ;;  %v647_v34 = vld [vmem:[%s6841_s1 + $0x40] sm:$0xff] }
  0x5f   : > { %467 = vmatpush.msra.mxu0 %v436_v45  ;;  %613 = vmatpush.msra.mxu1 %v566_v46  ;;  %v575_v26 = vld [vmem:[#allocation5 + $0x48] sm:$0xff]  ;;  %v573_v27 = vld [vmem:[#allocation5 + $0x38] sm:$0xff]  ;;  %v414_v36 = vld [vmem:[#allocation2 + $0x50] sm:$0xff]  ;;  %v11716_v46 = vmov 2  }
  0x60   : > { %686 = vmatpush.msra.mxu3 %v655_v47  ;;  %468 = vmatmul.f32.vlgmr.msra.gmra.mxu0 %v404_v48  ;;  %v571_v28 = vld [vmem:[#allocation5 + $0x28] sm:$0xff]  ;;  %v569_v29 = vld [vmem:[#allocation5 + $0x18] sm:$0xff]  ;;  %v5944_v39 = vld [vmem:[%s11711_s7] ss:$0 sm:$0xff] }
  0x61   : > { %687 = vmatmul.f32.vlgmr.msra.gmra.mxu3 %v639_v49  ;;  %752 = vmatpush.msrb.mxu1 %v751_v50  ;;  %v411_v30 = vld [vmem:[#allocation2 + $0x38] sm:$0xff]  ;;  %v567_v31 = vld [vmem:[#allocation5 + $0x8] sm:$0xff]  ;;  %v416_v40 = vld [vmem:[#allocation2 + $0x60] sm:$0xff] }
  0x62   : > { %614 = vmatmul.f32.vlgmr.msra.gmra.mxu1 %v6847_v51  ;;  %621 = vmatpush.msra.mxu2 %v591_v14  ;;  %v646_v32 = vld [vmem:[%s6841_s1 + $0x38] sm:$0xff]  ;;  %v413_v35 = vld [vmem:[#allocation2 + $0x48] sm:$0xff]  ;;  %v5945_v41 = vld [vmem:[%s11712_s8] ss:$0 sm:$0xff] }
  0x63   : > { %753 = vmatpush.msrb.mxu1 %v750_v52  ;;  %v648_v37 = vld [vmem:[%s6841_s1 + $0x48] sm:$0xff]  ;;  %v415_v38 = vld [vmem:[#allocation2 + $0x58] sm:$0xff]  ;;  %2898 = vrot.lane.b32.xlu2 %v5944_v39, %s6543_s19  ;;  %v649_v44 = vld [vmem:[%s6841_s1 + $0x50] sm:$0xff] }
  0x64   : > { %622 = vmatpush.msra.mxu2 %v589_v15  ;;  %2917 = vrot.lane.b32.xlu1 %v5945_v41, %s6543_s19  ;;  %v417_v45 = vld [vmem:[#allocation2 + $0x68] sm:$0xff]  ;;  %v418_v47 = vld [vmem:[#allocation2 + $0x70] sm:$0xff]  ;;  %v650_v48 = vld [vmem:[%s6841_s1 + $0x58] sm:$0xff] }
  0x65   : > { %754 = vmatpush.msrb.mxu1 %v749_v53  ;;  %5658 = vset.pattern.permute.xlu2 %v11718_v42  ;;  %v651_v50 = vld [vmem:[%s6841_s1 + $0x60] sm:$0xff]  ;;  %v652_v53 = vld [vmem:[%s6841_s1 + $0x68] sm:$0xff]  ;;  %v427_v15 = vld [vmem:[#allocation2 + $0xb8] sm:$0xff] }
  0x66   : > { %623 = vmatpush.msra.mxu2 %v587_v16  ;;  %5657 = vset.pattern.permute.xlu0 %v11724_v43  ;;  %v420_v52 = vld [vmem:[#allocation2 + $0x80] sm:$0xff]  ;;  %v425_v8 = vld [vmem:[#allocation2 + $0xa8] sm:$0xff] }
  0x67   : > { %755 = vmatpush.msrb.mxu1 %v748_v54  ;;  %5666 = vset.pattern.permute.xlu1 %v11716_v46 }
  0x68   : > { %471 = vmatmul.f32.gmra.mxu0 %v405_v55  ;;  %624 = vmatpush.msra.mxu2 %v585_v17 }
  0x69   : > { %756 = vmatpush.msrb.mxu1 %v747_v56  ;;  %690 = vmatmul.f32.gmra.mxu3 %v640_v57  ;;  %v421_v56 = vld [vmem:[#allocation2 + $0x88] sm:$0xff] }
  0x6a   : > { %625 = vmatpush.msra.mxu2 %v583_v20 }
  0x6b   : > { %757 = vmatpush.msrb.mxu1 %v746_v58  ;;  %v653_v58 = vld [vmem:[%s6841_s1 + $0x70] sm:$0xff] }
  0x6c   : > { %626 = vmatpush.msra.mxu2 %v581_v21 }
  0x6d   : > { %758 = vmatpush.msrb.mxu1 %v745_v59 }
  0x6e   : > { %627 = vmatpush.msra.mxu2 %v579_v22 }
  0x6f   : > { %759 = vmatpush.msrb.mxu1 %v744_v60 }
  0x70   : > { %474 = vmatmul.f32.gmra.mxu0 %v406_v61  ;;  %628 = vmatpush.msra.mxu2 %v577_v23  ;;  %v422_v61 = vld [vmem:[#allocation2 + $0x90] sm:$0xff] }
  0x71   : > { %760 = vmatpush.msrb.mxu1 %v743_v62  ;;  %693 = vmatmul.f32.gmra.mxu3 %v641_v63 }
  0x72   : > { %629 = vmatpush.msra.mxu2 %v575_v26 }
  0x73   : > { %761 = vmatpush.msrb.mxu1 %v742_v0  ;;  %v423_v0 = vld [vmem:[#allocation2 + $0x98] sm:$0xff] }
  0x74   : > { %630 = vmatpush.msra.mxu2 %v573_v27 }
  0x75   : > { %762 = vmatpush.msrb.mxu1 %v741_v1 }
  0x76   : > { %631 = vmatpush.msra.mxu2 %v571_v28  ;;  %v430_v28 = vld [vmem:[#allocation2 + $0xd0] sm:$0xff] }
  0x77   : > { %763 = vmatpush.msrb.mxu1 %v740_v2  ;;  %v654_v2 = vld [vmem:[%s6841_s1 + $0x78] sm:$0xff]  ;;  %s9257_s1 = scalar_lea.vmem [#allocation9], %s5525_s6 }
  0x78   : > { %477 = vmatmul.f32.gmra.mxu0 %v407_v3  ;;  %632 = vmatpush.msra.mxu2 %v569_v29  ;;  %s5404_s24 = sshll.u32 %s9257_s1, 4  ;;  %s5405_s24 = int_to_ptr.vmem [resolvable:$true] %s5404_s24 }
  0x79   : > { %764 = vmatpush.msrb.mxu1 %v739_v4  ;;  %696 = vmatmul.f32.gmra.mxu3 %v642_v5 }
  0x7a   : > { %633 = vmatpush.msra.mxu2 %v567_v31  ;;  %v431_v31 = vld [vmem:[#allocation2 + $0xd8] sm:$0xff] }
  0x7b   : > { %765 = vmatpush.msrb.mxu1 %v738_v6  ;;  %634 = vmatmul.f32.vlgmr.msra.gmra.mxu2 %v6847_v51 }
  0x7d   : > { %766 = vmatpush.msrb.mxu1 %v737_v9 }
  0x7f   : > { %767 = vmatpush.msrb.mxu1 %v736_v11 }
  0x80   : > { %768 = vmatmul.f32.vlgmr.msrb.gmra.mxu1 %v639_v49  ;;  %480 = vmatmul.f32.gmra.mxu0 %v408_v12  ;;  %v419_v49 = vld [vmem:[#allocation2 + $0x78] sm:$0xff]  ;;  %v426_v12 = vld [vmem:[#allocation2 + $0xb0] sm:$0xff] }
  0x81   : > { %699 = vmatmul.f32.gmra.mxu3 %v643_v13 }
  0x88   : > { %771 = vmatmul.f32.gmra.mxu1 %v640_v57  ;;  %483 = vmatmul.f32.gmra.mxu0 %v409_v18 }
  0x89   : > { %702 = vmatmul.f32.gmra.mxu3 %v644_v19 }
  0x90   : > { %774 = vmatmul.f32.gmra.mxu1 %v641_v63  ;;  %486 = vmatmul.f32.gmra.mxu0 %v410_v24  ;;  %v429_v24 = vld [vmem:[#allocation2 + $0xc8] sm:$0xff] }
  0x91   : > { %705 = vmatmul.f32.gmra.mxu3 %v645_v25 }
  0x98   : > { %489 = vmatmul.f32.gmra.mxu0 %v411_v30  ;;  %777 = vmatmul.f32.gmra.mxu1 %v642_v5  ;;  %v424_v5 = vld [vmem:[#allocation2 + $0xa0] sm:$0xff] }
  0x99   : > { %708 = vmatmul.f32.gmra.mxu3 %v646_v32 }
  0xa0   : > { %492 = vmatmul.f32.gmra.mxu0 %v412_v33  ;;  %780 = vmatmul.f32.gmra.mxu1 %v643_v13 }
  0xa1   : > { %711 = vmatmul.f32.gmra.mxu3 %v647_v34 }
  0xa8   : > { %495 = vmatmul.f32.gmra.mxu0 %v413_v35  ;;  %783 = vmatmul.f32.gmra.mxu1 %v644_v19  ;;  %v428_v19 = vld [vmem:[#allocation2 + $0xc0] sm:$0xff] }
  0xa9   : > { %714 = vmatmul.f32.gmra.mxu3 %v648_v37 }
  0xb0   : > { %498 = vmatmul.f32.gmra.mxu0 %v414_v36  ;;  %786 = vmatmul.f32.gmra.mxu1 %v645_v25 }
  0xb1   : > { %717 = vmatmul.f32.gmra.mxu3 %v649_v44 }
  0xb8   : > { %501 = vmatmul.f32.gmra.mxu0 %v415_v38  ;;  %789 = vmatmul.f32.gmra.mxu1 %v646_v32  ;;  %v433_v38 = vld [vmem:[#allocation2 + $0xe8] sm:$0xff] }
  0xb9   : > { %720 = vmatmul.f32.gmra.mxu3 %v650_v48 }
  0xc0   : > { %504 = vmatmul.f32.gmra.mxu0 %v416_v40  ;;  %792 = vmatmul.f32.gmra.mxu1 %v647_v34  ;;  %v432_v34 = vld [vmem:[#allocation2 + $0xe0] sm:$0xff] }
  0xc1   : > { %723 = vmatmul.f32.gmra.mxu3 %v651_v50 }
  0xc8   : > { %507 = vmatmul.f32.gmra.mxu0 %v417_v45  ;;  %795 = vmatmul.f32.gmra.mxu1 %v648_v37 }
  0xc9   : > { %726 = vmatmul.f32.gmra.mxu3 %v652_v53 }
  0xd0   : > { %510 = vmatmul.f32.gmra.mxu0 %v418_v47  ;;  %798 = vmatmul.f32.gmra.mxu1 %v649_v44  ;;  %v434_v44 = vld [vmem:[#allocation2 + $0xf0] sm:$0xff] }
  0xd1   : > { %729 = vmatmul.f32.gmra.mxu3 %v653_v58 }
  0xd6   : > { %v7027_v45 = vpop.permute.xlu1 %2917 }
  0xd7   : > { %12177 = vst [vmem:[#allocation53_spill] sm:$0xff] %v7027_v45 }
  0xd8   : > { %513 = vmatmul.f32.gmra.mxu0 %v419_v49  ;;  %801 = vmatmul.f32.gmra.mxu1 %v650_v48 }
  0xd9   : > { %732 = vmatmul.f32.gmra.mxu3 %v654_v2 }
  0xdd   : > { %v6874_v51 = vpop.f32.mrf.mxu0 }
  0xde   : > { %12139 = vst [vmem:[#allocation15_spill] sm:$0xff] %v6874_v51 }
  0xdf   : > { %v6897_v62 = vpop.f32.mrf.mxu1 }
  0xe0   : > { %516 = vmatmul.f32.gmra.mxu0 %v420_v52  ;;  %804 = vmatmul.f32.gmra.mxu1 %v651_v50  ;;  %12145 = vst [vmem:[#allocation21_spill] sm:$0xff] %v6897_v62  ;;  %v435_v50 = vld [vmem:[#allocation2 + $0xf8] sm:$0xff] }
  0xe4   : > { %v6877_v54 = vpop.f32.mrf.mxu3 }
  0xe5   : > { %12140 = vst [vmem:[#allocation16_spill] sm:$0xff] %v6877_v54  ;;  %1855 = vperm.xlu2 %5658, %v6877_v54   ;;  %885 = vperm.xlu0 %5657, %v6877_v54   ;;  %v6881_v55 = vpop.f32.mrf.mxu0 }
  0xe6   : > { %12141 = vst [vmem:[#allocation17_spill] sm:$0xff] %v6881_v55  ;;  %v6885_v57 = vpack.i.bf16 %v6881_v55, %v6874_v51 }
  0xe8   : > { %12142 = vst [vmem:[#allocation18_spill] sm:$0xff] %v6885_v57  ;;  %519 = vmatmul.f32.gmra.mxu0 %v421_v56  ;;  %5661 = vrot.lane.b32.xlu1 %v6885_v57, %s6543_s19 }
  0xe9   : > { %807 = vmatmul.f32.gmra.mxu1 %v652_v53 }
  0xec   : > { %v6890_v59 = vpop.f32.mrf.mxu3 }
  0xed   : > { %12143 = vst [vmem:[#allocation19_spill] sm:$0xff] %v6890_v59  ;;  %5659 = vset.pattern.permute.xlu2 %v11716_v46  ;;  %v6893_v60 = vpop.f32.mrf.mxu0 }
  0xee   : > { %12144 = vst [vmem:[#allocation20_spill] sm:$0xff] %v6893_v60  ;;  %3066 = vperm.xlu2 %5659, %v6877_v54  }
  0xf0   : > { %522 = vmatmul.f32.gmra.mxu0 %v422_v61  ;;  %3070 = vperm.xlu1 %5666, %v6890_v59   ;;  %v7062_v61 = vpop.permute.xlu2 %2898 }
  0xf1   : > { %810 = vmatmul.f32.gmra.mxu1 %v653_v58  ;;  %12184 = vst [vmem:[#allocation60_spill] sm:$0xff] %v7062_v61 }
  0xf4   : > { %v6901_v1 = vpop.f32.mrf.mxu3 }
  0xf5   : > { %v6899_v63 = vpop.f32.mrf.mxu0  ;;  %12147 = vst [vmem:[#allocation23_spill] sm:$0xff] %v6901_v1 }
  0xf6   : > { %12146 = vst [vmem:[#allocation22_spill] sm:$0xff] %v6899_v63  ;;  %5676 = vset.pattern.permute.xlu2 %v11718_v42  ;;  %v6927_v10 = vpack.i.bf16 %v6899_v63, %v6893_v60 }
  0xf8   : > { %525 = vmatmul.f32.gmra.mxu0 %v423_v0  ;;  %5667 = vset.pattern.permute.xlu1 %v11724_v43  ;;  %12153 = vst [vmem:[#allocation29_spill] sm:$0xff] %v6927_v10 }
  0xf9   : > { %895 = vperm.xlu1 %5667, %v6901_v1   ;;  %813 = vmatmul.f32.gmra.mxu1 %v654_v2 }
  0xfc   : > { %v6937_v13 = vpop.f32.mrf.mxu3 }
  0xfd   : > { %v6907_v3 = vpop.f32.mrf.mxu1  ;;  %v6909_v4 = vpop.f32.mrf.mxu0  ;;  %12155 = vst [vmem:[#allocation31_spill] sm:$0xff] %v6937_v13 }
  0xfe   : > { %12148 = vst [vmem:[#allocation24_spill] sm:$0xff] %v6907_v3  ;;  %2720 = vrot.lane.b32.xlu0 %v6907_v3, %s6543_s19  ;;  %v7290_v3 = vld [vmem:[%s6732_s25 + $0x18] sm:$0xff] }
  0xff   : > { %12149 = vst [vmem:[#allocation25_spill] sm:$0xff] %v6909_v4  ;;  %vm11846_vm9 = vcmp.ne.f32.partialorder %v7290_v3, 0.0 }
 0x100   : > { %528 = vmatmul.f32.gmra.mxu0 %v424_v5  ;;  %12232 = vst [vmem:[#allocation105_spill] sm:$0xff] %v7290_v3 }
 0x101   : > { %5668 = vset.pattern.permute.xlu1 %v11718_v42 }
 0x102   : > { %1863 = vperm.xlu1 %5668, %v6901_v1  }
 0x104   : > { %v6947_v17 = vpop.f32.mrf.mxu3 }
 0x105   : > { %v6915_v6 = vpop.f32.mrf.mxu1  ;;  %v6917_v7 = vpop.f32.mrf.mxu0  ;;  %12158 = vst [vmem:[#allocation34_spill] sm:$0xff] %v6947_v17 }
 0x106   : > { %12150 = vst [vmem:[#allocation26_spill] sm:$0xff] %v6915_v6  ;;  %890 = vperm.xlu0 %5657, %v6890_v59   ;;  %2722 = vrot.lane.b32.xlu2 %v6915_v6, %s6543_s19  ;;  %v6966_v23 = vpack.i.bf16 %v6917_v7, %v6909_v4 }
 0x107   : > { %12151 = vst [vmem:[#allocation27_spill] sm:$0xff] %v6917_v7 }
 0x108   : > { %531 = vmatmul.f32.gmra.mxu0 %v425_v8  ;;  %12163 = vst [vmem:[#allocation39_spill] sm:$0xff] %v6966_v23 }
 0x10a   : > { %5675 = vset.pattern.permute.xlu1 %v11724_v43 }
 0x10c   : > { %v6960_v21 = vpop.f32.mrf.mxu3 }
 0x10d   : > { %v6923_v9 = vpop.f32.mrf.mxu1  ;;  %v6929_v11 = vpop.f32.mrf.mxu0  ;;  %12161 = vst [vmem:[#allocation37_spill] sm:$0xff] %v6960_v21 }
 0x10e   : > { %12152 = vst [vmem:[#allocation28_spill] sm:$0xff] %v6923_v9  ;;  %5665 = vset.pattern.permute.xlu0 %v11718_v42  ;;  %2724 = vrot.lane.b32.xlu1 %v6923_v9, %s6543_s19 }
 0x10f   : > { %12154 = vst [vmem:[#allocation30_spill] sm:$0xff] %v6929_v11  ;;  %5671 = vrot.lane.b32.xlu2 %v6927_v10, %s6543_s19  ;;  %1859 = vperm.xlu0 %5665, %v6890_v59   ;;  %v12219_v59 = vmov 2   ;;  %v7287_v10 = vld [vmem:[%s6732_s25 + $0x10] sm:$0xff] }
 0x110   : > { %534 = vmatmul.f32.gmra.mxu0 %v426_v12  ;;  %12231 = vst [vmem:[#allocation104_spill] sm:$0xff] %v7287_v10  ;;  %vm11847_vm8 = vcmp.ne.f32.partialorder %v7287_v10, 0.0 }
 0x114   : > { %v6978_v27 = vpop.f32.mrf.mxu3 }
 0x115   : > { %v6939_v14 = vpop.f32.mrf.mxu0  ;;  %v6945_v16 = vpop.f32.mrf.mxu1  ;;  %12166 = vst [vmem:[#allocation42_spill] sm:$0xff] %v6978_v27 }
 0x116   : > { %12156 = vst [vmem:[#allocation32_spill] sm:$0xff] %v6939_v14  ;;  %900 = vperm.xlu1 %5675, %v6937_v13   ;;  %v7010_v37 = vpack.i.bf16 %v6939_v14, %v6929_v11 }
 0x117   : > { %1867 = vperm.xlu2 %5676, %v6937_v13   ;;  %5669 = vset.pattern.permute.xlu0 %v11716_v46  ;;  %12157 = vst [vmem:[#allocation33_spill] sm:$0xff] %v6945_v16 }
 0x118   : > { %3074 = vperm.xlu0 %5669, %v6901_v1   ;;  %537 = vmatmul.f32.gmra.mxu0 %v427_v15  ;;  %12173 = vst [vmem:[#allocation49_spill] sm:$0xff] %v7010_v37 }
 0x11c   : > { %v6997_v33 = vpop.f32.mrf.mxu3 }
 0x11d   : > { %v6949_v18 = vpop.f32.mrf.mxu0  ;;  %v6958_v20 = vpop.f32.mrf.mxu1  ;;  %12170 = vst [vmem:[#allocation46_spill] sm:$0xff] %v6997_v33 }
 0x11e   : > { %12159 = vst [vmem:[#allocation35_spill] sm:$0xff] %v6949_v18  ;;  %5679 = vset.pattern.permute.xlu1 %v11718_v42 }
 0x11f   : > { %5677 = vset.pattern.permute.xlu2 %v11716_v46  ;;  %1871 = vperm.xlu1 %5679, %v6947_v17   ;;  %12160 = vst [vmem:[#allocation36_spill] sm:$0xff] %v6958_v20 }
 0x120   : > { %3078 = vperm.xlu2 %5677, %v6937_v13   ;;  %2726 = vrot.lane.b32.xlu0 %v6945_v16, %s6543_s19 }
 0x121   : > { %540 = vmatmul.f32.gmra.mxu0 %v428_v19  ;;  %5688 = vset.pattern.permute.xlu0 %v11724_v43 }
 0x124   : > { %v7006_v36 = vpop.f32.mrf.mxu3 }
 0x125   : > { %v6962_v22 = vpop.f32.mrf.mxu0  ;;  %v6974_v25 = vpop.f32.mrf.mxu1  ;;  %12172 = vst [vmem:[#allocation48_spill] sm:$0xff] %v7006_v36 }
 0x126   : > { %12162 = vst [vmem:[#allocation38_spill] sm:$0xff] %v6962_v22  ;;  %v7025_v41 = vpack.i.bf16 %v6962_v22, %v6949_v18 }
 0x127   : > { %5680 = vset.pattern.permute.xlu1 %v11716_v46  ;;  %12164 = vst [vmem:[#allocation40_spill] sm:$0xff] %v6974_v25 }
 0x128   : > { %5678 = vset.pattern.permute.xlu2 %v11724_v43  ;;  %3082 = vperm.xlu1 %5680, %v6947_v17   ;;  %12176 = vst [vmem:[#allocation52_spill] sm:$0xff] %v7025_v41 }
 0x129   : > { %905 = vperm.xlu2 %5678, %v6947_v17   ;;  %5682 = vrot.lane.b32.xlu0 %v6966_v23, %s6543_s19 }
 0x12a   : > { %543 = vmatmul.f32.gmra.mxu0 %v429_v24 }
 0x12c   : > { %v7040_v49 = vpop.f32.mrf.mxu3 }
 0x12d   : > { %v6976_v26 = vpop.f32.mrf.mxu0  ;;  %v6988_v30 = vpop.f32.mrf.mxu1  ;;  %12180 = vst [vmem:[#allocation56_spill] sm:$0xff] %v7040_v49 }
 0x12e   : > { %12165 = vst [vmem:[#allocation41_spill] sm:$0xff] %v6976_v26 }
 0x12f   : > { %12168 = vst [vmem:[#allocation44_spill] sm:$0xff] %v6988_v30 }
 0x130   : > { %2730 = vrot.lane.b32.xlu1 %v6974_v25, %s6543_s19 }
 0x131   : > { %2728 = vrot.lane.b32.xlu2 %v6958_v20, %s6543_s19  ;;  %915 = vperm.xlu0 %5688, %v6978_v27  }
 0x132   : > { %546 = vmatmul.f32.gmra.mxu0 %v430_v28  ;;  %5689 = vset.pattern.permute.xlu1 %v11718_v42 }
 0x134   : > { %v7060_v58 = vpop.f32.mrf.mxu3 }
 0x135   : > { %v6986_v29 = vpop.f32.mrf.mxu0  ;;  %v7017_v39 = vpop.f32.mrf.mxu1  ;;  %12183 = vst [vmem:[#allocation59_spill] sm:$0xff] %v7060_v58 }
 0x136   : > { %12167 = vst [vmem:[#allocation43_spill] sm:$0xff] %v6986_v29 }
 0x137   : > { %12174 = vst [vmem:[#allocation50_spill] sm:$0xff] %v7017_v39 }
 0x138   : > { %1879 = vperm.xlu1 %5689, %v6978_v27  }
 0x139   : > { %910 = vperm.xlu2 %5678, %v6960_v21   ;;  %2732 = vrot.lane.b32.xlu0 %v6988_v30, %s6543_s19 }
 0x13a   : > { %549 = vmatmul.f32.gmra.mxu0 %v431_v31  ;;  %5698 = vset.pattern.permute.xlu0 %v11716_v46 }
 0x13c   : > { %v7082_v8 = vpop.f32.mrf.mxu3 }
 0x13d   : > { %v6995_v32 = vpop.f32.mrf.mxu0  ;;  %v7037_v48 = vpop.f32.mrf.mxu1  ;;  %12187 = vst [vmem:[#allocation63_spill] sm:$0xff] %v7082_v8 }
 0x13e   : > { %12169 = vst [vmem:[#allocation45_spill] sm:$0xff] %v6995_v32 }
 0x13f   : > { %12179 = vst [vmem:[#allocation55_spill] sm:$0xff] %v7037_v48  ;;  %v7084_v12 = vpop.permute.xlu2 %1855 }
 0x140   : > { %5690 = vset.pattern.permute.xlu1 %v11716_v46 }
 0x141   : > { %5686 = vset.pattern.permute.xlu2 %v11718_v42  ;;  %3094 = vperm.xlu0 %5698, %v6997_v33  }
 0x142   : > { %3090 = vperm.xlu1 %5690, %v6978_v27   ;;  %1875 = vperm.xlu2 %5686, %v6960_v21  }
 0x143   : > { %552 = vmatmul.f32.gmra.mxu0 %v432_v34 }
 0x144   : > { %v7108_v34 = vpop.f32.mrf.mxu3 }
 0x145   : > { %v7004_v35 = vpop.f32.mrf.mxu0  ;;  %v7057_v56 = vpop.f32.mrf.mxu1  ;;  %12192 = vst [vmem:[#allocation68_spill] sm:$0xff] %v7108_v34 }
 0x146   : > { %12171 = vst [vmem:[#allocation47_spill] sm:$0xff] %v7004_v35 }
 0x147   : > { %12182 = vst [vmem:[#allocation58_spill] sm:$0xff] %v7057_v56 }
 0x149   : > { %5700 = vset.pattern.permute.xlu0 %v11718_v42 }
 0x14a   : > { %5687 = vset.pattern.permute.xlu2 %v11716_v46  ;;  %1887 = vperm.xlu0 %5700, %v7006_v36  }
 0x14b   : > { %555 = vmatmul.f32.gmra.mxu0 %v433_v38  ;;  %5692 = vrot.lane.b32.xlu1 %v7010_v37, %s6543_s19  ;;  %v7111_v38 = vpop.permute.xlu2 %3066 }
 0x14c   : > { %3086 = vperm.xlu2 %5687, %v6960_v21   ;;  %5696 = vset.pattern.permute.xlu1 %v11724_v43  ;;  %12193 = vst [vmem:[#allocation69_spill] sm:$0xff] %v7111_v38 }
 0x14d   : > { %v7021_v40 = vpop.f32.mrf.mxu0  ;;  %v7091_v19 = vpop.f32.mrf.mxu1 }
 0x14e   : > { %12175 = vst [vmem:[#allocation51_spill] sm:$0xff] %v7021_v40 }
 0x14f   : > { %12189 = vst [vmem:[#allocation65_spill] sm:$0xff] %v7091_v19 }
 0x152   : > { %5703 = vrot.lane.b32.xlu0 %v7025_v41, %s6543_s19  ;;  %v7276_v41 = vld [vmem:[%s6732_s25] sm:$0xff] }
 0x153   : > { %558 = vmatmul.f32.gmra.mxu0 %v434_v44  ;;  %920 = vperm.xlu1 %5696, %v6997_v33   ;;  %12229 = vst [vmem:[#allocation102_spill] sm:$0xff] %v7276_v41  ;;  %vm12071_vm4 = vcmp.ne.f32.partialorder %v7276_v41, 0.0 }
 0x154   : > { %5697 = vset.pattern.permute.xlu2 %v11718_v42  ;;  %5707 = vset.pattern.permute.xlu0 %v11724_v43 }
 0x155   : > { %1883 = vperm.xlu2 %5697, %v6997_v33   ;;  %v7035_v47 = vpop.f32.mrf.mxu0  ;;  %v7114_v44 = vpop.f32.mrf.mxu1 }
 0x156   : > { %12178 = vst [vmem:[#allocation54_spill] sm:$0xff] %v7035_v47  ;;  %1621 = vmatpush.msrb.mxu2 %v7035_v47 }
 0x157   : > { %v7076_v5 = vpop.permute.xlu0 %885  ;;  %12194 = vst [vmem:[#allocation70_spill] sm:$0xff] %v7114_v44 }
 0x158   : > { %1622 = vmatpush.msrb.mxu2 %v7021_v40 }
 0x15a   : > { %930 = vperm.xlu0 %5707, %v7040_v49   ;;  %v7044_v52 = vpop.permute.xlu1 %5661  ;;  %1623 = vmatpush.msrb.mxu2 %v7004_v35 }
 0x15b   : > { %2736 = vrot.lane.b32.xlu1 %v7037_v48, %s6543_s19  ;;  %561 = vmatmul.f32.gmra.mxu0 %v435_v50 }
 0x15c   : > { %1624 = vmatpush.msrb.mxu2 %v6995_v32  ;;  %5708 = vset.pattern.permute.xlu1 %v11718_v42 }
 0x15d   : > { %2734 = vrot.lane.b32.xlu2 %v7017_v39, %s6543_s19  ;;  %v7053_v53 = vpop.f32.mrf.mxu0  ;;  %v7244_v39 = vperm.slane %v6897_v62, 0 }
 0x15e   : > { %12181 = vst [vmem:[#allocation57_spill] sm:$0xff] %v7053_v53  ;;  %1625 = vmatpush.msrb.mxu2 %v6986_v29  ;;  %5699 = vset.pattern.permute.xlu2 %v11724_v43 }
 0x15f   : > { %v965_v23 = vadd.f32 %v7244_v39, %v7076_v5 }
 0x160   : > { %1626 = vmatpush.msrb.mxu2 %v6976_v26 }
 0x161   : > { %v1029_v25 = vmul.f32 0.2, %v965_v23  ;;  %vm997_vm0 = vcmp.ge.f32.partialorder %v965_v23, 0.0 }
 0x162   : > { %2738 = vrot.lane.b32.xlu0 %v7057_v56, %s6543_s19  ;;  %1627 = vmatpush.msrb.mxu2 %v6962_v22  ;;  %v7069_v0 = vpop.permute.xlu1 %3070  ;;  %v7241_v56 = vpop.f32.mrf.mxu2 }
 0x163   : > { %1891 = vperm.xlu1 %5708, %v7040_v49   ;;  %5712 = vset.pattern.permute.xlu0 %v11716_v46  ;;  %12185 = vst [vmem:[#allocation61_spill] sm:$0xff] %v7069_v0  ;;  %v1061_v37 = vsel %vm997_vm0, %v965_v23, %v1029_v25 }
 0x164   : > { %1628 = vmatpush.msrb.mxu2 %v6949_v18  ;;  %12227 = vst [vmem:[#allocation100_spill] sm:$0xff] %v7241_v56 }
 0x165   : > { %925 = vperm.xlu2 %5699, %v7006_v36   ;;  %v7073_v2 = vpop.f32.mrf.mxu0 }
 0x166   : > { %12186 = vst [vmem:[#allocation62_spill] sm:$0xff] %v7073_v2  ;;  %1629 = vmatpush.msrb.mxu2 %v6939_v14  ;;  %v12201_v14 = vmov 0  }
 0x168   : > { %1630 = vmatpush.msrb.mxu2 %v6929_v11  ;;  %v7142_v11 = vpop.f32.mrf.mxu1 }
 0x169   : > { %12202 = vst [vmem:[#allocation76_spill] sm:$0xff] %v7142_v11 }
 0x16a   : > { %3106 = vperm.xlu0 %5712, %v7060_v58   ;;  %1631 = vmatpush.msrb.mxu2 %v6917_v7 }
 0x16b   : > { %5709 = vset.pattern.permute.xlu1 %v11716_v46  ;;  %v7093_v24 = vpop.permute.xlu1 %895 }
 0x16c   : > { %3102 = vperm.xlu1 %5709, %v7040_v49   ;;  %1632 = vmatpush.msrb.mxu2 %v6909_v4 }
 0x16d   : > { %5701 = vset.pattern.permute.xlu2 %v11716_v46  ;;  %v7089_v15 = vpop.f32.mrf.mxu0 }
 0x16e   : > { %12188 = vst [vmem:[#allocation64_spill] sm:$0xff] %v7089_v15  ;;  %3098 = vperm.xlu2 %5701, %v7006_v36   ;;  %1633 = vmatpush.msrb.mxu2 %v6899_v63 }
 0x170   : > { %v7097_v28 = vpop.permute.xlu0 %2720  ;;  %1634 = vmatpush.msrb.mxu2 %v6893_v60  ;;  %v7135_v60 = vpop.permute.xlu2 %2722 }
 0x171   : > { %12190 = vst [vmem:[#allocation66_spill] sm:$0xff] %v7097_v28  ;;  %v7169_v36 = vpop.f32.mrf.mxu1 }
 0x172   : > { %5719 = vset.pattern.permute.xlu0 %v11718_v42  ;;  %1635 = vmatpush.msrb.mxu2 %v6881_v55  ;;  %v7133_v55 = vpop.f32.mrf.mxu3  ;;  %12199 = vst [vmem:[#allocation74_spill] sm:$0xff] %v7135_v60 }
 0x173   : > { %1899 = vperm.xlu0 %5719, %v7082_v8   ;;  %12198 = vst [vmem:[#allocation73_spill] sm:$0xff] %v7133_v55 }
 0x174   : > { %5710 = vset.pattern.permute.xlu1 %v11724_v43  ;;  %1636 = vmatpush.msrb.mxu2 %v6874_v51  ;;  %v7116_v50 = vpop.permute.xlu1 %1863  ;;  %v12197_v51 = vmov 1   ;;  %12208 = vst [vmem:[#allocation82_spill] sm:$0xff] %v7169_v36 }
 0x175   : > { %935 = vperm.xlu1 %5710, %v7060_v58   ;;  %v7106_v31 = vpop.f32.mrf.mxu0 }
 0x176   : > { %12191 = vst [vmem:[#allocation67_spill] sm:$0xff] %v7106_v31  ;;  %5711 = vset.pattern.permute.xlu2 %v11718_v42  ;;  %v7126_v42 = vpack.i.bf16 %v6986_v29, %v6976_v26  ;;  %v7158_v26 = vpack.i.bf16 %v7004_v35, %v6995_v32  ;;  %v7175_v32 = vpack.i.bf16 %v7035_v47, %v7021_v40 }
 0x177   : > { %1895 = vperm.xlu2 %5711, %v7060_v58  }
 0x178   : > { %v7118_v46 = vpop.permute.xlu0 %890  ;;  %12195 = vst [vmem:[#allocation71_spill] sm:$0xff] %v7126_v42  ;;  %v7160_v29 = vpop.permute.xlu2 %5671 }
 0x179   : > { %12205 = vst [vmem:[#allocation79_spill] sm:$0xff] %v7158_v26  ;;  %v7190_v28 = vpop.f32.mrf.mxu1 }
 0x17a   : > { %v7154_v7 = vpop.f32.mrf.mxu3  ;;  %12209 = vst [vmem:[#allocation83_spill] sm:$0xff] %v7175_v32 }
 0x17b   : > { %5720 = vset.pattern.permute.xlu0 %v11724_v43  ;;  %12204 = vst [vmem:[#allocation78_spill] sm:$0xff] %v7154_v7 }
 0x17c   : > { %945 = vperm.xlu0 %5720, %v7108_v34   ;;  %12212 = vst [vmem:[#allocation86_spill] sm:$0xff] %v7190_v28 }
 0x17d   : > { %2742 = vrot.lane.b32.xlu1 %v7114_v44, %s6543_s19  ;;  %v7128_v63 = vpop.f32.mrf.mxu0 }
 0x17e   : > { %12196 = vst [vmem:[#allocation72_spill] sm:$0xff] %v7128_v63  ;;  %5721 = vset.pattern.permute.xlu1 %v12197_v51 }
 0x17f   : > { %5714 = vrot.lane.b32.xlu2 %v7126_v42, %s6543_s19  ;;  %v7250_v42 = vperm.slane %v7241_v56, 0 }
 0x180   : > { %v7137_v43 = vpop.permute.xlu1 %2724  ;;  %5718 = vset.pattern.permute.xlu2 %v12201_v14  ;;  %v7181_v33 = vpop.permute.xlu2 %1867 }
 0x181   : > { %12200 = vst [vmem:[#allocation75_spill] sm:$0xff] %v7137_v43  ;;  %v7140_v22 = vpop.permute.xlu0 %1859  ;;  %v7209_v61 = vpop.f32.mrf.mxu1  ;;  %v966_v16 = vadd.f32 %v7250_v42, %v7076_v5  ;;  %v970_v0 = vadd.f32 %v7250_v42, %v7093_v24 }
 0x182   : > { %v7193_v47 = vpop.f32.mrf.mxu3  ;;  %12217 = vst [vmem:[#allocation91_spill] sm:$0xff] %v7209_v61 }
 0x183   : > { %12213 = vst [vmem:[#allocation87_spill] sm:$0xff] %v7193_v47  ;;  %vm998_vm5 = vcmp.ge.f32.partialorder %v966_v16, 0.0  ;;  %vm1002_vm11 = vcmp.ge.f32.partialorder %v970_v0, 0.0 }
 0x184   : > { %2744 = vrot.lane.b32.xlu0 %v7142_v11, %s6543_s19 }
 0x185   : > { %1903 = vperm.xlu1 %5721, %v7108_v34   ;;  %v7147_v18 = vpop.f32.mrf.mxu0  ;;  %5730 = vset.pattern.permute.xlu0 %v12197_v51 }
 0x186   : > { %12203 = vst [vmem:[#allocation77_spill] sm:$0xff] %v7147_v18 }
 0x187   : > { %2740 = vrot.lane.b32.xlu2 %v7091_v19, %s6543_s19 }
 0x188   : > { %v7152_v4 = vpop.permute.xlu1 %900  ;;  %v7202_v49 = vpop.permute.xlu2 %3078 }
 0x189   : > { %12215 = vst [vmem:[#allocation89_spill] sm:$0xff] %v7202_v49 }
 0x18a   : > { %v7162_v58 = vpop.permute.xlu0 %3074 }
 0x18b   : > { %12206 = vst [vmem:[#allocation80_spill] sm:$0xff] %v7162_v58 }
 0x18c   : > { %1911 = vperm.xlu0 %5730, %v7154_v7  }
 0x18d   : > { %5723 = vrot.lane.b32.xlu1 %v7158_v26, %s6543_s19  ;;  %v7167_v43 = vpop.f32.mrf.mxu0 }
 0x18e   : > { %12207 = vst [vmem:[#allocation81_spill] sm:$0xff] %v7167_v43  ;;  %5727 = vset.pattern.permute.xlu1 %v12201_v14 }
 0x18f   : > { %940 = vperm.xlu2 %5718, %v7082_v8  }
 0x191   : > { %v7177_v35 = vpop.permute.xlu1 %1871 }
 0x192   : > { %v7179_v27 = vpop.permute.xlu0 %2726 }
 0x193   : > { %12210 = vst [vmem:[#allocation84_spill] sm:$0xff] %v7179_v27 }
 0x194   : > { %5732 = vrot.lane.b32.xlu0 %v7175_v32, %s6543_s19 }
 0x195   : > { %950 = vperm.xlu1 %5727, %v7133_v55   ;;  %v7186_v21 = vpop.f32.mrf.mxu0  ;;  %5736 = vset.pattern.permute.xlu0 %v12201_v14 }
 0x196   : > { %12211 = vst [vmem:[#allocation85_spill] sm:$0xff] %v7186_v21 }
 0x197   : > { %5728 = vset.pattern.permute.xlu2 %v12197_v51 }
 0x198   : > { %1907 = vperm.xlu2 %5728, %v7133_v55  }
 0x19a   : > { %v7195_v40 = vpop.permute.xlu1 %3082 }
 0x19b   : > { %12214 = vst [vmem:[#allocation88_spill] sm:$0xff] %v7195_v40  ;;  %v7197_v27 = vpop.permute.xlu0 %5682  ;;  %v969_v40 = vadd.f32 %v7244_v39, %v7093_v24 }
 0x19c   : > { %960 = vperm.xlu0 %5736, %v7193_v47  }
 0x19d   : > { %2748 = vrot.lane.b32.xlu1 %v7190_v28, %s6543_s19  ;;  %vm1001_vm10 = vcmp.ge.f32.partialorder %v969_v40, 0.0 }
 0x19e   : > { %v7204_v45 = vpop.f32.mrf.mxu0  ;;  %5737 = vset.pattern.permute.xlu1 %v12197_v51  ;;  %v7222_v51 = vpop.permute.xlu2 %905 }
 0x19f   : > { %12216 = vst [vmem:[#allocation90_spill] sm:$0xff] %v7204_v45 }
 0x1a0   : > { %2746 = vrot.lane.b32.xlu2 %v7169_v36, %s6543_s19 }
 0x1a1   : > { %5729 = vset.pattern.permute.xlu2 %v12201_v14 }
 0x1a2   : > { %v7212_v17 = vpop.permute.xlu1 %2730 }
 0x1a3   : > { %12218 = vst [vmem:[#allocation92_spill] sm:$0xff] %v7212_v17  ;;  %v7214_v60 = vpop.permute.xlu0 %915 }
 0x1a4   : > { %2750 = vrot.lane.b32.xlu0 %v7209_v61, %s6543_s19 }
 0x1a5   : > { %1915 = vperm.xlu1 %5737, %v7193_v47   ;;  %5750 = vset.pattern.permute.xlu0 %v12219_v59 }
 0x1a6   : > { %v7233_v1 = vpop.permute.xlu2 %2728 }
 0x1a7   : > { %v7220_v13 = vpop.f32.mrf.mxu0  ;;  %12223 = vst [vmem:[#allocation96_spill] sm:$0xff] %v7233_v1 }
 0x1a8   : > { %12220 = vst [vmem:[#allocation93_spill] sm:$0xff] %v7220_v13  ;;  %955 = vperm.xlu2 %5729, %v7154_v7  }
 0x1aa   : > { %v7225_v36 = vpop.permute.xlu1 %1879 }
 0x1ab   : > { %v7227_v14 = vpop.permute.xlu0 %2732 }
 0x1ac   : > { %12221 = vst [vmem:[#allocation94_spill] sm:$0xff] %v7227_v14  ;;  %v7247_v14 = vperm.slane %v6897_v62, 1 }
 0x1ad   : > { %5749 = vset.pattern.permute.xlu1 %v12219_v59 }
 0x1ae   : > { %v7255_v1 = vpop.permute.xlu2 %910  ;;  %v1920_v30 = vadd.f32 %v7247_v14, %v7084_v12  ;;  %v1922_v20 = vadd.f32 %v7247_v14, %v7140_v22  ;;  %v1924_v25 = vadd.f32 %v7247_v14, %v7116_v50 }
 0x1af   : > { %v7230_v17 = vpop.f32.mrf.mxu0 }
 0x1b0   : > { %12222 = vst [vmem:[#allocation95_spill] sm:$0xff] %v7230_v17  ;;  %5748 = vset.pattern.permute.xlu2 %v12219_v59  ;;  %v7253_v59 = vperm.slane %v7241_v56, 1  ;;  %v1984_v6 = vmul.f32 0.2, %v1920_v30  ;;  %v1986_v57 = vmul.f32 0.2, %v1922_v20 }
 0x1b1   : > { %vm1952_vm1 = vcmp.ge.f32.partialorder %v1920_v30, 0.0  ;;  %vm1954_vm2 = vcmp.ge.f32.partialorder %v1922_v20, 0.0  ;;  %v1988_v56 = vmul.f32 0.2, %v1924_v25  ;;  %vm1956_vm12 = vcmp.ge.f32.partialorder %v1924_v25, 0.0 }
 0x1b2   : > { %v1923_v44 = vadd.f32 %v7253_v59, %v7140_v22  ;;  %v1921_v48 = vadd.f32 %v7253_v59, %v7084_v12  ;;  %v1030_v22 = vmul.f32 0.2, %v966_v16  ;;  %v7284_v12 = vld [vmem:[%s6732_s25 + $0x8] sm:$0xff]  ;;  %v2018_v58 = vsel %vm1954_vm2, %v1922_v20, %v1986_v57 }
 0x1b3   : > { %v7235_v61 = vpop.permute.xlu0 %3094  ;;  %12230 = vst [vmem:[#allocation103_spill] sm:$0xff] %v7284_v12  ;;  %vm12060_vm7 = vcmp.ne.f32.partialorder %v7284_v12, 0.0  ;;  %v7320_v20 = vsel %vm11847_vm8, %v2018_v58, -1e+30 }
 0x1b4   : > { %12224 = vst [vmem:[#allocation97_spill] sm:$0xff] %v7235_v61  ;;  %v7237_v19 = vpop.permute.xlu1 %3090  ;;  %v1987_v9 = vmul.f32 0.2, %v1923_v44  ;;  %vm1955_vm3 = vcmp.ge.f32.partialorder %v1923_v44, 0.0  ;;  %vm1953_vm6 = vcmp.ge.f32.partialorder %v1921_v48, 0.0  ;;  %v2016_v61 = vsel %vm1952_vm1, %v1920_v30, %v1984_v6 }
 0x1b5   : > { %12225 = vst [vmem:[#allocation98_spill] sm:$0xff] %v7237_v19  ;;  %v1985_v19 = vmul.f32 0.2, %v1921_v48  ;;  %v1925_v6 = vadd.f32 %v7253_v59, %v7116_v50  ;;  %v1062_v30 = vsel %vm998_vm5, %v966_v16, %v1030_v22  ;;  %v7312_v57 = vsel %vm12071_vm4, %v2016_v61, -1e+30  ;;  %v7331_v50 = vld [vmem:[%s6732_s25 + $0x28] sm:$0xff] }
 0x1b6   : > { %v7296_v49 = vpop.permute.xlu2 %1875  ;;  %v2019_v23 = vsel %vm1955_vm3, %v1923_v44, %v1987_v9  ;;  %v7316_v9 = vsel %vm12071_vm4, %v1061_v37, -1e+30  ;;  %12235 = vst [vmem:[#allocation108_spill] sm:$0xff] %v7320_v20  ;;  %v7328_v44 = vld [vmem:[%s6732_s25 + $0x20] sm:$0xff]  ;;  %v7335_v61 = vsel %vm12060_vm7, %v1062_v30, -1e+30 }
 0x1b7   : > { %v7239_v11 = vpop.f32.mrf.mxu0  ;;  %12234 = vst [vmem:[#allocation107_spill] sm:$0xff] %v7316_v9  ;;  %v7324_v16 = vsel %vm11846_vm9, %v2019_v23, -1e+30  ;;  %v2017_v24 = vsel %vm1953_vm6, %v1921_v48, %v1985_v19  ;;  %v1033_v37 = vmul.f32 0.2, %v969_v40  ;;  %vm1957_vm13 = vcmp.ge.f32.partialorder %v1925_v6, 0.0 }
 0x1b8   : > { %12226 = vst [vmem:[#allocation99_spill] sm:$0xff] %v7239_v11  ;;  %v1034_v22 = vmul.f32 0.2, %v970_v0  ;;  %v1989_v62 = vmul.f32 0.2, %v1925_v6  ;;  %v2083_v23 = vmax.f32 %v7320_v20, %v7324_v16  ;;  %v1125_v30 = vmax.f32 %v7316_v9, %v7335_v61  ;;  %v7454_v9 = vld [vmem:[%s6732_s25 + $0x40] sm:$0xff] }
 0x1b9   : > { %12236 = vst [vmem:[#allocation109_spill] sm:$0xff] %v7324_v16  ;;  %v7343_v48 = vsel %vm12060_vm7, %v2017_v24, -1e+30  ;;  %vm853_vm14 = vcmp.ne.f32.partialorder %v7328_v44, 0.0  ;;  %vm12086_vm15 = vcmp.ne.f32.partialorder %v7331_v50, 0.0  ;;  %v1065_v7 = vsel %vm1001_vm10, %v969_v40, %v1033_v37 }
 0x1ba   : > { %12237 = vst [vmem:[#allocation110_spill] sm:$0xff] %v7328_v44  ;;  %v1066_v41 = vsel %vm1002_vm11, %v970_v0, %v1034_v22  ;;  %v2080_v16 = vmax.f32 %v7312_v57, %v7343_v48  ;;  %v2020_v24 = vsel %vm1956_vm12, %v1924_v25, %v1988_v56  ;;  %v2021_v20 = vsel %vm1957_vm13, %v1925_v6, %v1989_v62 }
 0x1bb   : > { %12238 = vst [vmem:[#allocation111_spill] sm:$0xff] %v7331_v50  ;;  %v7367_v40 = vsel %vm853_vm14, %v2020_v24, -1e+30  ;;  %v7371_v62 = vsel %vm12086_vm15, %v2021_v20, -1e+30  ;;  %v7457_v50 = vld [vmem:[%s6732_s25 + $0x48] sm:$0xff] }
 0x1bc   : > { %v7257_v54 = vpop.permute.xlu0 %1887  ;;  %12239 = vst [vmem:[#allocation112_spill] sm:$0xff] %v7335_v61  ;;  %vm11845_vm5 = vcmp.ne.f32.partialorder %v7454_v9, 0.0  ;;  %vm11844_vm6 = vcmp.ne.f32.partialorder %v7457_v50, 0.0 }
 0x1bd   : > { %v7263_v28 = vpop.permute.xlu1 %5692  ;;  %12244 = vst [vmem:[#allocation117_spill] sm:$0xff] %v7367_v40 }
 0x1be   : > { %v7353_v12 = vpop.permute.xlu2 %3086  ;;  %12245 = vst [vmem:[#allocation118_spill] sm:$0xff] %v7371_v62 }
 0x1bf   : > { %12241 = vst [vmem:[#allocation114_spill] sm:$0xff] %v7353_v12 }
 0x1c0   : > { %v7271_v32 = vpop.f32.mrf.mxu0  ;;  %12257 = vst [vmem:[#allocation130_spill] sm:$0xff] %v7454_v9 }
 0x1c1   : > { %12228 = vst [vmem:[#allocation101_spill] sm:$0xff] %v7271_v32 }
 0x1c2   : > { %12258 = vst [vmem:[#allocation131_spill] sm:$0xff] %v7457_v50 }
 0x1c4   : > { %v7278_v5 = vpop.permute.xlu0 %5703 }
 0x1c5   : > { %v7281_v26 = vpop.permute.xlu1 %920 }
 0x1c6   : > { %v7384_v6 = vpop.permute.xlu2 %1883 }
 0x1c8   : > { %v7305_v38 = vpop.f32.mrf.mxu0 }
 0x1c9   : > { %12233 = vst [vmem:[#allocation106_spill] sm:$0xff] %v7305_v38 }
 0x1cc   : > { %v7337_v58 = vpop.permute.xlu0 %930 }
 0x1cd   : > { %v7345_v19 = vpop.permute.xlu1 %2736 }
 0x1ce   : > { %12240 = vst [vmem:[#allocation113_spill] sm:$0xff] %v7345_v19  ;;  %2084 = vmax.xlane.f32.xlu0 %v2083_v23  ;;  %v7359_v23 = vsel %vm853_vm14, %v1065_v7, -1e+30  ;;  %v7363_v19 = vsel %vm12086_vm15, %v1066_v41, -1e+30  ;;  %v2086_v7 = vmax.f32 %v7367_v40, %v7371_v62  ;;  %v7395_v37 = vpop.permute.xlu2 %2734 }
 0x1cf   : > { %1126 = vmax.xlane.f32.xlu1 %v1125_v30  ;;  %12243 = vst [vmem:[#allocation116_spill] sm:$0xff] %v7363_v19  ;;  %v1131_v0 = vmax.f32 %v7359_v23, %v7363_v19  ;;  %v7403_v30 = vpack.i.bf16 %v7073_v2, %v7053_v53 }
 0x1d0   : > { %v7355_v47 = vpop.f32.mrf.mxu0  ;;  %12250 = vst [vmem:[#allocation123_spill] sm:$0xff] %v7395_v37 }
 0x1d1   : > { %12242 = vst [vmem:[#allocation115_spill] sm:$0xff] %v7355_v47  ;;  %2081 = vmax.xlane.f32.xlu2 %v2080_v16 }
 0x1d2   : > { %12251 = vst [vmem:[#allocation124_spill] sm:$0xff] %v7403_v30 }
 0x1d4   : > { %v7373_v56 = vpop.permute.xlu0 %2738 }
 0x1d5   : > { %12246 = vst [vmem:[#allocation119_spill] sm:$0xff] %v7373_v56  ;;  %v7379_v25 = vpop.permute.xlu1 %1891 }
 0x1d6   : > { %1132 = vmax.xlane.f32.xlu0 %v1131_v0  ;;  %v7414_v0 = vpack.i.bf16 %v7106_v31, %v7089_v15 }
 0x1d7   : > { %2087 = vmax.xlane.f32.xlu1 %v2086_v7  ;;  %v7417_v7 = vpop.permute.xlu2 %925 }
 0x1d8   : > { %v7381_v41 = vpop.f32.mrf.mxu0  ;;  %12252 = vst [vmem:[#allocation125_spill] sm:$0xff] %v7414_v0 }
 0x1d9   : > { %12247 = vst [vmem:[#allocation120_spill] sm:$0xff] %v7381_v41  ;;  %1686 = vmatpush.msrb.mxu3 %v7381_v41 }
 0x1db   : > { %1687 = vmatpush.msrb.mxu3 %v7355_v47 }
 0x1dc   : > { %v7387_v20 = vpop.permute.xlu0 %3106 }
 0x1dd   : > { %12248 = vst [vmem:[#allocation121_spill] sm:$0xff] %v7387_v20  ;;  %1688 = vmatpush.msrb.mxu3 %v7305_v38 }
 0x1de   : > { %v7391_v16 = vpop.permute.xlu1 %3102 }
 0x1df   : > { %1689 = vmatpush.msrb.mxu3 %v7271_v32  ;;  %12249 = vst [vmem:[#allocation122_spill] sm:$0xff] %v7391_v16  ;;  %v971_v32 = vadd.f32 %v7244_v39, %v7152_v4 }
 0x1e1   : > { %1690 = vmatpush.msrb.mxu3 %v7239_v11  ;;  %vm1003_vm10 = vcmp.ge.f32.partialorder %v971_v32, 0.0 }
 0x1e3   : > { %1691 = vmatpush.msrb.mxu3 %v7230_v17 }
 0x1e5   : > { %1692 = vmatpush.msrb.mxu3 %v7220_v13  ;;  %v7398_v22 = vpop.permute.xlu0 %1899 }
 0x1e7   : > { %1693 = vmatpush.msrb.mxu3 %v7204_v45  ;;  %v7408_v24 = vpop.permute.xlu1 %935 }
 0x1e9   : > { %5739 = vrot.lane.b32.xlu2 %v7403_v30, %s6543_s19  ;;  %1694 = vmatpush.msrb.mxu3 %v7186_v21  ;;  %v7432_v30 = vpop.permute.xlu2 %3098 }
 0x1ea   : > { %3118 = vperm.xlu0 %5750, %v7133_v55   ;;  %12255 = vst [vmem:[#allocation128_spill] sm:$0xff] %v7432_v30 }
 0x1eb   : > { %1695 = vmatpush.msrb.mxu3 %v7167_v43 }
 0x1ed   : > { %1696 = vmatpush.msrb.mxu3 %v7147_v18 }
 0x1ee   : > { %v7419_v56 = vpop.permute.xlu0 %945 }
 0x1ef   : > { %1697 = vmatpush.msrb.mxu3 %v7128_v63  ;;  %v7426_v55 = vpop.permute.xlu1 %2742 }
 0x1f0   : > { %5744 = vrot.lane.b32.xlu1 %v7414_v0, %s6543_s19  ;;  %12253 = vst [vmem:[#allocation126_spill] sm:$0xff] %v7426_v55 }
 0x1f1   : > { %1698 = vmatpush.msrb.mxu3 %v7106_v31  ;;  %v967_v31 = vadd.f32 %v7244_v39, %v7118_v46  ;;  %v7443_v55 = vpop.permute.xlu2 %1895 }
 0x1f3   : > { %1699 = vmatpush.msrb.mxu3 %v7089_v15  ;;  %v968_v15 = vadd.f32 %v7250_v42, %v7118_v46  ;;  %vm999_vm0 = vcmp.ge.f32.partialorder %v967_v31, 0.0 }
 0x1f5   : > { %1700 = vmatpush.msrb.mxu3 %v7073_v2  ;;  %v1928_v2 = vadd.f32 %v7247_v14, %v7177_v35  ;;  %v1032_v0 = vmul.f32 0.2, %v968_v15  ;;  %vm1000_vm1 = vcmp.ge.f32.partialorder %v968_v15, 0.0 }
 0x1f6   : > { %v7429_v37 = vpop.permute.xlu0 %2744 }
 0x1f7   : > { %12254 = vst [vmem:[#allocation127_spill] sm:$0xff] %v7429_v37  ;;  %1701 = vmatpush.msrb.mxu3 %v7053_v53  ;;  %v7435_v16 = vpop.permute.xlu1 %1903  ;;  %v1929_v53 = vadd.f32 %v7253_v59, %v7177_v35  ;;  %v1992_v12 = vmul.f32 0.2, %v1928_v2  ;;  %vm1960_vm2 = vcmp.ge.f32.partialorder %v1928_v2, 0.0  ;;  %v972_v35 = vadd.f32 %v7250_v42, %v7152_v4 }
 0x1f8   : > { %3114 = vperm.xlu1 %5749, %v7108_v34   ;;  %12256 = vst [vmem:[#allocation129_spill] sm:$0xff] %v7435_v16  ;;  %v1031_v34 = vmul.f32 0.2, %v967_v31  ;;  %v1064_v61 = vsel %vm1000_vm1, %v968_v15, %v1032_v0  ;;  %v1035_v4 = vmul.f32 0.2, %v971_v32 }
 0x1f9   : > { %v1993_v46 = vmul.f32 0.2, %v1929_v53  ;;  %vm1961_vm3 = vcmp.ge.f32.partialorder %v1929_v53, 0.0  ;;  %v5715_v44 = vpop.permute.xlu2 %5714  ;;  %v2024_v41 = vsel %vm1960_vm2, %v1928_v2, %v1992_v12  ;;  %v7465_v19 = vsel %vm11846_vm9, %v1064_v61, -1e+30 }
 0x1fa   : > { %v1063_v16 = vsel %vm999_vm0, %v967_v31, %v1031_v34  ;;  %12260 = vst [vmem:[#allocation133_spill] sm:$0xff] %v7465_v19  ;;  %v1036_v15 = vmul.f32 0.2, %v972_v35  ;;  %v5717_v2 = vunpack.i.h.bf16 %v5715_v44  ;;  %vm1004_vm11 = vcmp.ge.f32.partialorder %v972_v35, 0.0 }
 0x1fb   : > { %v2025_v47 = vsel %vm1961_vm3, %v1929_v53, %v1993_v46  ;;  %v7471_v53 = vsel %vm11845_vm5, %v2024_v41, -1e+30  ;;  %v1926_v34 = vadd.f32 %v7247_v14, %v7181_v33  ;;  %v1927_v12 = vadd.f32 %v7253_v59, %v7181_v33  ;;  %v7486_v41 = vld [vmem:[%s6732_s25 + $0x30] sm:$0xff] }
 0x1fc   : > { %v7475_v31 = vsel %vm11844_vm6, %v2025_v47, -1e+30  ;;  %v973_v61 = vadd.f32 %v7244_v39, %v7222_v51  ;;  %12261 = vst [vmem:[#allocation134_spill] sm:$0xff] %v7486_v41  ;;  %v974_v47 = vadd.f32 %v7250_v42, %v7222_v51  ;;  %v1067_v0 = vsel %vm1003_vm10, %v971_v32, %v1035_v4 }
 0x1fd   : > { %v1068_v46 = vsel %vm1004_vm11, %v972_v35, %v1036_v15  ;;  %v5706_v33 = vunpack.i.h.bf16 %v7278_v5  ;;  %vm11854_vm12 = vcmp.ne.f32.partialorder %v7486_v41, 0.0  ;;  %v1991_v35 = vmul.f32 0.2, %v1927_v12 }
 0x1fe   : > { %v7437_v20 = vpop.permute.xlu0 %1911  ;;  %v7502_v51 = vsel %vm11854_vm12, %v1067_v0, -1e+30  ;;  %vm1958_vm0 = vcmp.ge.f32.partialorder %v1926_v34, 0.0  ;;  %vm1959_vm1 = vcmp.ge.f32.partialorder %v1927_v12, 0.0  ;;  %v1037_v4 = vmul.f32 0.2, %v973_v61 }
 0x1ff   : > { %v5724_v30 = vpop.permute.xlu1 %5723  ;;  %v1038_v15 = vmul.f32 0.2, %v974_v47  ;;  %vm1005_vm2 = vcmp.ge.f32.partialorder %v973_v61, 0.0  ;;  %vm1006_vm3 = vcmp.ge.f32.partialorder %v974_v47, 0.0  ;;  %v2023_v0 = vsel %vm1959_vm1, %v1927_v12, %v1991_v35 }
 0x200   : > { %v5726_v38 = vunpack.i.h.bf16 %v5724_v30 }
 0x206   : > { %v5733_v37 = vpop.permute.xlu0 %5732 }
 0x207   : > { %v5735_v62 = vunpack.i.h.bf16 %v5733_v37  ;;  %v5734_v40 = vunpack.i.l.bf16 %v5733_v37  ;;  %v5725_v37 = vunpack.i.l.bf16 %v5724_v30  ;;  %v2092_v30 = vmax.f32 %v7471_v53, %v7475_v31 }
 0x209   : > { %2768 = vmatpush.msra.mxu1 %v5735_v62  ;;  %v7461_v62 = vsel %vm11847_vm8, %v1063_v16, -1e+30  ;;  %v7489_v16 = vld [vmem:[%s6732_s25 + $0x38] sm:$0xff] }
 0x20a   : > { %12259 = vst [vmem:[#allocation132_spill] sm:$0xff] %v7461_v62  ;;  %vm11853_vm13 = vcmp.ne.f32.partialorder %v7489_v16, 0.0 }
 0x20b   : > { %2769 = vmatpush.msra.mxu1 %v5734_v40  ;;  %v5716_v40 = vunpack.i.l.bf16 %v5715_v44  ;;  %12262 = vst [vmem:[#allocation135_spill] sm:$0xff] %v7489_v16  ;;  %v1990_v44 = vmul.f32 0.2, %v1926_v34  ;;  %v7506_v32 = vsel %vm11853_vm13, %v1068_v46, -1e+30  ;;  %v1931_v46 = vadd.f32 %v7253_v59, %v7296_v49 }
 0x20d   : > { %2770 = vmatpush.msra.mxu1 %v5726_v38  ;;  %v1128_v38 = vmax.f32 %v7461_v62, %v7465_v19  ;;  %v1070_v19 = vsel %vm1006_vm3, %v974_v47, %v1038_v15  ;;  %v1995_v47 = vmul.f32 0.2, %v1931_v46  ;;  %vm1963_vm11 = vcmp.ge.f32.partialorder %v1931_v46, 0.0  ;;  %v7541_v15 = vld [vmem:[%s6732_s25 + $0x50] sm:$0xff] }
 0x20e   : > { %v7532_v12 = vsel %vm11844_vm6, %v1070_v19, -1e+30  ;;  %12265 = vst [vmem:[#allocation138_spill] sm:$0xff] %v7541_v15  ;;  %v7544_v19 = vld [vmem:[%s6732_s25 + $0x58] sm:$0xff] }
 0x20f   : > { %2771 = vmatpush.msra.mxu1 %v5725_v37  ;;  %v5705_v37 = vunpack.i.l.bf16 %v7278_v5  ;;  %v1134_v5 = vmax.f32 %v7502_v51, %v7506_v32  ;;  %12264 = vst [vmem:[#allocation137_spill] sm:$0xff] %v7532_v12  ;;  %vm11865_vm1 = vcmp.ne.f32.partialorder %v7544_v19, 0.0 }
 0x210   : > { %12266 = vst [vmem:[#allocation139_spill] sm:$0xff] %v7544_v19 }
 0x211   : > { %2772 = vmatpush.msra.mxu1 %v5717_v2  ;;  %v5695_v2 = vunpack.i.h.bf16 %v7263_v28 }
 0x212   : > { %1129 = vmax.xlane.f32.xlu2 %v1128_v38  ;;  %v1930_v38 = vadd.f32 %v7247_v14, %v7296_v49 }
 0x213   : > { %2773 = vmatpush.msra.mxu1 %v5716_v40  ;;  %v5694_v40 = vunpack.i.l.bf16 %v7263_v28  ;;  %v7523_v28 = vsel %vm11853_vm13, %v2023_v0, -1e+30  ;;  %v5664_v0 = vunpack.i.h.bf16 %v7044_v52 }
 0x214   : > { %2093 = vmax.xlane.f32.xlu0 %v2092_v30  ;;  %v2022_v30 = vsel %vm1958_vm0, %v1926_v34, %v1990_v44  ;;  %v5684_v34 = vunpack.i.l.bf16 %v7197_v27  ;;  %vm1962_vm10 = vcmp.ge.f32.partialorder %v1930_v38, 0.0  ;;  %v5674_v44 = vunpack.i.h.bf16 %v7160_v29 }
 0x215   : > { %2774 = vmatpush.msra.mxu1 %v5706_v33  ;;  %v1069_v33 = vsel %vm1005_vm2, %v973_v61, %v1037_v4  ;;  %v7519_v62 = vsel %vm11854_vm12, %v2022_v30, -1e+30  ;;  %v1994_v61 = vmul.f32 0.2, %v1930_v38  ;;  %v5673_v4 = vunpack.i.l.bf16 %v7160_v29 }
 0x216   : > { %v7528_v49 = vsel %vm11845_vm5, %v1069_v33, -1e+30  ;;  %v2089_v35 = vmax.f32 %v7519_v62, %v7523_v28  ;;  %v2027_v30 = vsel %vm1963_vm11, %v1931_v46, %v1995_v47  ;;  %v7553_v29 = vpack.i.bf16 %v7147_v18, %v7128_v63 }
 0x217   : > { %2775 = vmatpush.msra.mxu1 %v5705_v37  ;;  %v5685_v37 = vunpack.i.h.bf16 %v7197_v27  ;;  %12263 = vst [vmem:[#allocation136_spill] sm:$0xff] %v7528_v49  ;;  %v1137_v27 = vmax.f32 %v7528_v49, %v7532_v12  ;;  %vm11866_vm0 = vcmp.ne.f32.partialorder %v7541_v15, 0.0  ;;  %v7564_v46 = vsel %vm11865_vm1, %v2027_v30, -1e+30 }
 0x218   : > { %12267 = vst [vmem:[#allocation140_spill] sm:$0xff] %v7553_v29  ;;  %v1936_v47 = vadd.f32 %v7247_v14, %v7257_v54 }
 0x219   : > { %2776 = vmatpush.msra.mxu1 %v5695_v2  ;;  %v2026_v2 = vsel %vm1962_vm10, %v1930_v38, %v1994_v61  ;;  %v5663_v38 = vunpack.i.l.bf16 %v7044_v52  ;;  %12269 = vst [vmem:[#allocation142_spill] sm:$0xff] %v7564_v46  ;;  %v7574_v61 = vld [vmem:[%s6732_s25 + $0x78] sm:$0xff] }
 0x21a   : > { %1135 = vmax.xlane.f32.xlu2 %v1134_v5  ;;  %v979_v5 = vadd.f32 %v7244_v39, %v7281_v26  ;;  %12271 = vst [vmem:[#allocation144_spill] sm:$0xff] %v7574_v61  ;;  %vm11859_vm11 = vcmp.ne.f32.partialorder %v7574_v61, 0.0  ;;  %v2000_v30 = vmul.f32 0.2, %v1936_v47 }
 0x21b   : > { %2777 = vmatpush.msra.mxu1 %v5694_v40  ;;  %v980_v40 = vadd.f32 %v7250_v42, %v7281_v26  ;;  %v7560_v26 = vsel %vm11866_vm0, %v2026_v2, -1e+30 }
 0x21c   : > { %12268 = vst [vmem:[#allocation141_spill] sm:$0xff] %v7560_v26  ;;  %v1043_v33 = vmul.f32 0.2, %v979_v5  ;;  %vm1011_vm2 = vcmp.ge.f32.partialorder %v979_v5, 0.0  ;;  %v2095_v52 = vmax.f32 %v7560_v26, %v7564_v46 }
 0x21d   : > { %2778 = vmatpush.msra.mxu1 %v5685_v37  ;;  %v1044_v37 = vmul.f32 0.2, %v980_v40  ;;  %vm1012_vm3 = vcmp.ge.f32.partialorder %v980_v40, 0.0 }
 0x21f   : > { %2779 = vmatpush.msra.mxu1 %v5684_v34  ;;  %v7571_v34 = vld [vmem:[%s6732_s25 + $0x70] sm:$0xff] }
 0x220   : > { %12270 = vst [vmem:[#allocation143_spill] sm:$0xff] %v7571_v34  ;;  %vm11860_vm10 = vcmp.ne.f32.partialorder %v7571_v34, 0.0 }
 0x221   : > { %2780 = vmatpush.msra.mxu1 %v5674_v44  ;;  %v1937_v44 = vadd.f32 %v7253_v59, %v7257_v54  ;;  %v7594_v54 = vld [vmem:[%s6732_s25 + $0x88] sm:$0xff] }
 0x222   : > { %2090 = vmax.xlane.f32.xlu2 %v2089_v35  ;;  %1138 = vmax.xlane.f32.xlu1 %v1137_v27  ;;  %v1075_v35 = vsel %vm1011_vm2, %v979_v5, %v1043_v33  ;;  %v1076_v27 = vsel %vm1012_vm3, %v980_v40, %v1044_v37  ;;  %12275 = vst [vmem:[#allocation148_spill] sm:$0xff] %v7594_v54  ;;  %vm1968_vm2 = vcmp.ge.f32.partialorder %v1936_v47, 0.0  ;;  %vm11945_vm5 = vcmp.ne.f32.partialorder %v7594_v54, 0.0 }
 0x223   : > { %2781 = vmatpush.msra.mxu1 %v5673_v4  ;;  %v7584_v4 = vsel %vm11860_vm10, %v1075_v35, -1e+30  ;;  %v7588_v2 = vsel %vm11859_vm11, %v1076_v27, -1e+30  ;;  %vm1969_vm3 = vcmp.ge.f32.partialorder %v1937_v44, 0.0  ;;  %v2032_v40 = vsel %vm1968_vm2, %v1936_v47, %v2000_v30  ;;  %v7619_v30 = vld [vmem:[%s6732_s25 + $0x68] sm:$0xff] }
 0x224   : > { %12272 = vst [vmem:[#allocation145_spill] sm:$0xff] %v7584_v4  ;;  %v1146_v5 = vmax.f32 %v7584_v4, %v7588_v2  ;;  %v977_v27 = vadd.f32 %v7244_v39, %v7214_v60  ;;  %v978_v47 = vadd.f32 %v7250_v42, %v7214_v60  ;;  %vm11898_vm8 = vcmp.ne.f32.partialorder %v7619_v30, 0.0 }
 0x225   : > { %2782 = vmatpush.msra.mxu1 %v5664_v0  ;;  %12273 = vst [vmem:[#allocation146_spill] sm:$0xff] %v7588_v2  ;;  %v2001_v0 = vmul.f32 0.2, %v1937_v44  ;;  %v7660_v2 = vld [vmem:[%s6732_s25 + $0x90] sm:$0xff] }
 0x226   : > { %12279 = vst [vmem:[#allocation152_spill] sm:$0xff] %v7619_v30  ;;  %vm1009_vm2 = vcmp.ge.f32.partialorder %v977_v27, 0.0 }
 0x227   : > { %2783 = vmatpush.msra.mxu1 %v5663_v38  ;;  %v7591_v38 = vld [vmem:[%s6732_s25 + $0x80] sm:$0xff]  ;;  %v2033_v33 = vsel %vm1969_vm3, %v1937_v44, %v2001_v0  ;;  %v1041_v0 = vmul.f32 0.2, %v977_v27  ;;  %vm1010_vm3 = vcmp.ge.f32.partialorder %v978_v47, 0.0  ;;  %12281 = vst [vmem:[#allocation154_spill] sm:$0xff] %v7660_v2 }
 0x228   : > { %5752 = vrot.lane.b32.xlu0 %v7553_v29, %s6543_s19  ;;  %12274 = vst [vmem:[#allocation147_spill] sm:$0xff] %v7591_v38  ;;  %vm11946_vm6 = vcmp.ne.f32.partialorder %v7591_v38, 0.0  ;;  %v7616_v44 = vld [vmem:[%s6732_s25 + $0x60] sm:$0xff] }
 0x229   : > { %v7602_v37 = vsel %vm11946_vm6, %v2032_v40, -1e+30  ;;  %12278 = vst [vmem:[#allocation151_spill] sm:$0xff] %v7616_v44  ;;  %vm11902_vm9 = vcmp.ne.f32.partialorder %v7616_v44, 0.0  ;;  %v1934_v40 = vadd.f32 %v7247_v14, %v7384_v6 }
 0x22a   : > { %2096 = vmax.xlane.f32.xlu1 %v2095_v52  ;;  %12276 = vst [vmem:[#allocation149_spill] sm:$0xff] %v7602_v37  ;;  %v7606_v52 = vsel %vm11945_vm5, %v2033_v33, -1e+30  ;;  %v1935_v33 = vadd.f32 %v7253_v59, %v7384_v6  ;;  %v975_v6 = vadd.f32 %v7244_v39, %v7255_v1 }
 0x22b   : > { %12277 = vst [vmem:[#allocation150_spill] sm:$0xff] %v7606_v52  ;;  %v2104_v35 = vmax.f32 %v7602_v37, %v7606_v52  ;;  %v7637_v52 = vpack.i.bf16 %v7220_v13, %v7204_v45  ;;  %vm1966_vm13 = vcmp.ge.f32.partialorder %v1934_v40, 0.0 }
 0x22c   : > { %v1999_v29 = vmul.f32 0.2, %v1935_v33  ;;  %vm1967_vm12 = vcmp.ge.f32.partialorder %v1935_v33, 0.0  ;;  %v1039_v45 = vmul.f32 0.2, %v975_v6 }
 0x22d   : > { %12280 = vst [vmem:[#allocation153_spill] sm:$0xff] %v7637_v52 }
 0x232   : > { %1147 = vmax.xlane.f32.xlu1 %v1146_v5  ;;  %v1042_v5 = vmul.f32 0.2, %v978_v47 }
 0x234   : > { %v1074_v60 = vsel %vm1010_vm3, %v978_v47, %v1042_v5  ;;  %v984_v5 = vadd.f32 %v7250_v42, %v7337_v58 }
 0x235   : > { %v7633_v63 = vsel %vm11898_vm8, %v1074_v60, -1e+30  ;;  %v2031_v60 = vsel %vm1967_vm12, %v1935_v33, %v1999_v29 }
 0x236   : > { %v7657_v13 = vsel %vm11859_vm11, %v2031_v60, -1e+30  ;;  %v1048_v29 = vmul.f32 0.2, %v984_v5  ;;  %vm867_vm11 = vcmp.ne.f32.partialorder %v7660_v2, 0.0  ;;  %v1940_v60 = vadd.f32 %v7247_v14, %v7443_v55 }
 0x23a   : > { %3110 = vperm.xlu2 %5748, %v7082_v8   ;;  %2105 = vmax.xlane.f32.xlu1 %v2104_v35  ;;  %v1073_v35 = vsel %vm1009_vm2, %v977_v27, %v1041_v0  ;;  %v1998_v8 = vmul.f32 0.2, %v1934_v40  ;;  %v976_v27 = vadd.f32 %v7250_v42, %v7255_v1  ;;  %v983_v0 = vadd.f32 %v7244_v39, %v7337_v58  ;;  %v7663_v58 = vld [vmem:[%s6732_s25 + $0x98] sm:$0xff] }
 0x23b   : > { %v7629_v18 = vsel %vm11902_vm9, %v1073_v35, -1e+30  ;;  %vm1007_vm2 = vcmp.ge.f32.partialorder %v975_v6, 0.0  ;;  %12282 = vst [vmem:[#allocation155_spill] sm:$0xff] %v7663_v58 }
 0x23c   : > { %v1143_v47 = vmax.f32 %v7629_v18, %v7633_v63  ;;  %v2030_v35 = vsel %vm1966_vm13, %v1934_v40, %v1998_v8  ;;  %vm1008_vm3 = vcmp.ge.f32.partialorder %v976_v27, 0.0  ;;  %v1040_v37 = vmul.f32 0.2, %v976_v27 }
 0x23d   : > { %v7653_v1 = vsel %vm11860_vm10, %v2030_v35, -1e+30  ;;  %v1047_v8 = vmul.f32 0.2, %v983_v0  ;;  %vm1015_vm12 = vcmp.ge.f32.partialorder %v983_v0, 0.0  ;;  %vm1016_vm13 = vcmp.ge.f32.partialorder %v984_v5, 0.0 }
 0x23e   : > { %v2101_v40 = vmax.f32 %v7653_v1, %v7657_v13  ;;  %v1071_v33 = vsel %vm1007_vm2, %v975_v6, %v1039_v45  ;;  %v1072_v35 = vsel %vm1008_vm3, %v976_v27, %v1040_v37  ;;  %vm868_vm10 = vcmp.ne.f32.partialorder %v7663_v58, 0.0  ;;  %v12283_v6 = vld [vmem:[#allocation87_spill] sm:$0xff] }
 0x23f   : > { %v1079_v4 = vsel %vm1015_vm12, %v983_v0, %v1047_v8  ;;  %v1080_v46 = vsel %vm1016_vm13, %v984_v5, %v1048_v29  ;;  %v1933_v45 = vadd.f32 %v7253_v59, %v7225_v36  ;;  %v7680_v37 = vsel %vm11866_vm0, %v1071_v33, -1e+30  ;;  %v7695_v29 = vld [vmem:[%s6732_s25 + $0xa0] sm:$0xff]  ;;  %v7700_v33 = vpop.permute.xlu2 %2740 }
 0x240   : > { %v7684_v27 = vsel %vm11865_vm1, %v1072_v35, -1e+30  ;;  %v7688_v26 = vsel %vm867_vm11, %v1079_v4, -1e+30  ;;  %12286 = vst [vmem:[#allocation158_spill] sm:$0xff] %v7695_v29  ;;  %vm1972_vm2 = vcmp.ge.f32.partialorder %v1940_v60, 0.0 }
 0x241   : > { %12284 = vst [vmem:[#allocation156_spill] sm:$0xff] %v7688_v26  ;;  %v1997_v8 = vmul.f32 0.2, %v1933_v45  ;;  %vm1965_vm13 = vcmp.ge.f32.partialorder %v1933_v45, 0.0  ;;  %vm11882_vm1 = vcmp.ne.f32.partialorder %v7695_v29, 0.0 }
 0x242   : > { %12288 = vst [vmem:[#allocation160_spill] sm:$0xff] %v7700_v33 }
 0x243   : > { %v2029_v49 = vsel %vm1965_vm13, %v1933_v45, %v1997_v8  ;;  %v1943_v8 = vadd.f32 %v7253_v59, %v7398_v22 }
 0x244   : > { %v7722_v34 = vsel %vm11898_vm8, %v2029_v49, -1e+30  ;;  %v986_v49 = vadd.f32 %v7250_v42, %v7408_v24 }
 0x245   : > { %vm1975_vm13 = vcmp.ge.f32.partialorder %v1943_v8, 0.0 }
 0x252   : > { %1144 = vmax.xlane.f32.xlu0 %v1143_v47  ;;  %v1932_v47 = vadd.f32 %v7247_v14, %v7225_v36  ;;  %v2004_v36 = vmul.f32 0.2, %v1940_v60 }
 0x253   : > { %5762 = vrot.lane.b32.xlu1 %v7637_v52, %s6543_s19  ;;  %v1941_v52 = vadd.f32 %v7253_v59, %v7443_v55  ;;  %v7692_v55 = vsel %vm868_vm10, %v1080_v46, -1e+30  ;;  %v1140_v46 = vmax.f32 %v7680_v37, %v7684_v27 }
 0x254   : > { %12285 = vst [vmem:[#allocation157_spill] sm:$0xff] %v7692_v55  ;;  %v1996_v0 = vmul.f32 0.2, %v1932_v47  ;;  %v1152_v4 = vmax.f32 %v7688_v26, %v7692_v55  ;;  %vm1964_vm12 = vcmp.ge.f32.partialorder %v1932_v47, 0.0  ;;  %v2036_v35 = vsel %vm1972_vm2, %v1940_v60, %v2004_v36  ;;  %v7728_v60 = vpop.permute.xlu2 %940 }
 0x255   : > { %v2005_v5 = vmul.f32 0.2, %v1941_v52  ;;  %vm1973_vm3 = vcmp.ge.f32.partialorder %v1941_v52, 0.0  ;;  %v7710_v33 = vsel %vm11882_vm1, %v2036_v35, -1e+30  ;;  %v7738_v36 = vpack.i.bf16 %v7239_v11, %v7230_v17 }
 0x256   : > { %v2028_v12 = vsel %vm1964_vm12, %v1932_v47, %v1996_v0  ;;  %12289 = vst [vmem:[#allocation161_spill] sm:$0xff] %v7710_v33  ;;  %v1050_v0 = vmul.f32 0.2, %v986_v49  ;;  %v7758_v17 = vpack.i.bf16 %v7186_v21, %v7167_v43  ;;  %v1939_v55 = vadd.f32 %v7253_v59, %v7379_v25 }
 0x257   : > { %12291 = vst [vmem:[#allocation163_spill] sm:$0xff] %v7738_v36 }
 0x258   : > { %12295 = vst [vmem:[#allocation167_spill] sm:$0xff] %v7758_v17 }
 0x25a   : > { %2102 = vmax.xlane.f32.xlu0 %v2101_v40  ;;  %v7698_v40 = vld [vmem:[%s6732_s25 + $0xa8] sm:$0xff] }
 0x25b   : > { %3126 = vperm.xlu1 %5749, %v12283_v6   ;;  %12287 = vst [vmem:[#allocation159_spill] sm:$0xff] %v7698_v40  ;;  %vm11881_vm0 = vcmp.ne.f32.partialorder %v7698_v40, 0.0  ;;  %v2037_v6 = vsel %vm1973_vm3, %v1941_v52, %v2005_v5  ;;  %vm1018_vm3 = vcmp.ge.f32.partialorder %v986_v49, 0.0  ;;  %v1942_v5 = vadd.f32 %v7247_v14, %v7398_v22  ;;  %v7761_v22 = vld [vmem:[%s6732_s25 + $0xb0] sm:$0xff] }
 0x25c   : > { %v7714_v61 = vsel %vm11881_vm0, %v2037_v6, -1e+30  ;;  %v7730_v45 = vpop.permute.xlu2 %1907  ;;  %v1082_v35 = vsel %vm1018_vm3, %v986_v49, %v1050_v0  ;;  %12296 = vst [vmem:[#allocation168_spill] sm:$0xff] %v7761_v22  ;;  %v951_v0 = vpop.permute.xlu1 %950 }
 0x25d   : > { %12290 = vst [vmem:[#allocation162_spill] sm:$0xff] %v7714_v61  ;;  %v2110_v52 = vmax.f32 %v7710_v33, %v7714_v61  ;;  %v2006_v49 = vmul.f32 0.2, %v1942_v5  ;;  %vm1974_vm12 = vcmp.ge.f32.partialorder %v1942_v5, 0.0  ;;  %v992_v21 = vadd.f32 %v7250_v42, %v951_v0 }
 0x25e   : > { %v1938_v33 = vadd.f32 %v7247_v14, %v7379_v25 }
 0x25f   : > { %v2038_v43 = vsel %vm1974_vm12, %v1942_v5, %v2006_v49  ;;  %v7787_v5 = vld [vmem:[%s6732_s25 + $0xd0] sm:$0xff] }
 0x260   : > { %12301 = vst [vmem:[#allocation173_spill] sm:$0xff] %v7787_v5  ;;  %vm11944_vm12 = vcmp.ne.f32.partialorder %v7787_v5, 0.0 }
 0x262   : > { %1153 = vmax.xlane.f32.xlu0 %v1152_v4  ;;  %v7718_v4 = vsel %vm11902_vm9, %v2028_v12, -1e+30  ;;  %v985_v12 = vadd.f32 %v7244_v39, %v7408_v24 }
 0x263   : > { %1141 = vmax.xlane.f32.xlu2 %v1140_v46  ;;  %v2098_v47 = vmax.f32 %v7718_v4, %v7722_v34 }
 0x264   : > { %v1049_v6 = vmul.f32 0.2, %v985_v12  ;;  %vm1017_vm2 = vcmp.ge.f32.partialorder %v985_v12, 0.0  ;;  %v7822_v29 = vpop.permute.xlu1 %2748 }
 0x265   : > { %12307 = vst [vmem:[#allocation179_spill] sm:$0xff] %v7822_v29  ;;  %v7843_v29 = vld [vmem:[%s6732_s25 + $0xc0] sm:$0xff] }
 0x266   : > { %v1081_v46 = vsel %vm1017_vm2, %v985_v12, %v1049_v6  ;;  %v7764_v12 = vld [vmem:[%s6732_s25 + $0xb8] sm:$0xff]  ;;  %v2007_v6 = vmul.f32 0.2, %v1943_v8  ;;  %vm11889_vm2 = vcmp.ne.f32.partialorder %v7761_v22, 0.0  ;;  %12312 = vst [vmem:[#allocation184_spill] sm:$0xff] %v7843_v29 }
 0x267   : > { %v7750_v24 = vsel %vm11882_vm1, %v1081_v46, -1e+30  ;;  %12297 = vst [vmem:[#allocation169_spill] sm:$0xff] %v7764_v12  ;;  %vm11888_vm3 = vcmp.ne.f32.partialorder %v7764_v12, 0.0  ;;  %vm1024_vm1 = vcmp.ge.f32.partialorder %v992_v21, 0.0 }
 0x268   : > { %12293 = vst [vmem:[#allocation165_spill] sm:$0xff] %v7750_v24  ;;  %v2039_v11 = vsel %vm1975_vm13, %v1943_v8, %v2007_v6  ;;  %v7790_v8 = vld [vmem:[%s6732_s25 + $0xd8] sm:$0xff] }
 0x269   : > { %12302 = vst [vmem:[#allocation174_spill] sm:$0xff] %v7790_v8  ;;  %vm11943_vm13 = vcmp.ne.f32.partialorder %v7790_v8, 0.0 }
 0x26a   : > { %2111 = vmax.xlane.f32.xlu0 %v2110_v52  ;;  %v7744_v52 = vpop.permute.xlu2 %2746 }
 0x26b   : > { %2099 = vmax.xlane.f32.xlu2 %v2098_v47  ;;  %12292 = vst [vmem:[#allocation164_spill] sm:$0xff] %v7744_v52  ;;  %v7754_v47 = vsel %vm11881_vm0, %v1082_v35, -1e+30  ;;  %v991_v35 = vadd.f32 %v7244_v39, %v951_v0 }
 0x26c   : > { %12294 = vst [vmem:[#allocation166_spill] sm:$0xff] %v7754_v47  ;;  %v1155_v46 = vmax.f32 %v7750_v24, %v7754_v47  ;;  %v1056_v24 = vmul.f32 0.2, %v992_v21 }
 0x26d   : > { %v1055_v47 = vmul.f32 0.2, %v991_v35  ;;  %vm1023_vm0 = vcmp.ge.f32.partialorder %v991_v35, 0.0 }
 0x26e   : > { %v1088_v6 = vsel %vm1024_vm1, %v992_v21, %v1056_v24  ;;  %v7812_v21 = vld [vmem:[%s6732_s25 + $0xe8] sm:$0xff] }
 0x26f   : > { %v1087_v49 = vsel %vm1023_vm0, %v991_v35, %v1055_v47  ;;  %12306 = vst [vmem:[#allocation178_spill] sm:$0xff] %v7812_v21 }
 0x272   : > { %v7774_v52 = vpop.permute.xlu2 %955 }
 0x273   : > { %12298 = vst [vmem:[#allocation170_spill] sm:$0xff] %v7774_v52 }
 0x27e   : > { %5767 = vrot.lane.b32.xlu0 %v7738_v36, %s6543_s19  ;;  %v7782_v36 = vsel %vm11888_vm3, %v2039_v11, -1e+30  ;;  %v1949_v11 = vadd.f32 %v7253_v59, %v7437_v20 }
 0x27f   : > { %12300 = vst [vmem:[#allocation172_spill] sm:$0xff] %v7782_v36 }
 0x280   : > { %v2013_v40 = vmul.f32 0.2, %v1949_v11  ;;  %vm1981_vm1 = vcmp.ge.f32.partialorder %v1949_v11, 0.0 }
 0x282   : > { %v2045_v35 = vsel %vm1981_vm1, %v1949_v11, %v2013_v40 }
 0x283   : > { %5757 = vrot.lane.b32.xlu2 %v7758_v17, %s6543_s19  ;;  %v7778_v17 = vsel %vm11889_vm2, %v2038_v43, -1e+30  ;;  %v1948_v43 = vadd.f32 %v7247_v14, %v7437_v20  ;;  %v961_v20 = vpop.permute.xlu0 %960  ;;  %vm11896_vm2 = vcmp.ne.f32.partialorder %v7812_v21, 0.0 }
 0x284   : > { %12299 = vst [vmem:[#allocation171_spill] sm:$0xff] %v7778_v17  ;;  %v2113_v0 = vmax.f32 %v7778_v17, %v7782_v36  ;;  %v7802_v36 = vsel %vm11944_vm12, %v1087_v49, -1e+30  ;;  %v7806_v17 = vsel %vm11943_vm13, %v1088_v6, -1e+30  ;;  %v989_v49 = vadd.f32 %v7244_v39, %v7419_v56 }
 0x285   : > { %1156 = vmax.xlane.f32.xlu1 %v1155_v46  ;;  %v7798_v46 = vpop.xlane.xlu2 %2081  ;;  %12303 = vst [vmem:[#allocation175_spill] sm:$0xff] %v7802_v36  ;;  %v2012_v52 = vmul.f32 0.2, %v1948_v43  ;;  %vm1980_vm0 = vcmp.ge.f32.partialorder %v1948_v43, 0.0  ;;  %v1164_v24 = vmax.f32 %v7802_v36, %v7806_v17  ;;  %v990_v6 = vadd.f32 %v7250_v42, %v7419_v56 }
 0x286   : > { %12304 = vst [vmem:[#allocation176_spill] sm:$0xff] %v7806_v17  ;;  %v982_v56 = vadd.f32 %v7250_v42, %v7417_v7  ;;  %v1053_v36 = vmul.f32 0.2, %v989_v49 }
 0x287   : > { %v2044_v47 = vsel %vm1980_vm0, %v1948_v43, %v2012_v52  ;;  %v981_v52 = vadd.f32 %v7244_v39, %v7417_v7  ;;  %vm1021_vm0 = vcmp.ge.f32.partialorder %v989_v49, 0.0  ;;  %vm1022_vm1 = vcmp.ge.f32.partialorder %v990_v6, 0.0 }
 0x288   : > { %v1946_v7 = vadd.f32 %v7247_v14, %v7730_v45  ;;  %vm1014_vm9 = vcmp.ge.f32.partialorder %v982_v56, 0.0 }
 0x289   : > { %v1045_v21 = vmul.f32 0.2, %v981_v52  ;;  %vm1013_vm8 = vcmp.ge.f32.partialorder %v981_v52, 0.0 }
 0x28b   : > { %v7834_v40 = vpop.permute.xlu0 %2750  ;;  %v1077_v61 = vsel %vm1013_vm8, %v981_v52, %v1045_v21  ;;  %vm1978_vm8 = vcmp.ge.f32.partialorder %v1946_v7, 0.0  ;;  %v2003_v52 = vmul.f32 0.2, %v1939_v55 }
 0x28c   : > { %12310 = vst [vmem:[#allocation182_spill] sm:$0xff] %v7834_v40  ;;  %v1046_v40 = vmul.f32 0.2, %v982_v56  ;;  %v7876_v25 = vsel %vm11946_vm6, %v1077_v61, -1e+30  ;;  %vm12367_vm6 = vcmp.ne.f32.partialorder %v7489_v16, 0.0 }
 0x28d   : > { %2114 = vmax.xlane.f32.xlu1 %v2113_v0  ;;  %v7809_v0 = vld [vmem:[%s6732_s25 + $0xe0] sm:$0xff]  ;;  %v7836_v43 = vpop.permute.xlu2 %5739 }
 0x28e   : > { %12305 = vst [vmem:[#allocation177_spill] sm:$0xff] %v7809_v0  ;;  %vm11897_vm3 = vcmp.ne.f32.partialorder %v7809_v0, 0.0  ;;  %v7854_v0 = vpop.permute.xlu1 %1915 }
 0x28f   : > { %v7826_v17 = vsel %vm11897_vm3, %v2044_v47, -1e+30  ;;  %12311 = vst [vmem:[#allocation183_spill] sm:$0xff] %v7836_v43  ;;  %v7846_v47 = vld [vmem:[%s6732_s25 + $0xc8] sm:$0xff]  ;;  %v1947_v43 = vadd.f32 %v7253_v59, %v7730_v45 }
 0x290   : > { %12308 = vst [vmem:[#allocation180_spill] sm:$0xff] %v7826_v17  ;;  %vm874_vm3 = vcmp.ne.f32.partialorder %v7846_v47, 0.0 }
 0x291   : > { %12313 = vst [vmem:[#allocation185_spill] sm:$0xff] %v7846_v47 }
 0x292   : > { %12314 = vst [vmem:[#allocation186_spill] sm:$0xff] %v7854_v0 }
 0x295   : > { %1165 = vmax.xlane.f32.xlu1 %v1164_v24  ;;  %v7830_v24 = vsel %vm11896_vm2, %v2045_v35, -1e+30  ;;  %v1054_v35 = vmul.f32 0.2, %v990_v6  ;;  %vm873_vm2 = vcmp.ne.f32.partialorder %v7843_v29, 0.0 }
 0x296   : > { %12309 = vst [vmem:[#allocation181_spill] sm:$0xff] %v7830_v24  ;;  %v2122_v11 = vmax.f32 %v7826_v17, %v7830_v24  ;;  %v1085_v24 = vsel %vm1021_vm0, %v989_v49, %v1053_v36  ;;  %v7870_v36 = vpop.xlane.xlu0 %2084  ;;  %v1078_v49 = vsel %vm1014_vm9, %v982_v56, %v1046_v40  ;;  %vm1979_vm0 = vcmp.ge.f32.partialorder %v1947_v43, 0.0  ;;  %v7886_v61 = vpop.xlane.xlu1 %1126 }
 0x297   : > { %v1086_v17 = vsel %vm1022_vm1, %v990_v6, %v1054_v35  ;;  %v7864_v26 = vsel %vm873_vm2, %v1085_v24, -1e+30  ;;  %v2010_v6 = vmul.f32 0.2, %v1946_v7  ;;  %v2011_v35 = vmul.f32 0.2, %v1947_v43 }
 0x298   : > { %v7868_v45 = vsel %vm874_vm3, %v1086_v17, -1e+30  ;;  %v7880_v24 = vsel %vm11945_vm5, %v1078_v49, -1e+30  ;;  %v2002_v17 = vmul.f32 0.2, %v1938_v33  ;;  %v996_v40 = vadd.f32 %v7250_v42, %v961_v20 }
 0x299   : > { %12316 = vst [vmem:[#allocation188_spill] sm:$0xff] %v7868_v45  ;;  %v1161_v21 = vmax.f32 %v7864_v26, %v7868_v45  ;;  %v2042_v56 = vsel %vm1978_vm8, %v1946_v7, %v2010_v6  ;;  %v2043_v0 = vsel %vm1979_vm0, %v1947_v43, %v2011_v35  ;;  %v2128_v45 = vsub.f32 %v7312_v57, %v7798_v46 }
 0x29a   : > { %vm1970_vm9 = vcmp.ge.f32.partialorder %v1938_v33, 0.0  ;;  %vm1971_vm1 = vcmp.ge.f32.partialorder %v1939_v55, 0.0  ;;  %v2129_v49 = vsub.f32 %v7343_v48, %v7798_v46  ;;  %v1149_v54 = vmax.f32 %v7876_v25, %v7880_v24  ;;  %v7903_v48 = vld [vmem:[%s6732_s25 + $0xf0] sm:$0xff]  ;;  %v7906_v46 = vld [vmem:[%s6732_s25 + $0xf8] sm:$0xff] }
 0x29b   : > { %v7898_v43 = vsel %vm11943_vm13, %v2043_v0, -1e+30  ;;  %v2034_v7 = vsel %vm1970_vm9, %v1938_v33, %v2002_v17  ;;  %v2035_v6 = vsel %vm1971_vm1, %v1939_v55, %v2003_v52  ;;  %v2160_v38 = vmul.f32 1.442695, %v2128_v45  ;;  %12318 = vst [vmem:[#allocation190_spill] sm:$0xff] %v7903_v48  ;;  %v12320_v17 = vld [vmem:[#allocation116_spill] sm:$0xff] }
 0x29c   : > { %12317 = vst [vmem:[#allocation189_spill] sm:$0xff] %v7898_v43  ;;  %vm1028_vm0 = vcmp.ge.f32.partialorder %v996_v40, 0.0  ;;  %v7912_v8 = vsel %vm867_vm11, %v2034_v7, -1e+30  ;;  %vm11940_vm9 = vcmp.ne.f32.partialorder %v7903_v48, 0.0  ;;  %vm11939_vm1 = vcmp.ne.f32.partialorder %v7906_v46, 0.0 }
 0x29d   : > { %2123 = vmax.xlane.f32.xlu1 %v2122_v11  ;;  %v7856_v11 = vpop.xlane.xlu2 %1129  ;;  %12319 = vst [vmem:[#allocation191_spill] sm:$0xff] %v7906_v46  ;;  %5946 = vpow2.f32 %v2160_v38  ;;  %v12321_v7 = vld [vmem:[#allocation115_spill] sm:$0xff]  ;;  %vm12365_vm5 = vcmp.ne.f32.partialorder %v7486_v41, 0.0 }
 0x29e   : > { %12315 = vst [vmem:[#allocation187_spill] sm:$0xff] %v7856_v11  ;;  %v995_v11 = vadd.f32 %v7244_v39, %v961_v20  ;;  %v7894_v20 = vsel %vm11944_vm12, %v2042_v56, -1e+30  ;;  %v2162_v56 = vmul.f32 1.442695, %v2129_v49  ;;  %v1133_v5 = vpop.xlane.xlu0 %1132  ;;  %v7936_v38 = vpop.xlane.xlu1 %2087  ;;  %vm12363_vm12 = vcmp.ne.f32.partialorder %v7619_v30, 0.0 }
 0x29f   : > { %v2119_v0 = vmax.f32 %v7894_v20, %v7898_v43  ;;  %v1177_v45 = vsub.f32 %v7359_v23, %v1133_v5  ;;  %v1178_v52 = vsub.f32 %v12320_v17, %v1133_v5  ;;  %v12322_v43 = vld [vmem:[#allocation120_spill] sm:$0xff]  ;;  %12324 = vst [vmem:[#allocation192_spill] sm:$0xff] %v7936_v38 }
 0x2a0   : > { %v1059_v35 = vmul.f32 0.2, %v995_v11  ;;  %vm1027_vm8 = vcmp.ge.f32.partialorder %v995_v11, 0.0  ;;  %5948 = vpow2.f32 %v2162_v56  ;;  %v12407_v17 = vld [vmem:[#allocation188_spill] sm:$0xff] }
 0x2a1   : > { %v1213_v23 = vmul.f32 1.442695, %v1177_v45  ;;  %v1215_v5 = vmul.f32 1.442695, %v1178_v52 }
 0x2a2   : > { %v1091_v55 = vsel %vm1027_vm8, %v995_v11, %v1059_v35  ;;  %vm12338_vm8 = vcmp.ne.f32.partialorder %v7486_v41, 0.0 }
 0x2a3   : > { %5950 = vpow2.f32 %v1213_v23 }
 0x2a4   : > { %5952 = vpow2.f32 %v1215_v5 }
 0x2a5   : > { %v7900_v57 = vpop.xlane.xlu2 %1135 }
 0x2a8   : > { %1162 = vmax.xlane.f32.xlu0 %v1161_v21  ;;  %v1060_v21 = vmul.f32 0.2, %v996_v40 }
 0x2aa   : > { %v1092_v33 = vsel %vm1028_vm0, %v996_v40, %v1060_v21  ;;  %v5947_v21 = vpop.eup %5946  ;;  %vm12340_vm0 = vcmp.ne.f32.partialorder %v7489_v16, 0.0 }
 0x2ab   : > { %v7934_v11 = vsel %vm11939_vm1, %v1092_v33, -1e+30  ;;  %v5949_v56 = vpop.eup %5948  ;;  %v7946_v45 = vsel %vm12071_vm4, %v5947_v21, 0.0  ;;  %vm12357_vm1 = vcmp.ne.f32.partialorder %v7287_v10, 0.0 }
 0x2ac   : > { %1150 = vmax.xlane.f32.xlu2 %v1149_v54  ;;  %v7916_v54 = vsel %vm868_vm10, %v2035_v6, -1e+30  ;;  %v7926_v6 = vpack.i.bf16 %v12322_v43, %v12321_v7  ;;  %12326 = vst [vmem:[#allocation193_spill] sm:$0xff] %v7946_v45  ;;  %v7952_v7 = vpop.permute.xlu1 %5744 }
 0x2ad   : > { %v2107_v49 = vmax.f32 %v7912_v8, %v7916_v54  ;;  %v2091_v40 = vpop.xlane.xlu2 %2090  ;;  %12329 = vst [vmem:[#allocation195_spill] sm:$0xff] %v7952_v7 }
 0x2ae   : > { %12323 = vst [vmem:[#allocation116_spill] sm:$0xff] %v7926_v6  ;;  %v2135_v33 = vsub.f32 %v7523_v28, %v2091_v40 }
 0x2b0   : > { %2120 = vmax.xlane.f32.xlu0 %v2119_v0  ;;  %v7930_v0 = vsel %vm11940_vm9, %v1091_v55, -1e+30  ;;  %v2134_v55 = vsub.f32 %v7519_v62, %v2091_v40  ;;  %vm12359_vm9 = vcmp.ne.f32.partialorder %v7290_v3, 0.0 }
 0x2b1   : > { %v1170_v35 = vmax.f32 %v7930_v0, %v7934_v11 }
 0x2b2   : > { %v2172_v43 = vmul.f32 1.442695, %v2134_v55 }
 0x2b4   : > { %2108 = vmax.xlane.f32.xlu2 %v2107_v49  ;;  %v7950_v49 = vsel %vm12060_vm7, %v5949_v56, 0.0  ;;  %5954 = vpow2.f32 %v2172_v43  ;;  %v7964_v56 = vpop.permute.xlu0 %3118  ;;  %v7966_v55 = vpop.permute.xlu1 %3114  ;;  %v12336_v43 = vld [vmem:[#allocation107_spill] sm:$0xff] }
 0x2b5   : > { %12328 = vst [vmem:[#allocation194_spill] sm:$0xff] %v7950_v49  ;;  %v2256_v23 = vadd.f32 %v7950_v49, %v7946_v45  ;;  %v7985_v46 = vpop.permute.xlu2 %3110 }
 0x2b6   : > { %5777 = vrot.lane.b32.xlu1 %v7926_v6, %s6543_s19  ;;  %v2174_v6 = vmul.f32 1.442695, %v2135_v33  ;;  %12334 = vst [vmem:[#allocation198_spill] sm:$0xff] %v7964_v56 }
 0x2b7   : > { %12335 = vst [vmem:[#allocation199_spill] sm:$0xff] %v7966_v55  ;;  %v12342_v55 = vld [vmem:[#allocation78_spill] sm:$0xff] }
 0x2b8   : > { %1171 = vmax.xlane.f32.xlu0 %v1170_v35  ;;  %v5951_v35 = vpop.eup %5950  ;;  %5956 = vpow2.f32 %v2174_v6  ;;  %v1173_v6 = vsub.f32 %v12336_v43, %v7886_v61  ;;  %12344 = vst [vmem:[#allocation201_spill] sm:$0xff] %v7985_v46 }
 0x2b9   : > { %v5953_v62 = vpop.eup %5952  ;;  %v7958_v5 = vsel %vm853_vm14, %v5951_v35, 0.0 }
 0x2ba   : > { %12331 = vst [vmem:[#allocation196_spill] sm:$0xff] %v7958_v5  ;;  %v7962_v21 = vsel %vm12086_vm15, %v5953_v62, 0.0  ;;  %v5955_v49 = vpop.eup %5954 }
 0x2bb   : > { %12333 = vst [vmem:[#allocation197_spill] sm:$0xff] %v7962_v21  ;;  %v1307_v33 = vadd.f32 %v7962_v21, %v7958_v5  ;;  %v7976_v62 = vsel %vm12338_vm8, %v5955_v49, 0.0  ;;  %v1205_v21 = vmul.f32 1.442695, %v1173_v6  ;;  %v12345_v49 = vld [vmem:[#allocation108_spill] sm:$0xff]  ;;  %vm12353_vm8 = vcmp.ne.f32.partialorder %v7541_v15, 0.0 }
 0x2bc   : > { %12339 = vst [vmem:[#allocation107_spill] sm:$0xff] %v7976_v62  ;;  %v2094_v5 = vpop.xlane.xlu0 %2093  ;;  %v2130_v43 = vsub.f32 %v12345_v49, %v7870_v36 }
 0x2bd   : > { %5958 = vpow2.f32 %v1205_v21 }
 0x2be   : > { %v5957_v7 = vpop.eup %5956 }
 0x2bf   : > { %v7980_v56 = vsel %vm12340_vm0, %v5957_v7, 0.0  ;;  %v12346_v7 = vld [vmem:[#allocation109_spill] sm:$0xff]  ;;  %vm12355_vm0 = vcmp.ne.f32.partialorder %v7544_v19, 0.0 }
 0x2c0   : > { %2257 = vadd.xlane.f32.xlu0 %v2256_v23  ;;  %v12337_v23 = vld [vmem:[#allocation112_spill] sm:$0xff] }
 0x2c1   : > { %v1174_v35 = vsub.f32 %v12337_v23, %v7886_v61  ;;  %12341 = vst [vmem:[#allocation112_spill] sm:$0xff] %v7980_v56  ;;  %v2265_v61 = vadd.f32 %v7980_v56, %v7976_v62  ;;  %v2131_v23 = vsub.f32 %v12346_v7, %v7870_v36  ;;  %v1180_v36 = vsub.f32 %v7506_v32, %v7900_v57 }
 0x2c3   : > { %v1207_v45 = vmul.f32 1.442695, %v1174_v35  ;;  %v2166_v6 = vmul.f32 1.442695, %v2131_v23 }
 0x2c4   : > { %v7993_v48 = vpop.permute.xlu0 %5752 }
 0x2c5   : > { %5960 = vpow2.f32 %v1207_v45  ;;  %12347 = vst [vmem:[#allocation108_spill] sm:$0xff] %v7993_v48  ;;  %v1179_v45 = vsub.f32 %v7502_v51, %v7900_v57  ;;  %v12351_v51 = vld [vmem:[#allocation100_spill] sm:$0xff] }
 0x2c8   : > { %1308 = vadd.xlane.f32.xlu0 %v1307_v33  ;;  %v7983_v33 = vpop.xlane.xlu1 %1138 }
 0x2c9   : > { %12343 = vst [vmem:[#allocation200_spill] sm:$0xff] %v7983_v33  ;;  %v5959_v33 = vpop.eup %5958 }
 0x2cb   : > { %v5961_v56 = vpop.eup %5960 }
 0x2cc   : > { %3122 = vperm.xlu2 %5748, %v12342_v55   ;;  %v2164_v55 = vmul.f32 1.442695, %v2130_v43  ;;  %v8005_v43 = vsel %vm12071_vm4, %v5959_v33, 0.0 }
 0x2cd   : > { %12348 = vst [vmem:[#allocation109_spill] sm:$0xff] %v8005_v43 }
 0x2ce   : > { %5962 = vpow2.f32 %v2164_v55  ;;  %v12350_v55 = vld [vmem:[#allocation21_spill] sm:$0xff] }
 0x2cf   : > { %5964 = vpow2.f32 %v2166_v6  ;;  %v8012_v7 = vperm.slane %v12350_v55, 2 }
 0x2d0   : > { %2266 = vadd.xlane.f32.xlu0 %v2265_v61  ;;  %v7997_v61 = vpop.xlane.xlu1 %2096 }
 0x2d4   : > { %v5963_v57 = vpop.eup %5962 }
 0x2d6   : > { %v1142_v35 = vpop.xlane.xlu2 %1141 }
 0x2d7   : > { %v1183_v46 = vsub.f32 %v7680_v37, %v1142_v35  ;;  %v1184_v38 = vsub.f32 %v7684_v27, %v1142_v35  ;;  %v8009_v37 = vsel %vm12060_vm7, %v5961_v56, 0.0  ;;  %v1217_v27 = vmul.f32 1.442695, %v1179_v45  ;;  %v5965_v56 = vpop.eup %5964  ;;  %v12352_v35 = vld [vmem:[#allocation69_spill] sm:$0xff] }
 0x2d8   : > { %12349 = vst [vmem:[#allocation202_spill] sm:$0xff] %v8009_v37  ;;  %v1301_v32 = vadd.f32 %v8009_v37, %v8005_v43  ;;  %v3131_v45 = vadd.f32 %v8012_v7, %v12352_v35 }
 0x2d9   : > { %v1225_v21 = vmul.f32 1.442695, %v1183_v46  ;;  %v1227_v49 = vmul.f32 1.442695, %v1184_v38  ;;  %v8015_v46 = vperm.slane %v12351_v51, 2  ;;  %v2136_v51 = vsub.f32 %v7471_v53, %v2094_v5 }
 0x2da   : > { %v1219_v38 = vmul.f32 1.442695, %v1180_v36 }
 0x2db   : > { %5966 = vpow2.f32 %v1225_v21  ;;  %v1145_v21 = vpop.xlane.xlu0 %1144  ;;  %v3132_v48 = vadd.f32 %v8015_v46, %v12352_v35 }
 0x2dc   : > { %5968 = vpow2.f32 %v1227_v49 }
 0x2dd   : > { %5970 = vpow2.f32 %v1217_v27  ;;  %v8039_v27 = vsel %vm12357_vm1, %v5963_v57, 0.0  ;;  %vm3163_vm1 = vcmp.ge.f32.partialorder %v3131_v45, 0.0 }
 0x2de   : > { %v2100_v23 = vpop.xlane.xlu2 %2099  ;;  %5972 = vpow2.f32 %v1219_v38  ;;  %12358 = vst [vmem:[#allocation204_spill] sm:$0xff] %v8039_v27  ;;  %v988_v38 = vadd.f32 %v7250_v42, %v7728_v60 }
 0x2df   : > { %v2140_v33 = vsub.f32 %v7718_v4, %v2100_v23  ;;  %v2141_v6 = vsub.f32 %v7722_v34, %v2100_v23  ;;  %v2137_v4 = vsub.f32 %v7475_v31, %v2094_v5  ;;  %v8027_v34 = vpop.xlane.xlu1 %1147  ;;  %v987_v31 = vadd.f32 %v7244_v39, %v7728_v60 }
 0x2e0   : > { %1302 = vadd.xlane.f32.xlu1 %v1301_v32  ;;  %v8043_v32 = vsel %vm12359_vm9, %v5965_v56, 0.0  ;;  %vm3164_vm9 = vcmp.ge.f32.partialorder %v3132_v48, 0.0  ;;  %v1052_v60 = vmul.f32 0.2, %v988_v38  ;;  %vm1020_vm13 = vcmp.ge.f32.partialorder %v988_v38, 0.0 }
 0x2e1   : > { %v5967_v49 = vpop.eup %5966  ;;  %v2184_v36 = vmul.f32 1.442695, %v2140_v33  ;;  %v2186_v55 = vmul.f32 1.442695, %v2141_v6  ;;  %12360 = vst [vmem:[#allocation205_spill] sm:$0xff] %v8043_v32  ;;  %v2259_v57 = vadd.f32 %v8043_v32, %v8039_v27 }
 0x2e2   : > { %v5969_v62 = vpop.eup %5968  ;;  %v8031_v23 = vsel %vm12353_vm8, %v5967_v49, 0.0  ;;  %v2178_v33 = vmul.f32 1.442695, %v2137_v4  ;;  %v1051_v35 = vmul.f32 0.2, %v987_v31  ;;  %vm1019_vm8 = vcmp.ge.f32.partialorder %v987_v31, 0.0 }
 0x2e3   : > { %12354 = vst [vmem:[#allocation69_spill] sm:$0xff] %v8031_v23  ;;  %5974 = vpow2.f32 %v2184_v36  ;;  %v8035_v53 = vsel %vm12355_vm0, %v5969_v62, 0.0  ;;  %v2176_v62 = vmul.f32 1.442695, %v2136_v51  ;;  %v5971_v6 = vpop.eup %5970  ;;  %v3195_v49 = vmul.f32 0.2, %v3131_v45 }
 0x2e4   : > { %12356 = vst [vmem:[#allocation203_spill] sm:$0xff] %v8035_v53  ;;  %5976 = vpow2.f32 %v2186_v55  ;;  %v1316_v5 = vadd.f32 %v8035_v53, %v8031_v23  ;;  %v5973_v56 = vpop.eup %5972  ;;  %v3196_v55 = vmul.f32 0.2, %v3132_v48  ;;  %v1185_v53 = vsub.f32 %v7629_v18, %v1145_v21 }
 0x2e5   : > { %5978 = vpow2.f32 %v2176_v62  ;;  %v1186_v4 = vsub.f32 %v7633_v63, %v1145_v21  ;;  %vm12361_vm0 = vcmp.ne.f32.partialorder %v7616_v44, 0.0  ;;  %v8065_v62 = vsel %vm12365_vm5, %v5971_v6, 0.0  ;;  %v12442_v44 = vld [vmem:[#allocation117_spill] sm:$0xff] }
 0x2e6   : > { %1317 = vadd.xlane.f32.xlu0 %v1316_v5  ;;  %5980 = vpow2.f32 %v2178_v33  ;;  %v2103_v5 = vpop.xlane.xlu0 %2102  ;;  %12366 = vst [vmem:[#allocation208_spill] sm:$0xff] %v8065_v62  ;;  %v8069_v18 = vsel %vm12367_vm6, %v5973_v56, 0.0  ;;  %v1083_v21 = vsel %vm1019_vm8, %v987_v31, %v1051_v35  ;;  %v3228_v23 = vsel %vm3164_vm9, %v3132_v48, %v3196_v55  ;;  %vm12380_vm8 = vmmov %vm12361_vm0 }
 0x2e7   : > { %12368 = vst [vmem:[#allocation209_spill] sm:$0xff] %v8069_v18  ;;  %v8071_v33 = vpop.xlane.xlu1 %2105  ;;  %v1229_v41 = vmul.f32 1.442695, %v1185_v53  ;;  %v1084_v16 = vsel %vm1020_vm13, %v988_v38, %v1052_v60  ;;  %v1231_v56 = vmul.f32 1.442695, %v1186_v4  ;;  %v1310_v37 = vadd.f32 %v8069_v18, %v8065_v62 }
 0x2e8   : > { %2260 = vadd.xlane.f32.xlu1 %v2259_v57  ;;  %vm12371_vm5 = vcmp.ne.f32.partialorder %v7761_v22, 0.0  ;;  %vm12372_vm6 = vcmp.ne.f32.partialorder %v7764_v12, 0.0  ;;  %v8097_v38 = vsel %vm12060_vm7, %v3228_v23, -1e+30  ;;  %v2142_v35 = vsub.f32 %v7653_v1, %v2103_v5 }
 0x2e9   : > { %v5975_v36 = vpop.eup %5974  ;;  %v8089_v48 = vsel %vm12371_vm5, %v1083_v21, -1e+30  ;;  %v8093_v53 = vsel %vm12372_vm6, %v1084_v16, -1e+30  ;;  %12373 = vst [vmem:[#allocation210_spill] sm:$0xff] %v8097_v38  ;;  %5982 = vpow2.f32 %v1229_v41  ;;  %vm12376_vm9 = vcmp.ne.f32.partialorder %v7457_v50, 0.0 }
 0x2ea   : > { %v5977_v51 = vpop.eup %5976  ;;  %v8057_v32 = vsel %vm12361_vm0, %v5975_v36, 0.0  ;;  %v3227_v36 = vsel %vm3163_vm1, %v3131_v45, %v3195_v49  ;;  %5984 = vpow2.f32 %v1231_v56  ;;  %v1158_v60 = vmax.f32 %v8089_v48, %v8093_v53 }
 0x2eb   : > { %12362 = vst [vmem:[#allocation206_spill] sm:$0xff] %v8057_v32  ;;  %v8061_v57 = vsel %vm12363_vm12, %v5977_v51, 0.0  ;;  %v12369_v51 = vld [vmem:[#allocation129_spill] sm:$0xff]  ;;  %v5979_v43 = vpop.eup %5978  ;;  %v8085_v31 = vsel %vm12071_vm4, %v3227_v36, -1e+30  ;;  %vm12374_vm1 = vcmp.ne.f32.partialorder %v7454_v9, 0.0 }
 0x2ec   : > { %12364 = vst [vmem:[#allocation207_spill] sm:$0xff] %v8061_v57  ;;  %v2274_v63 = vadd.f32 %v8061_v57, %v8057_v32  ;;  %v1944_v27 = vadd.f32 %v7247_v14, %v12369_v51  ;;  %v1945_v6 = vadd.f32 %v7253_v59, %v12369_v51  ;;  %v5981_v45 = vpop.eup %5980  ;;  %v8105_v16 = vsel %vm12374_vm1, %v5979_v43, 0.0 }
 0x2ed   : > { %12370 = vst [vmem:[#allocation129_spill] sm:$0xff] %v8085_v31  ;;  %v8109_v23 = vsel %vm12376_vm9, %v5981_v45, 0.0  ;;  %v3291_v4 = vmax.f32 %v8085_v31, %v8097_v38  ;;  %vm12382_vm0 = vcmp.ne.f32.partialorder %v7619_v30, 0.0  ;;  %v12441_v30 = vld [vmem:[#allocation192_spill] sm:$0xff] }
 0x2ee   : > { %2275 = vadd.xlane.f32.xlu0 %v2274_v63  ;;  %v2008_v49 = vmul.f32 0.2, %v1944_v27  ;;  %v2009_v55 = vmul.f32 0.2, %v1945_v6  ;;  %vm1976_vm12 = vcmp.ge.f32.partialorder %v1944_v27, 0.0  ;;  %vm1977_vm13 = vcmp.ge.f32.partialorder %v1945_v6, 0.0  ;;  %v1154_v1 = vpop.xlane.xlu0 %1153 }
 0x2ef   : > { %12375 = vst [vmem:[#allocation211_spill] sm:$0xff] %v8105_v16  ;;  %v8111_v41 = vpop.permute.xlu1 %5762  ;;  %v2268_v43 = vadd.f32 %v8109_v23, %v8105_v16  ;;  %v5983_v36 = vpop.eup %5982 }
 0x2f0   : > { %1311 = vadd.xlane.f32.xlu1 %v1310_v37  ;;  %v2143_v37 = vsub.f32 %v7657_v13, %v2103_v5  ;;  %12377 = vst [vmem:[#allocation212_spill] sm:$0xff] %v8109_v23  ;;  %v2188_v13 = vmul.f32 1.442695, %v2142_v35  ;;  %v2040_v5 = vsel %vm1976_vm12, %v1944_v27, %v2008_v49  ;;  %v2041_v63 = vsel %vm1977_vm13, %v1945_v6, %v2009_v55  ;;  %v5985_v51 = vpop.eup %5984  ;;  %v12378_v35 = vld [vmem:[#allocation156_spill] sm:$0xff]  ;;  %v12379_v6 = vld [vmem:[#allocation157_spill] sm:$0xff] }
 0x2f1   : > { %v8119_v56 = vsel %vm873_vm2, %v2040_v5, -1e+30  ;;  %v8123_v45 = vsel %vm874_vm3, %v2041_v63, -1e+30  ;;  %v1191_v27 = vsub.f32 %v12378_v35, %v1154_v1  ;;  %v1192_v49 = vsub.f32 %v12379_v6, %v1154_v1  ;;  %v12385_v35 = vld [vmem:[#allocation161_spill] sm:$0xff]  ;;  %v12386_v6 = vld [vmem:[#allocation162_spill] sm:$0xff] }
 0x2f2   : > { %v2190_v21 = vmul.f32 1.442695, %v2143_v37  ;;  %5986 = vpow2.f32 %v2188_v13  ;;  %v2116_v55 = vmax.f32 %v8119_v56, %v8123_v45  ;;  %v8131_v37 = vsel %vm12380_vm8, %v5983_v36, 0.0 }
 0x2f3   : > { %12381 = vst [vmem:[#allocation156_spill] sm:$0xff] %v8131_v37  ;;  %v1243_v13 = vmul.f32 1.442695, %v1192_v49 }
 0x2f4   : > { %5988 = vpow2.f32 %v2190_v21 }
 0x2f5   : > { %1159 = vmax.xlane.f32.xlu2 %v1158_v60  ;;  %v8135_v60 = vsel %vm12382_vm0, %v5985_v51, 0.0  ;;  %v12387_v51 = vld [vmem:[#allocation143_spill] sm:$0xff] }
 0x2f6   : > { %3292 = vmax.xlane.f32.xlu0 %v3291_v4  ;;  %12383 = vst [vmem:[#allocation157_spill] sm:$0xff] %v8135_v60  ;;  %v1241_v4 = vmul.f32 1.442695, %v1191_v27  ;;  %v2112_v63 = vpop.xlane.xlu0 %2111  ;;  %v1319_v1 = vadd.f32 %v8135_v60, %v8131_v37  ;;  %vm12388_vm5 = vcmp.ne.f32.partialorder %v12387_v51, 0.0 }
 0x2f7   : > { %v8137_v5 = vpop.permute.xlu1 %3126  ;;  %v2148_v36 = vsub.f32 %v12385_v35, %v2112_v63  ;;  %v2149_v57 = vsub.f32 %v12386_v6, %v2112_v63 }
 0x2f8   : > { %2269 = vadd.xlane.f32.xlu1 %v2268_v43  ;;  %12384 = vst [vmem:[#allocation213_spill] sm:$0xff] %v8137_v5  ;;  %v5987_v21 = vpop.eup %5986  ;;  %5990 = vpow2.f32 %v1241_v4 }
 0x2f9   : > { %5992 = vpow2.f32 %v1243_v13  ;;  %v8145_v27 = vsel %vm12388_vm5, %v5987_v21, 0.0  ;;  %v2200_v23 = vmul.f32 1.442695, %v2148_v36  ;;  %v2202_v16 = vmul.f32 1.442695, %v2149_v57  ;;  %v12395_v36 = vld [vmem:[#allocation80_spill] sm:$0xff] }
 0x2fa   : > { %v5989_v43 = vpop.eup %5988  ;;  %12389 = vst [vmem:[#allocation161_spill] sm:$0xff] %v8145_v27  ;;  %v3135_v6 = vadd.f32 %v8012_v7, %v12395_v36 }
 0x2fb   : > { %5994 = vpow2.f32 %v2200_v23  ;;  %v3136_v23 = vadd.f32 %v8015_v46, %v12395_v36  ;;  %v8189_v36 = vpop.permute.xlu2 %5757 }
 0x2fc   : > { %5996 = vpow2.f32 %v2202_v16  ;;  %v3199_v32 = vmul.f32 0.2, %v3135_v6  ;;  %vm3167_vm1 = vcmp.ge.f32.partialorder %v3135_v6, 0.0 }
 0x2fd   : > { %2117 = vmax.xlane.f32.xlu2 %v2116_v55  ;;  %v12390_v55 = vld [vmem:[#allocation144_spill] sm:$0xff]  ;;  %v3200_v18 = vmul.f32 0.2, %v3136_v23  ;;  %vm3168_vm9 = vcmp.ge.f32.partialorder %v3136_v23, 0.0 }
 0x2fe   : > { %vm12391_vm6 = vcmp.ne.f32.partialorder %v12390_v55, 0.0 }
 0x2ff   : > { %v8149_v49 = vsel %vm12391_vm6, %v5989_v43, 0.0  ;;  %v8151_v60 = vpop.xlane.xlu1 %1156 }
 0x300   : > { %1320 = vadd.xlane.f32.xlu1 %v1319_v1  ;;  %12392 = vst [vmem:[#allocation162_spill] sm:$0xff] %v8149_v49  ;;  %v2277_v4 = vadd.f32 %v8149_v49, %v8145_v27  ;;  %v5991_v1 = vpop.eup %5990  ;;  %v12397_v49 = vld [vmem:[#allocation106_spill] sm:$0xff] }
 0x301   : > { %v5993_v35 = vpop.eup %5992  ;;  %v8157_v13 = vsel %vm867_vm11, %v5991_v1, 0.0  ;;  %v12396_v1 = vld [vmem:[#allocation101_spill] sm:$0xff]  ;;  %v12399_v27 = vld [vmem:[#allocation158_spill] sm:$0xff] }
 0x302   : > { %12393 = vst [vmem:[#allocation214_spill] sm:$0xff] %v8157_v13  ;;  %v8161_v63 = vsel %vm868_vm10, %v5993_v35, 0.0  ;;  %v5995_v21 = vpop.eup %5994  ;;  %v8175_v35 = vpack.i.bf16 %v12397_v49, %v12396_v1  ;;  %vm12400_vm12 = vcmp.ne.f32.partialorder %v12399_v27, 0.0  ;;  %v3231_v49 = vsel %vm3167_vm1, %v3135_v6, %v3199_v32 }
 0x303   : > { %12394 = vst [vmem:[#allocation215_spill] sm:$0xff] %v8161_v63  ;;  %v1328_v57 = vadd.f32 %v8161_v63, %v8157_v13  ;;  %v5997_v43 = vpop.eup %5996  ;;  %v8179_v63 = vsel %vm12400_vm12, %v5995_v21, 0.0  ;;  %v12402_v13 = vld [vmem:[#allocation159_spill] sm:$0xff]  ;;  %v3232_v21 = vsel %vm3168_vm9, %v3136_v23, %v3200_v18  ;;  %vm12426_vm9 = vcmp.ne.f32.partialorder %v7541_v15, 0.0 }
 0x304   : > { %12398 = vst [vmem:[#allocation80_spill] sm:$0xff] %v8175_v35  ;;  %vm12403_vm13 = vcmp.ne.f32.partialorder %v12402_v13, 0.0 }
 0x305   : > { %12401 = vst [vmem:[#allocation216_spill] sm:$0xff] %v8179_v63  ;;  %v8183_v37 = vsel %vm12403_vm13, %v5997_v43, 0.0  ;;  %v8195_v43 = vsel %vm853_vm14, %v3231_v49, -1e+30 }
 0x306   : > { %12404 = vst [vmem:[#allocation217_spill] sm:$0xff] %v8183_v37 }
 0x307   : > { %v8169_v16 = vpop.xlane.xlu1 %2114  ;;  %12405 = vst [vmem:[#allocation218_spill] sm:$0xff] %v8195_v43 }
 0x308   : > { %2278 = vadd.xlane.f32.xlu1 %v2277_v4  ;;  %v8171_v4 = vpop.permute.xlu0 %5767 }
 0x30f   : > { %v8191_v1 = vpop.xlane.xlu1 %1165 }
 0x310   : > { %1329 = vadd.xlane.f32.xlu1 %v1328_v57  ;;  %v2286_v57 = vadd.f32 %v8183_v37, %v8179_v63 }
 0x315   : > { %5772 = vrot.lane.b32.xlu2 %v8175_v35, %s6543_s19  ;;  %v8199_v35 = vsel %vm12086_vm15, %v3232_v21, -1e+30 }
 0x316   : > { %12406 = vst [vmem:[#allocation219_spill] sm:$0xff] %v8199_v35  ;;  %v3297_v32 = vmax.f32 %v8195_v43, %v8199_v35 }
 0x317   : > { %v8207_v31 = vpop.xlane.xlu1 %2123 }
 0x318   : > { %2287 = vadd.xlane.f32.xlu1 %v2286_v57 }
 0x31b   : > { %v1163_v62 = vpop.xlane.xlu0 %1162 }
 0x31c   : > { %v1197_v52 = vsub.f32 %v7864_v26, %v1163_v62  ;;  %v1198_v37 = vsub.f32 %v12407_v17, %v1163_v62  ;;  %v12408_v17 = vld [vmem:[#allocation189_spill] sm:$0xff] }
 0x31e   : > { %v1253_v63 = vmul.f32 1.442695, %v1197_v52  ;;  %v1255_v38 = vmul.f32 1.442695, %v1198_v37  ;;  %v12409_v37 = vld [vmem:[#allocation114_spill] sm:$0xff] }
 0x31f   : > { %v1151_v18 = vpop.xlane.xlu2 %1150 }
 0x320   : > { %5998 = vpow2.f32 %v1253_v63  ;;  %v1189_v6 = vsub.f32 %v7876_v25, %v1151_v18  ;;  %v1190_v49 = vsub.f32 %v7880_v24, %v1151_v18  ;;  %3298 = vmax.xlane.f32.xlu1 %v3297_v32  ;;  %v3141_v63 = vadd.f32 %v8012_v7, %v12409_v37 }
 0x321   : > { %6000 = vpow2.f32 %v1255_v38  ;;  %v3142_v25 = vadd.f32 %v8015_v46, %v12409_v37 }
 0x322   : > { %v1237_v23 = vmul.f32 1.442695, %v1189_v6  ;;  %v1239_v57 = vmul.f32 1.442695, %v1190_v49  ;;  %vm3173_vm8 = vcmp.ge.f32.partialorder %v3141_v63, 0.0 }
 0x323   : > { %v2121_v21 = vpop.xlane.xlu0 %2120  ;;  %vm3174_vm0 = vcmp.ge.f32.partialorder %v3142_v25, 0.0  ;;  %v3206_v37 = vmul.f32 0.2, %v3142_v25 }
 0x324   : > { %6002 = vpow2.f32 %v1237_v23  ;;  %v2154_v26 = vsub.f32 %v7894_v20, %v2121_v21  ;;  %v2155_v52 = vsub.f32 %v12408_v17, %v2121_v21 }
 0x325   : > { %6004 = vpow2.f32 %v1239_v57 }
 0x326   : > { %v5999_v62 = vpop.eup %5998  ;;  %v2212_v24 = vmul.f32 1.442695, %v2154_v26  ;;  %v2214_v38 = vmul.f32 1.442695, %v2155_v52 }
 0x327   : > { %v6001_v32 = vpop.eup %6000  ;;  %v2109_v18 = vpop.xlane.xlu2 %2108  ;;  %v8217_v6 = vsel %vm873_vm2, %v5999_v62, 0.0  ;;  %v3205_v62 = vmul.f32 0.2, %v3141_v63 }
 0x328   : > { %12410 = vst [vmem:[#allocation188_spill] sm:$0xff] %v8217_v6  ;;  %6006 = vpow2.f32 %v2212_v24  ;;  %v2146_v20 = vsub.f32 %v7912_v8, %v2109_v18  ;;  %v2147_v49 = vsub.f32 %v7916_v54, %v2109_v18  ;;  %v8223_v23 = vsel %vm874_vm3, %v6001_v32, 0.0  ;;  %v12412_v24 = vld [vmem:[#allocation170_spill] sm:$0xff]  ;;  %v12413_v18 = vld [vmem:[#allocation147_spill] sm:$0xff] }
 0x329   : > { %12411 = vst [vmem:[#allocation189_spill] sm:$0xff] %v8223_v23  ;;  %6008 = vpow2.f32 %v2214_v38  ;;  %v1337_v57 = vadd.f32 %v8223_v23, %v8217_v6  ;;  %v993_v8 = vadd.f32 %v7244_v39, %v12412_v24  ;;  %vm12414_vm5 = vcmp.ne.f32.partialorder %v12413_v18, 0.0  ;;  %v12416_v6 = vld [vmem:[#allocation148_spill] sm:$0xff] }
 0x32a   : > { %v6003_v21 = vpop.eup %6002  ;;  %v2196_v26 = vmul.f32 1.442695, %v2146_v20  ;;  %v2198_v17 = vmul.f32 1.442695, %v2147_v49  ;;  %vm12417_vm6 = vcmp.ne.f32.partialorder %v12416_v6, 0.0  ;;  %v5778_v49 = vpop.permute.xlu1 %5777 }
 0x32b   : > { %v6005_v52 = vpop.eup %6004  ;;  %1338 = vadd.xlane.f32.xlu1 %v1337_v57  ;;  %v1172_v54 = vpop.xlane.xlu0 %1171  ;;  %v8231_v32 = vsel %vm12414_vm5, %v6003_v21, 0.0  ;;  %v5780_v57 = vunpack.i.h.bf16 %v5778_v49  ;;  %v5779_v35 = vunpack.i.l.bf16 %v5778_v49  ;;  %v994_v21 = vadd.f32 %v7250_v42, %v12412_v24 }
 0x32c   : > { %12415 = vst [vmem:[#allocation114_spill] sm:$0xff] %v8231_v32  ;;  %6010 = vpow2.f32 %v2196_v26  ;;  %v1203_v38 = vsub.f32 %v7930_v0, %v1172_v54  ;;  %v1204_v23 = vsub.f32 %v7934_v11, %v1172_v54  ;;  %v8237_v20 = vsel %vm12417_vm6, %v6005_v52, 0.0  ;;  %v12419_v0 = vld [vmem:[#allocation173_spill] sm:$0xff]  ;;  %v12422_v54 = vld [vmem:[#allocation174_spill] sm:$0xff] }
 0x32d   : > { %12418 = vst [vmem:[#allocation170_spill] sm:$0xff] %v8237_v20  ;;  %6012 = vpow2.f32 %v2198_v17  ;;  %v1325_v39 = vadd.f32 %v8237_v20, %v8231_v32  ;;  %vm12420_vm12 = vcmp.ne.f32.partialorder %v12419_v0, 0.0  ;;  %2833 = vmatpush.msra.mxu2 %v5780_v57  ;;  %vm12423_vm13 = vcmp.ne.f32.partialorder %v12422_v54, 0.0 }
 0x32e   : > { %v6007_v43 = vpop.eup %6006  ;;  %v1265_v52 = vmul.f32 1.442695, %v1203_v38  ;;  %v3237_v20 = vsel %vm3173_vm8, %v3141_v63, %v3205_v62  ;;  %v3238_v49 = vsel %vm3174_vm0, %v3142_v25, %v3206_v37  ;;  %v1267_v32 = vmul.f32 1.442695, %v1204_v23 }
 0x32f   : > { %v6009_v26 = vpop.eup %6008  ;;  %1326 = vadd.xlane.f32.xlu0 %v1325_v39  ;;  %v8245_v11 = vsel %vm12420_vm12, %v6007_v43, 0.0  ;;  %v1057_v24 = vmul.f32 0.2, %v993_v8  ;;  %2834 = vmatpush.msra.mxu2 %v5779_v35  ;;  %vm1025_vm1 = vcmp.ge.f32.partialorder %v993_v8, 0.0  ;;  %v1058_v43 = vmul.f32 0.2, %v994_v21 }
 0x330   : > { %12421 = vst [vmem:[#allocation220_spill] sm:$0xff] %v8245_v11  ;;  %v8249_v17 = vsel %vm12423_vm13, %v6009_v26, 0.0  ;;  %v8261_v63 = vsel %vm12426_vm9, %v3237_v20, -1e+30  ;;  %vm12428_vm8 = vcmp.ne.f32.partialorder %v7544_v19, 0.0  ;;  %vm1026_vm0 = vcmp.ge.f32.partialorder %v994_v21, 0.0 }
 0x331   : > { %12424 = vst [vmem:[#allocation221_spill] sm:$0xff] %v8249_v17  ;;  %v2295_v42 = vadd.f32 %v8249_v17, %v8245_v11  ;;  %v8265_v25 = vsel %vm12428_vm8, %v3238_v49, -1e+30  ;;  %v12430_v35 = vld [vmem:[#allocation186_spill] sm:$0xff]  ;;  %6014 = vpow2.f32 %v1265_v52  ;;  %v1089_v49 = vsel %vm1025_vm1, %v993_v8, %v1057_v24  ;;  %v12433_v52 = vld [vmem:[#allocation132_spill] sm:$0xff] }
 0x332   : > { %v6011_v39 = vpop.eup %6010  ;;  %12427 = vst [vmem:[#allocation223_spill] sm:$0xff] %v8261_v63  ;;  %v1950_v23 = vadd.f32 %v7247_v14, %v12430_v35  ;;  %v1951_v26 = vadd.f32 %v7253_v59, %v12430_v35  ;;  %6016 = vpow2.f32 %v1267_v32  ;;  %v12432_v14 = vld [vmem:[#allocation187_spill] sm:$0xff]  ;;  %v3306_v17 = vmax.f32 %v8261_v63, %v8265_v25  ;;  %v12435_v59 = vld [vmem:[#allocation177_spill] sm:$0xff]  ;;  %v12438_v24 = vld [vmem:[#allocation178_spill] sm:$0xff] }
 0x333   : > { %v6013_v5 = vpop.eup %6012  ;;  %2296 = vadd.xlane.f32.xlu1 %v2295_v42  ;;  %v2258_v38 = vpop.xlane.xlu0 %2257  ;;  %v8257_v57 = vsel %vm867_vm11, %v6011_v39, 0.0  ;;  %12429 = vst [vmem:[#allocation224_spill] sm:$0xff] %v8265_v25  ;;  %v1090_v42 = vsel %vm1026_vm0, %v994_v21, %v1058_v43  ;;  %v1175_v39 = vsub.f32 %v12433_v52, %v12432_v14  ;;  %vm12436_vm5 = vcmp.ne.f32.partialorder %v12435_v59, 0.0 }
 0x334   : > { %12425 = vst [vmem:[#allocation222_spill] sm:$0xff] %v8257_v57  ;;  %v8269_v62 = vmax.f32 %v2258_v38, 1e-30  ;;  %v8273_v37 = vsel %vm868_vm10, %v6013_v5, 0.0  ;;  %v12434_v38 = vld [vmem:[#allocation133_spill] sm:$0xff]  ;;  %vm12439_vm6 = vcmp.ne.f32.partialorder %v12438_v24, 0.0  ;;  %v2132_v54 = vsub.f32 %v12442_v44, %v12441_v30 }
 0x335   : > { %12431 = vst [vmem:[#allocation186_spill] sm:$0xff] %v8273_v37  ;;  %v2283_v20 = vadd.f32 %v8273_v37, %v8257_v57  ;;  %v1176_v5 = vsub.f32 %v12434_v38, %v12432_v14  ;;  %v8289_v32 = vsel %vm12436_vm5, %v1089_v49, -1e+30  ;;  %v2014_v35 = vmul.f32 0.2, %v1950_v23  ;;  %v12437_v37 = vld [vmem:[#allocation128_spill] sm:$0xff] }
 0x336   : > { %6018 = vrcp.f32 %v8269_v62  ;;  %v3147_v8 = vadd.f32 %v8012_v7, %v12437_v37  ;;  %v8295_v21 = vsel %vm12439_vm6, %v1090_v42, -1e+30  ;;  %vm1982_vm12 = vcmp.ge.f32.partialorder %v1950_v23, 0.0 }
 0x337   : > { %2284 = vadd.xlane.f32.xlu0 %v2283_v20  ;;  %12440 = vst [vmem:[#allocation187_spill] sm:$0xff] %v8295_v21  ;;  %v2015_v43 = vmul.f32 0.2, %v1951_v26  ;;  %v6015_v20 = vpop.eup %6014  ;;  %v3148_v14 = vadd.f32 %v8015_v46, %v12437_v37  ;;  %vm1983_vm13 = vcmp.ge.f32.partialorder %v1951_v26, 0.0  ;;  %v1209_v38 = vmul.f32 1.442695, %v1175_v39 }
 0x338   : > { %v6017_v52 = vpop.eup %6016  ;;  %v1211_v11 = vmul.f32 1.442695, %v1176_v5  ;;  %v1167_v57 = vmax.f32 %v8289_v32, %v8295_v21  ;;  %v2046_v25 = vsel %vm1982_vm12, %v1950_v23, %v2014_v35  ;;  %vm3179_vm1 = vcmp.ge.f32.partialorder %v3147_v8, 0.0  ;;  %v12443_v37 = vld [vmem:[#allocation190_spill] sm:$0xff]  ;;  %v12452_v21 = vld [vmem:[#allocation201_spill] sm:$0xff] }
 0x339   : > { %v3211_v63 = vmul.f32 0.2, %v3147_v8  ;;  %v2047_v58 = vsel %vm1983_vm13, %v1951_v26, %v2015_v43  ;;  %v3212_v2 = vmul.f32 0.2, %v3148_v14  ;;  %vm12444_vm9 = vcmp.ne.f32.partialorder %v12443_v37, 0.0  ;;  %v12450_v26 = vld [vmem:[#allocation118_spill] sm:$0xff] }
 0x33a   : > { %v8306_v39 = vsel %vm12444_vm9, %v6015_v20, 0.0  ;;  %vm3180_vm0 = vcmp.ge.f32.partialorder %v3148_v14, 0.0  ;;  %6020 = vpow2.f32 %v1209_v38  ;;  %vm12449_vm5 = vmmov %vm12444_vm9  ;;  %v2133_v43 = vsub.f32 %v12450_v26, %v12441_v30 }
 0x33b   : > { %3307 = vmax.xlane.f32.xlu1 %v3306_v17  ;;  %12445 = vst [vmem:[#allocation132_spill] sm:$0xff] %v8306_v39  ;;  %v12446_v17 = vld [vmem:[#allocation191_spill] sm:$0xff]  ;;  %v8314_v35 = vsel %vm12449_vm5, %v2046_v25, -1e+30  ;;  %6022 = vpow2.f32 %v1211_v11  ;;  %v2329_v38 = vand.u32 2147483647, %v8269_v62  ;;  %v3243_v25 = vsel %vm3179_vm1, %v3147_v8, %v3211_v63 }
 0x33c   : > { %v6019_v49 = vpop.eup %6018  ;;  %vm12447_vm8 = vcmp.ne.f32.partialorder %v12446_v17, 0.0  ;;  %v3244_v37 = vsel %vm3180_vm0, %v3148_v14, %v3212_v2  ;;  %v3153_v30 = vadd.f32 %v8012_v7, %v12452_v21  ;;  %vm2325_vm13 = vweird.f32 %v8269_v62  ;;  %v12453_v63 = vld [vmem:[#allocation200_spill] sm:$0xff] }
 0x33d   : > { %v2321_v42 = vmul.f32 %v6019_v49, %v8269_v62  ;;  %v8310_v5 = vsel %vm12447_vm8, %v6017_v52, 0.0  ;;  %vm12451_vm6 = vmmov %vm12447_vm8  ;;  %vm2326_vm12 = vweird.f32 %v6019_v49  ;;  %vm2330_vm1 = vcmp.eq.f32.partialorder %v2329_v38, 8.507059e+37  ;;  %v12454_v8 = vld [vmem:[#allocation136_spill] sm:$0xff] }
 0x33e   : > { %1168 = vmax.xlane.f32.xlu2 %v1167_v57  ;;  %12448 = vst [vmem:[#allocation133_spill] sm:$0xff] %v8310_v5  ;;  %v8320_v44 = vsel %vm12451_vm6, %v2047_v58, -1e+30  ;;  %v2331_v57 = vand.u32 2147483648, %v8269_v62  ;;  %v1346_v52 = vadd.f32 %v8310_v5, %v8306_v39  ;;  %v3154_v58 = vadd.f32 %v8015_v46, %v12452_v21  ;;  %vm2327_vm9 = vmor %vm2325_vm13, %vm2326_vm12 }
 0x33f   : > { %v2322_v23 = vsub.f32 1.0, %v2321_v42  ;;  %v2168_v42 = vmul.f32 1.442695, %v2132_v54  ;;  %v2125_v26 = vmax.f32 %v8314_v35, %v8320_v44  ;;  %v1181_v14 = vsub.f32 %v12454_v8, %v12453_v63 }
 0x340   : > { %v2332_v5 = vor.u32 1.1754944e-38, %v2331_v57  ;;  %v6021_v54 = vpop.eup %6020  ;;  %vm12456_vm8 = vcmp.ne.f32.partialorder %v12413_v18, 0.0  ;;  %vm12458_vm0 = vcmp.ne.f32.partialorder %v12416_v6, 0.0  ;;  %v3218_v57 = vmul.f32 0.2, %v3154_v58 }
 0x341   : > { %v2323_v20 = vmul.f32 %v6019_v49, %v2322_v23  ;;  %v2170_v23 = vmul.f32 1.442695, %v2133_v43  ;;  %v6023_v2 = vpop.eup %6022  ;;  %v8340_v21 = vsel %vm12456_vm8, %v3243_v25, -1e+30  ;;  %v8344_v62 = vsel %vm12458_vm0, %v3244_v37, -1e+30 }
 0x342   : > { %12457 = vst [vmem:[#allocation192_spill] sm:$0xff] %v8340_v21  ;;  %6024 = vpow2.f32 %v2168_v42  ;;  %v3217_v43 = vmul.f32 0.2, %v3153_v30  ;;  %vm3185_vm5 = vcmp.ge.f32.partialorder %v3153_v30, 0.0  ;;  %vm3186_vm6 = vcmp.ge.f32.partialorder %v3154_v58, 0.0 }
 0x343   : > { %1347 = vadd.xlane.f32.xlu1 %v1346_v52  ;;  %v2324_v11 = vadd.f32 %v6019_v49, %v2323_v20  ;;  %12459 = vst [vmem:[#allocation117_spill] sm:$0xff] %v8344_v62  ;;  %6026 = vpow2.f32 %v2170_v23  ;;  %v12461_v52 = vld [vmem:[#allocation137_spill] sm:$0xff]  ;;  %vm12462_vm12 = vcmp.ne.f32.partialorder %v7287_v10, 0.0  ;;  %vm12463_vm13 = vcmp.ne.f32.partialorder %v7290_v3, 0.0 }
 0x344   : > { %v1182_v38 = vsub.f32 %v12461_v52, %v12453_v63  ;;  %v8354_v37 = vsel %vm12462_vm12, %v6021_v54, 0.0  ;;  %v8358_v42 = vsel %vm12463_vm13, %v6023_v2, 0.0  ;;  %v1221_v25 = vmul.f32 1.442695, %v1181_v14  ;;  %v12468_v14 = vld [vmem:[#allocation141_spill] sm:$0xff] }
 0x345   : > { %v2328_v39 = vsel %vm2327_vm9, %v6019_v49, %v2324_v11  ;;  %v12460_v49 = vld [vmem:[#allocation193_spill] sm:$0xff]  ;;  %v3250_v63 = vsel %vm3186_vm6, %v3154_v58, %v3218_v57  ;;  %vm12464_vm9 = vcmp.ne.f32.partialorder %v7761_v22, 0.0  ;;  %v12469_v57 = vld [vmem:[#allocation142_spill] sm:$0xff]  ;;  %vm12475_vm6 = vcmp.ne.f32.partialorder %v12438_v24, 0.0 }
 0x346   : > { %2126 = vmax.xlane.f32.xlu2 %v2125_v26  ;;  %v8336_v17 = vsel %vm2330_vm1, %v2332_v5, %v2328_v39  ;;  %v3123_v39 = vpop.permute.xlu2 %3122  ;;  %v3315_v5 = vmax.f32 %v8340_v21, %v8344_v62  ;;  %v3249_v26 = vsel %vm3185_vm5, %v3153_v30, %v3217_v43  ;;  %v1223_v8 = vmul.f32 1.442695, %v1182_v38 }
 0x347   : > { %12455 = vst [vmem:[#allocation128_spill] sm:$0xff] %v8336_v17  ;;  %v2334_v20 = vmul.f32 %v8336_v17, %v12460_v49  ;;  %v3159_v11 = vadd.f32 %v8012_v7, %v3123_v39  ;;  %v3160_v23 = vadd.f32 %v8015_v46, %v3123_v39  ;;  %v1304_v49 = vadd.f32 %v8358_v42, %v8354_v37 }
 0x348   : > { %v8366_v54 = vsel %vm12464_vm9, %v3249_v26, -1e+30  ;;  %vm12466_vm1 = vcmp.ne.f32.partialorder %v7764_v12, 0.0  ;;  %6028 = vpow2.f32 %v1221_v25  ;;  %v2138_v30 = vsub.f32 %v12468_v14, %v7997_v61 }
 0x349   : > { %2784 = vmatmul.f32.vlgmr.msra.gmra.mxu1 %v2334_v20  ;;  %v6025_v20 = vpop.eup %6024  ;;  %12465 = vst [vmem:[#allocation118_spill] sm:$0xff] %v8366_v54  ;;  %v8370_v2 = vsel %vm12466_vm1, %v3250_v63, -1e+30  ;;  %v3223_v58 = vmul.f32 0.2, %v3159_v11  ;;  %6030 = vpow2.f32 %v1223_v8  ;;  %v2139_v38 = vsub.f32 %v12469_v57, %v7997_v61  ;;  %v12471_v61 = vld [vmem:[#allocation145_spill] sm:$0xff] }
 0x34a   : > { %v6027_v52 = vpop.eup %6026  ;;  %12467 = vst [vmem:[#allocation201_spill] sm:$0xff] %v8370_v2  ;;  %v3224_v43 = vmul.f32 0.2, %v3160_v23  ;;  %vm3191_vm8 = vcmp.ge.f32.partialorder %v3159_v11, 0.0  ;;  %vm3192_vm0 = vcmp.ge.f32.partialorder %v3160_v23, 0.0  ;;  %v3324_v39 = vmax.f32 %v8366_v54, %v8370_v2 }
 0x34b   : > { %3316 = vmax.xlane.f32.xlu1 %v3315_v5  ;;  %v8380_v5 = vsel %vm853_vm14, %v6025_v20, 0.0  ;;  %v8384_v25 = vsel %vm12086_vm15, %v6027_v52, 0.0  ;;  %v2180_v26 = vmul.f32 1.442695, %v2138_v30  ;;  %v3255_v8 = vsel %vm3191_vm8, %v3159_v11, %v3223_v58  ;;  %v12472_v20 = vld [vmem:[#allocation146_spill] sm:$0xff] }
 0x34c   : > { %12470 = vst [vmem:[#allocation200_spill] sm:$0xff] %v8384_v25  ;;  %v2182_v14 = vmul.f32 1.442695, %v2139_v38  ;;  %v1187_v57 = vsub.f32 %v12471_v61, %v8027_v34  ;;  %v2262_v2 = vadd.f32 %v8384_v25, %v8380_v5  ;;  %v1188_v62 = vsub.f32 %v12472_v20, %v8027_v34 }
 0x34d   : > { %vm12473_vm5 = vcmp.ne.f32.partialorder %v12435_v59, 0.0  ;;  %vm12477_vm12 = vcmp.ne.f32.partialorder %v7454_v9, 0.0  ;;  %vm12478_vm13 = vcmp.ne.f32.partialorder %v7457_v50, 0.0  ;;  %vm12481_vm9 = vcmp.ne.f32.partialorder %v7541_v15, 0.0 }
 0x34e   : > { %1305 = vadd.xlane.f32.xlu2 %v1304_v49  ;;  %v3256_v49 = vsel %vm3192_vm0, %v3160_v23, %v3224_v43  ;;  %v6029_v54 = vpop.eup %6028  ;;  %v8394_v52 = vsel %vm12473_vm5, %v3255_v8, -1e+30  ;;  %v1233_v23 = vmul.f32 1.442695, %v1187_v57  ;;  %v1235_v30 = vmul.f32 1.442695, %v1188_v62 }
 0x34f   : > { %v6031_v21 = vpop.eup %6030  ;;  %12474 = vst [vmem:[#allocation136_spill] sm:$0xff] %v8394_v52  ;;  %v8398_v11 = vsel %vm12475_vm6, %v3256_v49, -1e+30  ;;  %v8404_v34 = vsel %vm12477_vm12, %v6029_v54, 0.0  ;;  %v12479_v54 = vld [vmem:[#allocation149_spill] sm:$0xff]  ;;  %vm12482_vm1 = vcmp.ne.f32.partialorder %v7544_v19, 0.0 }
 0x350   : > { %12476 = vst [vmem:[#allocation193_spill] sm:$0xff] %v8398_v11  ;;  %v3333_v58 = vmax.f32 %v8394_v52, %v8398_v11  ;;  %v2144_v49 = vsub.f32 %v12479_v54, %v8071_v33  ;;  %vm12485_vm12 = vcmp.ne.f32.partialorder %v12387_v51, 0.0  ;;  %v12488_v19 = vld [vmem:[#allocation202_spill] sm:$0xff] }
 0x352   : > { %v2192_v54 = vmul.f32 1.442695, %v2144_v49 }
 0x353   : > { %3325 = vmax.xlane.f32.xlu1 %v3324_v39  ;;  %v1303_v63 = vpop.xlane.xlu1 %1302 }
 0x354   : > { %v1349_v17 = vmax.f32 %v1303_v63, 1e-30 }
 0x356   : > { %6032 = vrcp.f32 %v1349_v17  ;;  %2263 = vadd.xlane.f32.xlu2 %v2262_v2  ;;  %v8408_v2 = vsel %vm12478_vm13, %v6031_v21, 0.0  ;;  %v1376_v20 = vand.u32 2147483648, %v1349_v17  ;;  %vm1370_vm0 = vweird.f32 %v1349_v17 }
 0x357   : > { %6034 = vpow2.f32 %v2180_v26  ;;  %v1313_v62 = vadd.f32 %v8408_v2, %v8404_v34  ;;  %vm12489_vm13 = vcmp.ne.f32.partialorder %v12390_v55, 0.0 }
 0x358   : > { %6036 = vpow2.f32 %v2182_v14  ;;  %v12480_v14 = vld [vmem:[#allocation150_spill] sm:$0xff] }
 0x359   : > { %6038 = vpow2.f32 %v1233_v23  ;;  %v2145_v61 = vsub.f32 %v12480_v14, %v8071_v33 }
 0x35a   : > { %6040 = vpow2.f32 %v1235_v30 }
 0x35b   : > { %3334 = vmax.xlane.f32.xlu1 %v3333_v58  ;;  %v2261_v43 = vpop.xlane.xlu1 %2260  ;;  %v1374_v58 = vand.u32 2147483647, %v1349_v17  ;;  %v2194_v11 = vmul.f32 1.442695, %v2145_v61  ;;  %v12487_v61 = vld [vmem:[#allocation109_spill] sm:$0xff] }
 0x35c   : > { %v6033_v38 = vpop.eup %6032  ;;  %v8410_v39 = vmax.f32 %v2261_v43, 1e-30 }
 0x35d   : > { %v6035_v26 = vpop.eup %6034  ;;  %v1366_v63 = vmul.f32 %v6033_v38, %v1349_v17  ;;  %vm1371_vm8 = vweird.f32 %v6033_v38  ;;  %vm1375_vm6 = vcmp.eq.f32.partialorder %v1374_v58, 8.507059e+37  ;;  %v12491_v58 = vld [vmem:[#allocation166_spill] sm:$0xff] }
 0x35e   : > { %v6037_v8 = vpop.eup %6036  ;;  %6042 = vrcp.f32 %v8410_v39  ;;  %1314 = vadd.xlane.f32.xlu2 %v1313_v62  ;;  %v8421_v57 = vsel %vm12481_vm9, %v6035_v26, 0.0  ;;  %vm1372_vm5 = vmor %vm1370_vm0, %vm1371_vm8  ;;  %v1377_v26 = vor.u32 1.1754944e-38, %v1376_v20 }
 0x35f   : > { %v1367_v21 = vsub.f32 1.0, %v1366_v63  ;;  %v8425_v23 = vsel %vm12482_vm1, %v6037_v8, 0.0  ;;  %v6039_v43 = vpop.eup %6038  ;;  %6044 = vpow2.f32 %v2192_v54  ;;  %v1194_v54 = vsub.f32 %v12491_v58, %v8151_v60 }
 0x360   : > { %12483 = vst [vmem:[#allocation137_spill] sm:$0xff] %v8425_v23  ;;  %v6041_v25 = vpop.eup %6040  ;;  %v2271_v33 = vadd.f32 %v8425_v23, %v8421_v57  ;;  %v8434_v17 = vsel %vm12485_vm12, %v6039_v43, 0.0  ;;  %6046 = vpow2.f32 %v2194_v11  ;;  %vm2341_vm1 = vweird.f32 %v8410_v39 }
 0x361   : > { %v1368_v30 = vmul.f32 %v6033_v38, %v1367_v21  ;;  %v12484_v21 = vld [vmem:[#allocation165_spill] sm:$0xff]  ;;  %12486 = vst [vmem:[#allocation141_spill] sm:$0xff] %v8434_v17  ;;  %vm12501_vm12 = vcmp.ne.f32.partialorder %v7761_v22, 0.0 }
 0x362   : > { %v1193_v52 = vsub.f32 %v12484_v21, %v8151_v60 }
 0x363   : > { %v1369_v62 = vadd.f32 %v6033_v38, %v1368_v30 }
 0x364   : > { %v6043_v63 = vpop.eup %6042 }
 0x365   : > { %v1373_v14 = vsel %vm1372_vm5, %v6033_v38, %v1369_v62  ;;  %v2337_v8 = vmul.f32 %v6043_v63, %v8410_v39  ;;  %v8440_v38 = vsel %vm12489_vm13, %v6041_v25, 0.0  ;;  %vm2342_vm9 = vweird.f32 %v6043_v63  ;;  %v6045_v60 = vpop.eup %6044 }
 0x366   : > { %2272 = vadd.xlane.f32.xlu2 %v2271_v33  ;;  %v1378_v49 = vsel %vm1375_vm6, %v1377_v26, %v1373_v14  ;;  %12490 = vst [vmem:[#allocation142_spill] sm:$0xff] %v8440_v38  ;;  %v2345_v33 = vand.u32 2147483647, %v8410_v39  ;;  %v2347_v26 = vand.u32 2147483648, %v8410_v39  ;;  %v1245_v25 = vmul.f32 1.442695, %v1193_v52  ;;  %vm2343_vm8 = vmor %vm2341_vm1, %vm2342_vm9 }
 0x367   : > { %v1379_v30 = vmul.f32 %v1378_v49, %v12487_v61  ;;  %v1380_v23 = vmul.f32 %v1378_v49, %v12488_v19  ;;  %v2338_v20 = vsub.f32 1.0, %v2337_v8  ;;  %v1247_v49 = vmul.f32 1.442695, %v1194_v54  ;;  %v12493_v52 = vld [vmem:[#allocation89_spill] sm:$0xff]  ;;  %v12494_v39 = vld [vmem:[#allocation171_spill] sm:$0xff]  ;;  %v12495_v54 = vld [vmem:[#allocation204_spill] sm:$0xff] }
 0x368   : > { %v1160_v62 = vpop.xlane.xlu2 %1159  ;;  %v1322_v61 = vadd.f32 %v8440_v38, %v8434_v17  ;;  %v2348_v58 = vor.u32 1.1754944e-38, %v2347_v26  ;;  %vm2346_vm0 = vcmp.eq.f32.partialorder %v2345_v33, 8.507059e+37  ;;  %v3138_v26 = vadd.f32 %v8015_v46, %v12493_v52 }
 0x369   : > { %v1195_v43 = vsub.f32 %v8089_v48, %v1160_v62  ;;  %v1196_v14 = vsub.f32 %v8093_v53, %v1160_v62  ;;  %1637 = vmatmul.f32.vlgmr.msrb.gmra.mxu2 %v1379_v30  ;;  %1702 = vmatmul.f32.vlgmr.msrb.gmra.mxu3 %v1380_v23  ;;  %v2339_v19 = vmul.f32 %v6043_v63, %v2338_v20  ;;  %v6047_v53 = vpop.eup %6046  ;;  %vm12497_vm5 = vcmp.ne.f32.partialorder %v12413_v18, 0.0 }
 0x36a   : > { %v3137_v30 = vadd.f32 %v8012_v7, %v12493_v52  ;;  %v2150_v20 = vsub.f32 %v12494_v39, %v8169_v16  ;;  %vm12499_vm6 = vcmp.ne.f32.partialorder %v12416_v6, 0.0  ;;  %vm12503_vm13 = vcmp.ne.f32.partialorder %v7764_v12, 0.0  ;;  %v8483_v39 = vpop.xlane.xlu1 %1311 }
 0x36b   : > { %v1249_v21 = vmul.f32 1.442695, %v1195_v43  ;;  %v1251_v8 = vmul.f32 1.442695, %v1196_v14  ;;  %v2340_v11 = vadd.f32 %v6043_v63, %v2339_v19  ;;  %v8466_v19 = vsel %vm12497_vm5, %v6045_v60, 0.0 }
 0x36c   : > { %12498 = vst [vmem:[#allocation146_spill] sm:$0xff] %v8466_v19  ;;  %v3202_v60 = vmul.f32 0.2, %v3138_v26  ;;  %vm3169_vm9 = vcmp.ge.f32.partialorder %v3137_v30, 0.0  ;;  %vm3170_vm1 = vcmp.ge.f32.partialorder %v3138_v26, 0.0 }
 0x36d   : > { %6048 = vpow2.f32 %v1249_v21  ;;  %v2344_v48 = vsel %vm2343_vm8, %v6043_v63, %v2340_v11  ;;  %v12496_v63 = vld [vmem:[#allocation172_spill] sm:$0xff]  ;;  %v2204_v11 = vmul.f32 1.442695, %v2150_v20  ;;  %vm12505_vm8 = vcmp.ne.f32.partialorder %v12399_v27, 0.0 }
 0x36e   : > { %6050 = vpow2.f32 %v1251_v8  ;;  %1323 = vadd.xlane.f32.xlu2 %v1322_v61  ;;  %v8451_v23 = vsel %vm2346_vm0, %v2348_v58, %v2344_v48  ;;  %v2151_v33 = vsub.f32 %v12496_v63, %v8169_v16  ;;  %vm12507_vm0 = vcmp.ne.f32.partialorder %v12402_v13, 0.0 }
 0x36f   : > { %12492 = vst [vmem:[#allocation145_spill] sm:$0xff] %v8451_v23  ;;  %6052 = vpow2.f32 %v1245_v25  ;;  %v2350_v62 = vmul.f32 %v8451_v23, %v12495_v54  ;;  %v8470_v25 = vsel %vm12499_vm6, %v6047_v53, 0.0 }
 0x370   : > { %6054 = vpow2.f32 %v1247_v49  ;;  %v2118_v43 = vpop.xlane.xlu2 %2117  ;;  %12500 = vst [vmem:[#allocation149_spill] sm:$0xff] %v8470_v25  ;;  %v3201_v49 = vmul.f32 0.2, %v3137_v30  ;;  %v2206_v58 = vmul.f32 1.442695, %v2151_v33  ;;  %v2280_v16 = vadd.f32 %v8470_v25, %v8466_v19  ;;  %v12540_v19 = vld [vmem:[#allocation98_spill] sm:$0xff] }
 0x371   : > { %v2152_v14 = vsub.f32 %v8119_v56, %v2118_v43  ;;  %2787 = vmatmul.f32.gmra.mxu1 %v2350_v62  ;;  %v2153_v21 = vsub.f32 %v8123_v45, %v2118_v43  ;;  %6056 = vpow2.f32 %v2204_v11  ;;  %v3234_v33 = vsel %vm3170_vm1, %v3138_v26, %v3202_v60 }
 0x372   : > { %6058 = vpow2.f32 %v2206_v58  ;;  %v3233_v63 = vsel %vm3169_vm9, %v3137_v30, %v3201_v49  ;;  %v12511_v58 = vld [vmem:[#allocation135_spill] sm:$0xff]  ;;  %v8517_v23 = vpop.xlane.xlu1 %2269 }
 0x373   : > { %v6049_v8 = vpop.eup %6048  ;;  %v2208_v52 = vmul.f32 1.442695, %v2152_v14  ;;  %v2210_v20 = vmul.f32 1.442695, %v2153_v21  ;;  %vm12512_vm6 = vcmp.ne.f32.partialorder %v12511_v58, 0.0 }
 0x374   : > { %v6051_v61 = vpop.eup %6050  ;;  %v8477_v56 = vsel %vm12501_vm12, %v6049_v8, 0.0  ;;  %v8501_v30 = vsel %vm12512_vm6, %v3234_v33, -1e+30  ;;  %v5769_v33 = vunpack.i.l.bf16 %v8171_v4  ;;  %v8772_v29 = vmax.f32 %v8517_v23, 1e-30 }
 0x375   : > { %12502 = vst [vmem:[#allocation150_spill] sm:$0xff] %v8477_v56  ;;  %v6053_v48 = vpop.eup %6052  ;;  %v8481_v53 = vsel %vm12503_vm13, %v6051_v61, 0.0  ;;  %6060 = vpow2.f32 %v2208_v52  ;;  %v12509_v61 = vld [vmem:[#allocation134_spill] sm:$0xff] }
 0x376   : > { %12504 = vst [vmem:[#allocation165_spill] sm:$0xff] %v8481_v53  ;;  %v6055_v45 = vpop.eup %6054  ;;  %2281 = vadd.xlane.f32.xlu2 %v2280_v16  ;;  %v1334_v54 = vadd.f32 %v8481_v53, %v8477_v56  ;;  %v8489_v14 = vsel %vm12505_vm8, %v6053_v48, 0.0  ;;  %6062 = vpow2.f32 %v2210_v20  ;;  %vm12510_vm5 = vcmp.ne.f32.partialorder %v12509_v61, 0.0  ;;  %v12513_v48 = vld [vmem:[#allocation61_spill] sm:$0xff]  ;;  %v8537_v53 = vpop.xlane.xlu0 %1308 }
 0x377   : > { %12506 = vst [vmem:[#allocation109_spill] sm:$0xff] %v8489_v14  ;;  %v8493_v8 = vsel %vm12507_vm0, %v6055_v45, 0.0  ;;  %v8497_v11 = vsel %vm12510_vm5, %v3233_v63, -1e+30  ;;  %v6057_v49 = vpop.eup %6056  ;;  %v5770_v16 = vunpack.i.h.bf16 %v8171_v4  ;;  %v3133_v52 = vadd.f32 %v8012_v7, %v12513_v48 }
 0x378   : > { %1335 = vadd.xlane.f32.xlu0 %v1334_v54  ;;  %v5773_v62 = vpop.permute.xlu2 %5772  ;;  %12508 = vst [vmem:[#allocation202_spill] sm:$0xff] %v8493_v8  ;;  %v1331_v26 = vadd.f32 %v8493_v8, %v8489_v14  ;;  %v6059_v60 = vpop.eup %6058  ;;  %v3134_v45 = vadd.f32 %v8015_v46, %v12513_v48  ;;  %v3300_v20 = vmax.f32 %v8497_v11, %v8501_v30  ;;  %v5765_v48 = vunpack.i.h.bf16 %v8111_v41 }
 0x379   : > { %v5775_v43 = vunpack.i.h.bf16 %v5773_v62  ;;  %v5774_v21 = vunpack.i.l.bf16 %v5773_v62  ;;  %v12514_v62 = vld [vmem:[#allocation175_spill] sm:$0xff]  ;;  %vm3165_vm9 = vcmp.ge.f32.partialorder %v3133_v52, 0.0  ;;  %v3197_v4 = vmul.f32 0.2, %v3133_v52 }
 0x37a   : > { %v1199_v63 = vsub.f32 %v12514_v62, %v8191_v1  ;;  %v8526_v62 = vsel %vm12503_vm13, %v6059_v60, 0.0  ;;  %vm3166_vm1 = vcmp.ge.f32.partialorder %v3134_v45, 0.0  ;;  %v5760_v56 = vunpack.i.h.bf16 %v8189_v36 }
 0x37b   : > { %2835 = vmatpush.msra.mxu2 %v5775_v43  ;;  %v6061_v54 = vpop.eup %6060  ;;  %12517 = vst [vmem:[#allocation89_spill] sm:$0xff] %v8526_v62  ;;  %vm12523_vm8 = vcmp.ne.f32.partialorder %v7287_v10, 0.0  ;;  %vm12525_vm0 = vcmp.ne.f32.partialorder %v7290_v3, 0.0  ;;  %vm12529_vm5 = vcmp.ne.f32.partialorder %v12419_v0, 0.0 }
 0x37c   : > { %v6063_v43 = vpop.eup %6062 }
 0x37d   : > { %2836 = vmatpush.msra.mxu2 %v5774_v21  ;;  %v12515_v21 = vld [vmem:[#allocation176_spill] sm:$0xff] }
 0x37e   : > { %1332 = vadd.xlane.f32.xlu2 %v1331_v26  ;;  %v1200_v25 = vsub.f32 %v12515_v21, %v8191_v1  ;;  %v8522_v26 = vsel %vm12501_vm12, %v6057_v49, 0.0  ;;  %v5764_v1 = vunpack.i.l.bf16 %v8111_v41  ;;  %v1257_v21 = vmul.f32 1.442695, %v1199_v63 }
 0x37f   : > { %2837 = vmatpush.msra.mxu2 %v5770_v16  ;;  %12516 = vst [vmem:[#allocation166_spill] sm:$0xff] %v8522_v26  ;;  %v3198_v16 = vmul.f32 0.2, %v3134_v45  ;;  %v8535_v49 = vsel %vm874_vm3, %v6063_v43, 0.0  ;;  %v2289_v60 = vadd.f32 %v8526_v62, %v8522_v26  ;;  %v5759_v43 = vunpack.i.l.bf16 %v8189_v36  ;;  %v12521_v62 = vld [vmem:[#allocation181_spill] sm:$0xff] }
 0x380   : > { %3301 = vmax.xlane.f32.xlu0 %v3300_v20  ;;  %v8531_v20 = vsel %vm873_vm2, %v6061_v54, 0.0  ;;  %12519 = vst [vmem:[#allocation204_spill] sm:$0xff] %v8535_v49  ;;  %v3229_v54 = vsel %vm3165_vm9, %v3133_v52, %v3197_v4  ;;  %6064 = vpow2.f32 %v1257_v21  ;;  %v2157_v26 = vsub.f32 %v12521_v62, %v8207_v31  ;;  %v12527_v21 = vld [vmem:[#allocation195_spill] sm:$0xff] }
 0x381   : > { %2838 = vmatpush.msra.mxu2 %v5769_v33  ;;  %12518 = vst [vmem:[#allocation171_spill] sm:$0xff] %v8531_v20  ;;  %v1259_v33 = vmul.f32 1.442695, %v1200_v25  ;;  %v2292_v41 = vadd.f32 %v8535_v49, %v8531_v20  ;;  %v3230_v63 = vsel %vm3166_vm1, %v3134_v45, %v3198_v16  ;;  %v12520_v25 = vld [vmem:[#allocation180_spill] sm:$0xff]  ;;  %v8554_v52 = vsel %vm12523_vm8, %v3229_v54, -1e+30  ;;  %v8560_v45 = vpop.xlane.xlu1 %1320  ;;  %v2267_v54 = vpop.xlane.xlu0 %2266 }
 0x382   : > { %12524 = vst [vmem:[#allocation172_spill] sm:$0xff] %v8554_v52  ;;  %v8558_v36 = vsel %vm12525_vm0, %v3230_v63, -1e+30  ;;  %v2218_v16 = vmul.f32 1.442695, %v2157_v26  ;;  %v5746_v63 = vunpack.i.l.bf16 %v12527_v21  ;;  %v12535_v20 = vld [vmem:[#allocation97_spill] sm:$0xff] }
 0x383   : > { %2839 = vmatpush.msra.mxu2 %v5765_v48  ;;  %v2156_v48 = vsub.f32 %v12520_v25, %v8207_v31  ;;  %6066 = vpow2.f32 %v1259_v33  ;;  %12526 = vst [vmem:[#allocation61_spill] sm:$0xff] %v8558_v36  ;;  %v3294_v31 = vmax.f32 %v8554_v52, %v8558_v36  ;;  %v5747_v33 = vunpack.i.h.bf16 %v12527_v21  ;;  %v12556_v36 = vld [vmem:[#allocation152_spill] sm:$0xff] }
 0x384   : > { %vm12536_vm9 = vcmp.ne.f32.partialorder %v12435_v59, 0.0  ;;  %vm12538_vm1 = vcmp.ne.f32.partialorder %v12438_v24, 0.0 }
 0x385   : > { %2840 = vmatpush.msra.mxu2 %v5764_v1  ;;  %v12522_v1 = vld [vmem:[#allocation108_spill] sm:$0xff]  ;;  %v2216_v4 = vmul.f32 1.442695, %v2156_v48  ;;  %v12531_v48 = vld [vmem:[#allocation174_spill] sm:$0xff] }
 0x386   : > { %2290 = vadd.xlane.f32.xlu2 %v2289_v60  ;;  %v5755_v60 = vunpack.i.h.bf16 %v12522_v1  ;;  %v6065_v62 = vpop.eup %6064  ;;  %vm12532_vm6 = vcmp.ne.f32.partialorder %v12531_v48, 0.0 }
 0x387   : > { %2841 = vmatpush.msra.mxu2 %v5760_v56  ;;  %v5754_v56 = vunpack.i.l.bf16 %v12522_v1  ;;  %6068 = vpow2.f32 %v2216_v4  ;;  %v8570_v26 = vsel %vm12529_vm5, %v6065_v62, 0.0  ;;  %vm12541_vm5 = vcmp.ne.f32.partialorder %v7454_v9, 0.0 }
 0x388   : > { %2293 = vadd.xlane.f32.xlu0 %v2292_v41  ;;  %6070 = vpow2.f32 %v2218_v16  ;;  %12530 = vst [vmem:[#allocation175_spill] sm:$0xff] %v8570_v26  ;;  %v8624_v9 = vmax.f32 %v2267_v54, 1e-30 }
 0x389   : > { %2842 = vmatpush.msra.mxu2 %v5759_v43  ;;  %v6067_v41 = vpop.eup %6066  ;;  %v12528_v43 = vld [vmem:[#allocation183_spill] sm:$0xff]  ;;  %v8581_v16 = vpop.xlane.xlu1 %2278 }
 0x38a   : > { %v5742_v25 = vunpack.i.h.bf16 %v12528_v43  ;;  %v8574_v1 = vsel %vm12532_vm6, %v6067_v41, 0.0  ;;  %vm12543_vm6 = vcmp.ne.f32.partialorder %v7457_v50, 0.0 }
 0x38b   : > { %2843 = vmatpush.msra.mxu2 %v5755_v60  ;;  %12533 = vst [vmem:[#allocation176_spill] sm:$0xff] %v8574_v1  ;;  %v12534_v60 = vld [vmem:[#allocation88_spill] sm:$0xff]  ;;  %v1340_v21 = vadd.f32 %v8574_v1, %v8570_v26 }
 0x38c   : > { %v3140_v4 = vadd.f32 %v8015_v46, %v12534_v60 }
 0x38d   : > { %2844 = vmatpush.msra.mxu2 %v5754_v56  ;;  %v3139_v56 = vadd.f32 %v8012_v7, %v12534_v60  ;;  %v6069_v62 = vpop.eup %6068 }
 0x38e   : > { %3295 = vmax.xlane.f32.xlu2 %v3294_v31  ;;  %v5741_v31 = vunpack.i.l.bf16 %v12528_v43  ;;  %v3204_v49 = vmul.f32 0.2, %v3140_v4  ;;  %v3145_v43 = vadd.f32 %v8012_v7, %v12535_v20  ;;  %vm3172_vm13 = vcmp.ge.f32.partialorder %v3140_v4, 0.0 }
 0x38f   : > { %2845 = vmatpush.msra.mxu2 %v5747_v33  ;;  %v6071_v33 = vpop.eup %6070  ;;  %v3203_v41 = vmul.f32 0.2, %v3139_v56  ;;  %vm3171_vm12 = vcmp.ge.f32.partialorder %v3139_v56, 0.0  ;;  %v8593_v60 = vsel %vm12536_vm9, %v6069_v62, 0.0  ;;  %v3144_v62 = vadd.f32 %v8015_v46, %v12540_v19 }
 0x390   : > { %12537 = vst [vmem:[#allocation180_spill] sm:$0xff] %v8593_v60  ;;  %v3236_v14 = vsel %vm3172_vm13, %v3140_v4, %v3204_v49  ;;  %vm3177_vm8 = vcmp.ge.f32.partialorder %v3145_v43, 0.0  ;;  %vm12548_vm9 = vcmp.ne.f32.partialorder %v12387_v51, 0.0 }
 0x391   : > { %2846 = vmatpush.msra.mxu2 %v5746_v63  ;;  %v8585_v63 = vpop.xlane.xlu0 %1317  ;;  %v3235_v1 = vsel %vm3171_vm12, %v3139_v56, %v3203_v41  ;;  %v8605_v3 = vpop.xlane.xlu1 %1329  ;;  %v8615_v49 = vsel %vm12543_vm6, %v3236_v14, -1e+30  ;;  %vm3176_vm13 = vcmp.ge.f32.partialorder %v3144_v62, 0.0 }
 0x392   : > { %v8611_v56 = vsel %vm12541_vm5, %v3235_v1, -1e+30  ;;  %12544 = vst [vmem:[#allocation195_spill] sm:$0xff] %v8615_v49  ;;  %v12546_v1 = vld [vmem:[#allocation122_spill] sm:$0xff] }
 0x393   : > { %2847 = vmatpush.msra.mxu2 %v5742_v25  ;;  %v3146_v25 = vadd.f32 %v8015_v46, %v12535_v20  ;;  %v3143_v20 = vadd.f32 %v8012_v7, %v12540_v19  ;;  %12542 = vst [vmem:[#allocation108_spill] sm:$0xff] %v8611_v56  ;;  %v8620_v19 = vmax.f32 %v8537_v53, 1e-30  ;;  %v3149_v14 = vadd.f32 %v8012_v7, %v12546_v1 }
 0x394   : > { %v3303_v53 = vmax.f32 %v8611_v56, %v8615_v49 }
 0x395   : > { %2848 = vmatpush.msra.mxu2 %v5741_v31  ;;  %v8597_v31 = vsel %vm12538_vm1, %v6071_v33, 0.0  ;;  %v3210_v26 = vmul.f32 0.2, %v3146_v25  ;;  %vm3178_vm0 = vcmp.ge.f32.partialorder %v3146_v25, 0.0  ;;  %v3207_v10 = vmul.f32 0.2, %v3143_v20 }
 0x396   : > { %1341 = vadd.xlane.f32.xlu2 %v1340_v21  ;;  %12539 = vst [vmem:[#allocation181_spill] sm:$0xff] %v8597_v31  ;;  %v3209_v21 = vmul.f32 0.2, %v3145_v43  ;;  %v2298_v8 = vadd.f32 %v8597_v31, %v8593_v60  ;;  %v12545_v31 = vld [vmem:[#allocation121_spill] sm:$0xff]  ;;  %vm3175_vm12 = vcmp.ge.f32.partialorder %v3143_v20, 0.0  ;;  %vm12550_vm1 = vcmp.ne.f32.partialorder %v12390_v55, 0.0 }
 0x397   : > { %v3242_v41 = vsel %vm3178_vm0, %v3146_v25, %v3210_v26  ;;  %v3151_v60 = vadd.f32 %v8012_v7, %v12545_v31  ;;  %v3152_v38 = vadd.f32 %v8015_v46, %v12545_v31  ;;  %v3150_v26 = vadd.f32 %v8015_v46, %v12546_v1  ;;  %v12552_v55 = vld [vmem:[#allocation199_spill] sm:$0xff] }
 0x398   : > { %v3241_v4 = vsel %vm3177_vm8, %v3145_v43, %v3209_v21  ;;  %v12547_v43 = vld [vmem:[#allocation198_spill] sm:$0xff]  ;;  %v8640_v54 = vsel %vm12550_vm1, %v3242_v41, -1e+30  ;;  %6072 = vrcp.f32 %v8620_v19  ;;  %v3239_v31 = vsel %vm3175_vm12, %v3143_v20, %v3207_v10 }
 0x399   : > { %v8607_v33 = vpop.xlane.xlu0 %2275  ;;  %v3157_v25 = vadd.f32 %v8012_v7, %v12547_v43  ;;  %v8636_v21 = vsel %vm12548_vm9, %v3241_v4, -1e+30  ;;  %12551 = vst [vmem:[#allocation88_spill] sm:$0xff] %v8640_v54  ;;  %vm3183_vm8 = vcmp.ge.f32.partialorder %v3151_v60, 0.0  ;;  %vm3184_vm0 = vcmp.ge.f32.partialorder %v3152_v38, 0.0  ;;  %v8650_v20 = vpop.xlane.xlu1 %2287 }
 0x39a   : > { %12549 = vst [vmem:[#allocation183_spill] sm:$0xff] %v8636_v21  ;;  %v3215_v1 = vmul.f32 0.2, %v3151_v60  ;;  %v3216_v17 = vmul.f32 0.2, %v3152_v38  ;;  %6074 = vrcp.f32 %v8624_v9  ;;  %vm3181_vm5 = vcmp.ge.f32.partialorder %v3149_v14, 0.0 }
 0x39b   : > { %v3213_v49 = vmul.f32 0.2, %v3149_v14  ;;  %v3214_v51 = vmul.f32 0.2, %v3150_v26  ;;  %v3158_v4 = vadd.f32 %v8015_v46, %v12547_v43  ;;  %vm3182_vm6 = vcmp.ge.f32.partialorder %v3150_v26, 0.0  ;;  %v12553_v43 = vld [vmem:[#allocation151_spill] sm:$0xff] }
 0x39c   : > { %v3221_v41 = vmul.f32 0.2, %v3157_v25  ;;  %v3155_v56 = vadd.f32 %v8012_v7, %v12552_v55  ;;  %v3156_v10 = vadd.f32 %v8015_v46, %v12552_v55  ;;  %vm3189_vm12 = vcmp.ge.f32.partialorder %v3157_v25, 0.0 }
 0x39d   : > { %v3248_v12 = vsel %vm3184_vm0, %v3152_v38, %v3216_v17  ;;  %vm12557_vm9 = vcmp.ne.f32.partialorder %v12556_v36, 0.0  ;;  %vm3190_vm1 = vcmp.ge.f32.partialorder %v3158_v4, 0.0  ;;  %v3222_v58 = vmul.f32 0.2, %v3158_v4  ;;  %v12560_v36 = vld [vmem:[#allocation129_spill] sm:$0xff] }
 0x39e   : > { %2299 = vadd.xlane.f32.xlu2 %v2298_v8  ;;  %v3208_v8 = vmul.f32 0.2, %v3144_v62  ;;  %v8664_v55 = vpop.eup %6072  ;;  %v3245_v61 = vsel %vm3181_vm5, %v3149_v14, %v3213_v49  ;;  %v3219_v17 = vmul.f32 0.2, %v3155_v56  ;;  %v3220_v38 = vmul.f32 0.2, %v3156_v10 }
 0x39f   : > { %vm3188_vm0 = vcmp.ge.f32.partialorder %v3156_v10, 0.0  ;;  %v8678_v49 = vmax.f32 %v8483_v39, 1e-30  ;;  %vm12561_vm5 = vcmp.ne.f32.partialorder %v12399_v27, 0.0 }
 0x3a0   : > { %v3240_v50 = vsel %vm3176_vm13, %v3144_v62, %v3208_v8  ;;  %v3312_v62 = vmax.f32 %v8636_v21, %v8640_v54  ;;  %vm12554_vm13 = vcmp.ne.f32.partialorder %v12553_v43, 0.0  ;;  %v3246_v54 = vsel %vm3182_vm6, %v3150_v26, %v3214_v51  ;;  %v8668_v21 = vpop.eup %6074 }
 0x3a1   : > { %v3293_v8 = vpop.xlane.xlu0 %3292  ;;  %v8658_v22 = vsel %vm12554_vm13, %v3239_v31, -1e+30  ;;  %v8662_v52 = vsel %vm12557_vm9, %v3240_v50, -1e+30  ;;  %v12559_v31 = vld [vmem:[#allocation213_spill] sm:$0xff]  ;;  %vm12563_vm6 = vcmp.ne.f32.partialorder %v12402_v13, 0.0  ;;  %v8712_v26 = vpop.xlane.xlu1 %3298 }
 0x3a2   : > { %12555 = vst [vmem:[#allocation97_spill] sm:$0xff] %v8658_v22  ;;  %v3161_v50 = vadd.f32 %v8012_v7, %v12559_v31  ;;  %v3339_v43 = vsub.f32 %v12560_v36, %v3293_v8  ;;  %v8686_v14 = vsel %vm12563_vm6, %v3248_v12, -1e+30  ;;  %v1398_v7 = vmul.f32 %v8664_v55, %v8620_v19 }
 0x3a3   : > { %12558 = vst [vmem:[#allocation98_spill] sm:$0xff] %v8662_v52  ;;  %v8693_v36 = vsel %vm867_vm11, %v3245_v61, -1e+30  ;;  %v3162_v61 = vadd.f32 %v8015_v46, %v12559_v31  ;;  %vm12571_vm9 = vcmp.ne.f32.partialorder %v12531_v48, 0.0  ;;  %vm1402_vm6 = vweird.f32 %v8620_v19 }
 0x3a4   : > { %12564 = vst [vmem:[#allocation122_spill] sm:$0xff] %v8686_v14  ;;  %vm3193_vm13 = vcmp.ge.f32.partialorder %v3161_v50, 0.0 }
 0x3a6   : > { %3304 = vmax.xlane.f32.xlu2 %v3303_v53  ;;  %v3247_v53 = vsel %vm3183_vm8, %v3151_v60, %v3215_v1  ;;  %vm3187_vm8 = vcmp.ge.f32.partialorder %v3155_v56, 0.0  ;;  %v3253_v60 = vsel %vm3189_vm12, %v3157_v25, %v3221_v41  ;;  %v8674_v1 = vmax.f32 %v8585_v63, 1e-30 }
 0x3a7   : > { %v8682_v51 = vsel %vm12561_vm5, %v3247_v53, -1e+30  ;;  %v3254_v63 = vsel %vm3190_vm1, %v3158_v4, %v3222_v58  ;;  %v8697_v25 = vsel %vm868_vm10, %v3246_v54, -1e+30  ;;  %v2369_v41 = vmul.f32 %v8668_v21, %v8624_v9 }
 0x3a8   : > { %12562 = vst [vmem:[#allocation121_spill] sm:$0xff] %v8682_v51  ;;  %vm12568_vm12 = vcmp.ne.f32.partialorder %v12419_v0, 0.0  ;;  %v3251_v13 = vsel %vm3187_vm8, %v3155_v56, %v3219_v17  ;;  %v3252_v58 = vsel %vm3188_vm0, %v3156_v10, %v3220_v38  ;;  %v3225_v4 = vmul.f32 0.2, %v3161_v50 }
 0x3a9   : > { %v8704_v12 = vsel %vm12568_vm12, %v3253_v60, -1e+30  ;;  %6076 = vrcp.f32 %v8674_v1  ;;  %v3371_v54 = vmul.f32 1.442695, %v3339_v43  ;;  %v12570_v60 = vld [vmem:[#allocation187_spill] sm:$0xff]  ;;  %v1399_v0 = vsub.f32 1.0, %v1398_v7 }
 0x3aa   : > { %12569 = vst [vmem:[#allocation198_spill] sm:$0xff] %v8704_v12  ;;  %6078 = vrcp.f32 %v8678_v49  ;;  %v8718_v56 = vsel %vm12571_vm9, %v3254_v63, -1e+30  ;;  %v8722_v46 = vsel %vm873_vm2, %v3251_v13, -1e+30  ;;  %v2370_v10 = vsub.f32 1.0, %v2369_v41 }
 0x3ab   : > { %12572 = vst [vmem:[#allocation199_spill] sm:$0xff] %v8718_v56  ;;  %v3321_v31 = vmax.f32 %v8682_v51, %v8686_v14  ;;  %vm3194_vm1 = vcmp.ge.f32.partialorder %v3162_v61, 0.0  ;;  %6080 = vpow2.f32 %v3371_v54  ;;  %v8728_v7 = vsel %vm874_vm3, %v3252_v58, -1e+30 }
 0x3ac   : > { %v8731_v63 = vmax.f32 %v8607_v33, 1e-30  ;;  %v1400_v13 = vmul.f32 %v8664_v55, %v1399_v0  ;;  %v2371_v54 = vmul.f32 %v8668_v21, %v2370_v10  ;;  %v3330_v33 = vmax.f32 %v8704_v12, %v8718_v56 }
 0x3ad   : > { %vm1403_vm8 = vweird.f32 %v8664_v55  ;;  %vm2374_vm5 = vweird.f32 %v8668_v21  ;;  %vm12575_vm12 = vcmp.ne.f32.partialorder %v12435_v59, 0.0  ;;  %vm2373_vm9 = vweird.f32 %v8624_v9 }
 0x3ae   : > { %3313 = vmax.xlane.f32.xlu2 %v3312_v62  ;;  %v12567_v62 = vld [vmem:[#allocation210_spill] sm:$0xff] }
 0x3af   : > { %v3340_v53 = vsub.f32 %v12567_v62, %v3293_v8  ;;  %v8735_v41 = vpop.eup %6076 }
 0x3b1   : > { %v1169_v39 = vpop.xlane.xlu2 %1168  ;;  %v3373_v43 = vmul.f32 1.442695, %v3340_v53  ;;  %v2379_v53 = vand.u32 2147483648, %v8624_v9 }
 0x3b2   : > { %v1201_v8 = vsub.f32 %v8289_v32, %v1169_v39  ;;  %v1202_v62 = vsub.f32 %v12570_v60, %v1169_v39  ;;  %v3226_v32 = vmul.f32 0.2, %v3162_v61  ;;  %v3257_v39 = vsel %vm3193_vm13, %v3161_v50, %v3225_v4  ;;  %vm8780_vm13 = vmor %vm1402_vm6, %vm1403_vm8 }
 0x3b3   : > { %v1408_v4 = vand.u32 2147483648, %v8620_v19  ;;  %vm8794_vm8 = vmor %vm2373_vm9, %vm2374_vm5  ;;  %vm1450_vm9 = vweird.f32 %v8674_v1 }
 0x3b4   : > { %v1261_v17 = vmul.f32 1.442695, %v1201_v8  ;;  %v1263_v38 = vmul.f32 1.442695, %v1202_v62  ;;  %v8740_v8 = vpop.eup %6078  ;;  %v3258_v60 = vsel %vm3194_vm1, %v3162_v61, %v3226_v32  ;;  %v12573_v62 = vld [vmem:[#allocation190_spill] sm:$0xff]  ;;  %v2372_v32 = vadd.f32 %v8668_v21, %v2371_v54 }
 0x3b5   : > { %vm12574_vm0 = vcmp.ne.f32.partialorder %v12573_v62, 0.0  ;;  %v6081_v0 = vpop.eup %6080  ;;  %v1414_v61 = vmul.f32 %v8740_v8, %v8678_v49  ;;  %vm12579_vm1 = vcmp.ne.f32.partialorder %v12438_v24, 0.0 }
 0x3b6   : > { %6082 = vpow2.f32 %v1261_v17  ;;  %3322 = vmax.xlane.f32.xlu2 %v3321_v31  ;;  %v8753_v10 = vsel %vm12574_vm0, %v3257_v39, -1e+30  ;;  %v1446_v31 = vmul.f32 %v8735_v41, %v8674_v1 }
 0x3b7   : > { %6084 = vpow2.f32 %v1263_v38  ;;  %v1401_v38 = vadd.f32 %v8664_v55, %v1400_v13  ;;  %v2377_v13 = vand.u32 2147483647, %v8624_v9 }
 0x3b8   : > { %6086 = vpow2.f32 %v3373_v43  ;;  %v8756_v43 = vpop.xlane.xlu1 %1338 }
 0x3b9   : > { %v2127_v50 = vpop.xlane.xlu2 %2126  ;;  %6088 = vrcp.f32 %v8731_v63  ;;  %vm2378_vm6 = vcmp.eq.f32.partialorder %v2377_v13, 8.507059e+37 }
 0x3ba   : > { %v2158_v17 = vsub.f32 %v8314_v35, %v2127_v50  ;;  %v2159_v58 = vsub.f32 %v8320_v44, %v2127_v50  ;;  %v1406_v35 = vand.u32 2147483647, %v8620_v19  ;;  %v1409_v50 = vor.u32 1.1754944e-38, %v1408_v4 }
 0x3bb   : > { %v1447_v4 = vsub.f32 1.0, %v1446_v31  ;;  %6090 = vrcp.f32 %v8772_v29  ;;  %v12595_v31 = vmax.f32 %v8658_v22, %v8662_v52 }
 0x3bc   : > { %v6083_v39 = vpop.eup %6082  ;;  %v2220_v48 = vmul.f32 1.442695, %v2158_v17  ;;  %v2222_v56 = vmul.f32 1.442695, %v2159_v58  ;;  %vm1407_vm0 = vcmp.eq.f32.partialorder %v1406_v35, 8.507059e+37 }
 0x3bd   : > { %v6085_v47 = vpop.eup %6084  ;;  %v8776_v44 = vsel %vm12575_vm12, %v6083_v39, 0.0  ;;  %v1405_v39 = vsel %vm8780_vm13, %v8664_v55, %v1401_v38  ;;  %v2380_v55 = vor.u32 1.1754944e-38, %v2379_v53  ;;  %v12583_v38 = vld [vmem:[#allocation191_spill] sm:$0xff]  ;;  %v8824_v35 = vmax.f32 %v8560_v45, 1e-30  ;;  %v12590_v45 = vld [vmem:[#allocation196_spill] sm:$0xff] }
 0x3be   : > { %12576 = vst [vmem:[#allocation213_spill] sm:$0xff] %v8776_v44  ;;  %v6087_v19 = vpop.eup %6086  ;;  %3331 = vmax.xlane.f32.xlu2 %v3330_v33  ;;  %v8787_v23 = vsel %vm12579_vm1, %v6085_v47, 0.0  ;;  %v1415_v33 = vsub.f32 1.0, %v1414_v61  ;;  %v2376_v47 = vsel %vm8794_vm8, %v8668_v21, %v2372_v32  ;;  %vm12584_vm5 = vcmp.ne.f32.partialorder %v12583_v38, 0.0 }
 0x3bf   : > { %12580 = vst [vmem:[#allocation129_spill] sm:$0xff] %v8787_v23  ;;  %v1343_v9 = vadd.f32 %v8787_v23, %v8776_v44  ;;  %v8803_v17 = vpop.eup %6088  ;;  %v8807_v54 = vsel %vm12584_vm5, %v3258_v60, -1e+30  ;;  %v8812_v61 = vsel %vm12071_vm4, %v6081_v0, 0.0  ;;  %v8816_v27 = vsel %vm12060_vm7, %v6087_v19, 0.0 }
 0x3c0   : > { %12586 = vst [vmem:[#allocation210_spill] sm:$0xff] %v8812_v61  ;;  %v1410_v21 = vsel %vm1407_vm0, %v1409_v50, %v1405_v39  ;;  %6092 = vpow2.f32 %v2220_v48  ;;  %v8820_v53 = vsel %vm2378_vm6, %v2380_v55, %v2376_v47  ;;  %v1448_v60 = vmul.f32 %v8735_v41, %v1447_v4  ;;  %v12591_v4 = vld [vmem:[#allocation197_spill] sm:$0xff]  ;;  %v12592_v47 = vld [vmem:[#allocation107_spill] sm:$0xff] }
 0x3c1   : > { %1344 = vadd.xlane.f32.xlu0 %v1343_v9  ;;  %v1306_v58 = vpop.xlane.xlu2 %1305  ;;  %12588 = vst [vmem:[#allocation187_spill] sm:$0xff] %v8816_v27  ;;  %6094 = vpow2.f32 %v2222_v56  ;;  %v1416_v13 = vmul.f32 %v8740_v8, %v1415_v33  ;;  %v2417_v0 = vmul.f32 %v8803_v17, %v8731_v63  ;;  %v8829_v9 = vpop.xlane.xlu1 %2296  ;;  %v3467_v48 = vadd.f32 %v8816_v27, %v8812_v61 }
 0x3c2   : > { %v8818_v32 = vmax.f32 %v1306_v58, 1e-30  ;;  %12589 = vst [vmem:[#allocation225_spill] sm:$0xff] %v8820_v53  ;;  %v1454_v19 = vand.u32 2147483647, %v8674_v1  ;;  %v1456_v39 = vand.u32 2147483648, %v8674_v1  ;;  %v8839_v56 = vmul.f32 %v1410_v21, %v12590_v45  ;;  %v8852_v61 = vpop.eup %6090 }
 0x3c3   : > { %v8842_v33 = vmul.f32 %v1410_v21, %v12591_v4  ;;  %v8846_v55 = vmul.f32 %v8820_v53, %v12592_v47  ;;  %v1422_v58 = vand.u32 2147483647, %v8678_v49  ;;  %v1424_v50 = vand.u32 2147483648, %v8678_v49 }
 0x3c4   : > { %6096 = vrcp.f32 %v8818_v32  ;;  %v1449_v27 = vadd.f32 %v8735_v41, %v1448_v60  ;;  %vm1451_vm12 = vweird.f32 %v8735_v41  ;;  %v1417_v21 = vadd.f32 %v8740_v8, %v1416_v13 }
 0x3c5   : > { %6098 = vrcp.f32 %v8824_v35  ;;  %vm1419_vm13 = vweird.f32 %v8740_v8  ;;  %v2418_v45 = vsub.f32 1.0, %v2417_v0  ;;  %vm8861_vm1 = vcmp.eq.f32.partialorder %v1454_v19, 8.507059e+37  ;;  %vm8871_vm0 = vmor %vm1450_vm9, %vm1451_vm12 }
 0x3c6   : > { %3468 = vadd.xlane.f32.xlu2 %v3467_v48  ;;  %v6093_v4 = vpop.eup %6092  ;;  %v8858_v48 = vmax.f32 %v8581_v16, 1e-30  ;;  %v1457_v60 = vor.u32 1.1754944e-38, %v1456_v39  ;;  %vm1418_vm8 = vweird.f32 %v8678_v49  ;;  %vm2421_vm6 = vweird.f32 %v8731_v63 }
 0x3c7   : > { %v6095_v23 = vpop.eup %6094  ;;  %v2425_v1 = vand.u32 2147483647, %v8731_v63  ;;  %v2427_v0 = vand.u32 2147483648, %v8731_v63  ;;  %vm8882_vm5 = vmor %vm1418_vm8, %vm1419_vm13  ;;  %vm8886_vm7 = vcmp.eq.f32.partialorder %v1422_v58, 8.507059e+37  ;;  %v2395_v39 = vand.u32 2147483648, %v8772_v29 }
 0x3c8   : > { %v1453_v53 = vsel %vm8871_vm0, %v8735_v41, %v1449_v27  ;;  %v1425_v52 = vor.u32 1.1754944e-38, %v1424_v50  ;;  %v2385_v22 = vmul.f32 %v8852_v61, %v8772_v29  ;;  %v2419_v58 = vmul.f32 %v8803_v17, %v2418_v45 }
 0x3c9   : > { %3310 = vmax.xlane.f32.xlu0 %v12595_v31  ;;  %v2264_v13 = vpop.xlane.xlu2 %2263  ;;  %6100 = vrcp.f32 %v8858_v48  ;;  %vm12602_vm12 = vcmp.ne.f32.partialorder %v12573_v62, 0.0  ;;  %vm12604_vm13 = vcmp.ne.f32.partialorder %v12583_v38, 0.0  ;;  %v1458_v50 = vsel %vm8861_vm1, %v1457_v60, %v1453_v53  ;;  %v8916_v45 = vpop.xlane.xlu1 %3307 }
 0x3ca   : > { %v8878_v19 = vmax.f32 %v2264_v13, 1e-30  ;;  %v6097_v44 = vpop.eup %6096  ;;  %v1421_v13 = vsel %vm8882_vm5, %v8740_v8, %v1417_v21  ;;  %v8903_v12 = vsel %vm12602_vm12, %v6093_v4, 0.0  ;;  %v8907_v41 = vsel %vm12604_vm13, %v6095_v23, 0.0 }
 0x3cb   : > { %12603 = vst [vmem:[#allocation196_spill] sm:$0xff] %v8903_v12  ;;  %v1382_v27 = vmul.f32 %v6097_v44, %v8818_v32  ;;  %v8910_v16 = vpop.eup %6098  ;;  %v2393_v8 = vand.u32 2147483647, %v8772_v29  ;;  %v2428_v21 = vor.u32 1.1754944e-38, %v2427_v0  ;;  %v8920_v31 = vsel %vm8886_vm7, %v1425_v52, %v1421_v13 }
 0x3cc   : > { %12605 = vst [vmem:[#allocation197_spill] sm:$0xff] %v8907_v41  ;;  %6102 = vrcp.f32 %v8878_v19  ;;  %v8922_v23 = vor.u32 1.1754944e-38, %v2395_v39  ;;  %vm2422_vm9 = vweird.f32 %v8803_v17  ;;  %vm8925_vm8 = vcmp.eq.f32.partialorder %v2425_v1, 8.507059e+37  ;;  %v12608_v39 = vld [vmem:[#allocation208_spill] sm:$0xff] }
 0x3cd   : > { %v1383_v4 = vsub.f32 1.0, %v1382_v27  ;;  %v2301_v47 = vadd.f32 %v8907_v41, %v8903_v12  ;;  %v1392_v53 = vand.u32 2147483648, %v8818_v32  ;;  %v2386_v60 = vsub.f32 1.0, %v2385_v22  ;;  %v12609_v41 = vld [vmem:[#allocation69_spill] sm:$0xff]  ;;  %v12610_v22 = vld [vmem:[#allocation203_spill] sm:$0xff]  ;;  %vm8957_vm5 = vmor %vm2421_vm6, %vm2422_vm9 }
 0x3ce   : > { %v2420_v0 = vadd.f32 %v8803_v17, %v2419_v58  ;;  %vm1387_vm1 = vweird.f32 %v6097_v44  ;;  %v1390_v52 = vand.u32 2147483647, %v8818_v32  ;;  %v1462_v49 = vmul.f32 %v8910_v16, %v8824_v35 }
 0x3cf   : > { %v1384_v27 = vmul.f32 %v6097_v44, %v1383_v4  ;;  %v8938_v13 = vmul.f32 %v8920_v31, %v12608_v39  ;;  %vm2390_vm7 = vweird.f32 %v8852_v61  ;;  %v8942_v62 = vmul.f32 %v1458_v50, %v12609_v41  ;;  %v8947_v4 = vpop.eup %6100 }
 0x3d0   : > { %v8945_v58 = vmul.f32 %v1458_v50, %v12610_v22  ;;  %vm1386_vm0 = vweird.f32 %v8818_v32  ;;  %v1393_v50 = vor.u32 1.1754944e-38, %v1392_v53  ;;  %vm2389_vm13 = vweird.f32 %v8772_v29  ;;  %v12613_v32 = vld [vmem:[#allocation218_spill] sm:$0xff] }
 0x3d1   : > { %2302 = vadd.xlane.f32.xlu0 %v2301_v47  ;;  %v1315_v1 = vpop.xlane.xlu2 %1314  ;;  %v1385_v14 = vadd.f32 %v6097_v44, %v1384_v27  ;;  %vm1388_vm12 = vmor %vm1386_vm0, %vm1387_vm1  ;;  %v2424_v27 = vsel %vm8957_vm5, %v8803_v17, %v2420_v0  ;;  %vm1391_vm4 = vcmp.eq.f32.partialorder %v1390_v52, 8.507059e+37  ;;  %v1463_v47 = vsub.f32 1.0, %v1462_v49  ;;  %v12614_v17 = vld [vmem:[#allocation219_spill] sm:$0xff] }
 0x3d2   : > { %v8949_v12 = vmax.f32 %v1315_v1, 1e-30  ;;  %v6103_v41 = vpop.eup %6102  ;;  %v2387_v1 = vmul.f32 %v8852_v61, %v2386_v60  ;;  %v2433_v51 = vmul.f32 %v8947_v4, %v8858_v48  ;;  %v8972_v53 = vmax.f32 %v8605_v3, 1e-30  ;;  %vm9020_vm5 = vmor %vm2389_vm13, %vm2390_vm7 }
 0x3d3   : > { %v1389_v22 = vsel %vm1388_vm12, %v6097_v44, %v1385_v14  ;;  %v2353_v63 = vmul.f32 %v6103_v41, %v8878_v19  ;;  %v3343_v24 = vsub.f32 %v12613_v32, %v8712_v26  ;;  %v3344_v0 = vsub.f32 %v12614_v17, %v8712_v26  ;;  %v8991_v32 = vpop.xlane.xlu1 %1347 }
 0x3d4   : > { %6104 = vrcp.f32 %v8949_v12  ;;  %v1394_v60 = vsel %vm1391_vm4, %v1393_v50, %v1389_v22  ;;  %v2363_v52 = vand.u32 2147483648, %v8878_v19  ;;  %v2388_v49 = vadd.f32 %v8852_v61, %v2387_v1  ;;  %v8999_v1 = vpop.xlane.xlu0 %1326 }
 0x3d5   : > { %v1395_v39 = vmul.f32 %v1394_v60, %v8354_v37  ;;  %v1396_v14 = vmul.f32 %v1394_v60, %v8358_v42  ;;  %v2354_v44 = vsub.f32 1.0, %v2353_v63  ;;  %vm8983_vm6 = vcmp.eq.f32.partialorder %v2393_v8, 8.507059e+37 }
 0x3d6   : > { %v8989_v50 = vsel %vm8925_vm8, %v2428_v21, %v2424_v27  ;;  %vm2358_vm4 = vweird.f32 %v6103_v41  ;;  %v2361_v42 = vand.u32 2147483647, %v8878_v19  ;;  %vm1467_vm9 = vweird.f32 %v8910_v16 }
 0x3d7   : > { %1640 = vmatmul.f32.gmra.mxu2 %v1395_v39  ;;  %1705 = vmatmul.f32.gmra.mxu3 %v1396_v14  ;;  %v2355_v37 = vmul.f32 %v6103_v41, %v2354_v44  ;;  %v2434_v26 = vsub.f32 1.0, %v2433_v51  ;;  %6106 = vrcp.f32 %v8972_v53  ;;  %v8997_v8 = vmax.f32 %v8650_v20, 1e-30 }
 0x3d8   : > { %v12617_v38 = vmax.f32 %v8693_v36, %v8697_v25  ;;  %v1464_v27 = vmul.f32 %v8910_v16, %v1463_v47  ;;  %v3379_v22 = vmul.f32 1.442695, %v3343_v24  ;;  %vm2357_vm8 = vweird.f32 %v8878_v19 }
 0x3d9   : > { %v2273_v21 = vpop.xlane.xlu2 %2272  ;;  %v2356_v60 = vadd.f32 %v6103_v41, %v2355_v37  ;;  %v3381_v39 = vmul.f32 1.442695, %v3344_v0  ;;  %vm2359_vm1 = vmor %vm2357_vm8, %vm2358_vm4  ;;  %v2364_v20 = vor.u32 1.1754944e-38, %v2363_v52  ;;  %v2441_v14 = vand.u32 2147483647, %v8858_v48 }
 0x3da   : > { %3319 = vmax.xlane.f32.xlu0 %v12617_v38  ;;  %v9005_v63 = vmax.f32 %v2273_v21, 1e-30  ;;  %v9008_v51 = vpop.eup %6104  ;;  %v2443_v44 = vand.u32 2147483648, %v8858_v48  ;;  %vm2362_vm0 = vcmp.eq.f32.partialorder %v2361_v42, 8.507059e+37  ;;  %v1465_v0 = vadd.f32 %v8910_v16, %v1464_v27  ;;  %v12620_v38 = vld [vmem:[#allocation209_spill] sm:$0xff] }
 0x3db   : > { %v2360_v17 = vsel %vm2359_vm1, %v6103_v41, %v2356_v60  ;;  %v1430_v24 = vmul.f32 %v9008_v51, %v8949_v12  ;;  %v2392_v41 = vsel %vm9020_vm5, %v8852_v61, %v2388_v49  ;;  %v2435_v29 = vmul.f32 %v8947_v4, %v2434_v26  ;;  %v12624_v49 = vld [vmem:[#allocation223_spill] sm:$0xff]  ;;  %v9078_v19 = vpop.xlane.xlu1 %3316 }
 0x3dc   : > { %6108 = vrcp.f32 %v9005_v63  ;;  %v9025_v47 = vsel %vm2362_vm0, %v2364_v20, %v2360_v17  ;;  %v1428_v21 = vmul.f32 %v8920_v31, %v12620_v38  ;;  %vm1466_vm7 = vweird.f32 %v8824_v35  ;;  %v12630_v17 = vld [vmem:[#allocation206_spill] sm:$0xff] }
 0x3dd   : > { %6110 = vrcp.f32 %v8997_v8  ;;  %v2366_v52 = vmul.f32 %v9025_v47, %v8380_v5  ;;  %v1431_v37 = vsub.f32 1.0, %v1430_v24  ;;  %v9034_v42 = vpop.eup %6106  ;;  %v12621_v60 = vand.u32 2147483647, %v8824_v35  ;;  %vm9057_vm13 = vmor %vm1466_vm7, %vm1467_vm9 }
 0x3de   : > { %6112 = vpow2.f32 %v3379_v22  ;;  %v3349_v5 = vsub.f32 %v12624_v49, %v8916_v45  ;;  %v9053_v31 = vsel %vm8983_vm6, %v8922_v23, %v2392_v41  ;;  %v12627_v22 = vand.u32 2147483648, %v8824_v35 }
 0x3df   : > { %6114 = vpow2.f32 %v3381_v39  ;;  %vm9041_vm12 = vcmp.eq.f32.partialorder %v12621_v60, 8.507059e+37  ;;  %1643 = vmatmul.f32.gmra.mxu2 %v8839_v56  ;;  %1708 = vmatmul.f32.gmra.mxu3 %v8842_v33  ;;  %v1432_v26 = vmul.f32 %v9008_v51, %v1431_v37  ;;  %v12628_v56 = vld [vmem:[#allocation224_spill] sm:$0xff]  ;;  %v12629_v33 = vmax.f32 %v8722_v46, %v8728_v7  ;;  %v9090_v37 = vpop.xlane.xlu0 %2284  ;;  %v12633_v60 = vld [vmem:[#allocation211_spill] sm:$0xff] }
 0x3e0   : > { %v1473_v39 = vor.u32 1.1754944e-38, %v12627_v22  ;;  %v3350_v20 = vsub.f32 %v12628_v56, %v8916_v45  ;;  %2790 = vmatmul.f32.gmra.mxu1 %v2366_v52  ;;  %v1469_v23 = vsel %vm9057_vm13, %v8910_v16, %v1465_v0  ;;  %v9073_v24 = vmul.f32 %v8989_v50, %v12630_v17 }
 0x3e1   : > { %v1324_v3 = vpop.xlane.xlu2 %1323  ;;  %vm2437_vm6 = vweird.f32 %v8858_v48  ;;  %v2436_v45 = vadd.f32 %v8947_v4, %v2435_v29  ;;  %vm2438_vm4 = vweird.f32 %v8947_v4  ;;  %vm9082_vm9 = vcmp.eq.f32.partialorder %v2441_v14, 8.507059e+37 }
 0x3e2   : > { %3328 = vmax.xlane.f32.xlu0 %v12629_v33  ;;  %v9076_v35 = vpop.eup %6108  ;;  %v2444_v52 = vor.u32 1.1754944e-38, %v2443_v44  ;;  %v1510_v16 = vmul.f32 %v9034_v42, %v8972_v53  ;;  %v9092_v38 = vmax.f32 %v1324_v3, 1e-30  ;;  %v9096_v49 = vmul.f32 %v9053_v31, %v12633_v60  ;;  %vm9110_vm1 = vmor %vm2437_vm6, %vm2438_vm4 }
 0x3e3   : > { %v9088_v0 = vpop.eup %6110  ;;  %v2401_v14 = vmul.f32 %v9076_v35, %v9005_v63  ;;  %v3391_v44 = vmul.f32 1.442695, %v3349_v5  ;;  %v1433_v22 = vadd.f32 %v9008_v51, %v1432_v26  ;;  %vm1435_vm8 = vweird.f32 %v9008_v51 }
 0x3e4   : > { %v6113_v27 = vpop.eup %6112  ;;  %v1474_v56 = vsel %vm9041_vm12, %v1473_v39, %v1469_v23  ;;  %v3393_v3 = vmul.f32 1.442695, %v3350_v20  ;;  %v1440_v17 = vand.u32 2147483648, %v8949_v12  ;;  %vm1434_vm0 = vweird.f32 %v8949_v12 }
 0x3e5   : > { %v6115_v33 = vpop.eup %6114  ;;  %v2402_v60 = vsub.f32 1.0, %v2401_v14  ;;  %v1438_v61 = vand.u32 2147483647, %v8949_v12  ;;  %v2440_v26 = vsel %vm9110_vm1, %v8947_v4, %v2436_v45  ;;  %v1511_v39 = vsub.f32 1.0, %v1510_v16  ;;  %vm9128_vm5 = vmor %vm1434_vm0, %vm1435_vm8  ;;  %v12640_v16 = vld [vmem:[#allocation192_spill] sm:$0xff] }
 0x3e6   : > { %v2481_v20 = vmul.f32 %v9088_v0, %v8997_v8  ;;  %v9123_v48 = vmax.f32 %v8756_v43, 1e-30  ;;  %6116 = vrcp.f32 %v9092_v38  ;;  %v9134_v12 = vsel %vm853_vm14, %v6113_v27, 0.0 }
 0x3e7   : > { %12638 = vst [vmem:[#allocation107_spill] sm:$0xff] %v9134_v12  ;;  %v9137_v4 = vmax.f32 %v8999_v1, 1e-30  ;;  %6118 = vpow2.f32 %v3391_v44  ;;  %1646 = vmatmul.f32.gmra.mxu2 %v8938_v13  ;;  %1711 = vmatmul.f32.gmra.mxu3 %v1428_v21  ;;  %v1437_v43 = vsel %vm9128_vm5, %v9008_v51, %v1433_v22  ;;  %v9145_v45 = vsel %vm12086_vm15, %v6115_v33, 0.0  ;;  %v12642_v51 = vld [vmem:[#allocation117_spill] sm:$0xff]  ;;  %v12643_v44 = vld [vmem:[#allocation156_spill] sm:$0xff] }
 0x3e8   : > { %12639 = vst [vmem:[#allocation208_spill] sm:$0xff] %v9145_v45  ;;  %6120 = vpow2.f32 %v3393_v3  ;;  %v3355_v14 = vsub.f32 %v12640_v16, %v9078_v19  ;;  %2793 = vmatmul.f32.gmra.mxu1 %v8846_v55  ;;  %v12641_v1 = vmax.f32 %v8753_v10, %v8807_v54  ;;  %v1441_v21 = vor.u32 1.1754944e-38, %v1440_v17  ;;  %v12644_v33 = vld [vmem:[#allocation157_spill] sm:$0xff] }
 0x3e9   : > { %v2282_v13 = vpop.xlane.xlu2 %2281  ;;  %v2403_v29 = vmul.f32 %v9076_v35, %v2402_v60  ;;  %v3356_v27 = vsub.f32 %v12642_v51, %v9078_v19  ;;  %vm1439_vm7 = vcmp.eq.f32.partialorder %v1438_v61, 8.507059e+37  ;;  %v9157_v22 = vmul.f32 %v1474_v56, %v12643_v44  ;;  %v3326_v19 = vpop.xlane.xlu1 %3325 }
 0x3ea   : > { %3337 = vmax.xlane.f32.xlu0 %v12641_v1  ;;  %v9160_v3 = vmul.f32 %v1474_v56, %v12644_v33  ;;  %6122 = vrcp.f32 %v9123_v48  ;;  %v1442_v23 = vsel %vm1439_vm7, %v1441_v21, %v1437_v43  ;;  %v9167_v17 = vsel %vm9082_vm9, %v2444_v52, %v2440_v26  ;;  %v12645_v43 = vld [vmem:[#allocation24_spill] sm:$0xff] }
 0x3eb   : > { %v9163_v55 = vpop.xlane.xlu0 %1335  ;;  %v1512_v60 = vmul.f32 %v9034_v42, %v1511_v39  ;;  %v2482_v16 = vsub.f32 1.0, %v2481_v20  ;;  %6124 = vrcp.f32 %v9137_v4  ;;  %v9171_v61 = vmax.f32 %v2282_v13, 1e-30 }
 0x3ec   : > { %v1638_v1 = vpop.f32.mrf.mxu2  ;;  %v3473_v56 = vadd.f32 %v9145_v45, %v9134_v12  ;;  %v9175_v51 = vpop.eup %6116  ;;  %v3403_v44 = vmul.f32 1.442695, %v3355_v14  ;;  %v2404_v41 = vadd.f32 %v9076_v35, %v2403_v29  ;;  %vm2406_vm12 = vweird.f32 %v9076_v35  ;;  %v12646_v45 = vld [vmem:[#allocation118_spill] sm:$0xff]  ;;  %v12651_v12 = vld [vmem:[#allocation139_spill] sm:$0xff] }
 0x3ed   : > { %v1639_v21 = vadd.f32 %v1638_v1, %v12645_v43  ;;  %v6119_v52 = vpop.eup %6118  ;;  %v3405_v26 = vmul.f32 1.442695, %v3356_v27  ;;  %v1703_v39 = vpop.f32.mrf.mxu3  ;;  %v1443_v20 = vmul.f32 %v1442_v23, %v8404_v34  ;;  %v1444_v13 = vmul.f32 %v1442_v23, %v8408_v2  ;;  %v9209_v1 = vld [vmem:[%s11711_s7] ss:$0 sm:$0xff] }
 0x3ee   : > { %v2411_v33 = vand.u32 2147483648, %v9005_v63  ;;  %vm1515_vm13 = vweird.f32 %v9034_v42  ;;  %v6121_v5 = vpop.eup %6120  ;;  %v3361_v14 = vsub.f32 %v12646_v45, %v3326_v19  ;;  %vm2405_vm6 = vweird.f32 %v9005_v63 }
 0x3ef   : > { %v1704_v40 = vadd.f32 %v1703_v39, %v1639_v21  ;;  %v2409_v29 = vand.u32 2147483647, %v9005_v63  ;;  %6126 = vrcp.f32 %v9171_v61  ;;  %1649 = vmatmul.f32.gmra.mxu2 %v1443_v20  ;;  %1714 = vmatmul.f32.gmra.mxu3 %v1444_v13  ;;  %vm9190_vm4 = vmor %vm2405_vm6, %vm2406_vm12  ;;  %v1478_v2 = vmul.f32 %v9175_v51, %v9092_v38  ;;  %v12650_v20 = vld [vmem:[#allocation201_spill] sm:$0xff] }
 0x3f0   : > { %v9197_v45 = vadd.f32 %v9034_v42, %v1512_v60  ;;  %vm1514_vm9 = vweird.f32 %v8972_v53  ;;  %v2483_v63 = vmul.f32 %v9088_v0, %v2482_v16  ;;  %v9201_v27 = vpop.eup %6122  ;;  %v9204_v23 = vmax.f32 %v9090_v37, 1e-30  ;;  %2796 = vmatmul.f32.gmra.mxu1 %v9096_v49 }
 0x3f1   : > { %v1754_v21 = vmul.f32 %v9209_v1, %v1704_v40  ;;  %v1333_v60 = vpop.xlane.xlu2 %1332  ;;  %v2408_v16 = vsel %vm9190_vm4, %v9076_v35, %v2404_v41  ;;  %vm12649_vm8 = vcmp.ne.f32.partialorder %v7541_v15, 0.0  ;;  %v9220_v37 = vpop.eup %6124  ;;  %6128 = vpow2.f32 %v3403_v44  ;;  %v9231_v35 = vld [vmem:[%s11712_s8] ss:$0 sm:$0xff]  ;;  %vm9271_vm12 = vmor %vm1514_vm9, %vm1515_vm13 }
 0x3f2   : > { %3474 = vadd.xlane.f32.xlu0 %v3473_v56  ;;  %v9218_v39 = vsel %vm12649_vm8, %v6119_v52, 0.0  ;;  %v3362_v13 = vsub.f32 %v12650_v20, %v3326_v19  ;;  %v2412_v28 = vor.u32 1.1754944e-38, %v2411_v33  ;;  %vm12652_vm1 = vcmp.ne.f32.partialorder %v12651_v12, 0.0  ;;  %v12668_v15 = vld [vmem:[#allocation135_spill] sm:$0xff] }
 0x3f3   : > { %v9225_v40 = vsel %vm12652_vm1, %v6121_v5, 0.0  ;;  %6130 = vpow2.f32 %v3405_v26  ;;  %v3415_v49 = vmul.f32 1.442695, %v3361_v14  ;;  %v1773_v56 = vadd.f32 %v9231_v35, %v1754_v21  ;;  %v3302_v41 = vpop.xlane.xlu0 %3301 }
 0x3f4   : > { %12653 = vst [vmem:[#allocation69_spill] sm:$0xff] %v9225_v40  ;;  %vm2410_vm0 = vcmp.eq.f32.partialorder %v2409_v29, 8.507059e+37  ;;  %v3345_v44 = vsub.f32 %v8497_v11, %v3302_v41  ;;  %v3346_v19 = vsub.f32 %v8501_v30, %v3302_v41  ;;  %v1479_v5 = vsub.f32 1.0, %v1478_v2 }
 0x3f5   : > { %v9236_v52 = vsel %vm2410_vm0, %v2412_v28, %v2408_v16  ;;  %vm1789_vm5 = vcmp.ge.f32.partialorder %v1773_v56, 0.0  ;;  %v1805_v33 = vmul.f32 0.002, %v1773_v56  ;;  %v1494_v26 = vmul.f32 %v9220_v37, %v9137_v4  ;;  %v9240_v14 = vpop.eup %6126  ;;  %v3335_v16 = vpop.xlane.xlu1 %3334 }
 0x3f6   : > { %vm1837_vm7 = vcmask 261120   ;;  %6132 = vrcp.f32 %v9204_v23  ;;  %v3417_v34 = vmul.f32 1.442695, %v3362_v13  ;;  %v3383_v29 = vmul.f32 1.442695, %v3345_v44 }
 0x3f7   : > { %v3385_v21 = vmul.f32 1.442695, %v3346_v19  ;;  %6134 = vpow2.f32 %v3415_v49  ;;  %v1821_v11 = vsel %vm1789_vm5, %v1773_v56, %v1805_v33  ;;  %v2414_v28 = vmul.f32 %v9236_v52, %v8421_v57  ;;  %v6129_v2 = vpop.eup %6128  ;;  %1652 = vmatmul.f32.gmra.mxu2 %v8942_v62  ;;  %1717 = vmatmul.f32.gmra.mxu3 %v8945_v58  ;;  %v12655_v56 = vld [vmem:[#allocation161_spill] sm:$0xff] }
 0x3f8   : > { %v3482_v30 = vadd.f32 %v9225_v40, %v9218_v39  ;;  %6136 = vpow2.f32 %v3383_v29  ;;  %v1480_v20 = vmul.f32 %v9175_v51, %v1479_v5  ;;  %v12654_v13 = vand.u32 2147483648, %v8972_v53  ;;  %1838 = vst.msk [vmem:[%s9257_s1] sm:$0xff] %vm1837_vm7, %v1821_v11  ;;  %v12658_v11 = vld [vmem:[#allocation136_spill] sm:$0xff] }
 0x3f9   : > { %v6131_v57 = vpop.eup %6130  ;;  %v2449_v62 = vmul.f32 %v9240_v14, %v9171_v61  ;;  %6138 = vpow2.f32 %v3385_v21  ;;  %2799 = vmatmul.f32.gmra.mxu1 %v2414_v28  ;;  %v2291_v58 = vpop.xlane.xlu2 %2290  ;;  %v9265_v44 = vmul.f32 %v9167_v17, %v12655_v56  ;;  %v1495_v33 = vsub.f32 1.0, %v1494_v26  ;;  %v12661_v26 = vld [vmem:[#allocation193_spill] sm:$0xff] }
 0x3fa   : > { %v9252_v41 = vor.u32 1.1754944e-38, %v12654_v13  ;;  %3483 = vadd.xlane.f32.xlu0 %v3482_v30  ;;  %6140 = vpow2.f32 %v3417_v34  ;;  %v9281_v21 = vadd.f32 %v9088_v0, %v2483_v63  ;;  %v3367_v28 = vsub.f32 %v12658_v11, %v3335_v16 }
 0x3fb   : > { %v9284_v30 = vmax.f32 %v1333_v60, 1e-30  ;;  %vm12659_vm13 = vcmp.ne.f32.partialorder %v12413_v18, 0.0  ;;  %v3368_v49 = vsub.f32 %v12661_v26, %v3335_v16  ;;  %vm12662_vm6 = vcmp.ne.f32.partialorder %v12416_v6, 0.0 }
 0x3fc   : > { %v9288_v13 = vsel %vm12659_vm13, %v6129_v2, 0.0  ;;  %v9291_v34 = vpop.eup %6132  ;;  %v9296_v29 = vsel %vm12662_vm6, %v6131_v57, 0.0  ;;  %v1481_v63 = vadd.f32 %v9175_v51, %v1480_v20  ;;  %vm1483_vm4 = vweird.f32 %v9175_v51  ;;  %v12664_v2 = vld [vmem:[#allocation134_spill] sm:$0xff] }
 0x3fd   : > { %12660 = vst [vmem:[#allocation203_spill] sm:$0xff] %v9288_v13  ;;  %v6135_v60 = vpop.eup %6134  ;;  %v2450_v11 = vsub.f32 1.0, %v2449_v62  ;;  %v1488_v5 = vand.u32 2147483648, %v9092_v38  ;;  %v9304_v56 = vmul.f32 %v9201_v27, %v9123_v48  ;;  %vm1482_vm9 = vweird.f32 %v9092_v38 }
 0x3fe   : > { %12663 = vst [vmem:[#allocation218_spill] sm:$0xff] %v9296_v29  ;;  %v6137_v18 = vpop.eup %6136  ;;  %v1486_v16 = vand.u32 2147483647, %v9092_v38  ;;  %v1496_v57 = vmul.f32 %v9220_v37, %v1495_v33  ;;  %vm1498_vm8 = vweird.f32 %v9137_v4  ;;  %vm1499_vm1 = vweird.f32 %v9220_v37  ;;  %vm9321_vm13 = vmor %vm1482_vm9, %vm1483_vm4 }
 0x3ff   : > { %vm2486_vm0 = vweird.f32 %v9088_v0  ;;  %v6139_v20 = vpop.eup %6138  ;;  %v3427_v62 = vmul.f32 1.442695, %v3367_v28  ;;  %6142 = vrcp.f32 %v9284_v30  ;;  %v3491_v26 = vadd.f32 %v9296_v29, %v9288_v13  ;;  %1655 = vmatmul.f32.gmra.mxu2 %v9157_v22  ;;  %1720 = vmatmul.f32.gmra.mxu3 %v9160_v3 }
 0x400   : > { %vm12665_vm5 = vcmp.ne.f32.partialorder %v12664_v2, 0.0  ;;  %v6141_v33 = vpop.eup %6140  ;;  %v2465_v12 = vmul.f32 %v9291_v34, %v9204_v23  ;;  %v3429_v28 = vmul.f32 1.442695, %v3368_v49  ;;  %vm12669_vm6 = vcmp.ne.f32.partialorder %v12668_v15, 0.0  ;;  %v12676_v2 = vld [vmem:[#allocation168_spill] sm:$0xff] }
 0x401   : > { %v9317_v6 = vsel %vm12665_vm5, %v6137_v18, 0.0  ;;  %v9331_v29 = vsel %vm12669_vm6, %v6139_v20, 0.0  ;;  %v1485_v18 = vsel %vm9321_vm13, %v9175_v51, %v1481_v63  ;;  %v12671_v40 = vand.u32 2147483647, %v8972_v53  ;;  %2802 = vmatmul.f32.gmra.mxu1 %v9073_v24  ;;  %v3296_v49 = vpop.xlane.xlu2 %3295  ;;  %v12674_v53 = vld [vmem:[#allocation172_spill] sm:$0xff]  ;;  %v12675_v63 = vld [vmem:[#allocation61_spill] sm:$0xff] }
 0x402   : > { %12670 = vst [vmem:[#allocation219_spill] sm:$0xff] %v9331_v29  ;;  %vm2485_vm9 = vweird.f32 %v8997_v8  ;;  %v9344_v22 = vmax.f32 %v9163_v55, 1e-30  ;;  %3492 = vadd.xlane.f32.xlu0 %v3491_v26  ;;  %v3476_v3 = vadd.f32 %v9331_v29, %v9317_v6  ;;  %v1489_v20 = vor.u32 1.1754944e-38, %v1488_v5  ;;  %v12678_v26 = vld [vmem:[#allocation169_spill] sm:$0xff] }
 0x403   : > { %vm9338_vm4 = vcmp.eq.f32.partialorder %v12671_v40, 8.507059e+37  ;;  %v2451_v51 = vmul.f32 %v9240_v14, %v2450_v11  ;;  %v3341_v40 = vsub.f32 %v12674_v53, %v3296_v49  ;;  %v3342_v38 = vsub.f32 %v12675_v63, %v3296_v49 }
 0x404   : > { %vm1487_vm5 = vcmp.eq.f32.partialorder %v1486_v16, 8.507059e+37  ;;  %v1497_v15 = vadd.f32 %v9220_v37, %v1496_v57  ;;  %6144 = vpow2.f32 %v3427_v62  ;;  %3477 = vadd.xlane.f32.xlu2 %v3476_v3  ;;  %vm12677_vm13 = vcmp.ne.f32.partialorder %v12676_v2, 0.0 }
 0x405   : > { %v1490_v55 = vsel %vm1487_vm5, %v1489_v20, %v1485_v18  ;;  %v9355_v24 = vsel %vm12677_vm13, %v6135_v60, 0.0  ;;  %vm12679_vm6 = vcmp.ne.f32.partialorder %v12678_v26, 0.0  ;;  %6146 = vpow2.f32 %v3429_v28  ;;  %v9363_v49 = vpop.eup %6142  ;;  %v12681_v60 = vld [vmem:[#allocation141_spill] sm:$0xff]  ;;  %v12682_v18 = vld [vmem:[#allocation142_spill] sm:$0xff]  ;;  %vm9377_vm13 = vmor %vm1498_vm8, %vm1499_vm1 }
 0x406   : > { %v9359_v29 = vsel %vm12679_vm6, %v6141_v33, 0.0  ;;  %v9361_v5 = vmax.f32 %v2291_v58, 1e-30  ;;  %v3375_v11 = vmul.f32 1.442695, %v3341_v40  ;;  %v2466_v16 = vsub.f32 1.0, %v2465_v12  ;;  %v2294_v58 = vpop.xlane.xlu0 %2293  ;;  %vm9416_vm8 = vmor %vm2485_vm9, %vm2486_vm0 }
 0x407   : > { %12680 = vst [vmem:[#allocation209_spill] sm:$0xff] %v9359_v29  ;;  %v3377_v53 = vmul.f32 1.442695, %v3342_v38  ;;  %6148 = vrcp.f32 %v9344_v22  ;;  %v2452_v57 = vadd.f32 %v9240_v14, %v2451_v51  ;;  %vm2454_vm5 = vweird.f32 %v9240_v14  ;;  %v12693_v40 = vld [vmem:[#allocation104_spill] sm:$0xff] }
 0x408   : > { %6150 = vpow2.f32 %v3375_v11  ;;  %v1491_v62 = vmul.f32 %v1490_v55, %v12681_v60  ;;  %v1492_v33 = vmul.f32 %v1490_v55, %v12682_v18  ;;  %v2459_v28 = vand.u32 2147483648, %v9171_v61 }
 0x409   : > { %6152 = vpow2.f32 %v3377_v53  ;;  %v3500_v3 = vadd.f32 %v9359_v29, %v9355_v24  ;;  %vm2453_vm6 = vweird.f32 %v9171_v61  ;;  %v2457_v20 = vand.u32 2147483647, %v9171_v61  ;;  %2805 = vmatmul.f32.gmra.mxu1 %v9265_v44  ;;  %v1342_v11 = vpop.xlane.xlu2 %1341 }
 0x40a   : > { %6154 = vrcp.f32 %v9361_v5  ;;  %1658 = vmatmul.f32.gmra.mxu2 %v1491_v62  ;;  %1723 = vmatmul.f32.gmra.mxu3 %v1492_v33  ;;  %v1501_v51 = vsel %vm9377_vm13, %v9220_v37, %v1497_v15  ;;  %vm9389_vm15 = vmor %vm2453_vm6, %vm2454_vm5  ;;  %v1526_v63 = vmul.f32 %v9363_v49, %v9284_v30  ;;  %v12687_v38 = vand.u32 2147483648, %v8997_v8  ;;  %v6145_v55 = vpop.eup %6144 }
 0x40b   : > { %3501 = vadd.xlane.f32.xlu0 %v3500_v3  ;;  %v12688_v53 = vand.u32 2147483648, %v9137_v4  ;;  %v2456_v37 = vsel %vm9389_vm15, %v9240_v14, %v2452_v57  ;;  %v12689_v60 = vsel %vm9271_vm12, %v9034_v42, %v9197_v45  ;;  %v2467_v44 = vmul.f32 %v9291_v34, %v2466_v16  ;;  %v6147_v14 = vpop.eup %6146 }
 0x40c   : > { %v2492_v61 = vor.u32 1.1754944e-38, %v12687_v38  ;;  %v1522_v62 = vsel %vm9338_vm4, %v9252_v41, %v12689_v60  ;;  %v9420_v57 = vmax.f32 %v2294_v58, 1e-30  ;;  %v12692_v19 = vand.u32 2147483647, %v9137_v4 }
 0x40d   : > { %v1505_v15 = vor.u32 1.1754944e-38, %v12688_v53  ;;  %v2460_v42 = vor.u32 1.1754944e-38, %v2459_v28  ;;  %v2488_v45 = vsel %vm9416_vm8, %v9088_v0, %v9281_v21  ;;  %v9428_v41 = vpop.eup %6148  ;;  %v9431_v13 = vmax.f32 %v8829_v9, 1e-30  ;;  %v12696_v21 = vld [vmem:[#allocation178_spill] sm:$0xff] }
 0x40e   : > { %vm1503_vm15 = vcmp.eq.f32.partialorder %v12692_v19, 8.507059e+37  ;;  %vm2458_vm12 = vcmp.eq.f32.partialorder %v2457_v20, 8.507059e+37  ;;  %v1559_v33 = vsub.f32 1.0, %v9304_v56  ;;  %v6151_v58 = vpop.eup %6150  ;;  %vm2470_vm1 = vweird.f32 %v9291_v34  ;;  %v12700_v53 = vld [vmem:[#allocation170_spill] sm:$0xff] }
 0x40f   : > { %v1506_v16 = vsel %vm1503_vm15, %v1505_v15, %v1501_v51  ;;  %v9434_v3 = vsel %vm2458_vm12, %v2460_v42, %v2456_v37  ;;  %v2475_v4 = vand.u32 2147483648, %v9204_v23  ;;  %v1527_v28 = vsub.f32 1.0, %v1526_v63  ;;  %v6153_v12 = vpop.eup %6152  ;;  %v12699_v63 = vld [vmem:[#allocation114_spill] sm:$0xff]  ;;  %v12701_v37 = vld [vmem:[#allocation105_spill] sm:$0xff] }
 0x410   : > { %vm12694_vm0 = vcmp.ne.f32.partialorder %v12693_v40, 0.0  ;;  %vm12695_vm4 = vcmp.ne.f32.partialorder %v12435_v59, 0.0  ;;  %vm12697_vm9 = vcmp.ne.f32.partialorder %v12696_v21, 0.0  ;;  %v2468_v20 = vadd.f32 %v9291_v34, %v2467_v44  ;;  %v9451_v51 = vpop.eup %6154  ;;  %v12707_v21 = vld [vmem:[#allocation214_spill] sm:$0xff] }
 0x411   : > { %v9440_v0 = vsel %vm12694_vm0, %v6151_v58, 0.0  ;;  %v9444_v9 = vsel %vm12695_vm4, %v6145_v55, 0.0  ;;  %v9448_v56 = vsel %vm12697_vm9, %v6147_v14, 0.0  ;;  %6156 = vrcp.f32 %v9420_v57  ;;  %v12703_v55 = vld [vmem:[#allocation146_spill] sm:$0xff] }
 0x412   : > { %12698 = vst [vmem:[#allocation223_spill] sm:$0xff] %v9448_v56  ;;  %v1507_v38 = vmul.f32 %v1506_v16, %v12699_v63  ;;  %v1508_v15 = vmul.f32 %v1506_v16, %v12700_v53  ;;  %vm12702_vm5 = vcmp.ne.f32.partialorder %v12701_v37, 0.0  ;;  %v2462_v18 = vmul.f32 %v9434_v3, %v12703_v55  ;;  %v12830_v37 = vld [vmem:[#allocation23_spill] sm:$0xff] }
 0x413   : > { %v9458_v60 = vsel %vm12702_vm5, %v6153_v12, 0.0  ;;  %vm2469_vm13 = vweird.f32 %v9204_v23  ;;  %v2473_v44 = vand.u32 2147483647, %v9204_v23  ;;  %6158 = vrcp.f32 %v9431_v13  ;;  %v2300_v12 = vpop.xlane.xlu2 %2299 }
 0x414   : > { %v3470_v14 = vadd.f32 %v9458_v60, %v9440_v0  ;;  %1661 = vmatmul.f32.gmra.mxu2 %v1507_v38  ;;  %1726 = vmatmul.f32.gmra.mxu3 %v1508_v15  ;;  %v3509_v19 = vadd.f32 %v9448_v56, %v9444_v9  ;;  %vm9471_vm6 = vmor %vm2469_vm13, %vm2470_vm1  ;;  %v1528_v16 = vmul.f32 %v9363_v49, %v1527_v28  ;;  %v12706_v38 = vand.u32 2147483647, %v8997_v8 }
 0x415   : > { %v1542_v58 = vmul.f32 %v9428_v41, %v9344_v22  ;;  %v2497_v23 = vmul.f32 %v9451_v51, %v9361_v5  ;;  %2808 = vmatmul.f32.gmra.mxu1 %v2462_v18  ;;  %v2472_v63 = vsel %vm9471_vm6, %v9291_v34, %v2468_v20  ;;  %v2476_v53 = vor.u32 1.1754944e-38, %v2475_v4 }
 0x416   : > { %3471 = vadd.xlane.f32.xlu1 %v3470_v14  ;;  %vm2490_vm8 = vcmp.eq.f32.partialorder %v12706_v38, 8.507059e+37  ;;  %3510 = vadd.xlane.f32.xlu0 %v3509_v19  ;;  %v1560_v28 = vmul.f32 %v9201_v27, %v1559_v33  ;;  %v9488_v55 = vmax.f32 %v1342_v11, 1e-30  ;;  %v1523_v59 = vmul.f32 %v1522_v62, %v12707_v21  ;;  %v12709_v33 = vld [vmem:[#allocation216_spill] sm:$0xff] }
 0x417   : > { %v9485_v15 = vsel %vm2490_vm8, %v2492_v61, %v2488_v45  ;;  %vm2474_vm15 = vcmp.eq.f32.partialorder %v2473_v44, 8.507059e+37  ;;  %v1568_v18 = vand.u32 2147483648, %v9123_v48  ;;  %v9492_v14 = vpop.eup %6156  ;;  %v1529_v8 = vadd.f32 %v9363_v49, %v1528_v16  ;;  %v12708_v45 = vld [vmem:[#allocation215_spill] sm:$0xff] }
 0x418   : > { %v9494_v42 = vsel %vm2474_vm15, %v2476_v53, %v2472_v63  ;;  %vm1531_vm12 = vweird.f32 %v9363_v49  ;;  %v1543_v34 = vsub.f32 1.0, %v1542_v58  ;;  %v2498_v61 = vsub.f32 1.0, %v2497_v23 }
 0x419   : > { %v1524_v4 = vmul.f32 %v1522_v62, %v12708_v45  ;;  %v1536_v11 = vand.u32 2147483648, %v9284_v30  ;;  %v2494_v21 = vmul.f32 %v9485_v15, %v12709_v33  ;;  %v9502_v20 = vpop.eup %6158  ;;  %vm1530_vm1 = vweird.f32 %v9284_v30  ;;  %v12710_v62 = vld [vmem:[#allocation222_spill] sm:$0xff] }
 0x41a   : > { %v1534_v44 = vand.u32 2147483647, %v9284_v30  ;;  %v1561_v19 = vadd.f32 %v9201_v27, %v1560_v28  ;;  %vm1563_vm0 = vweird.f32 %v9201_v27  ;;  %v2513_v16 = vmul.f32 %v9492_v14, %v9420_v57  ;;  %vm9513_vm4 = vmor %vm1530_vm1, %vm1531_vm12 }
 0x41b   : > { %6160 = vrcp.f32 %v9488_v55  ;;  %v2478_v58 = vmul.f32 %v9494_v42, %v12710_v62  ;;  %vm1562_vm9 = vweird.f32 %v9123_v48  ;;  %v1533_v30 = vsel %vm9513_vm4, %v9363_v49, %v1529_v8  ;;  %v3305_v33 = vpop.xlane.xlu2 %3304  ;;  %v12715_v8 = vld [vmem:[#allocation108_spill] sm:$0xff] }
 0x41c   : > { %1664 = vmatmul.f32.gmra.mxu2 %v1523_v59  ;;  %1729 = vmatmul.f32.gmra.mxu3 %v1524_v4  ;;  %v1544_v63 = vmul.f32 %v9428_v41, %v1543_v34  ;;  %v1566_v38 = vand.u32 2147483647, %v9123_v48  ;;  %v1569_v53 = vor.u32 1.1754944e-38, %v1568_v18  ;;  %v9525_v28 = vmul.f32 %v9502_v20, %v9431_v13  ;;  %vm9532_vm5 = vmor %vm1562_vm9, %vm1563_vm0  ;;  %v12716_v18 = vld [vmem:[#allocation195_spill] sm:$0xff] }
 0x41d   : > { %v9527_v45 = vmax.f32 %v2300_v12, 1e-30  ;;  %2811 = vmatmul.f32.gmra.mxu1 %v2478_v58  ;;  %v1537_v62 = vor.u32 1.1754944e-38, %v1536_v11  ;;  %v2499_v59 = vmul.f32 %v9451_v51, %v2498_v61  ;;  %v3347_v48 = vsub.f32 %v12715_v8, %v3305_v33 }
 0x41e   : > { %v3348_v34 = vsub.f32 %v12716_v18, %v3305_v33  ;;  %vm1535_vm13 = vcmp.eq.f32.partialorder %v1534_v44, 8.507059e+37  ;;  %v1565_v12 = vsel %vm9532_vm5, %v9201_v27, %v1561_v19  ;;  %v2514_v4 = vsub.f32 1.0, %v2513_v16  ;;  %v12717_v19 = vld [vmem:[#allocation109_spill] sm:$0xff] }
 0x41f   : > { %v1538_v58 = vsel %vm1535_vm13, %v1537_v62, %v1533_v30  ;;  %vm1546_vm6 = vweird.f32 %v9344_v22  ;;  %v1550_v61 = vand.u32 2147483647, %v9344_v22  ;;  %v3387_v11 = vmul.f32 1.442695, %v3347_v48  ;;  %v12718_v30 = vld [vmem:[#allocation202_spill] sm:$0xff]  ;;  %v12729_v18 = vld [vmem:[#allocation165_spill] sm:$0xff] }
 0x420   : > { %v3389_v23 = vmul.f32 1.442695, %v3348_v34  ;;  %v1545_v26 = vadd.f32 %v9428_v41, %v1544_v63  ;;  %vm1547_vm8 = vweird.f32 %v9428_v41  ;;  %6162 = vrcp.f32 %v9527_v45 }
 0x421   : > { %v9545_v8 = vpop.eup %6160  ;;  %v1552_v44 = vand.u32 2147483648, %v9344_v22  ;;  %v2500_v27 = vadd.f32 %v9451_v51, %v2499_v59  ;;  %vm2502_vm15 = vweird.f32 %v9451_v51  ;;  %6164 = vpow2.f32 %v3387_v11  ;;  %vm9556_vm12 = vmor %vm1546_vm6, %vm1547_vm8 }
 0x422   : > { %v1539_v16 = vmul.f32 %v1538_v58, %v12717_v19  ;;  %v1540_v33 = vmul.f32 %v1538_v58, %v12718_v30  ;;  %v2507_v62 = vand.u32 2147483648, %v9361_v5  ;;  %6166 = vpow2.f32 %v3389_v23  ;;  %v12723_v23 = vld [vmem:[#allocation183_spill] sm:$0xff] }
 0x423   : > { %vm2501_vm1 = vweird.f32 %v9361_v5  ;;  %v2505_v59 = vand.u32 2147483647, %v9361_v5  ;;  %v2515_v49 = vmul.f32 %v9492_v14, %v2514_v4  ;;  %v1549_v48 = vsel %vm9556_vm12, %v9428_v41, %v1545_v26  ;;  %v3314_v5 = vpop.xlane.xlu2 %3313  ;;  %v12724_v41 = vld [vmem:[#allocation88_spill] sm:$0xff] }
 0x424   : > { %1667 = vmatmul.f32.gmra.mxu2 %v1539_v16  ;;  %1732 = vmatmul.f32.gmra.mxu3 %v1540_v33  ;;  %vm9566_vm0 = vmor %vm2501_vm1, %vm2502_vm15  ;;  %vm1567_vm4 = vcmp.eq.f32.partialorder %v1566_v38, 8.507059e+37  ;;  %v1574_v22 = vmul.f32 %v9545_v8, %v9488_v55  ;;  %v2530_v34 = vsub.f32 1.0, %v9525_v28  ;;  %v1553_v58 = vor.u32 1.1754944e-38, %v1552_v44 }
 0x425   : > { %2814 = vmatmul.f32.gmra.mxu1 %v2494_v21  ;;  %v2504_v4 = vsel %vm9566_vm0, %v9451_v51, %v2500_v27  ;;  %v1570_v11 = vsel %vm1567_vm4, %v1569_v53, %v1565_v12  ;;  %v3353_v26 = vsub.f32 %v12723_v23, %v3314_v5  ;;  %v3354_v19 = vsub.f32 %v12724_v41, %v3314_v5  ;;  %v12725_v12 = vld [vmem:[#allocation130_spill] sm:$0xff]  ;;  %v12730_v5 = vld [vmem:[#allocation131_spill] sm:$0xff] }
 0x426   : > { %vm1551_vm9 = vcmp.eq.f32.partialorder %v1550_v61, 8.507059e+37  ;;  %v2508_v16 = vor.u32 1.1754944e-38, %v2507_v62  ;;  %v9578_v38 = vpop.eup %6162  ;;  %vm2506_vm5 = vcmp.eq.f32.partialorder %v2505_v59, 8.507059e+37  ;;  %v2516_v28 = vadd.f32 %v9492_v14, %v2515_v49  ;;  %v12727_v59 = vld [vmem:[#allocation29_spill] sm:$0xff]  ;;  %v12728_v49 = vld [vmem:[#allocation150_spill] sm:$0xff] }
 0x427   : > { %v1554_v30 = vsel %vm1551_vm9, %v1553_v58, %v1549_v48  ;;  %vm2518_vm13 = vweird.f32 %v9492_v14  ;;  %v6165_v21 = vpop.eup %6164  ;;  %v3399_v44 = vmul.f32 1.442695, %v3353_v26  ;;  %v3401_v33 = vmul.f32 1.442695, %v3354_v19 }
 0x428   : > { %v9582_v63 = vsel %vm2506_vm5, %v2508_v16, %v2504_v4  ;;  %v1575_v51 = vsub.f32 1.0, %v1574_v22  ;;  %v6167_v53 = vpop.eup %6166  ;;  %vm12726_vm6 = vcmp.ne.f32.partialorder %v12725_v12, 0.0  ;;  %vm2517_vm8 = vweird.f32 %v9420_v57  ;;  %v12732_v4 = vld [vmem:[#allocation166_spill] sm:$0xff] }
 0x429   : > { %v9586_v27 = vsel %vm12726_vm6, %v6165_v21, 0.0  ;;  %v2521_v61 = vand.u32 2147483647, %v9420_v57  ;;  %v2523_v62 = vand.u32 2147483648, %v9420_v57  ;;  %6168 = vpow2.f32 %v3399_v44  ;;  %vm9605_vm12 = vmor %vm2517_vm8, %vm2518_vm13 }
 0x42a   : > { %5787 = vrot.lane.b32.xlu0 %v12727_v59, %s6547_s27  ;;  %v1555_v48 = vmul.f32 %v1554_v30, %v12728_v49  ;;  %v1556_v22 = vmul.f32 %v1554_v30, %v12729_v18  ;;  %vm12731_vm15 = vcmp.ne.f32.partialorder %v12730_v5, 0.0  ;;  %6170 = vpow2.f32 %v3401_v33  ;;  %v12736_v49 = vld [vmem:[#allocation122_spill] sm:$0xff] }
 0x42b   : > { %v9597_v58 = vsel %vm12731_vm15, %v6167_v53, 0.0  ;;  %v2510_v23 = vmul.f32 %v9582_v63, %v12732_v4  ;;  %v2531_v41 = vmul.f32 %v9502_v20, %v2530_v34  ;;  %v2545_v19 = vmul.f32 %v9578_v38, %v9527_v45  ;;  %v3323_v21 = vpop.xlane.xlu2 %3322  ;;  %v12735_v53 = vld [vmem:[#allocation121_spill] sm:$0xff] }
 0x42c   : > { %v3479_v57 = vadd.f32 %v9597_v58, %v9586_v27  ;;  %1670 = vmatmul.f32.gmra.mxu2 %v1555_v48  ;;  %1735 = vmatmul.f32.gmra.mxu3 %v1556_v22  ;;  %v2520_v16 = vsel %vm9605_vm12, %v9492_v14, %v2516_v28  ;;  %v1576_v30 = vmul.f32 %v9545_v8, %v1575_v51  ;;  %v2524_v44 = vor.u32 1.1754944e-38, %v2523_v62  ;;  %v12737_v14 = vld [vmem:[#allocation188_spill] sm:$0xff] }
 0x42d   : > { %2817 = vmatmul.f32.gmra.mxu1 %v2510_v23  ;;  %vm2533_vm1 = vweird.f32 %v9431_v13  ;;  %v2537_v33 = vand.u32 2147483647, %v9431_v13  ;;  %v2539_v34 = vand.u32 2147483648, %v9431_v13  ;;  %v3359_v59 = vsub.f32 %v12735_v53, %v3323_v21 }
 0x42e   : > { %3480 = vadd.xlane.f32.xlu1 %v3479_v57  ;;  %v3360_v48 = vsub.f32 %v12736_v49, %v3323_v21  ;;  %vm2522_vm0 = vcmp.eq.f32.partialorder %v2521_v61, 8.507059e+37  ;;  %vm2534_vm4 = vweird.f32 %v9502_v20  ;;  %v1571_v28 = vmul.f32 %v1570_v11, %v12737_v14  ;;  %v12738_v61 = vld [vmem:[#allocation189_spill] sm:$0xff]  ;;  %v12739_v49 = vld [vmem:[#allocation143_spill] sm:$0xff] }
 0x42f   : > { %v9623_v51 = vsel %vm2522_vm0, %v2524_v44, %v2520_v16  ;;  %vm1579_vm9 = vweird.f32 %v9545_v8  ;;  %v2532_v62 = vadd.f32 %v9502_v20, %v2531_v41  ;;  %v6169_v18 = vpop.eup %6168  ;;  %v2546_v22 = vsub.f32 1.0, %v2545_v19  ;;  %v12741_v41 = vld [vmem:[#allocation49_spill] sm:$0xff]  ;;  %v12742_v19 = vld [vmem:[#allocation144_spill] sm:$0xff]  ;;  %vm9649_vm8 = vmor %vm2533_vm1, %vm2534_vm4 }
 0x430   : > { %v3411_v4 = vmul.f32 1.442695, %v3359_v59  ;;  %v3413_v23 = vmul.f32 1.442695, %v3360_v48  ;;  %v1577_v57 = vadd.f32 %v9545_v8, %v1576_v30  ;;  %v6171_v26 = vpop.eup %6170  ;;  %v9629_v21 = vmax.f32 %v8991_v32, 1e-30 }
 0x431   : > { %v1572_v53 = vmul.f32 %v1570_v11, %v12738_v61  ;;  %vm12740_vm5 = vcmp.ne.f32.partialorder %v12739_v49, 0.0  ;;  %v1584_v44 = vand.u32 2147483648, %v9488_v55  ;;  %vm12743_vm13 = vcmp.ne.f32.partialorder %v12742_v19, 0.0  ;;  %v12746_v30 = vld [vmem:[#allocation171_spill] sm:$0xff] }
 0x432   : > { %v9634_v16 = vsel %vm12740_vm5, %v6169_v18, 0.0  ;;  %6172 = vpow2.f32 %v3411_v4  ;;  %5797 = vrot.lane.b32.xlu0 %v12741_v41, %s6547_s27  ;;  %v9641_v59 = vsel %vm12743_vm13, %v6171_v26, 0.0  ;;  %vm1578_vm6 = vweird.f32 %v9488_v55  ;;  %v12749_v41 = vld [vmem:[#allocation198_spill] sm:$0xff] }
 0x433   : > { %v1582_v32 = vand.u32 2147483647, %v9488_v55  ;;  %6174 = vpow2.f32 %v3413_v23  ;;  %v2526_v48 = vmul.f32 %v9623_v51, %v12746_v30  ;;  %v3488_v14 = vadd.f32 %v9641_v59, %v9634_v16  ;;  %vm9659_vm15 = vmor %vm1578_vm6, %vm1579_vm9  ;;  %v3332_v23 = vpop.xlane.xlu2 %3331 }
 0x434   : > { %1673 = vmatmul.f32.gmra.mxu2 %v1571_v28  ;;  %1738 = vmatmul.f32.gmra.mxu3 %v1572_v53  ;;  %v1581_v13 = vsel %vm9659_vm15, %v9545_v8, %v1577_v57  ;;  %v2536_v55 = vsel %vm9649_vm8, %v9502_v20, %v2532_v62  ;;  %v2547_v4 = vmul.f32 %v9578_v38, %v2546_v22  ;;  %6176 = vrcp.f32 %v9629_v21  ;;  %v12750_v53 = vld [vmem:[#allocation199_spill] sm:$0xff]  ;;  %v1345_v11 = vpop.xlane.xlu0 %1344 }
 0x435   : > { %2820 = vmatmul.f32.gmra.mxu1 %v2526_v48  ;;  %v1585_v26 = vor.u32 1.1754944e-38, %v1584_v44  ;;  %v2540_v61 = vor.u32 1.1754944e-38, %v2539_v34  ;;  %v3365_v28 = vsub.f32 %v12749_v41, %v3332_v23  ;;  %v3366_v30 = vsub.f32 %v12750_v53, %v3332_v23  ;;  %v12758_v53 = vld [vmem:[#allocation220_spill] sm:$0xff] }
 0x436   : > { %3489 = vadd.xlane.f32.xlu1 %v3488_v14  ;;  %vm1583_vm12 = vcmp.eq.f32.partialorder %v1582_v32, 8.507059e+37  ;;  %vm2538_vm1 = vcmp.eq.f32.partialorder %v2537_v33, 8.507059e+37  ;;  %vm2549_vm0 = vweird.f32 %v9527_v45  ;;  %v2548_v48 = vadd.f32 %v9578_v38, %v2547_v4  ;;  %v12751_v14 = vld [vmem:[#allocation158_spill] sm:$0xff] }
 0x437   : > { %v1586_v8 = vsel %vm1583_vm12, %v1585_v26, %v1581_v13  ;;  %v9673_v57 = vsel %vm2538_vm1, %v2540_v61, %v2536_v55  ;;  %v3423_v62 = vmul.f32 1.442695, %v3365_v28  ;;  %v3425_v22 = vmul.f32 1.442695, %v3366_v30  ;;  %v12753_v13 = vld [vmem:[#allocation79_spill] sm:$0xff]  ;;  %v12755_v26 = vld [vmem:[#allocation176_spill] sm:$0xff] }
 0x438   : > { %v6173_v20 = vpop.eup %6172  ;;  %vm2550_vm4 = vweird.f32 %v9578_v38  ;;  %v1363_v44 = vmax.f32 %v1345_v11, 1e-30  ;;  %vm12752_vm9 = vcmp.ne.f32.partialorder %v12751_v14, 0.0  ;;  %v2553_v33 = vand.u32 2147483647, %v9527_v45  ;;  %v12754_v55 = vld [vmem:[#allocation175_spill] sm:$0xff] }
 0x439   : > { %v6175_v34 = vpop.eup %6174  ;;  %v9680_v18 = vsel %vm12752_vm9, %v6173_v20, 0.0  ;;  %v2555_v32 = vand.u32 2147483648, %v9527_v45  ;;  %6178 = vpow2.f32 %v3423_v62  ;;  %v1587_v23 = vmul.f32 %v1586_v8, %v12754_v55  ;;  %v12756_v61 = vld [vmem:[#allocation159_spill] sm:$0xff]  ;;  %vm2551_vm13 = vmor %vm2549_vm0, %vm2550_vm4  ;;  %v12773_v14 = vld [vmem:[#allocation152_spill] sm:$0xff] }
 0x43a   : > { %5812 = vrot.lane.b32.xlu0 %v12753_v13, %s6547_s27  ;;  %v1588_v4 = vmul.f32 %v1586_v8, %v12755_v26  ;;  %vm12757_vm5 = vcmp.ne.f32.partialorder %v12756_v61, 0.0  ;;  %v9692_v28 = vpop.eup %6176  ;;  %6180 = vpow2.f32 %v3425_v22  ;;  %v2542_v30 = vmul.f32 %v9673_v57, %v12758_v53  ;;  %v12759_v26 = vld [vmem:[#allocation97_spill] sm:$0xff]  ;;  %v12760_v53 = vld [vmem:[#allocation98_spill] sm:$0xff] }
 0x43b   : > { %v9690_v41 = vsel %vm12757_vm5, %v6175_v34, 0.0  ;;  %6182 = vrcp.f32 %v1363_v44  ;;  %v2552_v8 = vsel %vm2551_vm13, %v9578_v38, %v2548_v48  ;;  %v2556_v62 = vor.u32 1.1754944e-38, %v2555_v32  ;;  %v12763_v48 = vld [vmem:[#allocation125_spill] sm:$0xff] }
 0x43c   : > { %v3497_v20 = vadd.f32 %v9690_v41, %v9680_v18  ;;  %1676 = vmatmul.f32.gmra.mxu2 %v1587_v23  ;;  %1741 = vmatmul.f32.gmra.mxu3 %v1588_v4  ;;  %vm2554_vm6 = vcmp.eq.f32.partialorder %v2553_v33, 8.507059e+37  ;;  %v1606_v22 = vmul.f32 %v9692_v28, %v9629_v21  ;;  %v3311_v13 = vpop.xlane.xlu0 %3310  ;;  %v12761_v23 = vld [vmem:[#allocation173_spill] sm:$0xff]  ;;  %v12764_v33 = vld [vmem:[#allocation180_spill] sm:$0xff]  ;;  %vm1594_vm1 = vweird.f32 %v1363_v44 }
 0x43d   : > { %2823 = vmatmul.f32.gmra.mxu1 %v2542_v30  ;;  %v9705_v11 = vsel %vm2554_vm6, %v2556_v62, %v2552_v8  ;;  %v3351_v45 = vsub.f32 %v12759_v26, %v3311_v13  ;;  %v3352_v2 = vsub.f32 %v12760_v53, %v3311_v13  ;;  %vm12762_vm8 = vcmp.ne.f32.partialorder %v12761_v23, 0.0  ;;  %v12765_v30 = vld [vmem:[#allocation174_spill] sm:$0xff] }
 0x43e   : > { %3498 = vadd.xlane.f32.xlu1 %v3497_v20  ;;  %v2558_v32 = vmul.f32 %v9705_v11, %v12764_v33  ;;  %vm12766_vm15 = vcmp.ne.f32.partialorder %v12765_v30, 0.0  ;;  %v1607_v8 = vsub.f32 1.0, %v1606_v22  ;;  %v1598_v33 = vand.u32 2147483647, %v1363_v44 }
 0x43f   : > { %v6179_v34 = vpop.eup %6178  ;;  %v3395_v62 = vmul.f32 1.442695, %v3351_v45  ;;  %v3397_v26 = vmul.f32 1.442695, %v3352_v2  ;;  %v12768_v2 = vld [vmem:[#allocation153_spill] sm:$0xff]  ;;  %vm1611_vm4 = vweird.f32 %v9692_v28  ;;  %vm1610_vm13 = vweird.f32 %v9629_v21 }
 0x440   : > { %v6181_v55 = vpop.eup %6180  ;;  %v9711_v4 = vsel %vm12762_vm8, %v6179_v34, 0.0  ;;  %v1608_v30 = vmul.f32 %v9692_v28, %v1607_v8  ;;  %vm1599_vm9 = vcmp.eq.f32.partialorder %v1598_v33, 8.507059e+37  ;;  %v12769_v8 = vld [vmem:[#allocation151_spill] sm:$0xff]  ;;  %vm12774_vm6 = vcmp.ne.f32.partialorder %v12773_v14, 0.0  ;;  %vm1612_vm8 = vmor %vm1610_vm13, %vm1611_vm4 }
 0x441   : > { %v6183_v38 = vpop.eup %6182  ;;  %v9719_v20 = vsel %vm12766_vm15, %v6181_v55, 0.0  ;;  %6184 = vpow2.f32 %v3395_v62  ;;  %vm12770_vm5 = vcmp.ne.f32.partialorder %v12769_v8, 0.0 }
 0x442   : > { %5827 = vrot.lane.b32.xlu0 %v12763_v48, %s6547_s27  ;;  %12767 = vst [vmem:[#allocation224_spill] sm:$0xff] %v9719_v20  ;;  %v3506_v13 = vadd.f32 %v9719_v20, %v9711_v4  ;;  %v1590_v53 = vmul.f32 %v6183_v38, %v1363_v44  ;;  %6186 = vpow2.f32 %v3397_v26  ;;  %v1600_v48 = vand.u32 2147483648, %v1363_v44 }
 0x443   : > { %vm1595_vm12 = vweird.f32 %v6183_v38  ;;  %v1609_v26 = vadd.f32 %v9692_v28, %v1608_v30  ;;  %v1616_v44 = vand.u32 2147483648, %v9629_v21  ;;  %v1614_v30 = vand.u32 2147483647, %v9629_v21 }
 0x444   : > { %v1591_v34 = vsub.f32 1.0, %v1590_v53  ;;  %v2303_v55 = vpop.xlane.xlu0 %2302  ;;  %vm1596_vm0 = vmor %vm1594_vm1, %vm1595_vm12  ;;  %v1601_v45 = vor.u32 1.1754944e-38, %v1600_v48 }
 0x445   : > { %2826 = vmatmul.f32.gmra.mxu1 %v2558_v32  ;;  %v2319_v61 = vmax.f32 %v2303_v55, 1e-30  ;;  %v12772_v55 = vld [vmem:[#allocation129_spill] sm:$0xff]  ;;  %vm1615_vm15 = vcmp.eq.f32.partialorder %v1614_v30, 8.507059e+37 }
 0x446   : > { %3507 = vadd.xlane.f32.xlu1 %v3506_v13  ;;  %v1592_v23 = vmul.f32 %v6183_v38, %v1591_v34 }
 0x447   : > { %v6185_v32 = vpop.eup %6184  ;;  %6188 = vrcp.f32 %v2319_v61  ;;  %vm2565_vm1 = vweird.f32 %v2319_v61 }
 0x448   : > { %v1593_v22 = vadd.f32 %v6183_v38, %v1592_v23  ;;  %v6187_v13 = vpop.eup %6186  ;;  %v9730_v34 = vsel %vm12770_vm5, %v6185_v32, 0.0  ;;  %v12771_v23 = vld [vmem:[#allocation213_spill] sm:$0xff]  ;;  %v1617_v32 = vor.u32 1.1754944e-38, %v1616_v44  ;;  %v2571_v44 = vand.u32 2147483648, %v2319_v61 }
 0x44a   : > { %5842 = vrot.lane.b32.xlu0 %v12768_v2, %s6547_s27  ;;  %v1597_v62 = vsel %vm1596_vm0, %v6183_v38, %v1593_v22  ;;  %v9738_v38 = vsel %vm12774_vm6, %v6187_v13, 0.0  ;;  %v1613_v22 = vsel %vm1612_vm8, %v9692_v28, %v1609_v26  ;;  %v12777_v26 = vld [vmem:[#allocation133_spill] sm:$0xff] }
 0x44b   : > { %v1602_v53 = vsel %vm1599_vm9, %v1601_v45, %v1597_v62  ;;  %v3485_v33 = vadd.f32 %v9738_v38, %v9730_v34 }
 0x44c   : > { %v1603_v48 = vmul.f32 %v1602_v53, %v12771_v23  ;;  %v1604_v2 = vmul.f32 %v1602_v53, %v12772_v55  ;;  %v12775_v23 = vld [vmem:[#allocation116_spill] sm:$0xff]  ;;  %v1618_v55 = vsel %vm1615_vm15, %v1617_v32, %v1613_v22 }
 0x44d   : > { %3486 = vadd.xlane.f32.xlu2 %v3485_v33  ;;  %v3320_v45 = vpop.xlane.xlu0 %3319  ;;  %v6189_v62 = vpop.eup %6188  ;;  %v1620_v33 = vmul.f32 %v1618_v55, %v12777_v26  ;;  %v12778_v32 = vld [vmem:[#allocation28_spill] sm:$0xff] }
 0x44e   : > { %1679 = vmatmul.f32.gmra.mxu2 %v1603_v48  ;;  %1744 = vmatmul.f32.gmra.mxu3 %v1604_v2  ;;  %v3357_v53 = vsub.f32 %v8693_v36, %v3320_v45  ;;  %v3358_v13 = vsub.f32 %v8697_v25, %v3320_v45  ;;  %v2561_v21 = vmul.f32 %v6189_v62, %v2319_v61  ;;  %v12776_v2 = vld [vmem:[#allocation132_spill] sm:$0xff]  ;;  %vm2566_vm12 = vweird.f32 %v6189_v62 }
 0x44f   : > { %v1619_v28 = vmul.f32 %v1618_v55, %v12776_v2  ;;  %v2569_v36 = vand.u32 2147483647, %v2319_v61  ;;  %vm2567_vm0 = vmor %vm2565_vm1, %vm2566_vm12  ;;  %v12782_v2 = vld [vmem:[#allocation128_spill] sm:$0xff] }
 0x450   : > { %v3407_v14 = vmul.f32 1.442695, %v3357_v53  ;;  %v3409_v8 = vmul.f32 1.442695, %v3358_v13  ;;  %v2562_v48 = vsub.f32 1.0, %v2561_v21  ;;  %v12806_v61 = vld [vmem:[#allocation140_spill] sm:$0xff] }
 0x451   : > { %vm2570_vm4 = vcmp.eq.f32.partialorder %v2569_v36, 8.507059e+37 }
 0x452   : > { %5857 = vrot.lane.b32.xlu0 %v12775_v23, %s6547_s27  ;;  %6190 = vpow2.f32 %v3407_v14  ;;  %v2563_v19 = vmul.f32 %v6189_v62, %v2562_v48  ;;  %v2572_v14 = vor.u32 1.1754944e-38, %v2571_v44  ;;  %v12779_v48 = vld [vmem:[#allocation196_spill] sm:$0xff] }
 0x453   : > { %6192 = vpow2.f32 %v3409_v8 }
 0x454   : > { %v2564_v30 = vadd.f32 %v6189_v62, %v2563_v19 }
 0x455   : > { %v3329_v25 = vpop.xlane.xlu0 %3328 }
 0x456   : > { %1682 = vmatmul.f32.gmra.mxu2 %v1619_v28  ;;  %1747 = vmatmul.f32.gmra.mxu3 %v1620_v33  ;;  %v3363_v22 = vsub.f32 %v8722_v46, %v3329_v25  ;;  %v3364_v45 = vsub.f32 %v8728_v7, %v3329_v25  ;;  %v2568_v53 = vsel %vm2567_vm0, %v6189_v62, %v2564_v30  ;;  %v12781_v7 = vld [vmem:[#allocation194_spill] sm:$0xff] }
 0x457   : > { %v9756_v23 = vsel %vm2570_vm4, %v2572_v14, %v2568_v53  ;;  %v2335_v28 = vmul.f32 %v12782_v2, %v12781_v7  ;;  %v12784_v33 = vld [vmem:[#allocation18_spill] sm:$0xff]  ;;  %v12805_v2 = vld [vmem:[#allocation225_spill] sm:$0xff] }
 0x458   : > { %v6191_v8 = vpop.eup %6190  ;;  %v3419_v13 = vmul.f32 1.442695, %v3363_v22  ;;  %v3421_v21 = vmul.f32 1.442695, %v3364_v45  ;;  %v2574_v19 = vmul.f32 %v9756_v23, %v12779_v48  ;;  %v12785_v30 = vld [vmem:[#allocation26_spill] sm:$0xff] }
 0x459   : > { %v6193_v55 = vpop.eup %6192  ;;  %v9762_v46 = vsel %vm867_vm11, %v6191_v8, 0.0 }
 0x45a   : > { %3887 = vrot.lane.b32.xlu0 %v12778_v32, %s6547_s27  ;;  %6194 = vpow2.f32 %v3419_v13  ;;  %v9768_v62 = vsel %vm868_vm10, %v6193_v55, 0.0  ;;  %2829 = vmatmul.f32.gmra.mxu1 %v2574_v19  ;;  %v1641_v36 = vpop.f32.mrf.mxu2  ;;  %v1706_v25 = vpop.f32.mrf.mxu3  ;;  %v12786_v13 = vld [vmem:[#allocation40_spill] sm:$0xff] }
 0x45b   : > { %6196 = vpow2.f32 %v3421_v21  ;;  %v3494_v44 = vadd.f32 %v9768_v62, %v9762_v46  ;;  %v1642_v22 = vadd.f32 %v1641_v36, %v12785_v30  ;;  %v12804_v36 = vld [vmem:[#allocation112_spill] sm:$0xff] }
 0x45c   : > { %v2383_v26 = vmul.f32 %v12805_v2, %v12804_v36  ;;  %v12809_v36 = vld [vmem:[#allocation212_spill] sm:$0xff] }
 0x45d   : > { %3495 = vadd.xlane.f32.xlu2 %v3494_v44  ;;  %v3338_v45 = vpop.xlane.xlu0 %3337  ;;  %v1707_v8 = vadd.f32 %v1706_v25, %v1642_v22  ;;  %v12789_v44 = vld [vmem:[#allocation145_spill] sm:$0xff]  ;;  %v12792_v22 = vld [vmem:[#allocation52_spill] sm:$0xff] }
 0x45e   : > { %2849 = vmatmul.f32.vlgmr.msra.gmra.mxu2 %v2335_v28  ;;  %v3369_v14 = vsub.f32 %v8753_v10, %v3338_v45  ;;  %v3370_v53 = vsub.f32 %v8807_v54, %v3338_v45 }
 0x45f   : > { %5782 = vrot.lane.b32.xlu1 %v12784_v33, %s6547_s27  ;;  %v1755_v7 = vmul.f32 %v9209_v1, %v1707_v8  ;;  %v12788_v33 = vld [vmem:[#allocation205_spill] sm:$0xff] }
 0x460   : > { %v6195_v21 = vpop.eup %6194  ;;  %v3431_v55 = vmul.f32 1.442695, %v3369_v14  ;;  %v3433_v48 = vmul.f32 1.442695, %v3370_v53  ;;  %v2351_v10 = vmul.f32 %v12789_v44, %v12788_v33 }
 0x461   : > { %v6197_v19 = vpop.eup %6196  ;;  %v9782_v28 = vsel %vm873_vm2, %v6195_v21, 0.0  ;;  %v1774_v25 = vadd.f32 %v9231_v35, %v1755_v7  ;;  %v9803_v7 = vld [vmem:[%s11711_s7] ss:$0 sm:$0xff] }
 0x462   : > { %3893 = vrot.lane.b32.xlu0 %v12786_v13, %s6547_s27  ;;  %6198 = vpow2.f32 %v3431_v55  ;;  %v9788_v54 = vsel %vm874_vm3, %v6197_v19, 0.0  ;;  %v1644_v45 = vpop.f32.mrf.mxu2  ;;  %v1709_v14 = vpop.f32.mrf.mxu3  ;;  %v12793_v19 = vld [vmem:[#allocation55_spill] sm:$0xff] }
 0x463   : > { %12791 = vst [vmem:[#allocation206_spill] sm:$0xff] %v9788_v54  ;;  %6200 = vpow2.f32 %v3433_v48  ;;  %v3503_v1 = vadd.f32 %v9788_v54, %v9782_v28  ;;  %vm1790_vm9 = vcmp.ge.f32.partialorder %v1774_v25, 0.0  ;;  %v1806_v53 = vmul.f32 0.002, %v1774_v25 }
 0x464   : > { %v1645_v8 = vadd.f32 %v1644_v45, %v12778_v32  ;;  %v12798_v45 = vld [vmem:[#allocation191_spill] sm:$0xff] }
 0x465   : > { %3504 = vadd.xlane.f32.xlu2 %v3503_v1  ;;  %v1822_v21 = vsel %vm1790_vm9, %v1774_v25, %v1806_v53  ;;  %v9806_v44 = vpop.xlane.xlu0 %3474  ;;  %vm12799_vm13 = vcmp.ne.f32.partialorder %v12798_v45, 0.0  ;;  %v9821_v53 = vld [vmem:[%s11712_s8] ss:$0 sm:$0xff]  ;;  %v6548_v45 = vmov 3  }
 0x466   : > { %2852 = vmatmul.f32.gmra.mxu2 %v2351_v10  ;;  %v1710_v55 = vadd.f32 %v1709_v14, %v1645_v8  ;;  %1839 = vst.msk [vmem:[%s9257_s1 + $0x8] sm:$0xff] %vm1837_vm7, %v1822_v21  ;;  %v12794_v10 = vld [vmem:[#allocation190_spill] sm:$0xff]  ;;  %v12801_v21 = vld [vmem:[#allocation83_spill] sm:$0xff]  ;;  %5861 = vset.pattern.permute.xlu0 %v6548_v45 }
 0x467   : > { %5802 = vrot.lane.b32.xlu1 %v12792_v22, %s6547_s27  ;;  %vm12795_vm5 = vcmp.ne.f32.partialorder %v12794_v10, 0.0  ;;  %v12797_v22 = vld [vmem:[#allocation200_spill] sm:$0xff]  ;;  %5863 = vset.pattern.permute.xlu2 %v6548_v45 }
 0x468   : > { %v6199_v35 = vpop.eup %6198  ;;  %v1756_v33 = vmul.f32 %v9803_v7, %v1710_v55  ;;  %v2367_v1 = vmul.f32 %v9025_v47, %v12797_v22  ;;  %v12802_v22 = vld [vmem:[#allocation33_spill] sm:$0xff]  ;;  %5862 = vset.pattern.permute.xlu1 %v6548_v45 }
 0x469   : > { %v6201_v48 = vpop.eup %6200  ;;  %v9810_v25 = vsel %vm12795_vm5, %v6199_v35, 0.0 }
 0x46a   : > { %3899 = vrot.lane.b32.xlu0 %v12793_v19, %s6547_s27  ;;  %12796 = vst [vmem:[#allocation211_spill] sm:$0xff] %v9810_v25  ;;  %v9816_v14 = vsel %vm12799_vm13, %v6201_v48, 0.0  ;;  %v1775_v8 = vadd.f32 %v9821_v53, %v1756_v33  ;;  %v1647_v47 = vpop.f32.mrf.mxu2  ;;  %v1712_v35 = vpop.f32.mrf.mxu3 }
 0x46b   : > { %12800 = vst [vmem:[#allocation192_spill] sm:$0xff] %v9816_v14  ;;  %v3512_v55 = vadd.f32 %v9816_v14, %v9810_v25  ;;  %v1648_v32 = vadd.f32 %v1647_v47, %v12802_v22  ;;  %v12852_v14 = vld [vmem:[#allocation21_spill] sm:$0xff] }
 0x46c   : > { %vm1791_vm6 = vcmp.ge.f32.partialorder %v1775_v8, 0.0  ;;  %v1807_v48 = vmul.f32 0.002, %v1775_v8 }
 0x46d   : > { %3513 = vadd.xlane.f32.xlu2 %v3512_v55  ;;  %v1713_v10 = vadd.f32 %v1712_v35, %v1648_v32  ;;  %v9837_v47 = vpop.xlane.xlu0 %3483  ;;  %v12807_v35 = vld [vmem:[#allocation36_spill] sm:$0xff] }
 0x46e   : > { %2855 = vmatmul.f32.gmra.mxu2 %v2367_v1  ;;  %v1823_v33 = vsel %vm1791_vm6, %v1775_v8, %v1807_v48 }
 0x46f   : > { %5817 = vrot.lane.b32.xlu1 %v12801_v21, %s6547_s27  ;;  %v12803_v21 = vld [vmem:[#allocation70_spill] sm:$0xff]  ;;  %1840 = vst.msk [vmem:[%s9257_s1 + $0x10] sm:$0xff] %vm1837_vm7, %v1823_v33  ;;  %v1757_v1 = vmul.f32 %v9803_v7, %v1713_v10 }
 0x470   : > { %v12808_v10 = vld [vmem:[#allocation86_spill] sm:$0xff] }
 0x471   : > { %v1776_v55 = vadd.f32 %v9821_v53, %v1757_v1  ;;  %v12810_v1 = vld [vmem:[#allocation163_spill] sm:$0xff] }
 0x472   : > { %3905 = vrot.lane.b32.xlu0 %v12803_v21, %s6547_s27  ;;  %v1650_v32 = vpop.f32.mrf.mxu2  ;;  %v1715_v45 = vpop.f32.mrf.mxu3 }
 0x473   : > { %vm1792_vm8 = vcmp.ge.f32.partialorder %v1776_v55, 0.0  ;;  %v1808_v8 = vmul.f32 0.002, %v1776_v55  ;;  %v1651_v48 = vadd.f32 %v1650_v32, %v12807_v35 }
 0x475   : > { %v1824_v33 = vsel %vm1792_vm8, %v1776_v55, %v1808_v8  ;;  %v1716_v49 = vadd.f32 %v1715_v45, %v1651_v48  ;;  %v9852_v8 = vpop.xlane.xlu0 %3492 }
 0x476   : > { %2858 = vmatmul.f32.gmra.mxu2 %v2383_v26  ;;  %1841 = vst.msk [vmem:[%s9257_s1 + $0x18] sm:$0xff] %vm1837_vm7, %v1824_v33 }
 0x477   : > { %5832 = vrot.lane.b32.xlu1 %v12806_v61, %s6547_s27  ;;  %v1758_v2 = vmul.f32 %v9803_v7, %v1716_v49  ;;  %v2399_v61 = vmul.f32 %v9053_v31, %v12809_v36  ;;  %v12811_v49 = vld [vmem:[#allocation137_spill] sm:$0xff] }
 0x479   : > { %v1777_v26 = vadd.f32 %v9821_v53, %v1758_v2  ;;  %v2415_v2 = vmul.f32 %v9236_v52, %v12811_v49  ;;  %v12814_v52 = vld [vmem:[#allocation16_spill] sm:$0xff]  ;;  %v12815_v49 = vld [vmem:[#allocation207_spill] sm:$0xff] }
 0x47a   : > { %3911 = vrot.lane.b32.xlu0 %v12808_v10, %s6547_s27  ;;  %v1653_v32 = vpop.f32.mrf.mxu2  ;;  %v1718_v55 = vpop.f32.mrf.mxu3 }
 0x47b   : > { %vm1793_vm15 = vcmp.ge.f32.partialorder %v1777_v26, 0.0  ;;  %v1809_v45 = vmul.f32 0.002, %v1777_v26  ;;  %v1654_v48 = vadd.f32 %v1653_v32, %v12786_v13  ;;  %v12812_v32 = vld [vmem:[#allocation39_spill] sm:$0xff] }
 0x47d   : > { %v1825_v33 = vsel %vm1793_vm15, %v1777_v26, %v1809_v45  ;;  %v1719_v5 = vadd.f32 %v1718_v55, %v1654_v48  ;;  %v12813_v55 = vld [vmem:[#allocation44_spill] sm:$0xff] }
 0x47e   : > { %2861 = vmatmul.f32.gmra.mxu2 %v2399_v61  ;;  %1842 = vst.msk [vmem:[%s9257_s1 + $0x20] sm:$0xff] %vm1837_vm7, %v1825_v33 }
 0x47f   : > { %5847 = vrot.lane.b32.xlu1 %v12810_v1, %s6547_s27  ;;  %v1759_v31 = vmul.f32 %v9803_v7, %v1719_v5  ;;  %v9868_v5 = vpop.xlane.xlu0 %3501 }
 0x481   : > { %v1778_v36 = vadd.f32 %v9821_v53, %v1759_v31 }
 0x482   : > { %4080 = vrot.lane.b32.xlu0 %v9821_v53, %s6547_s27  ;;  %v1656_v61 = vpop.f32.mrf.mxu2  ;;  %v1721_v26 = vpop.f32.mrf.mxu3 }
 0x483   : > { %vm1794_vm12 = vcmp.ge.f32.partialorder %v1778_v36, 0.0  ;;  %v1810_v1 = vmul.f32 0.002, %v1778_v36  ;;  %v1657_v45 = vadd.f32 %v1656_v61, %v12813_v55 }
 0x485   : > { %5792 = vrot.lane.b32.xlu2 %v12812_v32, %s6547_s27  ;;  %v1826_v48 = vsel %vm1794_vm12, %v1778_v36, %v1810_v1  ;;  %v1722_v33 = vadd.f32 %v1721_v26, %v1657_v45  ;;  %v12816_v1 = vld [vmem:[#allocation71_spill] sm:$0xff]  ;;  %v12817_v32 = vld [vmem:[#allocation50_spill] sm:$0xff] }
 0x486   : > { %2864 = vmatmul.f32.gmra.mxu2 %v2415_v2  ;;  %1843 = vst.msk [vmem:[%s9257_s1 + $0x28] sm:$0xff] %vm1837_vm7, %v1826_v48  ;;  %v2431_v2 = vmul.f32 %v8989_v50, %v12815_v49 }
 0x487   : > { %3883 = vrot.lane.b32.xlu1 %v12645_v43, %s6547_s27  ;;  %v1760_v31 = vmul.f32 %v9803_v7, %v1722_v33 }
 0x489   : > { %v1779_v13 = vadd.f32 %v9821_v53, %v1760_v31  ;;  %v9884_v50 = vpop.xlane.xlu0 %3510  ;;  %v12818_v31 = vld [vmem:[#allocation162_spill] sm:$0xff] }
 0x48a   : > { %4229 = vperm.xlu0 %5861, %v12814_v52   ;;  %v2447_v49 = vmul.f32 %v9167_v17, %v12818_v31 }
 0x48b   : > { %vm1795_vm1 = vcmp.ge.f32.partialorder %v1779_v13, 0.0  ;;  %v1811_v26 = vmul.f32 0.002, %v1779_v13 }
 0x48d   : > { %v1659_v36 = vpop.f32.mrf.mxu2  ;;  %v1724_v61 = vpop.f32.mrf.mxu3  ;;  %5807 = vrot.lane.b32.xlu2 %v12816_v1, %s6547_s27  ;;  %v1827_v48 = vsel %vm1795_vm1, %v1779_v13, %v1811_v26 }
 0x48e   : > { %2867 = vmatmul.f32.gmra.mxu2 %v2431_v2  ;;  %v1660_v45 = vadd.f32 %v1659_v36, %v12817_v32  ;;  %1844 = vst.msk [vmem:[%s9257_s1 + $0x30] sm:$0xff] %vm1837_vm7, %v1827_v48 }
 0x48f   : > { %3889 = vrot.lane.b32.xlu1 %v12802_v22, %s6547_s27 }
 0x490   : > { %v1725_v33 = vadd.f32 %v1724_v61, %v1660_v45  ;;  %v12819_v61 = vld [vmem:[#allocation124_spill] sm:$0xff] }
 0x492   : > { %v1761_v52 = vmul.f32 %v9803_v7, %v1725_v33 }
 0x494   : > { %v1780_v2 = vadd.f32 %v9821_v53, %v1761_v52  ;;  %v12820_v52 = vld [vmem:[#allocation149_spill] sm:$0xff] }
 0x495   : > { %5822 = vrot.lane.b32.xlu2 %v12819_v61, %s6547_s27  ;;  %v2463_v31 = vmul.f32 %v9434_v3, %v12820_v52  ;;  %v12823_v52 = vld [vmem:[#allocation186_spill] sm:$0xff] }
 0x496   : > { %2870 = vmatmul.f32.gmra.mxu2 %v2447_v49  ;;  %vm1796_vm0 = vcmp.ge.f32.partialorder %v1780_v2, 0.0  ;;  %v1812_v13 = vmul.f32 0.002, %v1780_v2 }
 0x497   : > { %3895 = vrot.lane.b32.xlu1 %v12813_v55, %s6547_s27  ;;  %v1662_v1 = vpop.f32.mrf.mxu2  ;;  %v1727_v36 = vpop.f32.mrf.mxu3  ;;  %v12821_v55 = vld [vmem:[#allocation58_spill] sm:$0xff] }
 0x498   : > { %v1663_v26 = vadd.f32 %v1662_v1, %v12793_v19  ;;  %v1828_v45 = vsel %vm1796_vm0, %v1780_v2, %v1812_v13 }
 0x499   : > { %1845 = vst.msk [vmem:[%s9257_s1 + $0x38] sm:$0xff] %vm1837_vm7, %v1828_v45 }
 0x49a   : > { %v1728_v48 = vadd.f32 %v1727_v36, %v1663_v26  ;;  %v12822_v36 = vld [vmem:[#allocation167_spill] sm:$0xff]  ;;  %v9908_v26 = vpop.xlane.xlu1 %3471 }
 0x49c   : > { %v1762_v17 = vmul.f32 %v9803_v7, %v1728_v48  ;;  %v9898_v33 = vpop.permute.xlu0 %5787 }
 0x49d   : > { %5837 = vrot.lane.b32.xlu2 %v12822_v36, %s6547_s27  ;;  %v12824_v36 = vld [vmem:[#allocation76_spill] sm:$0xff] }
 0x49e   : > { %v1781_v49 = vadd.f32 %v9821_v53, %v1762_v17  ;;  %2873 = vmatmul.f32.gmra.mxu2 %v2463_v31  ;;  %v2479_v31 = vmul.f32 %v9494_v42, %v12823_v52  ;;  %v12827_v52 = vld [vmem:[#allocation217_spill] sm:$0xff] }
 0x49f   : > { %3901 = vrot.lane.b32.xlu1 %v12821_v55, %s6547_s27  ;;  %v1665_v61 = vpop.f32.mrf.mxu2  ;;  %v1730_v1 = vpop.f32.mrf.mxu3 }
 0x4a0   : > { %vm1797_vm4 = vcmp.ge.f32.partialorder %v1781_v49, 0.0  ;;  %v1813_v2 = vmul.f32 0.002, %v1781_v49  ;;  %v1666_v13 = vadd.f32 %v1665_v61, %v12821_v55 }
 0x4a2   : > { %v1829_v45 = vsel %vm1797_vm4, %v1781_v49, %v1813_v2  ;;  %v1731_v48 = vadd.f32 %v1730_v1, %v1666_v13  ;;  %v12825_v1 = vld [vmem:[#allocation80_spill] sm:$0xff]  ;;  %v12826_v2 = vld [vmem:[#allocation65_spill] sm:$0xff] }
 0x4a3   : > { %1846 = vst.msk [vmem:[%s9257_s1 + $0x40] sm:$0xff] %vm1837_vm7, %v1829_v45 }
 0x4a4   : > { %v1763_v3 = vmul.f32 %v9803_v7, %v1731_v48  ;;  %v9913_v17 = vpop.permute.xlu0 %5797  ;;  %v9923_v48 = vpop.xlane.xlu1 %3480 }
 0x4a5   : > { %5852 = vrot.lane.b32.xlu2 %v12825_v1, %s6547_s27  ;;  %v12828_v1 = vld [vmem:[#allocation91_spill] sm:$0xff] }
 0x4a6   : > { %v1782_v19 = vadd.f32 %v9821_v53, %v1763_v3  ;;  %2876 = vmatmul.f32.gmra.mxu2 %v2479_v31  ;;  %v2495_v31 = vmul.f32 %v9485_v15, %v12827_v52  ;;  %v12829_v52 = vld [vmem:[#allocation89_spill] sm:$0xff] }
 0x4a7   : > { %3907 = vrot.lane.b32.xlu1 %v12824_v36, %s6547_s27  ;;  %v1668_v61 = vpop.f32.mrf.mxu2  ;;  %v1733_v55 = vpop.f32.mrf.mxu3 }
 0x4a8   : > { %vm1798_vm9 = vcmp.ge.f32.partialorder %v1782_v19, 0.0  ;;  %v1814_v49 = vmul.f32 0.002, %v1782_v19  ;;  %v1669_v13 = vadd.f32 %v1668_v61, %v12826_v2 }
 0x4aa   : > { %v1830_v45 = vsel %vm1798_vm9, %v1782_v19, %v1814_v49  ;;  %v1734_v22 = vadd.f32 %v1733_v55, %v1669_v13 }
 0x4ab   : > { %1847 = vst.msk [vmem:[%s9257_s1 + $0x48] sm:$0xff] %vm1837_vm7, %v1830_v45 }
 0x4ac   : > { %v1764_v42 = vmul.f32 %v9803_v7, %v1734_v22  ;;  %v9928_v3 = vpop.permute.xlu0 %5812  ;;  %v9940_v15 = vpop.xlane.xlu1 %3489 }
 0x4ad   : > { %3885 = vrot.lane.b32.xlu2 %v12785_v30, %s6547_s27  ;;  %v12832_v30 = vld [vmem:[#allocation31_spill] sm:$0xff] }
 0x4ae   : > { %v1783_v43 = vadd.f32 %v9821_v53, %v1764_v42  ;;  %2879 = vmatmul.f32.gmra.mxu2 %v2495_v31  ;;  %v2511_v31 = vmul.f32 %v9582_v63, %v12829_v52 }
 0x4af   : > { %3913 = vrot.lane.b32.xlu1 %v12828_v1, %s6547_s27  ;;  %v1671_v19 = vpop.f32.mrf.mxu2  ;;  %v1736_v61 = vpop.f32.mrf.mxu3 }
 0x4b0   : > { %vm1799_vm5 = vcmp.ge.f32.partialorder %v1783_v43, 0.0  ;;  %v1815_v55 = vmul.f32 0.002, %v1783_v43  ;;  %v1672_v22 = vadd.f32 %v1671_v19, %v12803_v21 }
 0x4b2   : > { %v1831_v49 = vsel %vm1799_vm5, %v1783_v43, %v1815_v55  ;;  %v1737_v13 = vadd.f32 %v1736_v61, %v1672_v22 }
 0x4b3   : > { %1848 = vst.msk [vmem:[%s9257_s1 + $0x50] sm:$0xff] %vm1837_vm7, %v1831_v49 }
 0x4b4   : > { %v1765_v45 = vmul.f32 %v9803_v7, %v1737_v13  ;;  %v9943_v42 = vpop.permute.xlu0 %5827  ;;  %v9952_v13 = vpop.xlane.xlu2 %3468 }
 0x4b5   : > { %3891 = vrot.lane.b32.xlu2 %v12807_v35, %s6547_s27 }
 0x4b6   : > { %v1784_v12 = vadd.f32 %v9821_v53, %v1765_v45  ;;  %2882 = vmatmul.f32.gmra.mxu2 %v2511_v31  ;;  %v12831_v45 = vld [vmem:[#allocation204_spill] sm:$0xff]  ;;  %v9961_v31 = vpop.xlane.xlu1 %3498 }
 0x4b7   : > { %4237 = vperm.xlu1 %5862, %v12830_v37   ;;  %v1674_v19 = vpop.f32.mrf.mxu2  ;;  %v1739_v43 = vpop.f32.mrf.mxu3  ;;  %v2527_v52 = vmul.f32 %v9623_v51, %v12831_v45  ;;  %v12834_v45 = vld [vmem:[#allocation221_spill] sm:$0xff] }
 0x4b8   : > { %vm1800_vm13 = vcmp.ge.f32.partialorder %v1784_v12, 0.0  ;;  %v1816_v61 = vmul.f32 0.002, %v1784_v12  ;;  %v1675_v55 = vadd.f32 %v1674_v19, %v12824_v36 }
 0x4ba   : > { %v1832_v22 = vsel %vm1800_vm13, %v1784_v12, %v1816_v61  ;;  %v1740_v49 = vadd.f32 %v1739_v43, %v1675_v55  ;;  %v12833_v43 = vld [vmem:[#allocation82_spill] sm:$0xff] }
 0x4bb   : > { %1849 = vst.msk [vmem:[%s9257_s1 + $0x58] sm:$0xff] %vm1837_vm7, %v1832_v22 }
 0x4bc   : > { %v1766_v63 = vmul.f32 %v9803_v7, %v1740_v49  ;;  %v9957_v37 = vpop.permute.xlu0 %5842  ;;  %v9968_v36 = vpop.xlane.xlu2 %3477 }
 0x4bd   : > { %3897 = vrot.lane.b32.xlu2 %v12817_v32, %s6547_s27  ;;  %v10090_v56 = vmax.f32 %v9968_v36, 1e-30 }
 0x4be   : > { %v1785_v35 = vadd.f32 %v9821_v53, %v1766_v63  ;;  %2885 = vmatmul.f32.gmra.mxu2 %v2527_v52  ;;  %v2543_v52 = vmul.f32 %v9673_v57, %v12834_v45 }
 0x4bf   : > { %4241 = vperm.xlu1 %5862, %v12832_v30   ;;  %v1677_v12 = vpop.f32.mrf.mxu2  ;;  %v1742_v55 = vpop.f32.mrf.mxu3 }
 0x4c0   : > { %vm1801_vm6 = vcmp.ge.f32.partialorder %v1785_v35, 0.0  ;;  %v1817_v19 = vmul.f32 0.002, %v1785_v35  ;;  %v1678_v61 = vadd.f32 %v1677_v12, %v12833_v43  ;;  %v9976_v12 = vpop.f32.mrf.mxu1 }
 0x4c1   : > { %12835 = vst [vmem:[#allocation117_spill] sm:$0xff] %v9976_v12 }
 0x4c2   : > { %v1833_v22 = vsel %vm1801_vm6, %v1785_v35, %v1817_v19  ;;  %v1743_v49 = vadd.f32 %v1742_v55, %v1678_v61  ;;  %v9978_v35 = vpop.xlane.xlu1 %3507 }
 0x4c3   : > { %1850 = vst.msk [vmem:[%s9257_s1 + $0x60] sm:$0xff] %vm1837_vm7, %v1833_v22  ;;  %v12837_v22 = vld [vmem:[#allocation181_spill] sm:$0xff] }
 0x4c4   : > { %v1767_v51 = vmul.f32 %v9803_v7, %v1743_v49  ;;  %v5858_v30 = vpop.permute.xlu0 %5857  ;;  %v9982_v55 = vpop.xlane.xlu2 %3486  ;;  %v2559_v49 = vmul.f32 %v9705_v11, %v12837_v22 }
 0x4c5   : > { %v5860_v63 = vunpack.i.h.bf16 %v5858_v30  ;;  %v5859_v32 = vunpack.i.l.bf16 %v5858_v30  ;;  %3903 = vrot.lane.b32.xlu2 %v12826_v2, %s6547_s27 }
 0x4c6   : > { %v1786_v21 = vadd.f32 %v9821_v53, %v1767_v51  ;;  %2888 = vmatmul.f32.gmra.mxu2 %v2543_v52 }
 0x4c7   : > { %3996 = vmatpush.msra.mxu3 %v5860_v63 }
 0x4c8   : > { %vm1802_vm8 = vcmp.ge.f32.partialorder %v1786_v21, 0.0  ;;  %v1818_v19 = vmul.f32 0.002, %v1786_v21  ;;  %v9990_v51 = vpop.f32.mrf.mxu1 }
 0x4c9   : > { %3997 = vmatpush.msra.mxu3 %v5859_v32 }
 0x4ca   : > { %v1834_v61 = vsel %vm1802_vm8, %v1786_v21, %v1818_v19 }
 0x4cb   : > { %1851 = vst.msk [vmem:[%s9257_s1 + $0x68] sm:$0xff] %vm1837_vm7, %v1834_v61  ;;  %v12839_v61 = vld [vmem:[#allocation197_spill] sm:$0xff] }
 0x4cc   : > { %v9986_v57 = vpop.permute.xlu0 %3887  ;;  %v2575_v11 = vmul.f32 %v9756_v23, %v12839_v61 }
 0x4cd   : > { %12836 = vst [vmem:[#allocation156_spill] sm:$0xff] %v9986_v57  ;;  %3909 = vrot.lane.b32.xlu2 %v12833_v43, %s6547_s27 }
 0x4ce   : > { %2891 = vmatmul.f32.gmra.mxu2 %v2559_v49 }
 0x4d0   : > { %v9997_v45 = vpop.xlane.xlu2 %3495  ;;  %v10004_v49 = vpop.f32.mrf.mxu1 }
 0x4d1   : > { %v9994_v30 = vpop.permute.xlu1 %5782  ;;  %v1680_v63 = vpop.f32.mrf.mxu2  ;;  %12840 = vst [vmem:[#allocation118_spill] sm:$0xff] %v10004_v49 }
 0x4d2   : > { %v1745_v32 = vpop.f32.mrf.mxu3  ;;  %v1681_v21 = vadd.f32 %v1680_v63, %v12808_v10 }
 0x4d4   : > { %v9999_v52 = vpop.permute.xlu0 %3893  ;;  %v1746_v19 = vadd.f32 %v1745_v32, %v1681_v21 }
 0x4d5   : > { %12838 = vst [vmem:[#allocation157_spill] sm:$0xff] %v9999_v52  ;;  %4061 = vrot.lane.b32.xlu2 %v9803_v7, %s6547_s27 }
 0x4d6   : > { %v1768_v22 = vmul.f32 %v9803_v7, %v1746_v19  ;;  %2894 = vmatmul.f32.gmra.mxu2 %v2575_v11 }
 0x4d8   : > { %v1787_v63 = vadd.f32 %v9821_v53, %v1768_v22  ;;  %v10012_v21 = vpop.xlane.xlu2 %3504  ;;  %v10020_v57 = vpop.f32.mrf.mxu1 }
 0x4d9   : > { %v10006_v43 = vpop.permute.xlu1 %5802  ;;  %v1683_v2 = vpop.f32.mrf.mxu2  ;;  %12842 = vst [vmem:[#allocation161_spill] sm:$0xff] %v10020_v57 }
 0x4da   : > { %vm1803_vm15 = vcmp.ge.f32.partialorder %v1787_v63, 0.0  ;;  %v1819_v10 = vmul.f32 0.002, %v1787_v63  ;;  %v1684_v32 = vadd.f32 %v1683_v2, %v12828_v1  ;;  %v1748_v23 = vpop.f32.mrf.mxu3 }
 0x4dc   : > { %v10014_v61 = vpop.permute.xlu0 %3899  ;;  %v1835_v19 = vsel %vm1803_vm15, %v1787_v63, %v1819_v10  ;;  %v1749_v11 = vadd.f32 %v1748_v23, %v1684_v32 }
 0x4dd   : > { %12841 = vst [vmem:[#allocation201_spill] sm:$0xff] %v10014_v61 }
 0x4de   : > { %1852 = vst.msk [vmem:[%s9257_s1 + $0x70] sm:$0xff] %vm1837_vm7, %v1835_v19  ;;  %v1769_v52 = vmul.f32 %v9803_v7, %v1749_v11  ;;  %v5815_v7 = vunpack.i.h.bf16 %v9928_v3 }
 0x4e0   : > { %v1788_v22 = vadd.f32 %v9821_v53, %v1769_v52  ;;  %v10024_v1 = vpop.xlane.xlu2 %3513  ;;  %v5814_v53 = vunpack.i.l.bf16 %v9928_v3  ;;  %v10033_v52 = vmax.f32 %v9952_v13, 1e-30 }
 0x4e1   : > { %v5818_v49 = vpop.permute.xlu1 %5817  ;;  %v10022_v40 = vpop.f32.mrf.mxu2 }
 0x4e2   : > { %v5820_v12 = vunpack.i.h.bf16 %v5818_v49  ;;  %12843 = vst [vmem:[#allocation136_spill] sm:$0xff] %v10022_v40  ;;  %vm1804_vm12 = vcmp.ge.f32.partialorder %v1788_v22, 0.0  ;;  %v1820_v2 = vmul.f32 0.002, %v1788_v22  ;;  %v5819_v10 = vunpack.i.l.bf16 %v5818_v49  ;;  %v10042_v49 = vpop.f32.mrf.mxu1 }
 0x4e3   : > { %6202 = vrcp.f32 %v10033_v52  ;;  %12845 = vst [vmem:[#allocation172_spill] sm:$0xff] %v10042_v49  ;;  %vm3536_vm5 = vweird.f32 %v10033_v52 }
 0x4e4   : > { %3931 = vmatpush.msrb.mxu0 %v5820_v12  ;;  %v10026_v63 = vpop.permute.xlu0 %3905  ;;  %v1836_v32 = vsel %vm1804_vm12, %v1788_v22, %v1820_v2  ;;  %v10047_v22 = vmax.f32 %v9908_v26, 1e-30 }
 0x4e5   : > { %12844 = vst [vmem:[#allocation193_spill] sm:$0xff] %v10026_v63 }
 0x4e6   : > { %3932 = vmatpush.msrb.mxu0 %v5819_v10  ;;  %1853 = vst.msk [vmem:[%s9257_s1 + $0x78] sm:$0xff] %vm1837_vm7, %v1836_v32  ;;  %6204 = vrcp.f32 %v10047_v22  ;;  %vm3552_vm15 = vweird.f32 %v10047_v22 }
 0x4e8   : > { %3933 = vmatpush.msrb.mxu0 %v5815_v7  ;;  %v10039_v12 = vpop.permute.xlu2 %5792 }
 0x4e9   : > { %v10035_v23 = vpop.permute.xlu1 %5832  ;;  %v10037_v19 = vpop.f32.mrf.mxu2  ;;  %v5795_v54 = vunpack.i.h.bf16 %v10039_v12  ;;  %v5794_v36 = vunpack.i.l.bf16 %v10039_v12 }
 0x4ea   : > { %3934 = vmatpush.msrb.mxu0 %v5814_v53  ;;  %v10051_v13 = vpop.eup %6202  ;;  %v10060_v63 = vpop.f32.mrf.mxu1 }
 0x4eb   : > { %v3532_v53 = vmul.f32 %v10051_v13, %v10033_v52  ;;  %12849 = vst [vmem:[#allocation114_spill] sm:$0xff] %v10060_v63  ;;  %v10074_v63 = vperm.slane %v12852_v14, 3  ;;  %vm3537_vm0 = vweird.f32 %v10051_v13 }
 0x4ec   : > { %v10044_v11 = vpop.permute.xlu0 %3911  ;;  %v10068_v40 = vpop.eup %6204  ;;  %vm3538_vm13 = vmor %vm3536_vm5, %vm3537_vm0 }
 0x4ed   : > { %12846 = vst [vmem:[#allocation61_spill] sm:$0xff] %v10044_v11  ;;  %v10063_v11 = vmax.f32 %v9806_v44, 1e-30  ;;  %v3533_v57 = vsub.f32 1.0, %v3532_v53  ;;  %v5800_v53 = vunpack.i.h.bf16 %v9913_v17  ;;  %vm3553_vm8 = vweird.f32 %v10068_v40 }
 0x4ee   : > { %vm3554_vm12 = vmor %vm3552_vm15, %vm3553_vm8 }
 0x4ef   : > { %6206 = vrcp.f32 %v10063_v11  ;;  %vm3568_vm0 = vweird.f32 %v10063_v11 }
 0x4f0   : > { %v5808_v10 = vpop.permute.xlu2 %5807  ;;  %6208 = vrcp.f32 %v10090_v56 }
 0x4f1   : > { %v10049_v3 = vpop.permute.xlu1 %5847  ;;  %v10053_v2 = vpop.f32.mrf.mxu2  ;;  %v5810_v7 = vunpack.i.h.bf16 %v5808_v10  ;;  %v5809_v26 = vunpack.i.l.bf16 %v5808_v10  ;;  %v12853_v10 = vld [vmem:[#allocation100_spill] sm:$0xff] }
 0x4f2   : > { %12847 = vst [vmem:[#allocation141_spill] sm:$0xff] %v10053_v2  ;;  %v5805_v2 = vunpack.i.h.bf16 %v10006_v43 }
 0x4f3   : > { %3935 = vmatpush.msrb.mxu0 %v5810_v7  ;;  %v10077_v7 = vperm.slane %v12853_v10, 3  ;;  %v5799_v10 = vunpack.i.l.bf16 %v9913_v17 }
 0x4f4   : > { %v10056_v32 = vpop.permute.xlu0 %4080 }
 0x4f5   : > { %12848 = vst [vmem:[#allocation142_spill] sm:$0xff] %v10056_v32  ;;  %3936 = vmatpush.msrb.mxu0 %v5809_v26  ;;  %v5804_v32 = vunpack.i.l.bf16 %v10006_v43  ;;  %v10099_v17 = vpop.eup %6206 }
 0x4f6   : > { %v3564_v12 = vmul.f32 %v10099_v17, %v10063_v11 }
 0x4f7   : > { %3937 = vmatpush.msrb.mxu0 %v5805_v2  ;;  %v3548_v2 = vmul.f32 %v10068_v40, %v10047_v22 }
 0x4f8   : > { %v10079_v44 = vpop.permute.xlu2 %5822 }
 0x4f9   : > { %v10065_v61 = vpop.permute.xlu1 %3883  ;;  %v10070_v49 = vpop.f32.mrf.mxu2  ;;  %3938 = vmatpush.msrb.mxu0 %v5804_v32  ;;  %v3549_v25 = vsub.f32 1.0, %v3548_v2  ;;  %v3542_v2 = vand.u32 2147483648, %v10033_v52 }
 0x4fa   : > { %12850 = vst [vmem:[#allocation170_spill] sm:$0xff] %v10065_v61  ;;  %v3534_v61 = vmul.f32 %v10051_v13, %v3533_v57  ;;  %v10092_v32 = vpop.f32.mrf.mxu1 }
 0x4fb   : > { %12851 = vst [vmem:[#allocation146_spill] sm:$0xff] %v10070_v49  ;;  %3939 = vmatpush.msrb.mxu0 %v5800_v53 }
 0x4fc   : > { %v4230_v26 = vpop.permute.xlu0 %4229  ;;  %12854 = vst [vmem:[#allocation214_spill] sm:$0xff] %v10092_v32 }
 0x4fd   : > { %v4294_v43 = vadd.f32 %v10074_v63, %v4230_v26  ;;  %v4295_v14 = vadd.f32 %v10077_v7, %v4230_v26  ;;  %3940 = vmatpush.msrb.mxu0 %v5799_v10  ;;  %v3535_v26 = vadd.f32 %v10051_v13, %v3534_v61  ;;  %v12857_v10 = vld [vmem:[#allocation102_spill] sm:$0xff]  ;;  %v12860_v61 = vld [vmem:[#allocation103_spill] sm:$0xff] }
 0x4fe   : > { %vm12858_vm4 = vcmp.ne.f32.partialorder %v12857_v10, 0.0  ;;  %vm12861_vm9 = vcmp.ne.f32.partialorder %v12860_v61, 0.0  ;;  %v10130_v61 = vmax.f32 %v9923_v48, 1e-30  ;;  %v5784_v48 = vunpack.i.l.bf16 %v9994_v30 }
 0x4ff   : > { %vm4326_vm7 = vcmp.ge.f32.partialorder %v4294_v43, 0.0  ;;  %vm4327_vm1 = vcmp.ge.f32.partialorder %v4295_v14, 0.0  ;;  %v4358_v49 = vmul.f32 0.2, %v4294_v43  ;;  %v4359_v20 = vmul.f32 0.2, %v4295_v14  ;;  %3941 = vmatpush.msrb.mxu0 %v5795_v54 }
 0x500   : > { %v3540_v54 = vand.u32 2147483647, %v10033_v52  ;;  %v5789_v52 = vunpack.i.l.bf16 %v9898_v33  ;;  %6210 = vrcp.f32 %v10130_v61 }
 0x501   : > { %v10094_v57 = vpop.permute.xlu1 %3889  ;;  %v4390_v29 = vsel %vm4326_vm7, %v4294_v43, %v4358_v49  ;;  %v10101_v53 = vpop.f32.mrf.mxu2  ;;  %v4391_v32 = vsel %vm4327_vm1, %v4295_v14, %v4359_v20  ;;  %3942 = vmatpush.msrb.mxu0 %v5794_v36  ;;  %v3539_v14 = vsel %vm3538_vm13, %v10051_v13, %v3535_v26  ;;  %v3543_v36 = vor.u32 1.1754944e-38, %v3542_v2 }
 0x502   : > { %12855 = vst [vmem:[#allocation215_spill] sm:$0xff] %v10094_v57  ;;  %v10107_v57 = vsel %vm12858_vm4, %v4390_v29, -1e+30  ;;  %v10110_v49 = vpop.permute.xlu2 %5837  ;;  %v10114_v43 = vsel %vm12861_vm9, %v4391_v32, -1e+30  ;;  %v5790_v29 = vunpack.i.h.bf16 %v9898_v33  ;;  %v3550_v32 = vmul.f32 %v10068_v40, %v3549_v25  ;;  %v10139_v25 = vpop.eup %6208 }
 0x503   : > { %12856 = vst [vmem:[#allocation216_spill] sm:$0xff] %v10101_v53  ;;  %v4454_v20 = vmax.f32 %v10107_v57, %v10114_v43  ;;  %vm3541_vm6 = vcmp.eq.f32.partialorder %v3540_v54, 8.507059e+37  ;;  %v3565_v53 = vsub.f32 1.0, %v3564_v12  ;;  %v2806_v33 = vpop.f32.mrf.mxu1  ;;  %v3558_v2 = vand.u32 2147483648, %v10047_v22 }
 0x504   : > { %12859 = vst [vmem:[#allocation222_spill] sm:$0xff] %v10107_v57  ;;  %3943 = vmatpush.msrb.mxu0 %v5790_v29  ;;  %v10135_v57 = vsel %vm3541_vm6, %v3543_v36, %v3539_v14  ;;  %v3551_v13 = vadd.f32 %v10068_v40, %v3550_v32  ;;  %v3556_v12 = vand.u32 2147483647, %v10047_v22  ;;  %v10151_v32 = vmax.f32 %v9837_v47, 1e-30 }
 0x505   : > { %12862 = vst [vmem:[#allocation108_spill] sm:$0xff] %v10114_v43  ;;  %4455 = vmax.xlane.f32.xlu1 %v4454_v20  ;;  %v5785_v43 = vunpack.i.h.bf16 %v9994_v30  ;;  %v12864_v20 = vld [vmem:[#allocation210_spill] sm:$0xff]  ;;  %v3580_v30 = vmul.f32 %v10139_v25, %v10090_v56  ;;  %v5850_v22 = vunpack.i.h.bf16 %v10049_v3  ;;  %vm3569_vm1 = vweird.f32 %v10099_v17 }
 0x506   : > { %3944 = vmatpush.msrb.mxu0 %v5789_v52  ;;  %v3545_v29 = vmul.f32 %v10135_v57, %v12864_v20  ;;  %v3566_v52 = vmul.f32 %v10099_v17, %v3565_v53  ;;  %v3559_v20 = vor.u32 1.1754944e-38, %v3558_v2  ;;  %vm3557_vm7 = vcmp.eq.f32.partialorder %v3556_v12, 8.507059e+37  ;;  %v10162_v47 = vpop.eup %6210  ;;  %vm3570_vm4 = vmor %vm3568_vm0, %vm3569_vm1 }
 0x507   : > { %6212 = vrcp.f32 %v10151_v32  ;;  %v5849_v53 = vunpack.i.l.bf16 %v10049_v3  ;;  %v3574_v2 = vand.u32 2147483648, %v10063_v11  ;;  %v3572_v12 = vand.u32 2147483647, %v10063_v11 }
 0x508   : > { %3945 = vmatpush.msrb.mxu0 %v5785_v43  ;;  %v3555_v43 = vsel %vm3554_vm12, %v10068_v40, %v3551_v13  ;;  %v3567_v40 = vadd.f32 %v10099_v17, %v3566_v52  ;;  %vm3585_vm5 = vweird.f32 %v10139_v25  ;;  %vm3584_vm13 = vweird.f32 %v10090_v56 }
 0x509   : > { %v10132_v10 = vpop.permute.xlu1 %3895  ;;  %v10141_v26 = vpop.f32.mrf.mxu2  ;;  %vm3573_vm9 = vcmp.eq.f32.partialorder %v3572_v12, 8.507059e+37  ;;  %v3590_v12 = vand.u32 2147483648, %v10090_v56  ;;  %vm3586_vm6 = vmor %vm3584_vm13, %vm3585_vm5  ;;  %vm3601_vm15 = vweird.f32 %v10162_v47  ;;  %vm3600_vm12 = vweird.f32 %v10130_v61 }
 0x50a   : > { %12863 = vst [vmem:[#allocation195_spill] sm:$0xff] %v10141_v26  ;;  %v5853_v54 = vpop.permute.xlu2 %5852  ;;  %3946 = vmatpush.msrb.mxu0 %v5784_v48  ;;  %v10160_v26 = vsel %vm3557_vm7, %v3559_v20, %v3555_v43  ;;  %v5845_v43 = vunpack.i.h.bf16 %v9957_v37  ;;  %v3571_v3 = vsel %vm3570_vm4, %v10099_v17, %v3567_v40  ;;  %v12866_v17 = vld [vmem:[#allocation123_spill] sm:$0xff]  ;;  %vm10235_vm7 = vmor %vm3600_vm12, %vm3601_vm15  ;;  %vm3616_vm4 = vweird.f32 %v10151_v32 }
 0x50b   : > { %v5855_v14 = vunpack.i.h.bf16 %v5853_v54  ;;  %3947 = vmatmul.f32.vlgmr.msrb.gmra.mxu0 %v3545_v29  ;;  %v5854_v36 = vunpack.i.l.bf16 %v5853_v54  ;;  %v3581_v29 = vsub.f32 1.0, %v3580_v30  ;;  %v3561_v54 = vmul.f32 %v10160_v26, %v9440_v0 }
 0x50c   : > { %v3596_v30 = vmul.f32 %v10162_v47, %v10130_v61  ;;  %v5844_v0 = vunpack.i.l.bf16 %v9957_v37 }
 0x50d   : > { %3998 = vmatpush.msra.mxu3 %v5855_v14  ;;  %v10175_v14 = vpop.f32.mrf.mxu1  ;;  %v3582_v52 = vmul.f32 %v10139_v25, %v3581_v29  ;;  %v10183_v20 = vpop.eup %6212  ;;  %v2807_v29 = vadd.f32 %v2806_v33, %v12866_v17  ;;  %v3588_v33 = vand.u32 2147483647, %v10090_v56  ;;  %v5834_v17 = vunpack.i.l.bf16 %v10035_v23 }
 0x50e   : > { %12865 = vst [vmem:[#allocation109_spill] sm:$0xff] %v10175_v14  ;;  %v3597_v11 = vsub.f32 1.0, %v3596_v30  ;;  %v5840_v14 = vunpack.i.h.bf16 %v10110_v49  ;;  %v3612_v40 = vmul.f32 %v10183_v20, %v10151_v32  ;;  %v10214_v56 = vmax.f32 %v9940_v15, 1e-30 }
 0x50f   : > { %3999 = vmatpush.msra.mxu3 %v5854_v36  ;;  %v3575_v36 = vor.u32 1.1754944e-38, %v3574_v2  ;;  %v3583_v37 = vadd.f32 %v10139_v25, %v3582_v52  ;;  %v5839_v2 = vunpack.i.l.bf16 %v10110_v49  ;;  %v5835_v52 = vunpack.i.h.bf16 %v10035_v23 }
 0x510   : > { %v3598_v49 = vmul.f32 %v10162_v47, %v3597_v11  ;;  %vm3589_vm8 = vcmp.eq.f32.partialorder %v3588_v33, 8.507059e+37  ;;  %vm3617_vm0 = vweird.f32 %v10183_v20 }
 0x511   : > { %v10158_v48 = vpop.permute.xlu1 %3901  ;;  %v10168_v13 = vpop.f32.mrf.mxu2  ;;  %4000 = vmatpush.msra.mxu3 %v5850_v22  ;;  %v10186_v22 = vmax.f32 %v9982_v55, 1e-30 }
 0x513   : > { %4001 = vmatpush.msra.mxu3 %v5849_v53  ;;  %3950 = vmatmul.f32.gmra.mxu0 %v3561_v54  ;;  %v10191_v54 = vsel %vm3573_vm9, %v3575_v36, %v3571_v3  ;;  %6214 = vrcp.f32 %v10186_v22  ;;  %vm10262_vm9 = vmor %vm3616_vm4, %vm3617_vm0  ;;  %vm3632_vm12 = vweird.f32 %v10186_v22 }
 0x514   : > { %6216 = vrcp.f32 %v10214_v56 }
 0x515   : > { %4002 = vmatpush.msra.mxu3 %v5845_v43  ;;  %v12868_v43 = vld [vmem:[#allocation107_spill] sm:$0xff]  ;;  %v10210_v36 = vpop.f32.mrf.mxu1 }
 0x516   : > { %v3577_v3 = vmul.f32 %v10191_v54, %v12868_v43 }
 0x517   : > { %4003 = vmatpush.msra.mxu3 %v5844_v0  ;;  %v3613_v0 = vsub.f32 1.0, %v3612_v40  ;;  %v5829_v40 = vunpack.i.l.bf16 %v9943_v42 }
 0x519   : > { %v10189_v53 = vpop.permute.xlu1 %3907  ;;  %v2871_v55 = vpop.f32.mrf.mxu2  ;;  %4004 = vmatpush.msra.mxu3 %v5840_v14  ;;  %v3587_v14 = vsel %vm3586_vm6, %v10139_v25, %v3583_v37  ;;  %v3599_v25 = vadd.f32 %v10162_v47, %v3598_v49  ;;  %v3606_v37 = vand.u32 2147483648, %v10130_v61  ;;  %v3614_v43 = vmul.f32 %v10183_v20, %v3613_v0 }
 0x51a   : > { %v10200_v30 = vadd.f32 %v2871_v55, %v2807_v29  ;;  %v3591_v29 = vor.u32 1.1754944e-38, %v3590_v12  ;;  %v5830_v55 = vunpack.i.h.bf16 %v9943_v42  ;;  %v10224_v23 = vpop.eup %6214  ;;  %v3604_v12 = vand.u32 2147483647, %v10130_v61 }
 0x51b   : > { %4005 = vmatpush.msra.mxu3 %v5839_v2  ;;  %3953 = vmatmul.f32.gmra.mxu0 %v3577_v3  ;;  %v5825_v42 = vunpack.i.h.bf16 %v10079_v44  ;;  %v10244_v61 = vmax.f32 %v9852_v8, 1e-30  ;;  %v3628_v49 = vmul.f32 %v10224_v23, %v10186_v22  ;;  %v5824_v0 = vunpack.i.l.bf16 %v10079_v44 }
 0x51c   : > { %12867 = vst [vmem:[#allocation202_spill] sm:$0xff] %v10200_v30  ;;  %v10219_v11 = vsel %vm3589_vm8, %v3591_v29, %v3587_v14  ;;  %v3607_v14 = vor.u32 1.1754944e-38, %v3606_v37  ;;  %vm3605_vm1 = vcmp.eq.f32.partialorder %v3604_v12, 8.507059e+37  ;;  %v12872_v29 = vld [vmem:[#allocation187_spill] sm:$0xff]  ;;  %v3620_v37 = vand.u32 2147483647, %v10151_v32 }
 0x51d   : > { %4006 = vmatpush.msra.mxu3 %v5835_v52  ;;  %v3593_v3 = vmul.f32 %v10219_v11, %v9317_v6  ;;  %v3603_v52 = vsel %vm10235_vm7, %v10162_v47, %v3599_v25  ;;  %v3622_v6 = vand.u32 2147483648, %v10151_v32  ;;  %v3546_v47 = vmul.f32 %v10135_v57, %v12872_v29 }
 0x51e   : > { %v10254_v8 = vsel %vm3605_vm1, %v3607_v14, %v3603_v52  ;;  %v3629_v44 = vsub.f32 1.0, %v3628_v49  ;;  %6218 = vrcp.f32 %v10244_v61  ;;  %vm3621_vm6 = vcmp.eq.f32.partialorder %v3620_v37, 8.507059e+37 }
 0x51f   : > { %4007 = vmatpush.msra.mxu3 %v5834_v17  ;;  %v3615_v17 = vadd.f32 %v10183_v20, %v3614_v43  ;;  %v3609_v33 = vmul.f32 %v10254_v8, %v9586_v27  ;;  %vm3633_vm15 = vweird.f32 %v10224_v23 }
 0x520   : > { %v3630_v27 = vmul.f32 %v10224_v23, %v3629_v44  ;;  %vm3634_vm0 = vmor %vm3632_vm12, %vm3633_vm15 }
 0x521   : > { %v10217_v2 = vpop.permute.xlu1 %3913  ;;  %v10227_v15 = vpop.f32.mrf.mxu2  ;;  %4008 = vmatpush.msra.mxu3 %v5830_v55  ;;  %v3619_v32 = vsel %vm10262_vm9, %v10183_v20, %v3615_v17  ;;  %v12877_v20 = vld [vmem:[#allocation111_spill] sm:$0xff]  ;;  %v3562_v17 = vmul.f32 %v10160_v26, %v9458_v60  ;;  %v12880_v26 = vld [vmem:[#allocation160_spill] sm:$0xff] }
 0x522   : > { %12869 = vst [vmem:[#allocation183_spill] sm:$0xff] %v10217_v2  ;;  %v2815_v55 = vpop.f32.mrf.mxu1  ;;  %vm12878_vm8 = vcmp.ne.f32.partialorder %v12877_v20, 0.0  ;;  %v3631_v60 = vadd.f32 %v10224_v23, %v3630_v27  ;;  %v12883_v20 = vld [vmem:[#allocation135_spill] sm:$0xff] }
 0x523   : > { %4009 = vmatpush.msra.mxu3 %v5829_v40  ;;  %3956 = vmatmul.f32.gmra.mxu0 %v3593_v3  ;;  %v10258_v40 = vpop.eup %6216  ;;  %vm12884_vm9 = vcmp.ne.f32.partialorder %v12883_v20, 0.0 }
 0x524   : > { %v3644_v14 = vmul.f32 %v10258_v40, %v10214_v56 }
 0x525   : > { %4010 = vmatpush.msra.mxu3 %v5825_v42  ;;  %v3623_v42 = vor.u32 1.1754944e-38, %v3622_v6 }
 0x527   : > { %4011 = vmatpush.msra.mxu3 %v5824_v0 }
 0x528   : > { %4012 = vmatmul.f32.vlgmr.msra.gmra.mxu3 %v3546_v47  ;;  %v10276_v47 = vsel %vm3621_vm6, %v3623_v42, %v3619_v32  ;;  %vm3648_vm6 = vweird.f32 %v10214_v56 }
 0x529   : > { %v4238_v25 = vpop.permute.xlu1 %4237  ;;  %v10267_v57 = vpop.f32.mrf.mxu2  ;;  %v3625_v32 = vmul.f32 %v10276_v47, %v9218_v39  ;;  %v3638_v39 = vand.u32 2147483648, %v10186_v22 }
 0x52a   : > { %v4298_v12 = vadd.f32 %v10074_v63, %v4238_v25  ;;  %v4299_v43 = vadd.f32 %v10077_v7, %v4238_v25 }
 0x52b   : > { %3959 = vmatmul.f32.gmra.mxu0 %v3609_v33  ;;  %v10294_v33 = vmax.f32 %v9997_v45, 1e-30 }
 0x52c   : > { %vm4330_vm5 = vcmp.ge.f32.partialorder %v4298_v12, 0.0  ;;  %vm4331_vm13 = vcmp.ge.f32.partialorder %v4299_v43, 0.0  ;;  %v4362_v52 = vmul.f32 0.2, %v4298_v12  ;;  %v4363_v49 = vmul.f32 0.2, %v4299_v43 }
 0x52d   : > { %6220 = vrcp.f32 %v10294_v33 }
 0x52e   : > { %v4394_v0 = vsel %vm4330_vm5, %v4298_v12, %v4362_v52  ;;  %v4395_v29 = vsel %vm4331_vm13, %v4299_v43, %v4363_v49  ;;  %v10291_v12 = vpop.eup %6218  ;;  %v3645_v43 = vsub.f32 1.0, %v3644_v14  ;;  %v2816_v49 = vadd.f32 %v2815_v55, %v12880_v26  ;;  %v10303_v14 = vpop.f32.mrf.mxu1 }
 0x52f   : > { %v10281_v3 = vsel %vm853_vm14, %v4394_v0, -1e+30  ;;  %v10285_v6 = vsel %vm12878_vm8, %v4395_v29, -1e+30  ;;  %v3636_v0 = vand.u32 2147483647, %v10186_v22  ;;  %v3660_v27 = vmul.f32 %v10291_v12, %v10244_v61 }
 0x530   : > { %12876 = vst [vmem:[#allocation88_spill] sm:$0xff] %v10281_v3  ;;  %v4460_v37 = vmax.f32 %v10281_v3, %v10285_v6  ;;  %4015 = vmatmul.f32.gmra.mxu3 %v3562_v17  ;;  %v3635_v26 = vsel %vm3634_vm0, %v10224_v23, %v3631_v60  ;;  %v3646_v2 = vmul.f32 %v10258_v40, %v3645_v43  ;;  %v12881_v22 = vld [vmem:[#allocation134_spill] sm:$0xff]  ;;  %v12885_v3 = vld [vmem:[#allocation208_spill] sm:$0xff]  ;;  %v10328_v23 = vmax.f32 %v9961_v31, 1e-30 }
 0x531   : > { %12879 = vst [vmem:[#allocation29_spill] sm:$0xff] %v10285_v6  ;;  %v4242_v44 = vpop.permute.xlu1 %4241  ;;  %v2880_v45 = vpop.f32.mrf.mxu2  ;;  %vm12882_vm4 = vcmp.ne.f32.partialorder %v12881_v22, 0.0  ;;  %v3639_v6 = vor.u32 1.1754944e-38, %v3638_v39  ;;  %vm3637_vm5 = vcmp.eq.f32.partialorder %v3636_v0, 8.507059e+37  ;;  %vm3649_vm13 = vweird.f32 %v10258_v40 }
 0x532   : > { %v4300_v42 = vadd.f32 %v10074_v63, %v4242_v44  ;;  %v4301_v52 = vadd.f32 %v10077_v7, %v4242_v44  ;;  %4461 = vmax.xlane.f32.xlu2 %v4460_v37  ;;  %v10311_v37 = vadd.f32 %v2880_v45, %v2816_v49  ;;  %v3578_v49 = vmul.f32 %v10191_v54, %v12885_v3  ;;  %vm3650_vm8 = vmor %vm3648_vm6, %vm3649_vm13 }
 0x533   : > { %3962 = vmatmul.f32.gmra.mxu0 %v3625_v32  ;;  %v10330_v43 = vsel %vm3637_vm5, %v3639_v6, %v3635_v26  ;;  %v10334_v60 = vpop.eup %6220  ;;  %v3654_v54 = vand.u32 2147483648, %v10214_v56  ;;  %v3652_v31 = vand.u32 2147483647, %v10214_v56  ;;  %6222 = vrcp.f32 %v10328_v23 }
 0x534   : > { %vm4332_vm7 = vcmp.ge.f32.partialorder %v4300_v42, 0.0  ;;  %vm4333_vm1 = vcmp.ge.f32.partialorder %v4301_v52, 0.0  ;;  %v4364_v29 = vmul.f32 0.2, %v4300_v42  ;;  %v4365_v17 = vmul.f32 0.2, %v4301_v52 }
 0x535   : > { %v3641_v3 = vmul.f32 %v10330_v43, %v9730_v34  ;;  %vm3653_vm15 = vcmp.eq.f32.partialorder %v3652_v31, 8.507059e+37  ;;  %v10353_v56 = vmax.f32 %v9868_v5, 1e-30  ;;  %vm3665_vm12 = vweird.f32 %v10291_v12 }
 0x536   : > { %v4396_v55 = vsel %vm4332_vm7, %v4300_v42, %v4364_v29  ;;  %v4397_v44 = vsel %vm4333_vm1, %v4301_v52, %v4365_v17  ;;  %v3661_v42 = vsub.f32 1.0, %v3660_v27  ;;  %v3647_v52 = vadd.f32 %v10258_v40, %v3646_v2  ;;  %v10344_v6 = vpop.f32.mrf.mxu1  ;;  %v12886_v17 = vld [vmem:[#allocation219_spill] sm:$0xff] }
 0x537   : > { %v10317_v30 = vsel %vm12882_vm4, %v4396_v55, -1e+30  ;;  %v10321_v25 = vsel %vm12884_vm9, %v4397_v44, -1e+30  ;;  %v3676_v2 = vmul.f32 %v10334_v60, %v10294_v33  ;;  %v3655_v29 = vor.u32 1.1754944e-38, %v3654_v54 }
 0x538   : > { %v4463_v32 = vmax.f32 %v10317_v30, %v10321_v25  ;;  %4018 = vmatmul.f32.gmra.mxu3 %v3578_v49  ;;  %v3651_v0 = vsel %vm3650_vm8, %v10258_v40, %v3647_v52  ;;  %v3662_v39 = vmul.f32 %v10291_v12, %v3661_v42  ;;  %v3594_v34 = vmul.f32 %v10219_v11, %v12886_v17 }
 0x539   : > { %v10336_v45 = vpop.f32.mrf.mxu2  ;;  %v10355_v27 = vsel %vm3653_vm15, %v3655_v29, %v3651_v0  ;;  %v3677_v55 = vsub.f32 1.0, %v3676_v2  ;;  %v10359_v26 = vpop.eup %6222  ;;  %v3670_v49 = vand.u32 2147483648, %v10244_v61  ;;  %vm3664_vm7 = vweird.f32 %v10244_v61  ;;  %v12887_v0 = vld [vmem:[#allocation164_spill] sm:$0xff]  ;;  %v12888_v29 = vld [vmem:[#allocation19_spill] sm:$0xff] }
 0x53a   : > { %4464 = vmax.xlane.f32.xlu1 %v4463_v32  ;;  %v3663_v44 = vadd.f32 %v10291_v12, %v3662_v39  ;;  %v3657_v11 = vmul.f32 %v10355_v27, %v9634_v16  ;;  %v3668_v5 = vand.u32 2147483647, %v10244_v61  ;;  %6224 = vrcp.f32 %v10353_v56  ;;  %vm3666_vm1 = vmor %vm3664_vm7, %vm3665_vm12 }
 0x53b   : > { %3965 = vmatmul.f32.gmra.mxu0 %v3641_v3  ;;  %v3692_v32 = vmul.f32 %v10359_v26, %v10328_v23  ;;  %v3678_v52 = vmul.f32 %v10334_v60, %v3677_v55  ;;  %v3671_v3 = vor.u32 1.1754944e-38, %v3670_v49  ;;  %v3610_v16 = vmul.f32 %v10254_v8, %v9597_v58 }
 0x53c   : > { %v3667_v42 = vsel %vm3666_vm1, %v10291_v12, %v3663_v44  ;;  %vm3669_vm0 = vcmp.eq.f32.partialorder %v3668_v5, 8.507059e+37  ;;  %v10376_v31 = vmax.f32 %v10012_v21, 1e-30  ;;  %vm3681_vm4 = vweird.f32 %v10334_v60  ;;  %v12889_v21 = vld [vmem:[#allocation203_spill] sm:$0xff] }
 0x53d   : > { %v10378_v61 = vsel %vm3669_vm0, %v3671_v3, %v3667_v42  ;;  %v3693_v2 = vsub.f32 1.0, %v3692_v32  ;;  %v3679_v12 = vadd.f32 %v10334_v60, %v3678_v52  ;;  %v3686_v58 = vand.u32 2147483648, %v10294_v33  ;;  %v12890_v32 = vld [vmem:[#allocation74_spill] sm:$0xff] }
 0x53e   : > { %v2824_v54 = vpop.f32.mrf.mxu1  ;;  %v3673_v55 = vmul.f32 %v10378_v61, %v12889_v21  ;;  %vm3680_vm9 = vweird.f32 %v10294_v33  ;;  %v3684_v44 = vand.u32 2147483647, %v10294_v33  ;;  %6226 = vrcp.f32 %v10376_v31 }
 0x53f   : > { %v2825_v39 = vadd.f32 %v2824_v54, %v12887_v0  ;;  %vm3682_vm5 = vmor %vm3680_vm9, %vm3681_vm4  ;;  %v3694_v5 = vmul.f32 %v10359_v26, %v3693_v2  ;;  %v2789_v42 = vadd.f32 %v9990_v51, %v12890_v32  ;;  %v3687_v52 = vor.u32 1.1754944e-38, %v3686_v58  ;;  %v12891_v54 = vld [vmem:[#allocation69_spill] sm:$0xff]  ;;  %v12895_v32 = vld [vmem:[#allocation56_spill] sm:$0xff] }
 0x540   : > { %4021 = vmatmul.f32.gmra.mxu3 %v3594_v34  ;;  %v10384_v17 = vpop.eup %6224  ;;  %v3626_v3 = vmul.f32 %v10276_v47, %v12891_v54  ;;  %vm3685_vm13 = vcmp.eq.f32.partialorder %v3684_v44, 8.507059e+37  ;;  %v10403_v33 = vmax.f32 %v9978_v35, 1e-30  ;;  %vm3697_vm6 = vweird.f32 %v10359_v26  ;;  %v12894_v44 = vld [vmem:[#allocation53_spill] sm:$0xff] }
 0x541   : > { %v10361_v40 = vpop.f32.mrf.mxu2  ;;  %v3708_v49 = vmul.f32 %v10384_v17, %v10353_v56  ;;  %v3695_v2 = vadd.f32 %v10359_v26, %v3694_v5  ;;  %v3702_v47 = vand.u32 2147483648, %v10328_v23  ;;  %vm3696_vm8 = vweird.f32 %v10328_v23 }
 0x542   : > { %6228 = vrcp.f32 %v10403_v33  ;;  %vm3698_vm15 = vmor %vm3696_vm8, %vm3697_vm6  ;;  %vm3713_vm7 = vweird.f32 %v10384_v17  ;;  %vm3712_vm1 = vweird.f32 %v10353_v56 }
 0x543   : > { %3968 = vmatmul.f32.gmra.mxu0 %v3657_v11  ;;  %v3683_v11 = vsel %vm3682_vm5, %v10334_v60, %v3679_v12  ;;  %v12892_v60 = vld [vmem:[#allocation34_spill] sm:$0xff]  ;;  %v3699_v58 = vsel %vm3698_vm15, %v10359_v26, %v3695_v2  ;;  %vm3714_vm0 = vmor %vm3712_vm1, %vm3713_vm7 }
 0x544   : > { %v10406_v0 = vsel %vm3685_vm13, %v3687_v52, %v3683_v11  ;;  %v10411_v51 = vpop.eup %6226  ;;  %v3718_v52 = vand.u32 2147483648, %v10353_v56  ;;  %vm3728_vm13 = vweird.f32 %v10376_v31 }
 0x545   : > { %v3689_v35 = vmul.f32 %v10406_v0, %v9762_v46  ;;  %v3642_v46 = vmul.f32 %v10330_v43, %v9738_v38  ;;  %vm3729_vm5 = vweird.f32 %v10411_v51 }
 0x546   : > { %vm3730_vm6 = vmor %vm3728_vm13, %vm3729_vm5 }
 0x548   : > { %4024 = vmatmul.f32.gmra.mxu3 %v3610_v16  ;;  %v2854_v16 = vadd.f32 %v10037_v19, %v2789_v42  ;;  %v3700_v19 = vand.u32 2147483647, %v10328_v23  ;;  %v10427_v23 = vmax.f32 %v9884_v50, 1e-30  ;;  %v6229_v42 = vpop.eup %6228  ;;  %v3716_v50 = vand.u32 2147483647, %v10353_v56 }
 0x549   : > { %v2889_v34 = vpop.f32.mrf.mxu2  ;;  %v3740_v54 = vmul.f32 %v6229_v42, %v10403_v33  ;;  %vm3745_vm15 = vweird.f32 %v6229_v42 }
 0x54a   : > { %4233 = vperm.xlu2 %5863, %v12888_v29   ;;  %v10387_v8 = vadd.f32 %v2889_v34, %v2825_v39  ;;  %v3709_v39 = vsub.f32 1.0, %v3708_v49  ;;  %v12893_v29 = vld [vmem:[#allocation60_spill] sm:$0xff]  ;;  %v3724_v34 = vmul.f32 %v10411_v51, %v10376_v31  ;;  %vm3701_vm12 = vcmp.eq.f32.partialorder %v3700_v19, 8.507059e+37 }
 0x54b   : > { %3971 = vmatmul.f32.gmra.mxu0 %v3673_v55  ;;  %v2902_v12 = vmul.f32 %v12893_v29, %v2854_v16  ;;  %v3703_v55 = vor.u32 1.1754944e-38, %v3702_v47  ;;  %6230 = vrcp.f32 %v10427_v23  ;;  %vm3717_vm9 = vcmp.eq.f32.partialorder %v3716_v50, 8.507059e+37 }
 0x54c   : > { %v3710_v21 = vmul.f32 %v10384_v17, %v3709_v39  ;;  %v3725_v5 = vsub.f32 1.0, %v3724_v34  ;;  %v3719_v39 = vor.u32 1.1754944e-38, %v3718_v52  ;;  %v3741_v47 = vsub.f32 1.0, %v3740_v54 }
 0x54d   : > { %v2921_v49 = vadd.f32 %v12894_v44, %v2902_v12  ;;  %v10430_v11 = vsel %vm3701_vm12, %v3703_v55, %v3699_v58  ;;  %v3734_v19 = vand.u32 2147483648, %v10376_v31  ;;  %vm3744_vm12 = vweird.f32 %v10403_v33 }
 0x54e   : > { %v3711_v26 = vadd.f32 %v10384_v17, %v3710_v21  ;;  %v3705_v38 = vmul.f32 %v10430_v11, %v9680_v18  ;;  %v3726_v16 = vmul.f32 %v10411_v51, %v3725_v5  ;;  %v3658_v18 = vmul.f32 %v10355_v27, %v9641_v59  ;;  %v12896_v21 = vld [vmem:[#allocation218_spill] sm:$0xff]  ;;  %vm3746_vm7 = vmor %vm3744_vm12, %vm3745_vm15 }
 0x54f   : > { %v2953_v43 = vmul.f32 0.002, %v2921_v49  ;;  %vm2937_vm4 = vcmp.ge.f32.partialorder %v2921_v49, 0.0  ;;  %v3742_v34 = vmul.f32 %v6229_v42, %v3741_v47  ;;  %v3735_v58 = vor.u32 1.1754944e-38, %v3734_v19 }
 0x550   : > { %4027 = vmatmul.f32.gmra.mxu3 %v3626_v3  ;;  %v3715_v3 = vsel %vm3714_vm0, %v10384_v17, %v3711_v26  ;;  %v3727_v17 = vadd.f32 %v10411_v51, %v3726_v16  ;;  %v3674_v55 = vmul.f32 %v10378_v61, %v12896_v21  ;;  %v3750_v5 = vand.u32 2147483648, %v10403_v33  ;;  %v10468_v26 = vpop.permute.xlu2 %3885 }
 0x551   : > { %v2969_v56 = vsel %vm2937_vm4, %v2921_v49, %v2953_v43  ;;  %v10449_v2 = vsel %vm3717_vm9, %v3719_v39, %v3715_v3  ;;  %v3743_v49 = vadd.f32 %v6229_v42, %v3742_v34  ;;  %v3690_v43 = vmul.f32 %v10406_v0, %v9768_v62 }
 0x552   : > { %4245 = vperm.xlu2 %5863, %v12892_v60   ;;  %v10447_v60 = vmax.f32 %v10024_v1, 1e-30  ;;  %v3721_v59 = vmul.f32 %v10449_v2, %v9355_v24  ;;  %v3732_v1 = vand.u32 2147483647, %v10376_v31  ;;  %v3731_v12 = vsel %vm3730_vm6, %v10411_v51, %v3727_v17 }
 0x553   : > { %3974 = vmatmul.f32.gmra.mxu0 %v3689_v35  ;;  %v6231_v35 = vpop.eup %6230  ;;  %v3748_v51 = vand.u32 2147483647, %v10403_v33  ;;  %v3747_v52 = vsel %vm3746_vm7, %v6229_v42, %v3743_v49  ;;  %v3751_v50 = vor.u32 1.1754944e-38, %v3750_v5  ;;  %v3766_v33 = vand.u32 2147483648, %v10427_v23 }
 0x554   : > { %6232 = vrcp.f32 %v10447_v60  ;;  %v3756_v27 = vmul.f32 %v6231_v35, %v10427_v23  ;;  %vm3733_vm8 = vcmp.eq.f32.partialorder %v3732_v1, 8.507059e+37  ;;  %vm3761_vm0 = vweird.f32 %v6231_v35  ;;  %v12897_v1 = vld [vmem:[#allocation209_spill] sm:$0xff] }
 0x555   : > { %vm3749_vm1 = vcmp.eq.f32.partialorder %v3748_v51, 8.507059e+37  ;;  %vm3760_vm4 = vweird.f32 %v10427_v23  ;;  %v3764_v39 = vand.u32 2147483647, %v10427_v23  ;;  %v3767_v62 = vor.u32 1.1754944e-38, %v3766_v33  ;;  %v12902_v51 = vld [vmem:[#allocation192_spill] sm:$0xff] }
 0x556   : > { %v3757_v24 = vsub.f32 1.0, %v3756_v27  ;;  %v3752_v54 = vsel %vm3749_vm1, %v3751_v50, %v3747_v52  ;;  %vm3762_vm9 = vmor %vm3760_vm4, %vm3761_vm0  ;;  %v3706_v0 = vmul.f32 %v10430_v11, %v9690_v41  ;;  %vm3776_vm6 = vweird.f32 %v10447_v60 }
 0x557   : > { %v3753_v16 = vmul.f32 %v3752_v54, %v9711_v4  ;;  %vm3765_vm5 = vcmp.eq.f32.partialorder %v3764_v39, 8.507059e+37  ;;  %v3782_v4 = vand.u32 2147483648, %v10447_v60  ;;  %v3780_v23 = vand.u32 2147483647, %v10447_v60 }
 0x558   : > { %4030 = vmatmul.f32.gmra.mxu3 %v3642_v46  ;;  %v3736_v46 = vsel %vm3733_vm8, %v3735_v58, %v3731_v12  ;;  %v3722_v41 = vmul.f32 %v10449_v2, %v12897_v1  ;;  %v12898_v12 = vld [vmem:[#allocation211_spill] sm:$0xff] }
 0x559   : > { %vm3781_vm15 = vcmp.eq.f32.partialorder %v3780_v23, 8.507059e+37 }
 0x55a   : > { %4265 = vperm.xlu2 %5863, %v12895_v32   ;;  %v6233_v31 = vpop.eup %6232  ;;  %v3737_v32 = vmul.f32 %v3736_v46, %v9782_v28 }
 0x55b   : > { %3977 = vmatmul.f32.gmra.mxu0 %v3705_v38  ;;  %v3772_v61 = vmul.f32 %v6233_v31, %v10447_v60  ;;  %v3758_v38 = vmul.f32 %v6231_v35, %v3757_v24  ;;  %vm3777_vm13 = vweird.f32 %v6233_v31 }
 0x55c   : > { %vm3778_vm8 = vmor %vm3776_vm6, %vm3777_vm13 }
 0x55d   : > { %v3773_v3 = vsub.f32 1.0, %v3772_v61  ;;  %v3759_v28 = vadd.f32 %v6231_v35, %v3758_v38  ;;  %v12903_v38 = vld [vmem:[#allocation170_spill] sm:$0xff] }
 0x55f   : > { %v3763_v42 = vsel %vm3762_vm9, %v6231_v35, %v3759_v28 }
 0x560   : > { %4033 = vmatmul.f32.gmra.mxu3 %v3658_v18  ;;  %v3774_v18 = vmul.f32 %v6233_v31, %v3773_v3  ;;  %v3768_v47 = vsel %vm3765_vm5, %v3767_v62, %v3763_v42 }
 0x561   : > { %v3769_v19 = vmul.f32 %v3768_v47, %v9444_v9  ;;  %v12899_v9 = vld [vmem:[#allocation206_spill] sm:$0xff] }
 0x562   : > { %3002 = vrot.lane.b32.xlu2 %v2969_v56, %s6549_s23  ;;  %v10477_v56 = vpop.permute.xlu2 %3891  ;;  %v3775_v17 = vadd.f32 %v6233_v31, %v3774_v18  ;;  %v3738_v58 = vmul.f32 %v3736_v46, %v12899_v9 }
 0x563   : > { %3980 = vmatmul.f32.gmra.mxu0 %v3721_v59  ;;  %v3783_v59 = vor.u32 1.1754944e-38, %v3782_v4  ;;  %v12906_v4 = vld [vmem:[#allocation105_spill] sm:$0xff] }
 0x564   : > { %v3779_v35 = vsel %vm3778_vm8, %v6233_v31, %v3775_v17  ;;  %v12901_v31 = vld [vmem:[#allocation223_spill] sm:$0xff]  ;;  %vm12907_vm0 = vcmp.ne.f32.partialorder %v12906_v4, 0.0  ;;  %vm3048_vm8 = vcmask 523520  }
 0x565   : > { %v3784_v27 = vsel %vm3781_vm15, %v3783_v59, %v3779_v35  ;;  %v3770_v5 = vmul.f32 %v3768_v47, %v12901_v31 }
 0x566   : > { %v3785_v34 = vmul.f32 %v3784_v27, %v12898_v12  ;;  %v3786_v61 = vmul.f32 %v3784_v27, %v12902_v51  ;;  %v12911_v51 = vld [vmem:[#allocation130_spill] sm:$0xff] }
 0x567   : > { %vm12912_vm5 = vcmp.ne.f32.partialorder %v12911_v51, 0.0 }
 0x568   : > { %4036 = vmatmul.f32.gmra.mxu3 %v3674_v55  ;;  %v12900_v55 = vld [vmem:[#allocation224_spill] sm:$0xff] }
 0x569   : > { %v3754_v24 = vmul.f32 %v3752_v54, %v12900_v55 }
 0x56a   : > { %v10487_v11 = vpop.permute.xlu2 %3897 }
 0x56b   : > { %3983 = vmatmul.f32.gmra.mxu0 %v3737_v32 }
 0x570   : > { %4039 = vmatmul.f32.gmra.mxu3 %v3690_v43 }
 0x572   : > { %v10491_v21 = vpop.permute.xlu2 %3903 }
 0x573   : > { %3986 = vmatmul.f32.gmra.mxu0 %v3753_v16 }
 0x578   : > { %4042 = vmatmul.f32.gmra.mxu3 %v3706_v0  ;;  %v12904_v0 = vld [vmem:[#allocation104_spill] sm:$0xff] }
 0x579   : > { %vm12905_vm1 = vcmp.ne.f32.partialorder %v12904_v0, 0.0 }
 0x57a   : > { %v10494_v49 = vpop.permute.xlu2 %3909 }
 0x57b   : > { %3989 = vmatmul.f32.gmra.mxu0 %v3769_v19 }
 0x580   : > { %4045 = vmatmul.f32.gmra.mxu3 %v3722_v41 }
 0x582   : > { %v10497_v32 = vpop.permute.xlu2 %4061 }
 0x583   : > { %3992 = vmatmul.f32.gmra.mxu0 %v3785_v34 }
 0x588   : > { %4048 = vmatmul.f32.gmra.mxu3 %v3738_v58  ;;  %v3948_v60 = vpop.f32.mrf.mxu0  ;;  %v12908_v58 = vld [vmem:[#allocation142_spill] sm:$0xff] }
 0x589   : > { %v3949_v50 = vadd.f32 %v3948_v60, %v12903_v38  ;;  %v12913_v38 = vld [vmem:[#allocation156_spill] sm:$0xff] }
 0x590   : > { %4051 = vmatmul.f32.gmra.mxu3 %v3754_v24  ;;  %v3951_v2 = vpop.f32.mrf.mxu0  ;;  %v12909_v24 = vld [vmem:[#allocation96_spill] sm:$0xff] }
 0x591   : > { %v3952_v17 = vadd.f32 %v3951_v2, %v10468_v26  ;;  %v12910_v2 = vld [vmem:[#allocation172_spill] sm:$0xff] }
 0x592   : > { %v2798_v31 = vadd.f32 %v12910_v2, %v12909_v24  ;;  %v12919_v2 = vld [vmem:[#allocation66_spill] sm:$0xff] }
 0x598   : > { %4054 = vmatmul.f32.gmra.mxu3 %v3770_v5  ;;  %v3954_v52 = vpop.f32.mrf.mxu0 }
 0x5a0   : > { %4057 = vmatmul.f32.gmra.mxu3 %v3786_v61  ;;  %v3957_v43 = vpop.f32.mrf.mxu0 }
 0x5a5   : > { %v10500_v46 = vpop.xlane.xlu2 %4461 }
 0x5a8   : > { %v3960_v12 = vpop.f32.mrf.mxu0 }
 0x5ab   : > { %v4013_v3 = vpop.f32.mrf.mxu3 }
 0x5ac   : > { %v10503_v28 = vadd.f32 %v4013_v3, %v3949_v50  ;;  %v3955_v50 = vadd.f32 %v3954_v52, %v12913_v38  ;;  %v12914_v3 = vld [vmem:[#allocation131_spill] sm:$0xff]  ;;  %v12921_v38 = vld [vmem:[#allocation136_spill] sm:$0xff] }
 0x5ad   : > { %v4234_v54 = vpop.permute.xlu2 %4233  ;;  %vm12915_vm13 = vcmp.ne.f32.partialorder %v12914_v3, 0.0 }
 0x5ae   : > { %v4296_v33 = vadd.f32 %v10074_v63, %v4234_v54  ;;  %v4297_v16 = vadd.f32 %v10077_v7, %v4234_v54 }
 0x5b0   : > { %vm4328_vm12 = vcmp.ge.f32.partialorder %v4296_v33, 0.0  ;;  %vm4329_vm7 = vcmp.ge.f32.partialorder %v4297_v16, 0.0  ;;  %v4360_v39 = vmul.f32 0.2, %v4296_v33  ;;  %v4361_v42 = vmul.f32 0.2, %v4297_v16 }
 0x5b2   : > { %v4392_v18 = vsel %vm4328_vm12, %v4296_v33, %v4360_v39  ;;  %v4393_v62 = vsel %vm4329_vm7, %v4297_v16, %v4361_v42 }
 0x5b3   : > { %v10509_v47 = vsel %vm12905_vm1, %v4392_v18, -1e+30  ;;  %v10514_v19 = vsel %vm12907_vm0, %v4393_v62, -1e+30  ;;  %v4016_v23 = vpop.f32.mrf.mxu3  ;;  %v12916_v18 = vld [vmem:[#allocation216_spill] sm:$0xff]  ;;  %vm4211_vm0 = vcmask 785920  }
 0x5b4   : > { %v4457_v59 = vmax.f32 %v10509_v47, %v10514_v19  ;;  %v4017_v1 = vadd.f32 %v4016_v23, %v3952_v17  ;;  %v2863_v62 = vadd.f32 %v12916_v18, %v2798_v31  ;;  %v12920_v31 = vld [vmem:[#allocation117_spill] sm:$0xff] }
 0x5b5   : > { %v4246_v35 = vpop.permute.xlu2 %4245 }
 0x5b6   : > { %v4302_v41 = vadd.f32 %v10074_v63, %v4246_v35  ;;  %v4303_v27 = vadd.f32 %v10077_v7, %v4246_v35  ;;  %4458 = vmax.xlane.f32.xlu0 %v4457_v59  ;;  %v4065_v34 = vmul.f32 %v10497_v32, %v4017_v1  ;;  %v10540_v35 = vpop.f32.mrf.mxu0  ;;  %v2905_v59 = vmul.f32 %v12893_v29, %v2863_v62 }
 0x5b8   : > { %vm4334_vm4 = vcmp.ge.f32.partialorder %v4302_v41, 0.0  ;;  %vm4335_vm9 = vcmp.ge.f32.partialorder %v4303_v27, 0.0  ;;  %v4366_v26 = vmul.f32 0.2, %v4302_v41  ;;  %v4367_v9 = vmul.f32 0.2, %v4303_v27 }
 0x5b9   : > { %v4084_v60 = vadd.f32 %v12908_v58, %v4065_v34 }
 0x5ba   : > { %v4398_v55 = vsel %vm4334_vm4, %v4302_v41, %v4366_v26  ;;  %v4399_v5 = vsel %vm4335_vm9, %v4303_v27, %v4367_v9  ;;  %v12917_v41 = vld [vmem:[#allocation215_spill] sm:$0xff] }
 0x5bb   : > { %v10526_v61 = vsel %vm12912_vm5, %v4398_v55, -1e+30  ;;  %v10531_v54 = vsel %vm12915_vm13, %v4399_v5, -1e+30  ;;  %vm4100_vm6 = vcmp.ge.f32.partialorder %v4084_v60, 0.0  ;;  %v4019_v16 = vpop.f32.mrf.mxu3  ;;  %v3958_v27 = vadd.f32 %v3957_v43, %v12917_v41 }
 0x5bc   : > { %v4116_v33 = vmul.f32 0.002, %v4084_v60  ;;  %v4466_v42 = vmax.f32 %v10526_v61, %v10531_v54  ;;  %v4020_v17 = vadd.f32 %v4019_v16, %v3955_v50  ;;  %v2786_v5 = vadd.f32 %v12920_v31, %v12919_v2  ;;  %v12922_v16 = vld [vmem:[#allocation37_spill] sm:$0xff] }
 0x5bd   : > { %v10533_v39 = vpop.permute.xlu2 %4265 }
 0x5be   : > { %v4132_v23 = vsel %vm4100_vm6, %v4084_v60, %v4116_v33  ;;  %4467 = vmax.xlane.f32.xlu1 %v4466_v42  ;;  %v4066_v52 = vmul.f32 %v10497_v32, %v4020_v17  ;;  %v2924_v60 = vadd.f32 %v12894_v44, %v2905_v59  ;;  %v2851_v50 = vadd.f32 %v12921_v38, %v2786_v5  ;;  %v3966_v43 = vpop.f32.mrf.mxu0  ;;  %v12925_v59 = vld [vmem:[#allocation161_spill] sm:$0xff] }
 0x5bf   : > { %4165 = vrot.lane.b32.xlu2 %v4132_v23, %s6547_s27  ;;  %v3961_v42 = vadd.f32 %v3960_v12, %v10477_v56  ;;  %v3967_v31 = vadd.f32 %v3966_v43, %v10132_v10 }
 0x5c0   : > { %v4085_v1 = vadd.f32 %v12908_v58, %v4066_v52  ;;  %v2956_v33 = vmul.f32 0.002, %v2924_v60  ;;  %vm2940_vm12 = vcmp.ge.f32.partialorder %v2924_v60, 0.0  ;;  %v2901_v62 = vmul.f32 %v12893_v29, %v2851_v50  ;;  %v12924_v52 = vld [vmem:[#allocation84_spill] sm:$0xff] }
 0x5c2   : > { %vm4101_vm15 = vcmp.ge.f32.partialorder %v4085_v1, 0.0  ;;  %v4117_v34 = vmul.f32 0.002, %v4085_v1  ;;  %v2972_v23 = vsel %vm2940_vm12, %v2924_v60, %v2956_v33  ;;  %v2920_v41 = vadd.f32 %v12894_v44, %v2901_v62 }
 0x5c3   : > { %v4022_v26 = vpop.f32.mrf.mxu3 }
 0x5c4   : > { %v10546_v55 = vadd.f32 %v4022_v26, %v3958_v27  ;;  %v4133_v24 = vsel %vm4101_vm15, %v4085_v1, %v4117_v34  ;;  %v2795_v1 = vadd.f32 %v12925_v59, %v12924_v52  ;;  %v12926_v27 = vld [vmem:[#allocation146_spill] sm:$0xff]  ;;  %v2952_v12 = vmul.f32 0.002, %v2920_v41 }
 0x5c5   : > { %v3003_v9 = vpop.permute.xlu2 %3002  ;;  %v12927_v26 = vld [vmem:[#allocation46_spill] sm:$0xff]  ;;  %vm2936_vm7 = vcmp.ge.f32.partialorder %v2920_v41, 0.0 }
 0x5c6   : > { %12918 = vst [vmem:[#allocation150_spill] sm:$0xff] %v10546_v55  ;;  %v2860_v34 = vadd.f32 %v12926_v27, %v2795_v1  ;;  %v2968_v2 = vsel %vm2936_vm7, %v2920_v41, %v2952_v12 }
 0x5c7   : > { %3050 = vst.msk [vmem:[%s9257_s1 + $0x8] sm:$0xff] %vm3048_vm8, %v3003_v9  ;;  %4167 = vrot.lane.b32.xlu2 %v4133_v24, %s6547_s27  ;;  %v3969_v9 = vpop.f32.mrf.mxu0 }
 0x5c8   : > { %v2904_v56 = vmul.f32 %v12893_v29, %v2860_v34 }
 0x5ca   : > { %4249 = vperm.xlu0 %5861, %v12922_v16   ;;  %v2923_v60 = vadd.f32 %v12894_v44, %v2904_v56 }
 0x5cb   : > { %v4025_v18 = vpop.f32.mrf.mxu3 }
 0x5cc   : > { %v10557_v17 = vadd.f32 %v4025_v18, %v3961_v42  ;;  %v2955_v50 = vmul.f32 0.002, %v2923_v60  ;;  %vm2939_vm1 = vcmp.ge.f32.partialorder %v2923_v60, 0.0  ;;  %v3970_v42 = vadd.f32 %v3969_v9, %v10487_v11 }
 0x5ce   : > { %12923 = vst [vmem:[#allocation165_spill] sm:$0xff] %v10557_v17  ;;  %v2971_v16 = vsel %vm2939_vm1, %v2923_v60, %v2955_v50 }
 0x5cf   : > { %3008 = vrot.lane.b32.xlu2 %v2972_v23, %s6549_s23  ;;  %v10573_v33 = vpop.f32.mrf.mxu0 }
 0x5d2   : > { %4257 = vperm.xlu0 %5861, %v12927_v26  }
 0x5d3   : > { %v10565_v24 = vpop.f32.mrf.mxu3 }
 0x5d7   : > { %v3975_v23 = vpop.f32.mrf.mxu0 }
 0x5d8   : > { %v3976_v10 = vadd.f32 %v3975_v23, %v10158_v48 }
 0x5da   : > { %3000 = vrot.lane.b32.xlu0 %v2968_v2, %s6549_s23 }
 0x5db   : > { %v4031_v5 = vpop.f32.mrf.mxu3 }
 0x5dc   : > { %v10571_v38 = vadd.f32 %v4031_v5, %v3967_v31 }
 0x5de   : > { %12928 = vst [vmem:[#allocation166_spill] sm:$0xff] %v10571_v38 }
 0x5df   : > { %v3978_v59 = vpop.f32.mrf.mxu0 }
 0x5e0   : > { %v3979_v41 = vadd.f32 %v3978_v59, %v10491_v21 }
 0x5e2   : > { %3006 = vrot.lane.b32.xlu0 %v2971_v16, %s6549_s23 }
 0x5e3   : > { %v4034_v18 = vpop.f32.mrf.mxu3 }
 0x5e4   : > { %v10577_v62 = vadd.f32 %v4034_v18, %v3970_v42 }
 0x5e6   : > { %12929 = vst [vmem:[#allocation121_spill] sm:$0xff] %v10577_v62  ;;  %v12951_v62 = vld [vmem:[#allocation141_spill] sm:$0xff] }
 0x5e7   : > { %v10585_v27 = vpop.f32.mrf.mxu0 }
 0x5e8   : > { %12932 = vst [vmem:[#allocation189_spill] sm:$0xff] %v10585_v27  ;;  %v13001_v27 = vld [vmem:[#allocation106_spill] sm:$0xff] }
 0x5eb   : > { %v10579_v52 = vpop.f32.mrf.mxu3 }
 0x5ec   : > { %12930 = vst [vmem:[#allocation122_spill] sm:$0xff] %v10579_v52  ;;  %v13027_v52 = vld [vmem:[#allocation57_spill] sm:$0xff] }
 0x5ef   : > { %v3984_v9 = vpop.f32.mrf.mxu0 }
 0x5f0   : > { %v3985_v56 = vadd.f32 %v3984_v9, %v10189_v53  ;;  %v12939_v9 = vld [vmem:[#allocation139_spill] sm:$0xff] }
 0x5f1   : > { %vm12940_vm13 = vcmp.ne.f32.partialorder %v12939_v9, 0.0 }
 0x5f3   : > { %v4040_v43 = vpop.f32.mrf.mxu3 }
 0x5f4   : > { %v10582_v1 = vadd.f32 %v4040_v43, %v3976_v10 }
 0x5f6   : > { %12931 = vst [vmem:[#allocation188_spill] sm:$0xff] %v10582_v1 }
 0x5f7   : > { %v3987_v48 = vpop.f32.mrf.mxu0 }
 0x5f8   : > { %v3988_v2 = vadd.f32 %v3987_v48, %v10494_v49 }
 0x5fb   : > { %v4043_v34 = vpop.f32.mrf.mxu3 }
 0x5fc   : > { %v10587_v11 = vadd.f32 %v4043_v34, %v3979_v41  ;;  %v12937_v41 = vld [vmem:[#allocation138_spill] sm:$0xff] }
 0x5fd   : > { %vm12938_vm5 = vcmp.ne.f32.partialorder %v12937_v41, 0.0 }
 0x5fe   : > { %12933 = vst [vmem:[#allocation49_spill] sm:$0xff] %v10587_v11 }
 0x603   : > { %v10589_v26 = vpop.f32.mrf.mxu3 }
 0x604   : > { %12934 = vst [vmem:[#allocation171_spill] sm:$0xff] %v10589_v26  ;;  %v13000_v26 = vld [vmem:[#allocation54_spill] sm:$0xff] }
 0x60b   : > { %v4049_v12 = vpop.f32.mrf.mxu3 }
 0x60c   : > { %v10592_v60 = vadd.f32 %v4049_v12, %v3985_v56 }
 0x60e   : > { %12935 = vst [vmem:[#allocation198_spill] sm:$0xff] %v10592_v60  ;;  %v12948_v60 = vld [vmem:[#allocation48_spill] sm:$0xff] }
 0x613   : > { %v4052_v31 = vpop.f32.mrf.mxu3 }
 0x614   : > { %v10595_v5 = vadd.f32 %v4052_v31, %v3988_v2 }
 0x616   : > { %12936 = vst [vmem:[#allocation199_spill] sm:$0xff] %v10595_v5 }
 0x619   : > { %v4166_v21 = vpop.permute.xlu2 %4165 }
 0x61a   : > { %4213 = vst.msk [vmem:[%s9257_s1 + $0x8] sm:$0xff] %vm4211_vm0, %v4166_v21 }
 0x621   : > { %v10599_v50 = vpop.permute.xlu2 %4167 }
 0x629   : > { %v3009_v16 = vpop.permute.xlu2 %3008  ;;  %v10603_v42 = vpop.xlane.xlu0 %4458 }
 0x62a   : > { %3053 = vst.msk [vmem:[%s9257_s1 + $0x20] sm:$0xff] %vm3048_vm8, %v3009_v16 }
 0x63c   : > { %v4250_v53 = vpop.permute.xlu0 %4249 }
 0x63d   : > { %v4304_v18 = vadd.f32 %v10074_v63, %v4250_v53  ;;  %v4305_v23 = vadd.f32 %v10077_v7, %v4250_v53 }
 0x63f   : > { %vm4336_vm4 = vcmp.ge.f32.partialorder %v4304_v18, 0.0  ;;  %vm4337_vm9 = vcmp.ge.f32.partialorder %v4305_v23, 0.0  ;;  %v4368_v49 = vmul.f32 0.2, %v4304_v18  ;;  %v4369_v59 = vmul.f32 0.2, %v4305_v23 }
 0x641   : > { %v4400_v10 = vsel %vm4336_vm4, %v4304_v18, %v4368_v49  ;;  %v4401_v43 = vsel %vm4337_vm9, %v4305_v23, %v4369_v59  ;;  %v12941_v23 = vld [vmem:[#allocation143_spill] sm:$0xff]  ;;  %v12943_v59 = vld [vmem:[#allocation144_spill] sm:$0xff] }
 0x642   : > { %v10609_v34 = vsel %vm12938_vm5, %v4400_v10, -1e+30  ;;  %v10613_v56 = vsel %vm12940_vm13, %v4401_v43, -1e+30  ;;  %vm12942_vm12 = vcmp.ne.f32.partialorder %v12941_v23, 0.0  ;;  %vm12944_vm7 = vcmp.ne.f32.partialorder %v12943_v59, 0.0 }
 0x643   : > { %v4469_v12 = vmax.f32 %v10609_v34, %v10613_v56 }
 0x644   : > { %v4258_v48 = vpop.permute.xlu0 %4257 }
 0x645   : > { %v4308_v2 = vadd.f32 %v10074_v63, %v4258_v48  ;;  %v4309_v31 = vadd.f32 %v10077_v7, %v4258_v48  ;;  %4470 = vmax.xlane.f32.xlu1 %v4469_v12  ;;  %v4064_v48 = vmul.f32 %v10497_v32, %v10503_v28 }
 0x647   : > { %vm4340_vm6 = vcmp.ge.f32.partialorder %v4308_v2, 0.0  ;;  %vm4341_vm15 = vcmp.ge.f32.partialorder %v4309_v31, 0.0  ;;  %v4372_v21 = vmul.f32 0.2, %v4308_v2  ;;  %v4373_v16 = vmul.f32 0.2, %v4309_v31 }
 0x649   : > { %v4404_v53 = vsel %vm4340_vm6, %v4308_v2, %v4372_v21  ;;  %v4405_v18 = vsel %vm4341_vm15, %v4309_v31, %v4373_v16  ;;  %v4083_v2 = vadd.f32 %v12908_v58, %v4064_v48  ;;  %v12945_v31 = vld [vmem:[#allocation94_spill] sm:$0xff] }
 0x64a   : > { %v10621_v49 = vsel %vm12942_vm12, %v4404_v53, -1e+30  ;;  %v10625_v10 = vsel %vm12944_vm7, %v4405_v18, -1e+30  ;;  %v12946_v21 = vld [vmem:[#allocation214_spill] sm:$0xff] }
 0x64b   : > { %v4475_v43 = vmax.f32 %v10621_v49, %v10625_v10  ;;  %v2804_v16 = vadd.f32 %v12946_v21, %v12945_v31  ;;  %v12947_v53 = vld [vmem:[#allocation42_spill] sm:$0xff]  ;;  %v4115_v11 = vmul.f32 0.002, %v4083_v2  ;;  %vm4099_vm1 = vcmp.ge.f32.partialorder %v4083_v2, 0.0  ;;  %v12952_v21 = vld [vmem:[#allocation59_spill] sm:$0xff] }
 0x64c   : > { %v3001_v5 = vpop.permute.xlu0 %3000 }
 0x64d   : > { %3049 = vst.msk [vmem:[%s9257_s1] sm:$0xff] %vm3048_vm8, %v3001_v5  ;;  %4476 = vmax.xlane.f32.xlu0 %v4475_v43  ;;  %v2869_v18 = vadd.f32 %v10168_v13, %v2804_v16  ;;  %v12949_v5 = vld [vmem:[#allocation75_spill] sm:$0xff]  ;;  %v12950_v43 = vld [vmem:[#allocation118_spill] sm:$0xff]  ;;  %v4131_v38 = vsel %vm4099_vm1, %v4083_v2, %v4115_v11  ;;  %v12953_v13 = vld [vmem:[#allocation92_spill] sm:$0xff] }
 0x64e   : > { %v2792_v1 = vadd.f32 %v12950_v43, %v12949_v5  ;;  %v12955_v5 = vld [vmem:[#allocation195_spill] sm:$0xff] }
 0x650   : > { %v2857_v28 = vadd.f32 %v12951_v62, %v2792_v1  ;;  %v12957_v1 = vld [vmem:[#allocation63_spill] sm:$0xff] }
 0x652   : > { %v2903_v31 = vmul.f32 %v12893_v29, %v2857_v28 }
 0x654   : > { %v3007_v12 = vpop.permute.xlu0 %3006  ;;  %v2922_v17 = vadd.f32 %v12894_v44, %v2903_v31 }
 0x655   : > { %3052 = vst.msk [vmem:[%s9257_s1 + $0x18] sm:$0xff] %vm3048_vm8, %v3007_v12  ;;  %v2907_v12 = vmul.f32 %v12893_v29, %v2869_v18  ;;  %v12956_v18 = vld [vmem:[#allocation119_spill] sm:$0xff] }
 0x656   : > { %v2813_v62 = vadd.f32 %v10210_v36, %v12956_v18  ;;  %vm2938_vm9 = vcmp.ge.f32.partialorder %v2922_v17, 0.0 }
 0x657   : > { %v2926_v48 = vadd.f32 %v12894_v44, %v2907_v12  ;;  %v2954_v12 = vmul.f32 0.002, %v2922_v17 }
 0x659   : > { %vm2942_vm4 = vcmp.ge.f32.partialorder %v2926_v48, 0.0 }
 0x65e   : > { %4253 = vperm.xlu1 %5862, %v12947_v53   ;;  %v2958_v53 = vmul.f32 0.002, %v2926_v48 }
 0x660   : > { %v2974_v11 = vsel %vm2942_vm4, %v2926_v48, %v2958_v53  ;;  %v12959_v48 = vld [vmem:[#allocation68_spill] sm:$0xff] }
 0x661   : > { %4261 = vperm.xlu0 %5861, %v12948_v60   ;;  %v12954_v60 = vld [vmem:[#allocation114_spill] sm:$0xff] }
 0x662   : > { %v2801_v16 = vadd.f32 %v12954_v60, %v12953_v13  ;;  %v12958_v13 = vld [vmem:[#allocation127_spill] sm:$0xff] }
 0x663   : > { %v2822_v60 = vadd.f32 %v10344_v6, %v12958_v13  ;;  %v12965_v13 = vld [vmem:[#allocation113_spill] sm:$0xff] }
 0x664   : > { %v2866_v43 = vadd.f32 %v12955_v5, %v2801_v16 }
 0x666   : > { %4163 = vrot.lane.b32.xlu1 %v4131_v38, %s6547_s27  ;;  %v2878_v38 = vadd.f32 %v10267_v57, %v2813_v62  ;;  %v2906_v2 = vmul.f32 %v12893_v29, %v2866_v43  ;;  %v2887_v57 = vadd.f32 %v10361_v40, %v2822_v60  ;;  %v12960_v62 = vld [vmem:[#allocation73_spill] sm:$0xff] }
 0x667   : > { %v12966_v60 = vld [vmem:[#allocation109_spill] sm:$0xff] }
 0x668   : > { %v2910_v28 = vmul.f32 %v12893_v29, %v2878_v38  ;;  %v2925_v31 = vadd.f32 %v12894_v44, %v2906_v2  ;;  %v2913_v53 = vmul.f32 %v12893_v29, %v2887_v57  ;;  %v2892_v38 = vpop.f32.mrf.mxu2  ;;  %v12962_v2 = vld [vmem:[#allocation115_spill] sm:$0xff] }
 0x669   : > { %4269 = vperm.xlu0 %5861, %v12952_v21   ;;  %v2970_v21 = vsel %vm2938_vm9, %v2922_v17, %v2954_v12 }
 0x66a   : > { %v2929_v36 = vadd.f32 %v12894_v44, %v2910_v28  ;;  %v2957_v16 = vmul.f32 0.002, %v2925_v31  ;;  %vm2941_vm5 = vcmp.ge.f32.partialorder %v2925_v31, 0.0  ;;  %v2932_v17 = vadd.f32 %v12894_v44, %v2913_v53  ;;  %v12963_v28 = vld [vmem:[#allocation47_spill] sm:$0xff]  ;;  %v12967_v53 = vld [vmem:[#allocation182_spill] sm:$0xff] }
 0x66c   : > { %v2961_v5 = vmul.f32 0.002, %v2929_v36  ;;  %v2973_v43 = vsel %vm2941_vm5, %v2925_v31, %v2957_v16  ;;  %vm2945_vm13 = vcmp.ge.f32.partialorder %v2929_v36, 0.0  ;;  %v2964_v18 = vmul.f32 0.002, %v2932_v17  ;;  %v12964_v31 = vld [vmem:[#allocation99_spill] sm:$0xff] }
 0x66d   : > { %vm2948_vm6 = vcmp.ge.f32.partialorder %v2932_v17, 0.0 }
 0x66e   : > { %4273 = vperm.xlu1 %5862, %v12957_v1   ;;  %v2977_v6 = vsel %vm2945_vm13, %v2929_v36, %v2961_v5  ;;  %v2980_v40 = vsel %vm2948_vm6, %v2932_v17, %v2964_v18  ;;  %v2827_v1 = vpop.f32.mrf.mxu1  ;;  %v2810_v36 = vadd.f32 %v12966_v60, %v12965_v13  ;;  %v12969_v17 = vld [vmem:[#allocation45_spill] sm:$0xff] }
 0x670   : > { %v2895_v16 = vpop.f32.mrf.mxu2 }
 0x671   : > { %3012 = vrot.lane.b32.xlu0 %v2974_v11, %s6549_s23  ;;  %v12961_v11 = vld [vmem:[#allocation120_spill] sm:$0xff] }
 0x672   : > { %v5864_v12 = vpack.i.bf16 %v12962_v2, %v12961_v11  ;;  %v12971_v11 = vld [vmem:[#allocation126_spill] sm:$0xff] }
 0x673   : > { %v2819_v2 = vadd.f32 %v10303_v14, %v12971_v11  ;;  %v12975_v14 = vld [vmem:[#allocation179_spill] sm:$0xff]  ;;  %v12977_v11 = vld [vmem:[#allocation93_spill] sm:$0xff] }
 0x675   : > { %v2884_v13 = vadd.f32 %v10336_v45, %v2819_v2 }
 0x676   : > { %3004 = vrot.lane.b32.xlu1 %v2970_v21, %s6549_s23  ;;  %v5879_v21 = vpack.i.bf16 %v12964_v31, %v12963_v28  ;;  %v2830_v57 = vpop.f32.mrf.mxu1  ;;  %v12973_v28 = vld [vmem:[#allocation101_spill] sm:$0xff] }
 0x677   : > { %v2831_v5 = vadd.f32 %v2830_v57, %v12967_v53  ;;  %v12974_v57 = vld [vmem:[#allocation87_spill] sm:$0xff] }
 0x679   : > { %4277 = vperm.xlu0 %5861, %v12959_v48   ;;  %v2875_v48 = vadd.f32 %v10227_v15, %v2810_v36  ;;  %v2912_v36 = vmul.f32 %v12893_v29, %v2884_v13 }
 0x67e   : > { %3010 = vrot.lane.b32.xlu1 %v2973_v43, %s6549_s23  ;;  %v12968_v43 = vld [vmem:[#allocation78_spill] sm:$0xff] }
 0x681   : > { %3018 = vrot.lane.b32.xlu0 %v2977_v6, %s6549_s23  ;;  %v12970_v6 = vld [vmem:[#allocation95_spill] sm:$0xff] }
 0x682   : > { %v5884_v18 = vpack.i.bf16 %v12970_v6, %v12969_v17 }
 0x686   : > { %4281 = vperm.xlu1 %5862, %v12960_v62   ;;  %v2896_v62 = vadd.f32 %v2895_v16, %v2831_v5  ;;  %v2828_v16 = vadd.f32 %v2827_v1, %v12975_v14  ;;  %v2931_v5 = vadd.f32 %v12894_v44, %v2912_v36  ;;  %v12976_v1 = vld [vmem:[#allocation43_spill] sm:$0xff]  ;;  %v4505_v14 = vsub.f32 %v10514_v19, %v10603_v42 }
 0x687   : > { %v5889_v2 = vpack.i.bf16 %v12977_v11, %v12976_v1 }
 0x688   : > { %v2916_v15 = vmul.f32 %v12893_v29, %v2896_v62  ;;  %vm2947_vm7 = vcmp.ge.f32.partialorder %v2931_v5, 0.0 }
 0x689   : > { %3024 = vrot.lane.b32.xlu0 %v2980_v40, %s6549_s23  ;;  %v2909_v40 = vmul.f32 %v12893_v29, %v2875_v48 }
 0x68a   : > { %v2935_v60 = vadd.f32 %v12894_v44, %v2916_v15  ;;  %v12979_v15 = vld [vmem:[#allocation90_spill] sm:$0xff] }
 0x68c   : > { %v2967_v53 = vmul.f32 0.002, %v2935_v60  ;;  %vm2951_vm12 = vcmp.ge.f32.partialorder %v2935_v60, 0.0 }
 0x68e   : > { %5865 = vrot.lane.b32.xlu1 %v5864_v12, %s6549_s23  ;;  %v12972_v12 = vld [vmem:[#allocation51_spill] sm:$0xff]  ;;  %v2983_v45 = vsel %vm2951_vm12, %v2935_v60, %v2967_v53 }
 0x68f   : > { %v5874_v31 = vpack.i.bf16 %v12973_v28, %v12972_v12 }
 0x691   : > { %5880 = vrot.lane.b32.xlu0 %v5879_v21, %s6549_s23  ;;  %v2928_v21 = vadd.f32 %v12894_v44, %v2909_v40 }
 0x693   : > { %v2960_v48 = vmul.f32 0.002, %v2928_v21  ;;  %vm2944_vm15 = vcmp.ge.f32.partialorder %v2928_v21, 0.0 }
 0x695   : > { %v2976_v17 = vsel %vm2944_vm15, %v2928_v21, %v2960_v48  ;;  %v4504_v48 = vsub.f32 %v10509_v47, %v10603_v42 }
 0x696   : > { %4285 = vperm.xlu1 %5862, %v12968_v43   ;;  %v2893_v43 = vadd.f32 %v2892_v38, %v2828_v16  ;;  %v10708_v38 = vpop.xlane.xlu1 %4455  ;;  %v12980_v16 = vld [vmem:[#allocation88_spill] sm:$0xff] }
 0x697   : > { %v4506_v53 = vsub.f32 %v12980_v16, %v10500_v46 }
 0x698   : > { %v2915_v6 = vmul.f32 %v12893_v29, %v2893_v43 }
 0x699   : > { %5885 = vrot.lane.b32.xlu0 %v5884_v18, %s6549_s23  ;;  %v2963_v18 = vmul.f32 0.002, %v2931_v5  ;;  %v4542_v11 = vmul.f32 1.442695, %v4506_v53 }
 0x69a   : > { %v2934_v62 = vadd.f32 %v12894_v44, %v2915_v6  ;;  %v4540_v6 = vmul.f32 1.442695, %v4505_v14 }
 0x69b   : > { %v2979_v40 = vsel %vm2947_vm7, %v2931_v5, %v2963_v18  ;;  %v4538_v5 = vmul.f32 1.442695, %v4504_v48  ;;  %v12984_v48 = vld [vmem:[#allocation152_spill] sm:$0xff] }
 0x69c   : > { %v2966_v12 = vmul.f32 0.002, %v2934_v62  ;;  %vm2950_vm1 = vcmp.ge.f32.partialorder %v2934_v62, 0.0  ;;  %vm12985_vm15 = vcmp.ne.f32.partialorder %v12984_v48, 0.0 }
 0x69d   : > { %6234 = vpow2.f32 %v4538_v5 }
 0x69e   : > { %5875 = vrot.lane.b32.xlu1 %v5874_v31, %s6549_s23  ;;  %v2982_v28 = vsel %vm2950_vm1, %v2934_v62, %v2966_v12  ;;  %v12978_v31 = vld [vmem:[#allocation41_spill] sm:$0xff]  ;;  %v10714_v13 = vpop.xlane.xlu1 %4464  ;;  %6236 = vpow2.f32 %v4540_v6  ;;  %vm12990_vm1 = vcmp.ne.f32.partialorder %v12904_v0, 0.0 }
 0x69f   : > { %v5894_v21 = vpack.i.bf16 %v12979_v15, %v12978_v31  ;;  %v12982_v15 = vld [vmem:[#allocation151_spill] sm:$0xff]  ;;  %6238 = vpow2.f32 %v4542_v11 }
 0x6a0   : > { %vm12983_vm6 = vcmp.ne.f32.partialorder %v12982_v15, 0.0 }
 0x6a1   : > { %4289 = vperm.xlu0 %5861, %v12974_v57  }
 0x6a6   : > { %3016 = vrot.lane.b32.xlu1 %v2976_v17, %s6549_s23  ;;  %v10717_v60 = vpop.xlane.xlu1 %4467  ;;  %v12981_v17 = vld [vmem:[#allocation29_spill] sm:$0xff] }
 0x6a9   : > { %3030 = vrot.lane.b32.xlu0 %v2983_v45, %s6549_s23  ;;  %v4507_v45 = vsub.f32 %v12981_v17, %v10500_v46  ;;  %v6235_v17 = vpop.eup %6234 }
 0x6aa   : > { %v10761_v11 = vsel %vm12990_vm1, %v6235_v17, 0.0  ;;  %v12995_v17 = vld [vmem:[#allocation202_spill] sm:$0xff]  ;;  %vm13012_vm1 = vcmp.ne.f32.partialorder %v12937_v41, 0.0 }
 0x6ae   : > { %3022 = vrot.lane.b32.xlu1 %v2979_v40, %s6549_s23 }
 0x6b1   : > { %5890 = vrot.lane.b32.xlu0 %v5889_v2, %s6549_s23  ;;  %v4544_v2 = vmul.f32 1.442695, %v4507_v45  ;;  %v6237_v45 = vpop.eup %6236 }
 0x6b3   : > { %6240 = vpow2.f32 %v4544_v2 }
 0x6b6   : > { %3028 = vrot.lane.b32.xlu1 %v2982_v28, %s6549_s23 }
 0x6b8   : > { %v10719_v36 = vpop.xlane.xlu1 %4470 }
 0x6b9   : > { %5895 = vrot.lane.b32.xlu0 %v5894_v21, %s6549_s23 }
 0x6c0   : > { %v10721_v57 = vpop.xlane.xlu0 %4476 }
 0x6d0   : > { %v4254_v43 = vpop.permute.xlu1 %4253 }
 0x6d1   : > { %v4306_v18 = vadd.f32 %v10074_v63, %v4254_v43  ;;  %v4307_v62 = vadd.f32 %v10077_v7, %v4254_v43 }
 0x6d3   : > { %vm4338_vm4 = vcmp.ge.f32.partialorder %v4306_v18, 0.0  ;;  %vm4339_vm9 = vcmp.ge.f32.partialorder %v4307_v62, 0.0  ;;  %v4370_v40 = vmul.f32 0.2, %v4306_v18  ;;  %v4371_v47 = vmul.f32 0.2, %v4307_v62  ;;  %v4262_v1 = vpop.permute.xlu0 %4261 }
 0x6d4   : > { %v4310_v19 = vadd.f32 %v10074_v63, %v4262_v1  ;;  %v4311_v42 = vadd.f32 %v10077_v7, %v4262_v1 }
 0x6d5   : > { %v4402_v46 = vsel %vm4338_vm4, %v4306_v18, %v4370_v40  ;;  %v4403_v12 = vsel %vm4339_vm9, %v4307_v62, %v4371_v47  ;;  %v12986_v18 = vld [vmem:[#allocation147_spill] sm:$0xff]  ;;  %v12988_v40 = vld [vmem:[#allocation148_spill] sm:$0xff]  ;;  %vm12991_vm4 = vcmp.ne.f32.partialorder %v12906_v4, 0.0 }
 0x6d6   : > { %vm4342_vm5 = vcmp.ge.f32.partialorder %v4310_v19, 0.0  ;;  %vm4343_vm13 = vcmp.ge.f32.partialorder %v4311_v42, 0.0  ;;  %v4374_v28 = vmul.f32 0.2, %v4310_v19  ;;  %v4375_v31 = vmul.f32 0.2, %v4311_v42 }
 0x6d7   : > { %v10737_v21 = vsel %vm12983_vm6, %v4402_v46, -1e+30  ;;  %v10741_v14 = vsel %vm12985_vm15, %v4403_v12, -1e+30  ;;  %vm12987_vm12 = vcmp.ne.f32.partialorder %v12986_v18, 0.0  ;;  %vm12989_vm7 = vcmp.ne.f32.partialorder %v12988_v40, 0.0 }
 0x6d8   : > { %v4164_v16 = vpop.permute.xlu1 %4163  ;;  %v4472_v53 = vmax.f32 %v10737_v21, %v10741_v14  ;;  %v4406_v5 = vsel %vm4342_vm5, %v4310_v19, %v4374_v28  ;;  %v4407_v43 = vsel %vm4343_vm13, %v4311_v42, %v4375_v31  ;;  %v10765_v19 = vsel %vm12991_vm4, %v6237_v45, 0.0  ;;  %v6239_v42 = vpop.eup %6238 }
 0x6d9   : > { %4212 = vst.msk [vmem:[%s9257_s1] sm:$0xff] %vm4211_vm0, %v4164_v16  ;;  %v10751_v62 = vsel %vm12987_vm12, %v4406_v5, -1e+30  ;;  %v10755_v47 = vsel %vm12989_vm7, %v4407_v43, -1e+30  ;;  %v6241_v2 = vpop.eup %6240  ;;  %v4312_v46 = vadd.f32 %v10074_v63, %v10533_v39  ;;  %v4313_v12 = vadd.f32 %v10077_v7, %v10533_v39 }
 0x6da   : > { %4473 = vmax.xlane.f32.xlu2 %v4472_v53  ;;  %v4478_v1 = vmax.f32 %v10751_v62, %v10755_v47  ;;  %v4633_v0 = vadd.f32 %v10765_v19, %v10761_v11  ;;  %v10777_v16 = vsel %vm853_vm14, %v6239_v42, 0.0  ;;  %v12993_v53 = vld [vmem:[#allocation111_spill] sm:$0xff]  ;;  %v2908_v45 = vmul.f32 %v12893_v29, %v12995_v17 }
 0x6db   : > { %v10747_v6 = vpop.permute.xlu0 %4269  ;;  %vm12994_vm9 = vcmp.ne.f32.partialorder %v12993_v53, 0.0  ;;  %v4376_v43 = vmul.f32 0.2, %v4312_v46  ;;  %v4377_v39 = vmul.f32 0.2, %v4313_v12  ;;  %vm4344_vm5 = vcmp.ge.f32.partialorder %v4312_v46, 0.0 }
 0x6dc   : > { %v10781_v5 = vsel %vm12994_vm9, %v6241_v2, 0.0  ;;  %vm4345_vm13 = vcmp.ge.f32.partialorder %v4313_v12, 0.0  ;;  %v2927_v2 = vadd.f32 %v12894_v44, %v2908_v45  ;;  %v2911_v45 = vmul.f32 %v12893_v29, %v10311_v37 }
 0x6dd   : > { %v4409_v4 = vsel %vm4345_vm13, %v4313_v12, %v4377_v39  ;;  %v2914_v37 = vmul.f32 %v12893_v29, %v10387_v8  ;;  %v13004_v29 = vld [vmem:[#allocation35_spill] sm:$0xff]  ;;  %vm13010_vm12 = vcmp.ne.f32.partialorder %v12911_v51, 0.0  ;;  %vm13011_vm7 = vcmp.ne.f32.partialorder %v12914_v3, 0.0 }
 0x6de   : > { %vm2943_vm14 = vcmp.ge.f32.partialorder %v2927_v2, 0.0  ;;  %v4314_v51 = vadd.f32 %v10074_v63, %v10747_v6  ;;  %v4315_v3 = vadd.f32 %v10077_v7, %v10747_v6  ;;  %vm13013_vm4 = vcmp.ne.f32.partialorder %v12939_v9, 0.0 }
 0x6e0   : > { %4479 = vmax.xlane.f32.xlu1 %v4478_v1  ;;  %v10771_v28 = vpop.permute.xlu1 %4273  ;;  %v4636_v1 = vadd.f32 %v10781_v5, %v10777_v16  ;;  %vm4346_vm13 = vcmp.ge.f32.partialorder %v4314_v51, 0.0 }
 0x6e3   : > { %4634 = vadd.xlane.f32.xlu0 %v4633_v0  ;;  %v3013_v31 = vpop.permute.xlu0 %3012  ;;  %v4408_v0 = vsel %vm4344_vm5, %v4312_v46, %v4376_v43  ;;  %v2959_v46 = vmul.f32 0.002, %v2927_v2 }
 0x6e4   : > { %3055 = vst.msk [vmem:[%s9257_s1 + $0x30] sm:$0xff] %vm3048_vm8, %v3013_v31  ;;  %v10799_v17 = vsel %vm867_vm11, %v4408_v0, -1e+30  ;;  %v12999_v0 = vld [vmem:[#allocation67_spill] sm:$0xff] }
 0x6e8   : > { %4637 = vadd.xlane.f32.xlu1 %v4636_v1  ;;  %v3005_v42 = vpop.permute.xlu1 %3004  ;;  %v10803_v1 = vsel %vm868_vm10, %v4409_v4, -1e+30 }
 0x6e9   : > { %3051 = vst.msk [vmem:[%s9257_s1 + $0x10] sm:$0xff] %vm3048_vm8, %v3005_v42  ;;  %v4481_v12 = vmax.f32 %v10799_v17, %v10803_v1  ;;  %v12998_v42 = vld [vmem:[#allocation27_spill] sm:$0xff] }
 0x6ea   : > { %4214 = vst.msk [vmem:[%s9257_s1 + $0x10] sm:$0xff] %vm4211_vm0, %v10599_v50  ;;  %v2975_v50 = vsel %vm2943_vm14, %v2927_v2, %v2959_v46  ;;  %v5919_v4 = vpack.i.bf16 %v12999_v0, %v12998_v42  ;;  %v2930_v2 = vadd.f32 %v12894_v44, %v2911_v45  ;;  %vm4347_vm14 = vcmp.ge.f32.partialorder %v4315_v3, 0.0 }
 0x6eb   : > { %v10795_v31 = vpop.permute.xlu0 %4277 }
 0x6ec   : > { %v2962_v42 = vmul.f32 0.002, %v2930_v2  ;;  %vm2946_vm6 = vcmp.ge.f32.partialorder %v2930_v2, 0.0 }
 0x6ee   : > { %v2978_v45 = vsel %vm2946_vm6, %v2930_v2, %v2962_v42 }
 0x6f0   : > { %4482 = vmax.xlane.f32.xlu1 %v4481_v12  ;;  %v3011_v43 = vpop.permute.xlu1 %3010  ;;  %v5869_v12 = vpack.i.bf16 %v13001_v27, %v13000_v26  ;;  %v2933_v26 = vadd.f32 %v12894_v44, %v2914_v37  ;;  %v13006_v37 = vld [vmem:[#allocation30_spill] sm:$0xff] }
 0x6f1   : > { %3054 = vst.msk [vmem:[%s9257_s1 + $0x28] sm:$0xff] %vm3048_vm8, %v3011_v43  ;;  %v13002_v43 = vld [vmem:[#allocation25_spill] sm:$0xff] }
 0x6f2   : > { %3014 = vrot.lane.b32.xlu2 %v2975_v50, %s6549_s23  ;;  %v13003_v50 = vld [vmem:[#allocation64_spill] sm:$0xff]  ;;  %v2965_v8 = vmul.f32 0.002, %v2933_v26  ;;  %vm2949_vm15 = vcmp.ge.f32.partialorder %v2933_v26, 0.0 }
 0x6f3   : > { %v3019_v39 = vpop.permute.xlu0 %3018 }
 0x6f4   : > { %3058 = vst.msk [vmem:[%s9257_s1 + $0x48] sm:$0xff] %vm3048_vm8, %v3019_v39  ;;  %v5924_v39 = vpack.i.bf16 %v13003_v50, %v13002_v43  ;;  %v2981_v44 = vsel %vm2949_vm15, %v2933_v26, %v2965_v8  ;;  %v4511_v26 = vsub.f32 %v10531_v54, %v10717_v60 }
 0x6f6   : > { %v4552_v8 = vmul.f32 1.442695, %v4511_v26 }
 0x6f7   : > { %5920 = vrot.lane.b32.xlu0 %v5919_v4, %s6549_s23 }
 0x6f8   : > { %v10819_v58 = vpop.permute.xlu1 %4281 }
 0x6fa   : > { %5870 = vrot.lane.b32.xlu2 %v5869_v12, %s6549_s23 }
 0x6fb   : > { %v3025_v46 = vpop.permute.xlu0 %3024 }
 0x6fc   : > { %3061 = vst.msk [vmem:[%s9257_s1 + $0x60] sm:$0xff] %vm3048_vm8, %v3025_v46  ;;  %v13005_v46 = vld [vmem:[#allocation81_spill] sm:$0xff] }
 0x6fd   : > { %v5904_v43 = vpack.i.bf16 %v13005_v46, %v13004_v29  ;;  %v4512_v46 = vsub.f32 %v10609_v34, %v10719_v36 }
 0x6ff   : > { %5925 = vrot.lane.b32.xlu0 %v5924_v39, %s6549_s23  ;;  %v13007_v39 = vld [vmem:[#allocation72_spill] sm:$0xff] }
 0x700   : > { %v5866_v27 = vpop.permute.xlu1 %5865  ;;  %v5914_v42 = vpack.i.bf16 %v13007_v39, %v13006_v37  ;;  %v4554_v39 = vmul.f32 1.442695, %v4512_v46 }
 0x701   : > { %v5867_v0 = vunpack.i.l.bf16 %v5866_v27  ;;  %v5868_v4 = vunpack.i.h.bf16 %v5866_v27 }
 0x702   : > { %3020 = vrot.lane.b32.xlu2 %v2978_v45, %s6549_s23 }
 0x703   : > { %v10832_v12 = vpop.permute.xlu0 %5880  ;;  %5159 = vmatpush.msrb.mxu2 %v5867_v0  ;;  %5551 = vmatpush.msrb.mxu3 %v5867_v0  ;;  %v4510_v0 = vsub.f32 %v10526_v61, %v10717_v60  ;;  %v13009_v60 = vld [vmem:[#allocation108_spill] sm:$0xff] }
 0x704   : > { %v4503_v37 = vsub.f32 %v13009_v60, %v10708_v38 }
 0x705   : > { %5160 = vmatpush.msrb.mxu2 %v5868_v4  ;;  %5552 = vmatpush.msrb.mxu3 %v5868_v4  ;;  %v4550_v4 = vmul.f32 1.442695, %v4510_v0 }
 0x707   : > { %6242 = vpow2.f32 %v4550_v4 }
 0x708   : > { %v10836_v50 = vpop.permute.xlu1 %4285  ;;  %6244 = vpow2.f32 %v4552_v8  ;;  %v4536_v8 = vmul.f32 1.442695, %v4503_v37  ;;  %v13014_v37 = vld [vmem:[#allocation102_spill] sm:$0xff] }
 0x709   : > { %5905 = vrot.lane.b32.xlu1 %v5904_v43, %s6549_s23  ;;  %v4513_v43 = vsub.f32 %v10613_v56, %v10719_v36  ;;  %6246 = vpow2.f32 %v4554_v39  ;;  %vm13015_vm9 = vcmp.ne.f32.partialorder %v13014_v37, 0.0 }
 0x70a   : > { %3026 = vrot.lane.b32.xlu2 %v2981_v44, %s6549_s23  ;;  %v13008_v44 = vld [vmem:[#allocation222_spill] sm:$0xff] }
 0x70b   : > { %v10840_v2 = vpop.permute.xlu0 %5885  ;;  %v4502_v54 = vsub.f32 %v13008_v44, %v10708_v38 }
 0x70d   : > { %v6243_v0 = vpop.eup %6242  ;;  %v4534_v26 = vmul.f32 1.442695, %v4502_v54 }
 0x70e   : > { %v6245_v34 = vpop.eup %6244  ;;  %v10869_v56 = vsel %vm13010_vm12, %v6243_v0, 0.0  ;;  %vm13028_vm12 = vcmp.ne.f32.partialorder %v12982_v15, 0.0 }
 0x70f   : > { %v10873_v38 = vsel %vm13011_vm7, %v6245_v34, 0.0 }
 0x710   : > { %v10844_v27 = vpop.permute.xlu1 %5875  ;;  %v4642_v36 = vadd.f32 %v10873_v38, %v10869_v56 }
 0x711   : > { %5915 = vrot.lane.b32.xlu1 %v5914_v42, %s6549_s23  ;;  %v4556_v42 = vmul.f32 1.442695, %v4513_v43 }
 0x713   : > { %v10851_v45 = vpop.permute.xlu0 %4289  ;;  %6248 = vpow2.f32 %v4556_v42  ;;  %v13016_v42 = vld [vmem:[#allocation103_spill] sm:$0xff] }
 0x714   : > { %6250 = vpow2.f32 %v4534_v26  ;;  %vm13017_vm5 = vcmp.ne.f32.partialorder %v13016_v42, 0.0  ;;  %v4378_v26 = vmul.f32 0.2, %v4314_v51 }
 0x715   : > { %6252 = vpow2.f32 %v4536_v8  ;;  %v13018_v8 = vld [vmem:[#allocation158_spill] sm:$0xff] }
 0x716   : > { %v4410_v9 = vsel %vm4346_vm13, %v4314_v51, %v4378_v26  ;;  %vm13019_vm6 = vcmp.ne.f32.partialorder %v13018_v8, 0.0  ;;  %vm13037_vm13 = vcmp.ne.f32.partialorder %v12941_v23, 0.0 }
 0x718   : > { %v3017_v29 = vpop.permute.xlu1 %3016 }
 0x719   : > { %3057 = vst.msk [vmem:[%s9257_s1 + $0x40] sm:$0xff] %vm3048_vm8, %v3017_v29  ;;  %v6247_v29 = vpop.eup %6246 }
 0x71a   : > { %v6249_v43 = vpop.eup %6248  ;;  %v10885_v54 = vsel %vm13012_vm1, %v6247_v29, 0.0  ;;  %v13020_v29 = vld [vmem:[#allocation159_spill] sm:$0xff] }
 0x71b   : > { %v3031_v61 = vpop.permute.xlu0 %3030  ;;  %v10889_v60 = vsel %vm13013_vm4, %v6249_v43, 0.0  ;;  %vm13021_vm15 = vcmp.ne.f32.partialorder %v13020_v29, 0.0  ;;  %vm13031_vm4 = vcmp.ne.f32.partialorder %v12984_v48, 0.0 }
 0x71c   : > { %3064 = vst.msk [vmem:[%s9257_s1 + $0x78] sm:$0xff] %vm3048_vm8, %v3031_v61  ;;  %v6251_v61 = vpop.eup %6250  ;;  %v4645_v6 = vadd.f32 %v10889_v60, %v10885_v54 }
 0x71d   : > { %v6253_v44 = vpop.eup %6252  ;;  %v10893_v39 = vsel %vm13015_vm9, %v6251_v61, 0.0  ;;  %v13022_v61 = vld [vmem:[#allocation38_spill] sm:$0xff] }
 0x71e   : > { %v10897_v0 = vsel %vm13017_vm5, %v6253_v44, 0.0  ;;  %v13023_v44 = vld [vmem:[#allocation85_spill] sm:$0xff] }
 0x71f   : > { %v4630_v41 = vadd.f32 %v10897_v0, %v10893_v39  ;;  %v5899_v37 = vpack.i.bf16 %v13023_v44, %v13022_v61  ;;  %v4320_v61 = vadd.f32 %v10074_v63, %v10819_v58  ;;  %v4516_v44 = vsub.f32 %v10621_v49, %v10721_v57 }
 0x720   : > { %v3023_v4 = vpop.permute.xlu1 %3022 }
 0x721   : > { %3060 = vst.msk [vmem:[%s9257_s1 + $0x58] sm:$0xff] %vm3048_vm8, %v3023_v4  ;;  %v4379_v4 = vmul.f32 0.2, %v4315_v3  ;;  %vm4352_vm7 = vcmp.ge.f32.partialorder %v4320_v61, 0.0 }
 0x723   : > { %v4411_v34 = vsel %vm4347_vm14, %v4315_v3, %v4379_v4  ;;  %vm13038_vm14 = vcmp.ne.f32.partialorder %v12943_v59, 0.0 }
 0x728   : > { %v3029_v46 = vpop.permute.xlu1 %3028 }
 0x729   : > { %3063 = vst.msk [vmem:[%s9257_s1 + $0x70] sm:$0xff] %vm3048_vm8, %v3029_v46  ;;  %4643 = vadd.xlane.f32.xlu0 %v4642_v36  ;;  %v10905_v36 = vsel %vm13019_vm6, %v4410_v9, -1e+30  ;;  %v10909_v46 = vsel %vm13021_vm15, %v4411_v34, -1e+30  ;;  %v13026_v34 = vld [vmem:[#allocation20_spill] sm:$0xff] }
 0x72a   : > { %v4484_v43 = vmax.f32 %v10905_v36, %v10909_v46  ;;  %vm13039_vm6 = vcmp.ne.f32.partialorder %v12986_v18, 0.0  ;;  %vm13040_vm15 = vcmp.ne.f32.partialorder %v12988_v40, 0.0 }
 0x731   : > { %4646 = vadd.xlane.f32.xlu0 %v4645_v6  ;;  %v13024_v6 = vld [vmem:[#allocation32_spill] sm:$0xff] }
 0x733   : > { %4631 = vadd.xlane.f32.xlu2 %v4630_v41  ;;  %v13025_v41 = vld [vmem:[#allocation77_spill] sm:$0xff] }
 0x734   : > { %v5909_v9 = vpack.i.bf16 %v13025_v41, %v13024_v6  ;;  %v13030_v6 = vld [vmem:[#allocation15_spill] sm:$0xff]  ;;  %v4562_v41 = vmul.f32 1.442695, %v4516_v44 }
 0x73b   : > { %4485 = vmax.xlane.f32.xlu1 %v4484_v43  ;;  %v5934_v43 = vpack.i.bf16 %v13027_v52, %v13026_v34  ;;  %v4517_v52 = vsub.f32 %v10625_v10, %v10721_v57  ;;  %v5891_v34 = vpop.permute.xlu0 %5890 }
 0x74b   : > { %5900 = vrot.lane.b32.xlu2 %v5899_v37, %s6549_s23 }
 0x74d   : > { %v4474_v51 = vpop.xlane.xlu2 %4473 }
 0x74e   : > { %v4514_v3 = vsub.f32 %v10737_v21, %v4474_v51  ;;  %v4515_v42 = vsub.f32 %v10741_v14, %v4474_v51  ;;  %v4321_v21 = vadd.f32 %v10077_v7, %v10819_v58 }
 0x750   : > { %v4558_v26 = vmul.f32 1.442695, %v4514_v3  ;;  %v4560_v4 = vmul.f32 1.442695, %v4515_v42  ;;  %v4384_v3 = vmul.f32 0.2, %v4320_v61 }
 0x751   : > { %v4385_v42 = vmul.f32 0.2, %v4321_v21  ;;  %vm4353_vm1 = vcmp.ge.f32.partialorder %v4321_v21, 0.0 }
 0x752   : > { %6254 = vpow2.f32 %v4558_v26 }
 0x753   : > { %6256 = vpow2.f32 %v4560_v4  ;;  %5910 = vrot.lane.b32.xlu2 %v5909_v9, %s6549_s23  ;;  %v13029_v4 = vld [vmem:[#allocation17_spill] sm:$0xff]  ;;  %v4564_v9 = vmul.f32 1.442695, %v4517_v52  ;;  %v4480_v10 = vpop.xlane.xlu1 %4479 }
 0x754   : > { %5935 = vrot.lane.b32.xlu1 %v5934_v43, %s6549_s23  ;;  %v5939_v58 = vpack.i.bf16 %v13030_v6, %v13029_v4  ;;  %v4416_v43 = vsel %vm4352_vm7, %v4320_v61, %v4384_v3  ;;  %6258 = vpow2.f32 %v4562_v41  ;;  %v4518_v44 = vsub.f32 %v10751_v62, %v4480_v10  ;;  %v13033_v52 = vld [vmem:[#allocation173_spill] sm:$0xff]  ;;  %v13035_v6 = vld [vmem:[#allocation174_spill] sm:$0xff] }
 0x755   : > { %v3015_v14 = vpop.permute.xlu2 %3014  ;;  %6260 = vpow2.f32 %v4564_v9  ;;  %v4519_v48 = vsub.f32 %v10755_v47, %v4480_v10  ;;  %vm13034_vm9 = vcmp.ne.f32.partialorder %v13033_v52, 0.0  ;;  %vm13036_vm5 = vcmp.ne.f32.partialorder %v13035_v6, 0.0 }
 0x756   : > { %3056 = vst.msk [vmem:[%s9257_s1 + $0x38] sm:$0xff] %vm3048_vm8, %v3015_v14  ;;  %v4417_v14 = vsel %vm4353_vm1, %v4321_v21, %v4385_v42  ;;  %v10951_v4 = vsel %vm13034_vm9, %v4416_v43, -1e+30  ;;  %v5878_v61 = vunpack.i.h.bf16 %v10844_v27  ;;  %v4566_v62 = vmul.f32 1.442695, %v4518_v44 }
 0x757   : > { %v5882_v47 = vunpack.i.l.bf16 %v10832_v12  ;;  %v4568_v21 = vmul.f32 1.442695, %v4519_v48  ;;  %v5883_v41 = vunpack.i.h.bf16 %v10832_v12  ;;  %v5887_v10 = vunpack.i.l.bf16 %v10840_v2 }
 0x758   : > { %v6255_v37 = vpop.eup %6254  ;;  %v5888_v43 = vunpack.i.h.bf16 %v10840_v2  ;;  %6262 = vpow2.f32 %v4566_v62  ;;  %v5892_v12 = vunpack.i.l.bf16 %v5891_v34 }
 0x759   : > { %v6257_v51 = vpop.eup %6256  ;;  %v10936_v26 = vsel %vm13028_vm12, %v6255_v37, 0.0  ;;  %6264 = vpow2.f32 %v4568_v21  ;;  %vm13043_vm12 = vcmp.ne.f32.partialorder %v12883_v20, 0.0 }
 0x75a   : > { %v10942_v49 = vsel %vm13031_vm4, %v6257_v51, 0.0  ;;  %v6259_v42 = vpop.eup %6258 }
 0x75b   : > { %13032 = vst [vmem:[#allocation79_spill] sm:$0xff] %v10942_v49  ;;  %v4648_v57 = vadd.f32 %v10942_v49, %v10936_v26  ;;  %v10955_v49 = vsel %vm13036_vm5, %v4417_v14, -1e+30  ;;  %v6261_v9 = vpop.eup %6260  ;;  %v5896_v14 = vpop.permute.xlu0 %5895  ;;  %v10973_v44 = vsel %vm13037_vm13, %v6259_v42, 0.0  ;;  %v4319_v42 = vadd.f32 %v10077_v7, %v10795_v31 }
 0x75c   : > { %5940 = vrot.lane.b32.xlu1 %v5939_v58, %s6549_s23  ;;  %v5877_v58 = vunpack.i.l.bf16 %v10844_v27  ;;  %v4493_v3 = vmax.f32 %v10951_v4, %v10955_v49  ;;  %v4508_v27 = vsub.f32 %v10317_v30, %v10714_v13  ;;  %v5893_v30 = vunpack.i.h.bf16 %v5891_v34 }
 0x75d   : > { %4649 = vadd.xlane.f32.xlu0 %v4648_v57  ;;  %v5871_v15 = vpop.permute.xlu2 %5870  ;;  %v5897_v2 = vunpack.i.l.bf16 %v5896_v14  ;;  %vm4351_vm1 = vcmp.ge.f32.partialorder %v4319_v42, 0.0 }
 0x75e   : > { %v5873_v37 = vunpack.i.h.bf16 %v5871_v15  ;;  %v5872_v51 = vunpack.i.l.bf16 %v5871_v15  ;;  %v4509_v15 = vsub.f32 %v10321_v25, %v10714_v13  ;;  %v10977_v25 = vsel %vm13038_vm14, %v6261_v9, 0.0  ;;  %v6263_v34 = vpop.eup %6262 }
 0x75f   : > { %v4546_v13 = vmul.f32 1.442695, %v4508_v27  ;;  %v4651_v23 = vadd.f32 %v10977_v25, %v10973_v44  ;;  %v6265_v59 = vpop.eup %6264  ;;  %v4383_v9 = vmul.f32 0.2, %v4319_v42 }
 0x760   : > { %5094 = vmatpush.msra.mxu0 %v5872_v51  ;;  %5535 = vmatpush.msrb.mxu1 %v5872_v51  ;;  %v4548_v48 = vmul.f32 1.442695, %v4509_v15 }
 0x761   : > { %5161 = vmatpush.msrb.mxu2 %v5873_v37  ;;  %5553 = vmatpush.msrb.mxu3 %v5873_v37  ;;  %v5898_v37 = vunpack.i.h.bf16 %v5896_v14  ;;  %6266 = vpow2.f32 %v4546_v13  ;;  %v11017_v14 = vpop.xlane.xlu1 %4637 }
 0x762   : > { %5095 = vmatpush.msra.mxu0 %v5877_v58  ;;  %5536 = vmatpush.msrb.mxu1 %v5877_v58  ;;  %6268 = vpow2.f32 %v4548_v48  ;;  %v10985_v58 = vsel %vm13039_vm6, %v6263_v34, 0.0  ;;  %v11110_v53 = vmax.f32 %v11017_v14, 1e-30 }
 0x763   : > { %5162 = vmatpush.msrb.mxu2 %v5878_v61  ;;  %5554 = vmatpush.msrb.mxu3 %v5878_v61  ;;  %v10989_v61 = vsel %vm13040_vm15, %v6265_v59, 0.0  ;;  %v4316_v59 = vadd.f32 %v10074_v63, %v10771_v28  ;;  %vm13052_vm15 = vcmp.ne.f32.partialorder %v13018_v8, 0.0 }
 0x764   : > { %5096 = vmatpush.msra.mxu0 %v5882_v47  ;;  %5537 = vmatpush.msrb.mxu1 %v5882_v47  ;;  %13041 = vst [vmem:[#allocation175_spill] sm:$0xff] %v10989_v61  ;;  %v4654_v47 = vadd.f32 %v10989_v61, %v10985_v58 }
 0x765   : > { %4494 = vmax.xlane.f32.xlu0 %v4493_v3  ;;  %v3021_v57 = vpop.permute.xlu2 %3020  ;;  %5163 = vmatpush.msrb.mxu2 %v5883_v41  ;;  %v4318_v3 = vadd.f32 %v10074_v63, %v10795_v31  ;;  %vm4348_vm4 = vcmp.ge.f32.partialorder %v4316_v59, 0.0 }
 0x766   : > { %3059 = vst.msk [vmem:[%s9257_s1 + $0x50] sm:$0xff] %vm3048_vm8, %v3021_v57  ;;  %5555 = vmatpush.msrb.mxu3 %v5883_v41  ;;  %5097 = vmatpush.msra.mxu0 %v5887_v10  ;;  %v4415_v57 = vsel %vm4351_vm1, %v4319_v42, %v4383_v9 }
 0x767   : > { %5538 = vmatpush.msrb.mxu1 %v5887_v10  ;;  %5164 = vmatpush.msrb.mxu2 %v5888_v43  ;;  %v6267_v62 = vpop.eup %6266  ;;  %v4382_v41 = vmul.f32 0.2, %v4318_v3  ;;  %vm4350_vm7 = vcmp.ge.f32.partialorder %v4318_v3, 0.0 }
 0x768   : > { %5556 = vmatpush.msrb.mxu3 %v5888_v43  ;;  %5098 = vmatpush.msra.mxu0 %v5892_v12  ;;  %v6269_v21 = vpop.eup %6268  ;;  %v11013_v43 = vsel %vm874_vm3, %v4415_v57, -1e+30 }
 0x769   : > { %5539 = vmatpush.msrb.mxu1 %v5892_v12  ;;  %5165 = vmatpush.msrb.mxu2 %v5893_v30  ;;  %v11003_v40 = vsel %vm13043_vm12, %v6269_v21, 0.0  ;;  %v4414_v10 = vsel %vm4350_vm7, %v4318_v3, %v4382_v41  ;;  %v13046_v12 = vld [vmem:[#allocation22_spill] sm:$0xff] }
 0x76a   : > { %5557 = vmatpush.msrb.mxu3 %v5893_v30  ;;  %5099 = vmatpush.msra.mxu0 %v5897_v2  ;;  %v11009_v31 = vsel %vm873_vm2, %v4414_v10, -1e+30  ;;  %v13047_v30 = vld [vmem:[#allocation62_spill] sm:$0xff] }
 0x76b   : > { %5540 = vmatpush.msrb.mxu1 %v5897_v2  ;;  %5166 = vmatpush.msrb.mxu2 %v5898_v37  ;;  %v4490_v20 = vmax.f32 %v11009_v31, %v11013_v43  ;;  %v5929_v13 = vpack.i.bf16 %v13047_v30, %v13046_v12  ;;  %v11021_v2 = vpop.xlane.xlu1 %4482 }
 0x76c   : > { %5558 = vmatpush.msrb.mxu3 %v5898_v37  ;;  %v11024_v37 = vpop.xlane.xlu0 %4634 }
 0x76d   : > { %4652 = vadd.xlane.f32.xlu0 %v4651_v23  ;;  %v3027_v51 = vpop.permute.xlu2 %3026  ;;  %v11113_v55 = vmax.f32 %v11024_v37, 1e-30 }
 0x76e   : > { %3062 = vst.msk [vmem:[%s9257_s1 + $0x68] sm:$0xff] %vm3048_vm8, %v3027_v51  ;;  %vm13042_vm8 = vcmp.ne.f32.partialorder %v12881_v22, 0.0 }
 0x76f   : > { %v10999_v18 = vsel %vm13042_vm8, %v6267_v62, 0.0  ;;  %v4317_v62 = vadd.f32 %v10077_v7, %v10771_v28  ;;  %v4322_v28 = vadd.f32 %v10074_v63, %v10836_v50  ;;  %vm13054_vm8 = vcmp.ne.f32.partialorder %v13020_v29, 0.0 }
 0x770   : > { %v4639_v27 = vadd.f32 %v11003_v40, %v10999_v18 }
 0x771   : > { %v4381_v10 = vmul.f32 0.2, %v4317_v62  ;;  %vm4349_vm9 = vcmp.ge.f32.partialorder %v4317_v62, 0.0  ;;  %vm4354_vm14 = vcmp.ge.f32.partialorder %v4322_v28, 0.0 }
 0x774   : > { %v11030_v51 = vpop.permute.xlu0 %5920 }
 0x775   : > { %4655 = vadd.xlane.f32.xlu0 %v4654_v47 }
 0x77b   : > { %v5906_v48 = vpop.permute.xlu1 %5905 }
 0x77c   : > { %4640 = vadd.xlane.f32.xlu2 %v4639_v27  ;;  %v4380_v27 = vmul.f32 0.2, %v4316_v59  ;;  %v5907_v57 = vunpack.i.l.bf16 %v5906_v48  ;;  %v5908_v30 = vunpack.i.h.bf16 %v5906_v48 }
 0x783   : > { %v5916_v23 = vpop.permute.xlu1 %5915 }
 0x784   : > { %v5917_v61 = vunpack.i.l.bf16 %v5916_v23 }
 0x786   : > { %4491 = vmax.xlane.f32.xlu1 %v4490_v20 }
 0x794   : > { %5930 = vrot.lane.b32.xlu2 %v5929_v13, %s6549_s23  ;;  %v4413_v13 = vsel %vm4349_vm9, %v4317_v62, %v4381_v10 }
 0x7a6   : > { %v11026_v34 = vpop.xlane.xlu2 %4631 }
 0x7ae   : > { %v5901_v47 = vpop.permute.xlu2 %5900  ;;  %v4486_v21 = vpop.xlane.xlu1 %4485 }
 0x7af   : > { %v5903_v3 = vunpack.i.h.bf16 %v5901_v47  ;;  %v5902_v42 = vunpack.i.l.bf16 %v5901_v47  ;;  %v4522_v41 = vsub.f32 %v10905_v36, %v4486_v21  ;;  %v4523_v9 = vsub.f32 %v10909_v46, %v4486_v21  ;;  %v5926_v47 = vpop.permute.xlu0 %5925 }
 0x7b0   : > { %v4323_v36 = vadd.f32 %v10077_v7, %v10836_v50  ;;  %v4412_v46 = vsel %vm4348_vm4, %v4316_v59, %v4380_v27  ;;  %v5918_v59 = vunpack.i.h.bf16 %v5916_v23  ;;  %v5922_v27 = vunpack.i.l.bf16 %v11030_v51 }
 0x7b1   : > { %v4574_v20 = vmul.f32 1.442695, %v4522_v41  ;;  %v4576_v12 = vmul.f32 1.442695, %v4523_v9  ;;  %5100 = vmatpush.msra.mxu0 %v5902_v42  ;;  %5541 = vmatpush.msrb.mxu1 %v5902_v42  ;;  %v4386_v41 = vmul.f32 0.2, %v4322_v28 }
 0x7b2   : > { %5167 = vmatpush.msrb.mxu2 %v5903_v3  ;;  %5559 = vmatpush.msrb.mxu3 %v5903_v3  ;;  %v13048_v3 = vld [vmem:[#allocation168_spill] sm:$0xff]  ;;  %vm4355_vm6 = vcmp.ge.f32.partialorder %v4323_v36, 0.0 }
 0x7b3   : > { %6270 = vpow2.f32 %v4574_v20  ;;  %5101 = vmatpush.msra.mxu0 %v5907_v57  ;;  %5542 = vmatpush.msrb.mxu1 %v5907_v57  ;;  %vm13049_vm5 = vcmp.ne.f32.partialorder %v13048_v3, 0.0  ;;  %v13050_v57 = vld [vmem:[#allocation169_spill] sm:$0xff]  ;;  %v4418_v23 = vsel %vm4354_vm14, %v4322_v28, %v4386_v41  ;;  %v4521_v28 = vsub.f32 %v10803_v1, %v11021_v2 }
 0x7b4   : > { %6272 = vpow2.f32 %v4576_v12  ;;  %5168 = vmatpush.msrb.mxu2 %v5908_v30  ;;  %5560 = vmatpush.msrb.mxu3 %v5908_v30  ;;  %v11042_v9 = vsel %vm13049_vm5, %v4412_v46, -1e+30  ;;  %vm13051_vm13 = vcmp.ne.f32.partialorder %v13050_v57, 0.0  ;;  %v4387_v30 = vmul.f32 0.2, %v4323_v36 }
 0x7b5   : > { %v11046_v20 = vsel %vm13051_vm13, %v4413_v13, -1e+30  ;;  %v5923_v13 = vunpack.i.h.bf16 %v11030_v51  ;;  %v4520_v51 = vsub.f32 %v10799_v17, %v11021_v2  ;;  %v5928_v41 = vunpack.i.h.bf16 %v5926_v47 }
 0x7b6   : > { %v5911_v21 = vpop.permute.xlu2 %5910  ;;  %v4487_v10 = vmax.f32 %v11042_v9, %v11046_v20  ;;  %v4419_v29 = vsel %vm4355_vm6, %v4323_v36, %v4387_v30  ;;  %v4572_v2 = vmul.f32 1.442695, %v4521_v28 }
 0x7b7   : > { %v5913_v42 = vunpack.i.h.bf16 %v5911_v21  ;;  %v5912_v48 = vunpack.i.l.bf16 %v5911_v21  ;;  %v4324_v21 = vadd.f32 %v10074_v63, %v10851_v45  ;;  %v13056_v63 = vld [vmem:[#allocation177_spill] sm:$0xff]  ;;  %v4570_v1 = vmul.f32 1.442695, %v4520_v51 }
 0x7b8   : > { %vm13057_vm12 = vcmp.ne.f32.partialorder %v13056_v63, 0.0 }
 0x7b9   : > { %v6271_v12 = vpop.eup %6270  ;;  %5102 = vmatpush.msra.mxu0 %v5912_v48  ;;  %5543 = vmatpush.msrb.mxu1 %v5912_v48  ;;  %v11070_v48 = vpop.xlane.xlu0 %4643  ;;  %v4388_v36 = vmul.f32 0.2, %v4324_v21  ;;  %vm4356_vm1 = vcmp.ge.f32.partialorder %v4324_v21, 0.0  ;;  %6274 = vpow2.f32 %v4570_v1 }
 0x7ba   : > { %v6273_v50 = vpop.eup %6272  ;;  %5169 = vmatpush.msrb.mxu2 %v5913_v42  ;;  %5561 = vmatpush.msrb.mxu3 %v5913_v42  ;;  %v11050_v62 = vsel %vm13052_vm15, %v6271_v12, 0.0  ;;  %v5927_v42 = vunpack.i.l.bf16 %v5926_v47  ;;  %6276 = vpow2.f32 %v4572_v2 }
 0x7bb   : > { %13053 = vst [vmem:[#allocation176_spill] sm:$0xff] %v11050_v62  ;;  %5103 = vmatpush.msra.mxu0 %v5917_v61  ;;  %5544 = vmatpush.msrb.mxu1 %v5917_v61  ;;  %v11057_v46 = vsel %vm13054_vm8, %v6273_v50, 0.0  ;;  %v4325_v61 = vadd.f32 %v10077_v7, %v10851_v45  ;;  %v11076_v7 = vsel %vm13057_vm12, %v4418_v23, -1e+30  ;;  %v13058_v45 = vld [vmem:[#allocation178_spill] sm:$0xff]  ;;  %v4420_v30 = vsel %vm4356_vm1, %v4324_v21, %v4388_v36 }
 0x7bc   : > { %13055 = vst [vmem:[#allocation220_spill] sm:$0xff] %v11057_v46  ;;  %5170 = vmatpush.msrb.mxu2 %v5918_v59  ;;  %5562 = vmatpush.msrb.mxu3 %v5918_v59  ;;  %v4660_v8 = vadd.f32 %v11057_v46, %v11050_v62  ;;  %vm13059_vm7 = vcmp.ne.f32.partialorder %v13058_v45, 0.0  ;;  %vm4731_vm8 = vweird.f32 %v11110_v53  ;;  %vm4715_vm12 = vweird.f32 %v11113_v55 }
 0x7bd   : > { %4488 = vmax.xlane.f32.xlu2 %v4487_v10  ;;  %5104 = vmatpush.msra.mxu0 %v5922_v27  ;;  %v11080_v17 = vsel %vm13059_vm7, %v4419_v29, -1e+30  ;;  %v4389_v12 = vmul.f32 0.2, %v4325_v61  ;;  %vm4357_vm4 = vcmp.ge.f32.partialorder %v4325_v61, 0.0 }
 0x7be   : > { %5545 = vmatpush.msrb.mxu1 %v5922_v27  ;;  %5171 = vmatpush.msrb.mxu2 %v5923_v13  ;;  %v4496_v47 = vmax.f32 %v11076_v7, %v11080_v17  ;;  %v13060_v27 = vld [vmem:[#allocation190_spill] sm:$0xff] }
 0x7bf   : > { %5563 = vmatpush.msrb.mxu3 %v5923_v13  ;;  %4661 = vadd.xlane.f32.xlu0 %v4660_v8  ;;  %v4421_v50 = vsel %vm4357_vm4, %v4325_v61, %v4389_v12  ;;  %vm13061_vm9 = vcmp.ne.f32.partialorder %v13060_v27, 0.0  ;;  %v13062_v13 = vld [vmem:[#allocation191_spill] sm:$0xff]  ;;  %v6275_v29 = vpop.eup %6274 }
 0x7c0   : > { %5105 = vmatpush.msra.mxu0 %v5927_v42  ;;  %5546 = vmatpush.msrb.mxu1 %v5927_v42  ;;  %v11086_v10 = vsel %vm13061_vm9, %v4420_v30, -1e+30  ;;  %vm13063_vm5 = vcmp.ne.f32.partialorder %v13062_v13, 0.0  ;;  %v6277_v51 = vpop.eup %6276  ;;  %v11098_v21 = vsel %vm867_vm11, %v6275_v29, 0.0  ;;  %vm13069_vm11 = vcmp.ne.f32.partialorder %v13035_v6, 0.0 }
 0x7c1   : > { %5172 = vmatpush.msrb.mxu2 %v5928_v41  ;;  %5564 = vmatpush.msrb.mxu3 %v5928_v41  ;;  %v4647_v59 = vpop.xlane.xlu0 %4646  ;;  %v11090_v8 = vsel %vm13063_vm5, %v4421_v50, -1e+30  ;;  %13065 = vst [vmem:[#allocation98_spill] sm:$0xff] %v11098_v21  ;;  %v11102_v61 = vsel %vm868_vm10, %v6277_v51, 0.0  ;;  %v4678_v41 = vmax.f32 %v11026_v34, 1e-30 }
 0x7c2   : > { %13064 = vst [vmem:[#allocation97_spill] sm:$0xff] %v11090_v8  ;;  %v4499_v23 = vmax.f32 %v11086_v10, %v11090_v8  ;;  %v4657_v28 = vadd.f32 %v11102_v61, %v11098_v21  ;;  %vm13067_vm10 = vcmp.ne.f32.partialorder %v13033_v52, 0.0 }
 0x7c3   : > { %13066 = vst [vmem:[#allocation125_spill] sm:$0xff] %v11102_v61  ;;  %6278 = vrcp.f32 %v4678_v41  ;;  %vm4699_vm14 = vweird.f32 %v4678_v41  ;;  %v13077_v61 = vld [vmem:[#allocation24_spill] sm:$0xff] }
 0x7c5   : > { %4497 = vmax.xlane.f32.xlu2 %v4496_v47 }
 0x7c6   : > { %v11129_v29 = vpop.permute.xlu1 %5935 }
 0x7c7   : > { %v5938_v63 = vunpack.i.h.bf16 %v11129_v29 }
 0x7c9   : > { %v6279_v30 = vpop.eup %6278 }
 0x7ca   : > { %vm4700_vm13 = vweird.f32 %v6279_v30 }
 0x7cb   : > { %vm11153_vm15 = vmor %vm4699_vm14, %vm4700_vm13 }
 0x7cd   : > { %4500 = vmax.xlane.f32.xlu2 %v4499_v23  ;;  %v4695_v23 = vmul.f32 %v6279_v30, %v4678_v41 }
 0x7d0   : > { %v11094_v42 = vpop.xlane.xlu0 %4649 }
 0x7d5   : > { %4658 = vadd.xlane.f32.xlu2 %v4657_v28  ;;  %v4696_v28 = vsub.f32 1.0, %v4695_v23  ;;  %v4705_v23 = vand.u32 2147483648, %v4678_v41 }
 0x7d8   : > { %v4495_v36 = vpop.xlane.xlu0 %4494 }
 0x7d9   : > { %v4528_v12 = vsub.f32 %v10951_v4, %v4495_v36  ;;  %v4529_v1 = vsub.f32 %v10955_v49, %v4495_v36 }
 0x7db   : > { %v4586_v2 = vmul.f32 1.442695, %v4528_v12  ;;  %v4588_v47 = vmul.f32 1.442695, %v4529_v1  ;;  %v11138_v12 = vmax.f32 %v11070_v48, 1e-30  ;;  %v4697_v1 = vmul.f32 %v6279_v30, %v4696_v28 }
 0x7dc   : > { %v4719_v28 = vand.u32 2147483647, %v11113_v55 }
 0x7dd   : > { %6280 = vpow2.f32 %v4586_v2  ;;  %v4767_v22 = vand.u32 2147483647, %v11138_v12 }
 0x7de   : > { %6282 = vpow2.f32 %v4588_v47  ;;  %vm11174_vm9 = vcmp.eq.f32.partialorder %v4719_v28, 8.507059e+37 }
 0x7df   : > { %6284 = vrcp.f32 %v11110_v53 }
 0x7e0   : > { %6286 = vrcp.f32 %v11113_v55 }
 0x7e1   : > { %6288 = vrcp.f32 %v11138_v12 }
 0x7e3   : > { %v6281_v34 = vpop.eup %6280 }
 0x7e4   : > { %v6283_v4 = vpop.eup %6282  ;;  %v11119_v49 = vsel %vm13067_vm10, %v6281_v34, 0.0 }
 0x7e5   : > { %13068 = vst [vmem:[#allocation180_spill] sm:$0xff] %v11119_v49  ;;  %v11123_v14 = vsel %vm13069_vm11, %v6283_v4, 0.0  ;;  %v11125_v50 = vpop.eup %6284 }
 0x7e6   : > { %13070 = vst [vmem:[#allocation153_spill] sm:$0xff] %v11123_v14  ;;  %v4669_v37 = vadd.f32 %v11123_v14, %v11119_v49  ;;  %v11131_v51 = vpop.eup %6286  ;;  %v4727_v52 = vmul.f32 %v11125_v50, %v11110_v53  ;;  %v4698_v14 = vadd.f32 %v6279_v30, %v4697_v1  ;;  %vm4732_vm6 = vweird.f32 %v11125_v50 }
 0x7e7   : > { %v4711_v6 = vmul.f32 %v11131_v51, %v11113_v55  ;;  %v4706_v49 = vor.u32 1.1754944e-38, %v4705_v23  ;;  %vm4716_vm7 = vweird.f32 %v11131_v51  ;;  %vm11169_vm1 = vmor %vm4731_vm8, %vm4732_vm6  ;;  %vm4768_vm8 = vcmp.eq.f32.partialorder %v4767_v22, 8.507059e+37 }
 0x7e8   : > { %4670 = vadd.xlane.f32.xlu0 %v4669_v37  ;;  %v4728_v36 = vsub.f32 1.0, %v4727_v52  ;;  %v11144_v37 = vpop.permute.xlu1 %5940  ;;  %v4703_v52 = vand.u32 2147483647, %v4678_v41  ;;  %v4702_v1 = vsel %vm11153_vm15, %v6279_v30, %v4698_v14  ;;  %v4721_v41 = vand.u32 2147483648, %v11113_v55  ;;  %vm11203_vm10 = vmor %vm4715_vm12, %vm4716_vm7 }
 0x7e9   : > { %v4712_v47 = vsub.f32 1.0, %v4711_v6 }
 0x7ea   : > { %v4729_v4 = vmul.f32 %v11125_v50, %v4728_v36  ;;  %v11151_v36 = vmax.f32 %v4647_v59, 1e-30  ;;  %v4737_v59 = vand.u32 2147483648, %v11110_v53  ;;  %vm4704_vm4 = vcmp.eq.f32.partialorder %v4703_v52, 8.507059e+37 }
 0x7eb   : > { %v4713_v48 = vmul.f32 %v11131_v51, %v4712_v47  ;;  %v11162_v47 = vpop.eup %6288  ;;  %v4707_v13 = vsel %vm4704_vm4, %v4706_v49, %v4702_v1  ;;  %v5937_v52 = vunpack.i.l.bf16 %v11129_v29  ;;  %v4722_v49 = vor.u32 1.1754944e-38, %v4721_v41 }
 0x7ec   : > { %v4730_v6 = vadd.f32 %v11125_v50, %v4729_v4  ;;  %v4735_v4 = vand.u32 2147483647, %v11110_v53  ;;  %v4738_v45 = vor.u32 1.1754944e-38, %v4737_v59  ;;  %v5942_v1 = vunpack.i.l.bf16 %v11144_v37  ;;  %v4653_v59 = vpop.xlane.xlu0 %4652 }
 0x7ed   : > { %vm4764_vm15 = vweird.f32 %v11162_v47  ;;  %vm4779_vm7 = vweird.f32 %v11151_v36 }
 0x7ee   : > { %v4734_v27 = vsel %vm11169_vm1, %v11125_v50, %v4730_v6  ;;  %vm4736_vm5 = vcmp.eq.f32.partialorder %v4735_v4, 8.507059e+37 }
 0x7ef   : > { %v4641_v2 = vpop.xlane.xlu2 %4640  ;;  %v11197_v29 = vsel %vm4736_vm5, %v4738_v45, %v4734_v27  ;;  %v5943_v27 = vunpack.i.h.bf16 %v11144_v37 }
 0x7f0   : > { %v11140_v34 = vmax.f32 %v4641_v2, 1e-30  ;;  %v4714_v2 = vadd.f32 %v11131_v51, %v4713_v48 }
 0x7f2   : > { %6290 = vrcp.f32 %v11140_v34  ;;  %vm4747_vm13 = vweird.f32 %v11140_v34 }
 0x7f3   : > { %6292 = vrcp.f32 %v11151_v36 }
 0x7f7   : > { %v5931_v46 = vpop.permute.xlu2 %5930 }
 0x7f8   : > { %v11167_v62 = vpop.eup %6290  ;;  %v5933_v30 = vunpack.i.h.bf16 %v5931_v46  ;;  %v5932_v14 = vunpack.i.l.bf16 %v5931_v46  ;;  %v4759_v46 = vmul.f32 %v11162_v47, %v11138_v12 }
 0x7f9   : > { %v4743_v53 = vmul.f32 %v11167_v62, %v11140_v34  ;;  %v4492_v23 = vpop.xlane.xlu1 %4491  ;;  %vm4748_vm11 = vweird.f32 %v11167_v62  ;;  %v11212_v45 = vpop.eup %6292 }
 0x7fa   : > { %v4526_v48 = vsub.f32 %v11009_v31, %v4492_v23  ;;  %v4527_v28 = vsub.f32 %v11013_v43, %v4492_v23  ;;  %5106 = vmatpush.msra.mxu0 %v5932_v14  ;;  %5547 = vmatpush.msrb.mxu1 %v5932_v14  ;;  %v4709_v31 = vmul.f32 %v4707_v13, %v10897_v0  ;;  %v11194_v43 = vmax.f32 %v11094_v42, 1e-30  ;;  %vm4749_vm14 = vmor %vm4747_vm13, %vm4748_vm11 }
 0x7fb   : > { %v4744_v8 = vsub.f32 1.0, %v4743_v53  ;;  %5173 = vmatpush.msrb.mxu2 %v5933_v30  ;;  %5565 = vmatpush.msrb.mxu3 %v5933_v30  ;;  %v4760_v0 = vsub.f32 1.0, %v4759_v46  ;;  %v4718_v42 = vsel %vm11203_vm10, %v11131_v51, %v4714_v2  ;;  %v4740_v30 = vmul.f32 %v11197_v29, %v10777_v16  ;;  %v13080_v2 = vld [vmem:[#allocation33_spill] sm:$0xff] }
 0x7fc   : > { %5046 = vrot.lane.b32.xlu0 %v13077_v61, %s6549_s23  ;;  %v4582_v50 = vmul.f32 1.442695, %v4526_v48  ;;  %v4584_v6 = vmul.f32 1.442695, %v4527_v28  ;;  %5107 = vmatpush.msra.mxu0 %v5937_v52  ;;  %v4751_v51 = vand.u32 2147483647, %v11140_v34  ;;  %v4723_v37 = vsel %vm11174_vm9, %v4722_v49, %v4718_v42 }
 0x7fd   : > { %5548 = vmatpush.msrb.mxu1 %v5937_v52  ;;  %5174 = vmatpush.msrb.mxu2 %v5938_v63  ;;  %v4745_v4 = vmul.f32 %v11167_v62, %v4744_v8  ;;  %v4753_v8 = vand.u32 2147483648, %v11140_v34  ;;  %v4725_v21 = vmul.f32 %v4723_v37, %v10765_v19  ;;  %v11234_v23 = vmax.f32 %v4653_v59, 1e-30 }
 0x7fe   : > { %6294 = vpow2.f32 %v4582_v50  ;;  %5566 = vmatpush.msrb.mxu3 %v5938_v63  ;;  %5175 = vmatmul.f32.vlgmr.msrb.gmra.mxu2 %v4709_v31  ;;  %v4708_v63 = vmul.f32 %v4707_v13, %v10893_v39  ;;  %v4775_v39 = vmul.f32 %v11212_v45, %v11151_v36  ;;  %v4761_v13 = vmul.f32 %v11162_v47, %v4760_v0  ;;  %v4656_v31 = vpop.xlane.xlu0 %4655 }
 0x7ff   : > { %6296 = vpow2.f32 %v4584_v6  ;;  %5108 = vmatpush.msra.mxu0 %v5942_v1  ;;  %5549 = vmatpush.msrb.mxu1 %v5942_v1  ;;  %v4746_v55 = vadd.f32 %v11167_v62, %v4745_v4  ;;  %v4754_v34 = vor.u32 1.1754944e-38, %v4753_v8  ;;  %vm4752_vm6 = vcmp.eq.f32.partialorder %v4751_v51, 8.507059e+37  ;;  %v13082_v51 = vld [vmem:[#allocation55_spill] sm:$0xff] }
 0x800   : > { %6298 = vrcp.f32 %v11194_v43  ;;  %v4776_v48 = vsub.f32 1.0, %v4775_v39  ;;  %v4762_v28 = vadd.f32 %v11162_v47, %v4761_v13  ;;  %v4769_v61 = vand.u32 2147483648, %v11138_v12 }
 0x801   : > { %5109 = vmatpush.msra.mxu0 %v5943_v27  ;;  %5550 = vmatpush.msrb.mxu1 %v5943_v27  ;;  %v4750_v16 = vsel %vm4749_vm14, %v11167_v62, %v4746_v55  ;;  %v4724_v15 = vmul.f32 %v4723_v37, %v10761_v11  ;;  %6300 = vrcp.f32 %v11234_v23  ;;  %v11261_v4 = vmax.f32 %v4656_v31, 1e-30  ;;  %v13085_v31 = vld [vmem:[#allocation86_spill] sm:$0xff] }
 0x802   : > { %5110 = vmatmul.f32.vlgmr.msra.gmra.mxu0 %v4708_v63  ;;  %5116 = vmatmul.f32.vlgmr.msrb.gmra.mxu1 %v4740_v30  ;;  %v4755_v52 = vsel %vm4752_vm6, %v4754_v34, %v4750_v16  ;;  %v4777_v41 = vmul.f32 %v11212_v45, %v4776_v48  ;;  %v4770_v11 = vor.u32 1.1754944e-38, %v4769_v61  ;;  %vm4780_vm12 = vweird.f32 %v11212_v45  ;;  %v13084_v61 = vld [vmem:[#allocation157_spill] sm:$0xff] }
 0x803   : > { %v4756_v50 = vmul.f32 %v4755_v52, %v10999_v18  ;;  %v13081_v18 = vld [vmem:[#allocation40_spill] sm:$0xff]  ;;  %v4785_v55 = vand.u32 2147483648, %v11151_v36  ;;  %v4783_v59 = vand.u32 2147483647, %v11151_v36  ;;  %6302 = vrcp.f32 %v11261_v4  ;;  %vm4781_vm1 = vmor %vm4779_vm7, %vm4780_vm12 }
 0x804   : > { %v6295_v14 = vpop.eup %6294  ;;  %5052 = vrot.lane.b32.xlu0 %v13080_v2, %s6549_s23  ;;  %v4778_v27 = vadd.f32 %v11212_v45, %v4777_v41  ;;  %v4757_v37 = vmul.f32 %v4755_v52, %v11003_v40  ;;  %v4801_v13 = vand.u32 2147483648, %v11194_v43  ;;  %vm4795_vm5 = vweird.f32 %v11194_v43 }
 0x805   : > { %v6297_v53 = vpop.eup %6296  ;;  %v11238_v46 = vsel %vm873_vm2, %v6295_v14, 0.0  ;;  %vm4763_vm2 = vweird.f32 %v11138_v12  ;;  %v4741_v12 = vmul.f32 %v11197_v29, %v10781_v5  ;;  %v4786_v30 = vor.u32 1.1754944e-38, %v4785_v55 }
 0x806   : > { %5178 = vmatmul.f32.gmra.mxu2 %v4725_v21  ;;  %v11242_v62 = vsel %vm874_vm3, %v6297_v53, 0.0  ;;  %v6299_v19 = vpop.eup %6298  ;;  %vm4765_vm3 = vmor %vm4763_vm2, %vm4764_vm15  ;;  %v4782_v29 = vsel %vm4781_vm1, %v11212_v45, %v4778_v27  ;;  %vm4784_vm4 = vcmp.eq.f32.partialorder %v4783_v59, 8.507059e+37  ;;  %v4799_v45 = vand.u32 2147483647, %v11194_v43  ;;  %v13083_v53 = vld [vmem:[#allocation70_spill] sm:$0xff] }
 0x807   : > { %v4666_v49 = vadd.f32 %v11242_v62, %v11238_v46  ;;  %v4791_v6 = vmul.f32 %v6299_v19, %v11194_v43  ;;  %v4766_v1 = vsel %vm4765_vm3, %v11162_v47, %v4762_v28  ;;  %v6301_v47 = vpop.eup %6300  ;;  %vm4796_vm9 = vweird.f32 %v6299_v19  ;;  %v13088_v27 = vld [vmem:[#allocation142_spill] sm:$0xff] }
 0x808   : > { %v4771_v0 = vsel %vm4768_vm8, %v4770_v11, %v4766_v1  ;;  %v4807_v5 = vmul.f32 %v6301_v47, %v11234_v23  ;;  %vm4797_vm10 = vmor %vm4795_vm5, %vm4796_vm9  ;;  %v4802_v21 = vor.u32 1.1754944e-38, %v4801_v13  ;;  %vm4800_vm11 = vcmp.eq.f32.partialorder %v4799_v45, 8.507059e+37  ;;  %v13086_v11 = vld [vmem:[#allocation201_spill] sm:$0xff] }
 0x809   : > { %4667 = vadd.xlane.f32.xlu2 %v4666_v49  ;;  %v4792_v42 = vsub.f32 1.0, %v4791_v6  ;;  %v4772_v8 = vmul.f32 %v4771_v0, %v10869_v56  ;;  %v4787_v56 = vsel %vm4784_vm4, %v4786_v30, %v4782_v29  ;;  %v6303_v16 = vpop.eup %6302  ;;  %v4773_v52 = vmul.f32 %v4771_v0, %v10873_v38  ;;  %v13090_v30 = vld [vmem:[#allocation193_spill] sm:$0xff] }
 0x80a   : > { %5113 = vmatmul.f32.gmra.mxu0 %v4724_v15  ;;  %5119 = vmatmul.f32.gmra.mxu1 %v4756_v50  ;;  %v4808_v39 = vsub.f32 1.0, %v4807_v5  ;;  %v4788_v34 = vmul.f32 %v4787_v56, %v10885_v54  ;;  %v4823_v14 = vmul.f32 %v6303_v16, %v11261_v4  ;;  %vm4812_vm13 = vweird.f32 %v6301_v47 }
 0x80b   : > { %v4793_v63 = vmul.f32 %v6299_v19, %v4792_v42  ;;  %v4817_v43 = vand.u32 2147483648, %v11234_v23  ;;  %vm4811_vm14 = vweird.f32 %v11234_v23  ;;  %v3964_v15 = vadd.f32 %v10540_v35, %v13084_v61 }
 0x80c   : > { %5056 = vrot.lane.b32.xlu0 %v13081_v18, %s6549_s23  ;;  %v4809_v2 = vmul.f32 %v6301_v47, %v4808_v39  ;;  %v4824_v28 = vsub.f32 1.0, %v4823_v14  ;;  %vm4813_vm6 = vmor %vm4811_vm14, %vm4812_vm13  ;;  %v4789_v1 = vmul.f32 %v4787_v56, %v10889_v60  ;;  %vm4828_vm2 = vweird.f32 %v6303_v16  ;;  %v13087_v60 = vld [vmem:[#allocation122_spill] sm:$0xff] }
 0x80d   : > { %v4794_v36 = vadd.f32 %v6299_v19, %v4793_v63  ;;  %v4029_v22 = vadd.f32 %v10565_v24, %v3964_v15  ;;  %v4818_v6 = vor.u32 1.1754944e-38, %v4817_v43  ;;  %v4833_v35 = vand.u32 2147483648, %v11261_v4 }
 0x80e   : > { %5181 = vmatmul.f32.gmra.mxu2 %v4741_v12  ;;  %v4810_v54 = vadd.f32 %v6301_v47, %v4809_v2  ;;  %v4825_v50 = vmul.f32 %v6303_v16, %v4824_v28  ;;  %v3973_v18 = vadd.f32 %v10573_v33, %v13086_v11  ;;  %vm4827_vm3 = vweird.f32 %v11261_v4  ;;  %v13089_v33 = vld [vmem:[#allocation79_spill] sm:$0xff] }
 0x80f   : > { %v4798_v40 = vsel %vm4797_vm10, %v6299_v19, %v4794_v36  ;;  %v4815_v19 = vand.u32 2147483647, %v11234_v23  ;;  %v4069_v23 = vmul.f32 %v10497_v32, %v4029_v22  ;;  %v4831_v12 = vand.u32 2147483647, %v11261_v4  ;;  %vm4829_vm8 = vmor %vm4827_vm3, %vm4828_vm2 }
 0x810   : > { %v4803_v48 = vsel %vm4800_vm11, %v4802_v21, %v4798_v40  ;;  %v4814_v38 = vsel %vm4813_vm6, %v6301_v47, %v4810_v54  ;;  %v4826_v41 = vadd.f32 %v6303_v16, %v4825_v50  ;;  %v4038_v0 = vadd.f32 %v13087_v60, %v3973_v18  ;;  %v3990_v40 = vpop.f32.mrf.mxu0 }
 0x811   : > { %v4804_v49 = vmul.f32 %v4803_v48, %v10936_v26  ;;  %vm4816_vm15 = vcmp.eq.f32.partialorder %v4815_v19, 8.507059e+37  ;;  %v4088_v47 = vadd.f32 %v13088_v27, %v4069_v23  ;;  %v4834_v55 = vor.u32 1.1754944e-38, %v4833_v35  ;;  %v13097_v23 = vld [vmem:[#allocation97_spill] sm:$0xff] }
 0x812   : > { %5122 = vmatmul.f32.gmra.mxu1 %v4772_v8  ;;  %v4819_v26 = vsel %vm4816_vm15, %v4818_v6, %v4814_v38  ;;  %v4830_v42 = vsel %vm4829_vm8, %v6303_v16, %v4826_v41  ;;  %v6334_v8 = vld [vmem:[%s11712_s8] ss:$0 sm:$0xff]  ;;  %vm4832_vm12 = vcmp.eq.f32.partialorder %v4831_v12, 8.507059e+37  ;;  %v4072_v4 = vmul.f32 %v10497_v32, %v4038_v0  ;;  %v13098_v0 = vld [vmem:[#allocation177_spill] sm:$0xff] }
 0x813   : > { %v4820_v24 = vmul.f32 %v4819_v26, %v10973_v44  ;;  %v4805_v44 = vmul.f32 %v4803_v48, %v13089_v33  ;;  %v4835_v59 = vsel %vm4832_vm12, %v4834_v55, %v4830_v42  ;;  %v4120_v5 = vmul.f32 0.002, %v4088_v47  ;;  %v13092_v16 = vld [vmem:[#allocation171_spill] sm:$0xff] }
 0x814   : > { %5062 = vrot.lane.b32.xlu0 %v13082_v51, %s6549_s23  ;;  %v4836_v63 = vmul.f32 %v4835_v59, %v10985_v58  ;;  %vm4104_vm7 = vcmp.ge.f32.partialorder %v4088_v47, 0.0  ;;  %v13091_v51 = vld [vmem:[#allocation189_spill] sm:$0xff]  ;;  %v4091_v36 = vadd.f32 %v13088_v27, %v4072_v4  ;;  %v4821_v58 = vmul.f32 %v4819_v26, %v10977_v25  ;;  %v13094_v38 = vld [vmem:[#allocation175_spill] sm:$0xff] }
 0x815   : > { %v4136_v14 = vsel %vm4104_vm7, %v4088_v47, %v4120_v5  ;;  %v4837_v50 = vmul.f32 %v4835_v59, %v13094_v38  ;;  %vm13095_vm4 = vcmp.ne.f32.partialorder %v13048_v3, 0.0  ;;  %vm13096_vm9 = vcmp.ne.f32.partialorder %v13050_v57, 0.0  ;;  %v13100_v47 = vld [vmem:[#allocation178_spill] sm:$0xff]  ;;  %v13109_v38 = vld [vmem:[#allocation176_spill] sm:$0xff] }
 0x816   : > { %5184 = vmatmul.f32.gmra.mxu2 %v4757_v37  ;;  %v3982_v37 = vadd.f32 %v13091_v51, %v13090_v30  ;;  %v4123_v2 = vmul.f32 0.002, %v4091_v36  ;;  %vm4107_vm1 = vcmp.ge.f32.partialorder %v4091_v36, 0.0  ;;  %vm13099_vm10 = vcmp.ne.f32.partialorder %v13098_v0, 0.0  ;;  %v13104_v51 = vld [vmem:[#allocation191_spill] sm:$0xff] }
 0x817   : > { %vm13101_vm11 = vcmp.ne.f32.partialorder %v13100_v47, 0.0  ;;  %vm13105_vm6 = vcmp.ne.f32.partialorder %v13104_v51, 0.0  ;;  %v13120_v47 = vld [vmem:[#allocation165_spill] sm:$0xff] }
 0x818   : > { %v4047_v13 = vadd.f32 %v13092_v16, %v3982_v37  ;;  %v4139_v54 = vsel %vm4107_vm1, %v4091_v36, %v4123_v2  ;;  %v13123_v51 = vld [vmem:[#allocation121_spill] sm:$0xff] }
 0x81a   : > { %5125 = vmatmul.f32.gmra.mxu1 %v4788_v34 }
 0x81c   : > { %5068 = vrot.lane.b32.xlu0 %v13083_v53, %s6549_s23  ;;  %v13093_v53 = vld [vmem:[#allocation61_spill] sm:$0xff] }
 0x81e   : > { %5187 = vmatmul.f32.gmra.mxu2 %v4773_v52  ;;  %v3991_v52 = vadd.f32 %v3990_v40, %v13093_v53 }
 0x822   : > { %5128 = vmatmul.f32.gmra.mxu1 %v4804_v49 }
 0x824   : > { %5074 = vrot.lane.b32.xlu0 %v13085_v31, %s6549_s23 }
 0x826   : > { %5190 = vmatmul.f32.gmra.mxu2 %v4789_v1 }
 0x82a   : > { %5131 = vmatmul.f32.gmra.mxu1 %v4820_v24 }
 0x82c   : > { %5243 = vrot.lane.b32.xlu0 %v6334_v8, %s6549_s23 }
 0x82e   : > { %5193 = vmatmul.f32.gmra.mxu2 %v4805_v44 }
 0x830   : > { %v4489_v29 = vpop.xlane.xlu2 %4488 }
 0x831   : > { %v4524_v56 = vsub.f32 %v11042_v9, %v4489_v29  ;;  %v4525_v39 = vsub.f32 %v11046_v20, %v4489_v29  ;;  %v4075_v9 = vmul.f32 %v10497_v32, %v4047_v13  ;;  %v4055_v20 = vpop.f32.mrf.mxu3 }
 0x832   : > { %5134 = vmatmul.f32.gmra.mxu1 %v4836_v63  ;;  %v4056_v49 = vadd.f32 %v4055_v20, %v3991_v52  ;;  %v4662_v6 = vpop.xlane.xlu0 %4661  ;;  %v13102_v63 = vld [vmem:[#allocation190_spill] sm:$0xff] }
 0x833   : > { %v4578_v34 = vmul.f32 1.442695, %v4524_v56  ;;  %v4580_v45 = vmul.f32 1.442695, %v4525_v39  ;;  %v4094_v25 = vadd.f32 %v13088_v27, %v4075_v9  ;;  %v11335_v26 = vmax.f32 %v4662_v6, 1e-30 }
 0x834   : > { %4173 = vrot.lane.b32.xlu0 %v4136_v14, %s6547_s27  ;;  %v4078_v31 = vmul.f32 %v10497_v32, %v4056_v49  ;;  %vm13103_vm14 = vcmp.ne.f32.partialorder %v13102_v63, 0.0  ;;  %v13110_v6 = vld [vmem:[#allocation220_spill] sm:$0xff] }
 0x835   : > { %6304 = vpow2.f32 %v4578_v34  ;;  %v4126_v1 = vmul.f32 0.002, %v4094_v25  ;;  %vm4110_vm5 = vcmp.ge.f32.partialorder %v4094_v25, 0.0  ;;  %v4865_v52 = vand.u32 2147483648, %v11335_v26 }
 0x836   : > { %6306 = vpow2.f32 %v4580_v45  ;;  %5196 = vmatmul.f32.gmra.mxu2 %v4821_v58  ;;  %v4097_v11 = vadd.f32 %v13088_v27, %v4078_v31  ;;  %vm4859_vm7 = vweird.f32 %v11335_v26 }
 0x837   : > { %v4142_v12 = vsel %vm4110_vm5, %v4094_v25, %v4126_v1  ;;  %v4863_v25 = vand.u32 2147483647, %v11335_v26  ;;  %v13111_v1 = vld [vmem:[#allocation28_spill] sm:$0xff] }
 0x838   : > { %v4498_v21 = vpop.xlane.xlu2 %4497  ;;  %v4129_v8 = vmul.f32 0.002, %v4097_v11  ;;  %vm4113_vm13 = vcmp.ge.f32.partialorder %v4097_v11, 0.0 }
 0x839   : > { %v4530_v48 = vsub.f32 %v11076_v7, %v4498_v21  ;;  %v4531_v28 = vsub.f32 %v11080_v17, %v4498_v21 }
 0x83a   : > { %v4145_v5 = vsel %vm4113_vm13, %v4097_v11, %v4129_v8  ;;  %v13116_v11 = vld [vmem:[#allocation65_spill] sm:$0xff] }
 0x83b   : > { %v6305_v43 = vpop.eup %6304  ;;  %v4590_v19 = vmul.f32 1.442695, %v4530_v48  ;;  %v4592_v61 = vmul.f32 1.442695, %v4531_v28  ;;  %v13106_v48 = vld [vmem:[#allocation98_spill] sm:$0xff] }
 0x83c   : > { %v6307_v15 = vpop.eup %6306  ;;  %4179 = vrot.lane.b32.xlu0 %v4139_v54, %s6547_s27  ;;  %v11326_v22 = vsel %vm13095_vm4, %v6305_v43, 0.0  ;;  %v13107_v54 = vld [vmem:[#allocation125_spill] sm:$0xff]  ;;  %vm4864_vm4 = vcmp.eq.f32.partialorder %v4863_v25, 8.507059e+37 }
 0x83d   : > { %6308 = vpow2.f32 %v4590_v19  ;;  %v11330_v7 = vsel %vm13096_vm9, %v6307_v15, 0.0  ;;  %v4866_v19 = vor.u32 1.1754944e-38, %v4865_v52 }
 0x83e   : > { %6310 = vpow2.f32 %v4592_v61  ;;  %5199 = vmatmul.f32.gmra.mxu2 %v4837_v50  ;;  %v4663_v17 = vadd.f32 %v11330_v7, %v11326_v22  ;;  %v13108_v61 = vld [vmem:[#allocation26_spill] sm:$0xff] }
 0x83f   : > { %6312 = vrcp.f32 %v11335_v26 }
 0x840   : > { %4664 = vadd.xlane.f32.xlu1 %v4663_v17  ;;  %v4501_v3 = vpop.xlane.xlu2 %4500 }
 0x841   : > { %v4532_v41 = vsub.f32 %v11086_v10, %v4501_v3  ;;  %v4533_v35 = vsub.f32 %v13097_v23, %v4501_v3  ;;  %v13114_v23 = vld [vmem:[#allocation50_spill] sm:$0xff] }
 0x843   : > { %v6309_v57 = vpop.eup %6308  ;;  %v4594_v18 = vmul.f32 1.442695, %v4532_v41  ;;  %v4596_v24 = vmul.f32 1.442695, %v4533_v35  ;;  %v13113_v41 = vld [vmem:[#allocation44_spill] sm:$0xff] }
 0x844   : > { %v6311_v60 = vpop.eup %6310  ;;  %4185 = vrot.lane.b32.xlu0 %v4142_v12, %s6547_s27  ;;  %v11344_v42 = vsel %vm13099_vm10, %v6309_v57, 0.0  ;;  %v13115_v57 = vld [vmem:[#allocation58_spill] sm:$0xff] }
 0x845   : > { %6314 = vpow2.f32 %v4594_v18  ;;  %v11348_v10 = vsel %vm13101_vm11, %v6311_v60, 0.0  ;;  %v6313_v59 = vpop.eup %6312  ;;  %v13118_v12 = vld [vmem:[#allocation82_spill] sm:$0xff] }
 0x846   : > { %6316 = vpow2.f32 %v4596_v24  ;;  %v4672_v55 = vadd.f32 %v11348_v10, %v11344_v42  ;;  %v4855_v56 = vmul.f32 %v6313_v59, %v11335_v26  ;;  %vm4860_vm12 = vweird.f32 %v6313_v59  ;;  %v13112_v26 = vld [vmem:[#allocation36_spill] sm:$0xff]  ;;  %v13119_v60 = vld [vmem:[#allocation150_spill] sm:$0xff] }
 0x847   : > { %vm4861_vm1 = vmor %vm4859_vm7, %vm4860_vm12  ;;  %v13117_v24 = vld [vmem:[#allocation76_spill] sm:$0xff]  ;;  %v4067_v0 = vmul.f32 %v10497_v32, %v13119_v60 }
 0x848   : > { %4673 = vadd.xlane.f32.xlu1 %v4672_v55  ;;  %v4659_v33 = vpop.xlane.xlu2 %4658  ;;  %v4856_v16 = vsub.f32 1.0, %v4855_v56  ;;  %v4068_v55 = vmul.f32 %v10497_v32, %v13120_v47  ;;  %v4071_v56 = vmul.f32 %v10497_v32, %v13123_v51 }
 0x849   : > { %v4687_v44 = vmax.f32 %v4659_v33, 1e-30  ;;  %v4086_v33 = vadd.f32 %v13088_v27, %v4067_v0 }
 0x84a   : > { %v4857_v40 = vmul.f32 %v6313_v59, %v4856_v16 }
 0x84b   : > { %v6315_v4 = vpop.eup %6314  ;;  %6318 = vrcp.f32 %v4687_v44  ;;  %v4849_v45 = vand.u32 2147483648, %v4687_v44  ;;  %v4847_v58 = vand.u32 2147483647, %v4687_v44  ;;  %vm4843_vm2 = vweird.f32 %v4687_v44 }
 0x84c   : > { %v6317_v29 = vpop.eup %6316  ;;  %4191 = vrot.lane.b32.xlu0 %v4145_v5, %s6547_s27  ;;  %v11355_v30 = vsel %vm13103_vm14, %v6315_v4, 0.0  ;;  %v4858_v21 = vadd.f32 %v6313_v59, %v4857_v40  ;;  %v6335_v4 = vld [vmem:[%s11711_s7] ss:$0 sm:$0xff]  ;;  %v13122_v5 = vld [vmem:[#allocation166_spill] sm:$0xff]  ;;  %v4118_v63 = vmul.f32 0.002, %v4086_v33 }
 0x84d   : > { %v11359_v37 = vsel %vm13105_vm6, %v6317_v29, 0.0  ;;  %v4850_v9 = vor.u32 1.1754944e-38, %v4849_v45  ;;  %vm4848_vm8 = vcmp.eq.f32.partialorder %v4847_v58, 8.507059e+37  ;;  %v4070_v29 = vmul.f32 %v10497_v32, %v13122_v5 }
 0x84e   : > { %v4675_v39 = vadd.f32 %v11359_v37, %v11355_v30  ;;  %v4862_v49 = vsel %vm4861_vm1, %v6313_v59, %v4858_v21  ;;  %v13121_v59 = vld [vmem:[#allocation91_spill] sm:$0xff]  ;;  %vm4102_vm9 = vcmp.ge.f32.partialorder %v4086_v33, 0.0 }
 0x84f   : > { %v4867_v15 = vsel %vm4864_vm4, %v4866_v19, %v4862_v49  ;;  %v4089_v16 = vadd.f32 %v13088_v27, %v4070_v29  ;;  %v13127_v19 = vld [vmem:[#allocation199_spill] sm:$0xff] }
 0x850   : > { %4676 = vadd.xlane.f32.xlu2 %v4675_v39  ;;  %v4868_v50 = vmul.f32 %v4867_v15, %v13109_v38  ;;  %v4869_v17 = vmul.f32 %v4867_v15, %v13110_v6  ;;  %v4058_v15 = vpop.f32.mrf.mxu3 }
 0x851   : > { %v6319_v36 = vpop.eup %6318  ;;  %v4121_v40 = vmul.f32 0.002, %v4089_v16  ;;  %vm4105_vm10 = vcmp.ge.f32.partialorder %v4089_v16, 0.0 }
 0x852   : > { %v4839_v13 = vmul.f32 %v6319_v36, %v4687_v44  ;;  %vm4844_vm15 = vweird.f32 %v6319_v36  ;;  %v4087_v44 = vadd.f32 %v13088_v27, %v4068_v55 }
 0x853   : > { %vm4845_vm3 = vmor %vm4843_vm2, %vm4844_vm15  ;;  %v4137_v52 = vsel %vm4105_vm10, %v4089_v16, %v4121_v40 }
 0x854   : > { %v4840_v34 = vsub.f32 1.0, %v4839_v13  ;;  %v4119_v39 = vmul.f32 0.002, %v4087_v44  ;;  %vm4103_vm5 = vcmp.ge.f32.partialorder %v4087_v44, 0.0  ;;  %v4134_v13 = vsel %vm4102_vm9, %v4086_v33, %v4118_v63 }
 0x856   : > { %v4841_v14 = vmul.f32 %v6319_v36, %v4840_v34  ;;  %v4090_v34 = vadd.f32 %v13088_v27, %v4071_v56  ;;  %v4135_v45 = vsel %vm4103_vm5, %v4087_v44, %v4119_v39 }
 0x858   : > { %v4842_v2 = vadd.f32 %v6319_v36, %v4841_v14  ;;  %v13124_v14 = vld [vmem:[#allocation188_spill] sm:$0xff]  ;;  %vm4106_vm11 = vcmp.ge.f32.partialorder %v4090_v34, 0.0 }
 0x859   : > { %v4073_v58 = vmul.f32 %v10497_v32, %v13124_v14 }
 0x85a   : > { %v4846_v20 = vsel %vm4845_vm3, %v6319_v36, %v4842_v2  ;;  %v13125_v2 = vld [vmem:[#allocation49_spill] sm:$0xff] }
 0x85b   : > { %v4851_v53 = vsel %vm4848_vm8, %v4850_v9, %v4846_v20  ;;  %v11373_v31 = vpop.xlane.xlu0 %4670  ;;  %v4074_v9 = vmul.f32 %v10497_v32, %v13125_v2  ;;  %v4122_v20 = vmul.f32 0.002, %v4090_v34 }
 0x85c   : > { %v4852_v28 = vmul.f32 %v4851_v53, %v13106_v48  ;;  %v4853_v43 = vmul.f32 %v4851_v53, %v13107_v54  ;;  %v4092_v53 = vadd.f32 %v13088_v27, %v4073_v58  ;;  %v3993_v54 = vpop.f32.mrf.mxu0  ;;  %v11459_v29 = vmax.f32 %v11373_v31, 1e-30 }
 0x85d   : > { %v4093_v48 = vadd.f32 %v13088_v27, %v4074_v9 }
 0x85e   : > { %5137 = vmatmul.f32.gmra.mxu1 %v4852_v28  ;;  %5202 = vmatmul.f32.gmra.mxu2 %v4853_v43  ;;  %v4138_v28 = vsel %vm4106_vm11, %v4090_v34, %v4122_v20  ;;  %v13126_v43 = vld [vmem:[#allocation198_spill] sm:$0xff]  ;;  %v4124_v49 = vmul.f32 0.002, %v4092_v53  ;;  %vm4108_vm13 = vcmp.ge.f32.partialorder %v4092_v53, 0.0 }
 0x85f   : > { %v4076_v25 = vmul.f32 %v10497_v32, %v13126_v43  ;;  %v4125_v38 = vmul.f32 0.002, %v4093_v48  ;;  %vm4109_vm14 = vcmp.ge.f32.partialorder %v4093_v48, 0.0 }
 0x861   : > { %5048 = vrot.lane.b32.xlu1 %v13108_v61, %s6549_s23  ;;  %v4077_v61 = vmul.f32 %v10497_v32, %v13127_v19 }
 0x866   : > { %5140 = vmatmul.f32.gmra.mxu1 %v4868_v50  ;;  %5205 = vmatmul.f32.gmra.mxu2 %v4869_v17  ;;  %v13128_v50 = vld [vmem:[#allocation183_spill] sm:$0xff] }
 0x867   : > { %v3994_v6 = vadd.f32 %v3993_v54, %v13128_v50 }
 0x868   : > { %5050 = vrot.lane.b32.xlu2 %v13111_v1, %s6549_s23  ;;  %v4095_v1 = vadd.f32 %v13088_v27, %v4076_v25 }
 0x869   : > { %5054 = vrot.lane.b32.xlu1 %v13112_v26, %s6549_s23  ;;  %v4059_v26 = vadd.f32 %v4058_v15, %v3994_v6 }
 0x86a   : > { %vm4111_vm6 = vcmp.ge.f32.partialorder %v4095_v1, 0.0 }
 0x86e   : > { %v11379_v3 = vpop.permute.xlu0 %5046 }
 0x870   : > { %5058 = vrot.lane.b32.xlu2 %v13113_v41, %s6549_s23  ;;  %v4140_v41 = vsel %vm4108_vm13, %v4092_v53, %v4124_v49 }
 0x871   : > { %5060 = vrot.lane.b32.xlu1 %v13114_v23, %s6549_s23  ;;  %v4096_v23 = vadd.f32 %v13088_v27, %v4077_v61 }
 0x873   : > { %vm4112_vm15 = vcmp.ge.f32.partialorder %v4096_v23, 0.0 }
 0x876   : > { %v11385_v35 = vpop.permute.xlu0 %5052 }
 0x878   : > { %5064 = vrot.lane.b32.xlu2 %v13115_v57, %s6549_s23  ;;  %v4141_v57 = vsel %vm4109_vm14, %v4093_v48, %v4125_v38 }
 0x879   : > { %5066 = vrot.lane.b32.xlu1 %v13116_v11, %s6549_s23  ;;  %v4079_v11 = vmul.f32 %v10497_v32, %v4059_v26 }
 0x87b   : > { %v4098_v0 = vadd.f32 %v13088_v27, %v4079_v11 }
 0x87c   : > { %v4668_v44 = vpop.xlane.xlu2 %4667 }
 0x87d   : > { %v4130_v32 = vmul.f32 0.002, %v4098_v0  ;;  %vm4114_vm2 = vcmp.ge.f32.partialorder %v4098_v0, 0.0 }
 0x87e   : > { %v11391_v18 = vpop.permute.xlu0 %5056 }
 0x87f   : > { %v4146_v27 = vsel %vm4114_vm2, %v4098_v0, %v4130_v32  ;;  %v11466_v16 = vpop.f32.mrf.mxu1 }
 0x880   : > { %5070 = vrot.lane.b32.xlu2 %v13117_v24, %s6549_s23  ;;  %v4127_v24 = vmul.f32 0.002, %v4095_v1 }
 0x881   : > { %5072 = vrot.lane.b32.xlu1 %v13118_v12, %s6549_s23  ;;  %v4128_v12 = vmul.f32 0.002, %v4096_v23  ;;  %v11446_v55 = vpop.f32.mrf.mxu2 }
 0x882   : > { %v4143_v47 = vsel %vm4111_vm6, %v4095_v1, %v4127_v24 }
 0x883   : > { %v4144_v33 = vsel %vm4112_vm15, %v4096_v23, %v4128_v12  ;;  %vm4907_vm15 = vweird.f32 %v11459_v29 }
 0x886   : > { %v11401_v8 = vpop.permute.xlu0 %5062 }
 0x887   : > { %v11479_v43 = vpop.f32.mrf.mxu1 }
 0x888   : > { %5076 = vrot.lane.b32.xlu2 %v13121_v59, %s6549_s23  ;;  %v11450_v59 = vmax.f32 %v4668_v44, 1e-30 }
 0x889   : > { %5224 = vrot.lane.b32.xlu1 %v6335_v4, %s6549_s23  ;;  %v11456_v5 = vpop.f32.mrf.mxu2 }
 0x88a   : > { %6320 = vrcp.f32 %v11450_v59  ;;  %vm4891_vm4 = vweird.f32 %v11450_v59  ;;  %v4897_v23 = vand.u32 2147483648, %v11450_v59  ;;  %v4895_v12 = vand.u32 2147483647, %v11450_v59 }
 0x88c   : > { %vm4896_vm11 = vcmp.eq.f32.partialorder %v4895_v12, 8.507059e+37 }
 0x88e   : > { %v11415_v36 = vpop.permute.xlu0 %5068 }
 0x890   : > { %4169 = vrot.lane.b32.xlu2 %v4134_v13, %s6547_s27  ;;  %v11461_v56 = vpop.eup %6320 }
 0x891   : > { %4171 = vrot.lane.b32.xlu1 %v4135_v45, %s6547_s27  ;;  %v4887_v13 = vmul.f32 %v11461_v56, %v11450_v59  ;;  %v11470_v31 = vpop.f32.mrf.mxu2  ;;  %vm4892_vm7 = vweird.f32 %v11461_v56 }
 0x892   : > { %vm11495_vm9 = vmor %vm4891_vm4, %vm4892_vm7 }
 0x893   : > { %v4888_v40 = vsub.f32 1.0, %v4887_v13 }
 0x895   : > { %v4889_v54 = vmul.f32 %v11461_v56, %v4888_v40 }
 0x896   : > { %v11425_v21 = vpop.permute.xlu0 %5074 }
 0x897   : > { %v4890_v1 = vadd.f32 %v11461_v56, %v4889_v54 }
 0x898   : > { %4175 = vrot.lane.b32.xlu2 %v4137_v52, %s6547_s27 }
 0x899   : > { %4177 = vrot.lane.b32.xlu1 %v4138_v28, %s6547_s27  ;;  %v11485_v26 = vpop.f32.mrf.mxu2 }
 0x89e   : > { %v11436_v17 = vpop.permute.xlu0 %5243 }
 0x8a0   : > { %4181 = vrot.lane.b32.xlu2 %v4140_v41, %s6547_s27 }
 0x8a1   : > { %4183 = vrot.lane.b32.xlu1 %v4141_v57, %s6547_s27 }
 0x8a6   : > { %v4174_v60 = vpop.permute.xlu0 %4173 }
 0x8a7   : > { %4217 = vst.msk [vmem:[%s9257_s1 + $0x28] sm:$0xff] %vm4211_vm0, %v4174_v60 }
 0x8a8   : > { %4187 = vrot.lane.b32.xlu2 %v4143_v47, %s6547_s27 }
 0x8a9   : > { %4189 = vrot.lane.b32.xlu1 %v4144_v33, %s6547_s27 }
 0x8ae   : > { %v4180_v4 = vpop.permute.xlu0 %4179 }
 0x8af   : > { %4220 = vst.msk [vmem:[%s9257_s1 + $0x40] sm:$0xff] %vm4211_vm0, %v4180_v4 }
 0x8b0   : > { %4193 = vrot.lane.b32.xlu2 %v4146_v27, %s6547_s27  ;;  %v11505_v27 = vpop.f32.mrf.mxu1  ;;  %s5403_s27 = scalar_lea.hbm %s11713_s9, %s5526_s28 }
 0x8b1   : > { %s5406_s21 = sshll.u32 %s5403_s27, 4  ;;  %s5407_s21 = int_to_ptr.hbm [resolvable:$true] %s5406_s21 }
 0x8b2   : > { %s6470_s0 = sshra.s32 %s5407_s21, 4  ;;  %s6471_s0 = int_to_ptr.hbm [resolvable:$true] %s6470_s0 }
 0x8b3   : > { %v4665_v63 = vpop.xlane.xlu1 %4664  ;;  %s6472_s23 = scalar_lea.hbm %s6471_s0, 128  ;;  %p6477_p11 = scmp.lt.s32.totalorder %s6471_s0, %s11713_s9 }
 0x8b4   : > { %v4689_v51 = vmax.f32 %v4665_v63, 1e-30  ;;  %p6473_p1 = scmp.ne.s32.totalorder %s6471_s0, %s6472_s23  ;;  %p6478_p9 = scmp.lt.s32.totalorder %s6476_s22, %s6472_s23 }
 0x8b6   : > { %6322 = vrcp.f32 %v4689_v51  ;;  %v4186_v39 = vpop.permute.xlu0 %4185  ;;  %v4881_v52 = vand.u32 2147483648, %v4689_v51  ;;  %v4879_v28 = vand.u32 2147483647, %v4689_v51  ;;  %vm4875_vm8 = vweird.f32 %v4689_v51  ;;  %p6474_p4 = pnand %p6473_p1, %p6688_p7  ;;  %p6479_p2 = por %p6478_p9, %p6477_p11 }
 0x8b7   : > { %6324 = vrcp.f32 %v11459_v29  ;;  %4223 = vst.msk [vmem:[%s9257_s1 + $0x58] sm:$0xff] %vm4211_vm0, %v4186_v39 }
 0x8b8   : > { %v4882_v38 = vor.u32 1.1754944e-38, %v4881_v52  ;;  %vm4880_vm1 = vcmp.eq.f32.partialorder %v4879_v28, 8.507059e+37  ;;  %p6475_p8 = pneg %p6474_p4 }
 0x8ba   : > { %p6480_p10 = pnand %p6479_p2, %p6475_p8 }
 0x8bb   : > { %v4674_v34 = vpop.xlane.xlu1 %4673 }
 0x8bc   : > { %v6323_v45 = vpop.eup %6322  ;;  %v4692_v14 = vmax.f32 %v4674_v34, 1e-30 }
 0x8bd   : > { %v11472_v58 = vpop.eup %6324  ;;  %v4871_v2 = vmul.f32 %v6323_v45, %v4689_v51  ;;  %vm4876_vm3 = vweird.f32 %v6323_v45 }
 0x8be   : > { %6326 = vrcp.f32 %v4692_v14  ;;  %v4192_v9 = vpop.permute.xlu0 %4191  ;;  %v4903_v53 = vmul.f32 %v11472_v58, %v11459_v29  ;;  %vm4877_vm12 = vmor %vm4875_vm8, %vm4876_vm3  ;;  %v4929_v60 = vand.u32 2147483648, %v4692_v14  ;;  %v4927_v44 = vand.u32 2147483647, %v4692_v14 }
 0x8bf   : > { %v4872_v20 = vsub.f32 1.0, %v4871_v2  ;;  %4226 = vst.msk [vmem:[%s9257_s1 + $0x70] sm:$0xff] %vm4211_vm0, %v4192_v9  ;;  %vm4923_vm10 = vweird.f32 %v4692_v14  ;;  %vm4908_vm14 = vweird.f32 %v11472_v58 }
 0x8c0   : > { %v4904_v61 = vsub.f32 1.0, %v4903_v53  ;;  %v4930_v63 = vor.u32 1.1754944e-38, %v4929_v60  ;;  %vm4928_vm6 = vcmp.eq.f32.partialorder %v4927_v44, 8.507059e+37  ;;  %v11516_v53 = vpop.f32.mrf.mxu2  ;;  %vm11518_vm2 = vmor %vm4907_vm15, %vm4908_vm14 }
 0x8c1   : > { %v4873_v48 = vmul.f32 %v6323_v45, %v4872_v20 }
 0x8c2   : > { %v4905_v47 = vmul.f32 %v11472_v58, %v4904_v61 }
 0x8c3   : > { %v4677_v25 = vpop.xlane.xlu2 %4676  ;;  %v4874_v49 = vadd.f32 %v6323_v45, %v4873_v48 }
 0x8c4   : > { %v6327_v19 = vpop.eup %6326  ;;  %v11481_v15 = vmax.f32 %v4677_v25, 1e-30 }
 0x8c5   : > { %v4919_v50 = vmul.f32 %v6327_v19, %v4692_v14  ;;  %v4878_v6 = vsel %vm4877_vm12, %v6323_v45, %v4874_v49  ;;  %vm4924_vm5 = vweird.f32 %v6327_v19  ;;  %v4911_v45 = vand.u32 2147483647, %v11459_v29 }
 0x8c6   : > { %6328 = vrcp.f32 %v11481_v15  ;;  %v4883_v41 = vsel %vm4880_vm1, %v4882_v38, %v4878_v6  ;;  %vm4925_vm13 = vmor %vm4923_vm10, %vm4924_vm5  ;;  %v4913_v14 = vand.u32 2147483648, %v11459_v29  ;;  %v4945_v48 = vand.u32 2147483648, %v11481_v15  ;;  %v5126_v38 = vpop.f32.mrf.mxu1 }
 0x8c7   : > { %v4920_v57 = vsub.f32 1.0, %v4919_v50  ;;  %v4884_v11 = vmul.f32 %v4883_v41, %v11326_v22  ;;  %v4885_v24 = vmul.f32 %v4883_v41, %v11330_v7  ;;  %v4894_v22 = vsel %vm11495_vm9, %v11461_v56, %v4890_v1  ;;  %v13133_v50 = vld [vmem:[#allocation180_spill] sm:$0xff]  ;;  %v13134_v1 = vld [vmem:[#allocation153_spill] sm:$0xff] }
 0x8c8   : > { %v4898_v7 = vor.u32 1.1754944e-38, %v4897_v23  ;;  %v4906_v56 = vadd.f32 %v11472_v58, %v4905_v47  ;;  %vm4912_vm8 = vcmp.eq.f32.partialorder %v4911_v45, 8.507059e+37  ;;  %vm4939_vm12 = vweird.f32 %v11481_v15 }
 0x8c9   : > { %v4921_v33 = vmul.f32 %v6327_v19, %v4920_v57  ;;  %5143 = vmatmul.f32.gmra.mxu1 %v4884_v11  ;;  %5208 = vmatmul.f32.gmra.mxu2 %v4885_v24  ;;  %v5191_v57 = vpop.f32.mrf.mxu2  ;;  %v5127_v45 = vadd.f32 %v5126_v38, %v11391_v18 }
 0x8ca   : > { %v4899_v51 = vsel %vm4896_vm11, %v4898_v7, %v4894_v22  ;;  %v4910_v29 = vsel %vm11518_vm2, %v11472_v58, %v4906_v56 }
 0x8cb   : > { %v4922_v32 = vadd.f32 %v6327_v19, %v4921_v33  ;;  %v11503_v59 = vpop.permute.xlu2 %5050  ;;  %v4900_v2 = vmul.f32 %v4899_v51, %v11238_v46  ;;  %v4901_v9 = vmul.f32 %v4899_v51, %v11242_v62  ;;  %v4943_v46 = vand.u32 2147483647, %v11481_v15 }
 0x8cc   : > { %v6329_v4 = vpop.eup %6328  ;;  %v4914_v62 = vor.u32 1.1754944e-38, %v4913_v14 }
 0x8cd   : > { %v4935_v39 = vmul.f32 %v6329_v4, %v11481_v15  ;;  %v4926_v13 = vsel %vm4925_vm13, %v6327_v19, %v4922_v32  ;;  %vm4940_vm3 = vweird.f32 %v6329_v4  ;;  %v4946_v19 = vor.u32 1.1754944e-38, %v4945_v48 }
 0x8ce   : > { %v4931_v34 = vsel %vm4928_vm6, %v4930_v63, %v4926_v13  ;;  %v4915_v49 = vsel %vm4912_vm8, %v4914_v62, %v4910_v29  ;;  %vm4941_vm7 = vmor %vm4939_vm12, %vm4940_vm3  ;;  %vm4944_vm1 = vcmp.eq.f32.partialorder %v4943_v46, 8.507059e+37  ;;  %v5129_v12 = vpop.f32.mrf.mxu1 }
 0x8cf   : > { %v4936_v40 = vsub.f32 1.0, %v4935_v39  ;;  %v4933_v20 = vmul.f32 %v4931_v34, %v11348_v10  ;;  %v4916_v6 = vmul.f32 %v4915_v49, %v13133_v50  ;;  %v4917_v41 = vmul.f32 %v4915_v49, %v13134_v1 }
 0x8d0   : > { %v4932_v24 = vmul.f32 %v4931_v34, %v11344_v42 }
 0x8d1   : > { %5146 = vmatmul.f32.gmra.mxu1 %v4900_v2  ;;  %5211 = vmatmul.f32.gmra.mxu2 %v4901_v9  ;;  %v4937_v28 = vmul.f32 %v6329_v4, %v4936_v40  ;;  %v11538_v47 = vpop.f32.mrf.mxu2  ;;  %v5121_v9 = vadd.f32 %v11479_v43, %v11385_v35 }
 0x8d2   : > { %5217 = vmatmul.f32.vlgmr.msrb.gmra.mxu3 %v4933_v20  ;;  %v5192_v20 = vadd.f32 %v5191_v57, %v5127_v45 }
 0x8d3   : > { %v11527_v10 = vpop.permute.xlu2 %5058  ;;  %v5049_v54 = vpop.permute.xlu1 %5048  ;;  %v4938_v25 = vadd.f32 %v6329_v4, %v4937_v28 }
 0x8d5   : > { %v4942_v61 = vsel %vm4941_vm7, %v6329_v4, %v4938_v25  ;;  %v5130_v25 = vadd.f32 %v5129_v12, %v11527_v10 }
 0x8d6   : > { %v4947_v58 = vsel %vm4944_vm1, %v4946_v19, %v4942_v61  ;;  %v5132_v44 = vpop.f32.mrf.mxu1 }
 0x8d7   : > { %v4949_v23 = vmul.f32 %v4947_v58, %v11359_v37  ;;  %v4948_v33 = vmul.f32 %v4947_v58, %v11355_v30  ;;  %v5111_v37 = vpop.f32.mrf.mxu0  ;;  %v5118_v30 = vadd.f32 %v11466_v16, %v11503_v59 }
 0x8d8   : > { %v5112_v39 = vadd.f32 %v5111_v37, %v11379_v3 }
 0x8d9   : > { %5149 = vmatmul.f32.gmra.mxu1 %v4916_v6  ;;  %5214 = vmatmul.f32.gmra.mxu2 %v4917_v41  ;;  %v5197_v32 = vpop.f32.mrf.mxu2  ;;  %v5183_v40 = vadd.f32 %v11470_v31, %v5118_v30  ;;  %v5186_v31 = vadd.f32 %v11485_v26, %v5121_v9 }
 0x8da   : > { %5220 = vmatmul.f32.gmra.mxu3 %v4949_v23  ;;  %v5177_v14 = vadd.f32 %v11446_v55, %v5112_v39  ;;  %v5195_v23 = vadd.f32 %v11538_v47, %v5130_v25 }
 0x8db   : > { %v11533_v11 = vpop.permute.xlu2 %5064  ;;  %v5055_v15 = vpop.permute.xlu1 %5054 }
 0x8dc   : > { %v5124_v34 = vadd.f32 %v11505_v27, %v5055_v15 }
 0x8de   : > { %v5135_v51 = vpop.f32.mrf.mxu1  ;;  %v5189_v16 = vadd.f32 %v11516_v53, %v5124_v34 }
 0x8df   : > { %v5114_v42 = vpop.f32.mrf.mxu0  ;;  %v5136_v26 = vadd.f32 %v5135_v51, %v11401_v8 }
 0x8e0   : > { %v5115_v13 = vadd.f32 %v5114_v42, %v5049_v54 }
 0x8e1   : > { %5152 = vmatmul.f32.gmra.mxu1 %v4932_v24  ;;  %v5200_v56 = vpop.f32.mrf.mxu2 }
 0x8e2   : > { %v5180_v2 = vadd.f32 %v11456_v5, %v5115_v13  ;;  %v5201_v41 = vadd.f32 %v5200_v56, %v5136_v26 }
 0x8e3   : > { %v11536_v60 = vpop.permute.xlu2 %5070  ;;  %v5061_v0 = vpop.permute.xlu1 %5060 }
 0x8e4   : > { %v5133_v29 = vadd.f32 %v5132_v44, %v5061_v0 }
 0x8e6   : > { %v5138_v5 = vpop.f32.mrf.mxu1  ;;  %v5198_v10 = vadd.f32 %v5197_v32, %v5133_v29 }
 0x8e7   : > { %v5139_v39 = vadd.f32 %v5138_v5, %v11533_v11 }
 0x8e9   : > { %5155 = vmatmul.f32.gmra.mxu1 %v4948_v33  ;;  %v5203_v46 = vpop.f32.mrf.mxu2 }
 0x8ea   : > { %v5204_v45 = vadd.f32 %v5203_v46, %v5139_v39 }
 0x8eb   : > { %v11541_v22 = vpop.permute.xlu2 %5076  ;;  %v11543_v7 = vpop.permute.xlu1 %5066 }
 0x8ee   : > { %v5141_v0 = vpop.f32.mrf.mxu1 }
 0x8ef   : > { %v5142_v44 = vadd.f32 %v5141_v0, %v11543_v7 }
 0x8f1   : > { %v5206_v32 = vpop.f32.mrf.mxu2 }
 0x8f2   : > { %v5207_v34 = vadd.f32 %v5206_v32, %v5142_v44 }
 0x8f3   : > { %v4170_v4 = vpop.permute.xlu2 %4169  ;;  %v11545_v63 = vpop.permute.xlu1 %5072 }
 0x8f4   : > { %4215 = vst.msk [vmem:[%s9257_s1 + $0x18] sm:$0xff] %vm4211_vm0, %v4170_v4 }
 0x8fb   : > { %v4176_v3 = vpop.permute.xlu2 %4175  ;;  %v11559_v52 = vpop.permute.xlu1 %5224 }
 0x8fc   : > { %4218 = vst.msk [vmem:[%s9257_s1 + $0x30] sm:$0xff] %vm4211_vm0, %v4176_v3  ;;  %v5229_v59 = vmul.f32 %v11559_v52, %v5183_v40  ;;  %v5228_v18 = vmul.f32 %v11559_v52, %v5180_v2  ;;  %v5227_v55 = vmul.f32 %v11559_v52, %v5177_v14  ;;  %v5232_v27 = vmul.f32 %v11559_v52, %v5192_v20 }
 0x8fd   : > { %v5231_v53 = vmul.f32 %v11559_v52, %v5189_v16  ;;  %v5230_v28 = vmul.f32 %v11559_v52, %v5186_v31  ;;  %v5235_v24 = vmul.f32 %v11559_v52, %v5201_v41  ;;  %v5234_v12 = vmul.f32 %v11559_v52, %v5198_v10 }
 0x8fe   : > { %v5248_v35 = vadd.f32 %v11436_v17, %v5229_v59  ;;  %v5247_v43 = vadd.f32 %v11436_v17, %v5228_v18  ;;  %v5246_v48 = vadd.f32 %v11436_v17, %v5227_v55  ;;  %v5251_v38 = vadd.f32 %v11436_v17, %v5232_v27 }
 0x8ff   : > { %v5250_v58 = vadd.f32 %v11436_v17, %v5231_v53  ;;  %v5249_v8 = vadd.f32 %v11436_v17, %v5230_v28  ;;  %v5233_v37 = vmul.f32 %v11559_v52, %v5195_v23  ;;  %v5254_v42 = vadd.f32 %v11436_v17, %v5235_v24 }
 0x900   : > { %vm5264_vm4 = vcmp.ge.f32.partialorder %v5248_v35, 0.0  ;;  %v5280_v62 = vmul.f32 0.002, %v5248_v35  ;;  %vm5263_vm9 = vcmp.ge.f32.partialorder %v5247_v43, 0.0  ;;  %v5279_v54 = vmul.f32 0.002, %v5247_v43 }
 0x901   : > { %vm5262_vm5 = vcmp.ge.f32.partialorder %v5246_v48, 0.0  ;;  %v5278_v49 = vmul.f32 0.002, %v5246_v48  ;;  %v5283_v57 = vmul.f32 0.002, %v5251_v38  ;;  %vm5267_vm10 = vcmp.ge.f32.partialorder %v5251_v38, 0.0 }
 0x902   : > { %v5296_v19 = vsel %vm5264_vm4, %v5248_v35, %v5280_v62  ;;  %v5295_v61 = vsel %vm5263_vm9, %v5247_v43, %v5279_v54  ;;  %v5282_v15 = vmul.f32 0.002, %v5250_v58  ;;  %vm5266_vm11 = vcmp.ge.f32.partialorder %v5250_v58, 0.0 }
 0x903   : > { %v4182_v50 = vpop.permute.xlu2 %4181  ;;  %v4172_v6 = vpop.permute.xlu1 %4171  ;;  %5330 = vrot.lane.b32.xlu2 %v5296_v19, %s6543_s19  ;;  %5328 = vrot.lane.b32.xlu0 %v5295_v61, %s6543_s19  ;;  %v5294_v1 = vsel %vm5262_vm5, %v5246_v48, %v5278_v49  ;;  %v5281_v33 = vmul.f32 0.002, %v5249_v8  ;;  %vm5265_vm13 = vcmp.ge.f32.partialorder %v5249_v8, 0.0  ;;  %v5299_v47 = vsel %vm5267_vm10, %v5251_v38, %v5283_v57 }
 0x904   : > { %4221 = vst.msk [vmem:[%s9257_s1 + $0x48] sm:$0xff] %vm4211_vm0, %v4182_v50  ;;  %5326 = vrot.lane.b32.xlu1 %v5294_v1, %s6543_s19  ;;  %v5298_v4 = vsel %vm5266_vm11, %v5250_v58, %v5282_v15  ;;  %v5253_v51 = vadd.f32 %v11436_v17, %v5234_v12  ;;  %v5252_v7 = vadd.f32 %v11436_v17, %v5233_v37  ;;  %v5286_v14 = vmul.f32 0.002, %v5254_v42 }
 0x905   : > { %4216 = vst.msk [vmem:[%s9257_s1 + $0x20] sm:$0xff] %vm4211_vm0, %v4172_v6  ;;  %v5297_v56 = vsel %vm5265_vm13, %v5249_v8, %v5281_v33  ;;  %v5237_v11 = vmul.f32 %v11559_v52, %v5207_v34  ;;  %vm5270_vm14 = vcmp.ge.f32.partialorder %v5254_v42, 0.0  ;;  %v5236_v9 = vmul.f32 %v11559_v52, %v5204_v45 }
 0x906   : > { %v5285_v40 = vmul.f32 0.002, %v5253_v51  ;;  %vm5269_vm6 = vcmp.ge.f32.partialorder %v5253_v51, 0.0  ;;  %v5284_v2 = vmul.f32 0.002, %v5252_v7  ;;  %vm5268_vm15 = vcmp.ge.f32.partialorder %v5252_v7, 0.0 }
 0x907   : > { %v5302_v20 = vsel %vm5270_vm14, %v5254_v42, %v5286_v14  ;;  %v5256_v16 = vadd.f32 %v11436_v17, %v5237_v11  ;;  %v5255_v31 = vadd.f32 %v11436_v17, %v5236_v9 }
 0x908   : > { %v5301_v3 = vsel %vm5269_vm6, %v5253_v51, %v5285_v40  ;;  %v5300_v55 = vsel %vm5268_vm15, %v5252_v7, %v5284_v2 }
 0x909   : > { %v5288_v5 = vmul.f32 0.002, %v5256_v16  ;;  %vm5272_vm2 = vcmp.ge.f32.partialorder %v5256_v16, 0.0  ;;  %v5287_v27 = vmul.f32 0.002, %v5255_v31  ;;  %vm5271_vm3 = vcmp.ge.f32.partialorder %v5255_v31, 0.0 }
 0x90b   : > { %v4188_v30 = vpop.permute.xlu2 %4187  ;;  %v4178_v13 = vpop.permute.xlu1 %4177  ;;  %5336 = vrot.lane.b32.xlu2 %v5299_v47, %s6543_s19  ;;  %5334 = vrot.lane.b32.xlu0 %v5298_v4, %s6543_s19  ;;  %v5304_v35 = vsel %vm5272_vm2, %v5256_v16, %v5288_v5  ;;  %v5303_v48 = vsel %vm5271_vm3, %v5255_v31, %v5287_v27 }
 0x90c   : > { %4224 = vst.msk [vmem:[%s9257_s1 + $0x60] sm:$0xff] %vm4211_vm0, %v4188_v30  ;;  %5332 = vrot.lane.b32.xlu1 %v5297_v56, %s6543_s19 }
 0x90d   : > { %4219 = vst.msk [vmem:[%s9257_s1 + $0x38] sm:$0xff] %vm4211_vm0, %v4178_v13 }
 0x913   : > { %v4194_v59 = vpop.permute.xlu2 %4193  ;;  %v4184_v18 = vpop.permute.xlu1 %4183  ;;  %5342 = vrot.lane.b32.xlu2 %v5302_v20, %s6543_s19  ;;  %5340 = vrot.lane.b32.xlu0 %v5301_v3, %s6543_s19 }
 0x914   : > { %4227 = vst.msk [vmem:[%s9257_s1 + $0x78] sm:$0xff] %vm4211_vm0, %v4194_v59  ;;  %5338 = vrot.lane.b32.xlu1 %v5300_v55, %s6543_s19 }
 0x915   : > { %4222 = vst.msk [vmem:[%s9257_s1 + $0x50] sm:$0xff] %vm4211_vm0, %v4184_v18 }
 0x91b   : > { %v4190_v43 = vpop.permute.xlu1 %4189  ;;  %5346 = vrot.lane.b32.xlu0 %v5304_v35, %s6543_s19 }
 0x91c   : > { %4225 = vst.msk [vmem:[%s9257_s1 + $0x68] sm:$0xff] %vm4211_vm0, %v4190_v43  ;;  %5344 = vrot.lane.b32.xlu1 %v5303_v48, %s6543_s19  ;;  %vm5374_vm0 = vcmask 1048320  }
 0x946   : > { %v5144_v53 = vpop.f32.mrf.mxu1 }
 0x947   : > { %v5145_v29 = vadd.f32 %v5144_v53, %v11415_v36 }
 0x94c   : > { %v5209_v28 = vpop.f32.mrf.mxu2 }
 0x94d   : > { %v5210_v46 = vadd.f32 %v5209_v28, %v5145_v29 }
 0x94e   : > { %v5147_v62 = vpop.f32.mrf.mxu1 }
 0x94f   : > { %v5238_v54 = vmul.f32 %v11559_v52, %v5210_v46  ;;  %v5148_v25 = vadd.f32 %v5147_v62, %v11536_v60 }
 0x951   : > { %v5257_v26 = vadd.f32 %v11436_v17, %v5238_v54 }
 0x953   : > { %vm5273_vm8 = vcmp.ge.f32.partialorder %v5257_v26, 0.0  ;;  %v5289_v49 = vmul.f32 0.002, %v5257_v26 }
 0x954   : > { %v5212_v19 = vpop.f32.mrf.mxu2 }
 0x955   : > { %v5213_v61 = vadd.f32 %v5212_v19, %v5148_v25  ;;  %v5305_v38 = vsel %vm5273_vm8, %v5257_v26, %v5289_v49  ;;  %v5218_v23 = vpop.f32.mrf.mxu3 }
 0x956   : > { %v5150_v58 = vpop.f32.mrf.mxu1  ;;  %5348 = vrot.lane.b32.xlu2 %v5305_v38, %s6543_s19 }
 0x957   : > { %v5239_v36 = vmul.f32 %v11559_v52, %v5213_v61  ;;  %v5151_v6 = vadd.f32 %v5150_v58, %v11545_v63 }
 0x959   : > { %v5258_v50 = vadd.f32 %v11436_v17, %v5239_v36 }
 0x95b   : > { %vm5274_vm12 = vcmp.ge.f32.partialorder %v5258_v50, 0.0  ;;  %v5290_v1 = vmul.f32 0.002, %v5258_v50 }
 0x95c   : > { %v5215_v8 = vpop.f32.mrf.mxu2 }
 0x95d   : > { %v5216_v60 = vadd.f32 %v5215_v8, %v5151_v6  ;;  %v5331_v41 = vpop.permute.xlu2 %5330  ;;  %v5306_v10 = vsel %vm5274_vm12, %v5258_v50, %v5290_v1  ;;  %v5221_v42 = vpop.f32.mrf.mxu3 }
 0x95e   : > { %5377 = vst.msk [vmem:[%s9257_s1 + $0x10] sm:$0xff] %vm5374_vm0, %v5331_v41  ;;  %v5153_v57 = vpop.f32.mrf.mxu1  ;;  %5350 = vrot.lane.b32.xlu1 %v5306_v10, %s6543_s19 }
 0x95f   : > { %v5240_v15 = vmul.f32 %v11559_v52, %v5216_v60  ;;  %v5154_v24 = vadd.f32 %v5153_v57, %v11425_v21 }
 0x961   : > { %v5259_v63 = vadd.f32 %v11436_v17, %v5240_v15  ;;  %v5219_v12 = vadd.f32 %v5218_v23, %v5154_v24 }
 0x963   : > { %v5241_v0 = vmul.f32 %v11559_v52, %v5219_v12  ;;  %vm5275_vm7 = vcmp.ge.f32.partialorder %v5259_v63, 0.0  ;;  %v5291_v33 = vmul.f32 0.002, %v5259_v63 }
 0x965   : > { %v5260_v37 = vadd.f32 %v11436_v17, %v5241_v0  ;;  %v5337_v44 = vpop.permute.xlu2 %5336  ;;  %v5307_v32 = vsel %vm5275_vm7, %v5259_v63, %v5291_v33 }
 0x966   : > { %5380 = vst.msk [vmem:[%s9257_s1 + $0x28] sm:$0xff] %vm5374_vm0, %v5337_v44  ;;  %v5156_v47 = vpop.f32.mrf.mxu1  ;;  %5352 = vrot.lane.b32.xlu0 %v5307_v32, %s6543_s19 }
 0x967   : > { %v5157_v4 = vadd.f32 %v5156_v47, %v11541_v22  ;;  %vm5276_vm1 = vcmp.ge.f32.partialorder %v5260_v37, 0.0  ;;  %v5292_v21 = vmul.f32 0.002, %v5260_v37 }
 0x969   : > { %v5222_v51 = vadd.f32 %v5221_v42, %v5157_v4  ;;  %v5308_v39 = vsel %vm5276_vm1, %v5260_v37, %v5292_v21 }
 0x96a   : > { %5354 = vrot.lane.b32.xlu2 %v5308_v39, %s6543_s19 }
 0x96b   : > { %v5242_v30 = vmul.f32 %v11559_v52, %v5222_v51 }
 0x96d   : > { %v5261_v13 = vadd.f32 %v11436_v17, %v5242_v30  ;;  %v5343_v56 = vpop.permute.xlu2 %5342 }
 0x96e   : > { %5383 = vst.msk [vmem:[%s9257_s1 + $0x40] sm:$0xff] %vm5374_vm0, %v5343_v56 }
 0x96f   : > { %vm5277_vm4 = vcmp.ge.f32.partialorder %v5261_v13, 0.0  ;;  %v5293_v22 = vmul.f32 0.002, %v5261_v13 }
 0x971   : > { %v5309_v7 = vsel %vm5277_vm4, %v5261_v13, %v5293_v22 }
 0x972   : > { %5356 = vrot.lane.b32.xlu1 %v5309_v7, %s6543_s19 }
 0x975   : > { %v5329_v34 = vpop.permute.xlu0 %5328 }
 0x976   : > { %5376 = vst.msk [vmem:[%s9257_s1 + $0x8] sm:$0xff] %vm5374_vm0, %v5329_v34  ;;  %v5327_v45 = vpop.permute.xlu1 %5326 }
 0x977   : > { %5375 = vst.msk [vmem:[%s9257_s1] sm:$0xff] %vm5374_vm0, %v5327_v45 }
 0x97d   : > { %v5335_v17 = vpop.permute.xlu0 %5334 }
 0x97e   : > { %5379 = vst.msk [vmem:[%s9257_s1 + $0x20] sm:$0xff] %vm5374_vm0, %v5335_v17  ;;  %v5333_v52 = vpop.permute.xlu1 %5332 }
 0x97f   : > { %5378 = vst.msk [vmem:[%s9257_s1 + $0x18] sm:$0xff] %vm5374_vm0, %v5333_v52 }
 0x985   : > { %v5341_v14 = vpop.permute.xlu0 %5340 }
 0x986   : > { %5382 = vst.msk [vmem:[%s9257_s1 + $0x38] sm:$0xff] %vm5374_vm0, %v5341_v14  ;;  %v5339_v40 = vpop.permute.xlu1 %5338 }
 0x987   : > { %5381 = vst.msk [vmem:[%s9257_s1 + $0x30] sm:$0xff] %vm5374_vm0, %v5339_v40 }
 0x98d   : > { %v5347_v11 = vpop.permute.xlu0 %5346 }
 0x98e   : > { %5385 = vst.msk [vmem:[%s9257_s1 + $0x50] sm:$0xff] %vm5374_vm0, %v5347_v11  ;;  %v5345_v2 = vpop.permute.xlu1 %5344 }
 0x98f   : > { %5384 = vst.msk [vmem:[%s9257_s1 + $0x48] sm:$0xff] %vm5374_vm0, %v5345_v2 }
 0x9b0   : > { %v5349_v9 = vpop.permute.xlu2 %5348 }
 0x9b1   : > { %5386 = vst.msk [vmem:[%s9257_s1 + $0x58] sm:$0xff] %vm5374_vm0, %v5349_v9 }
 0x9c4   : > { %v5355_v20 = vpop.permute.xlu2 %5354 }
 0x9c5   : > { %5389 = vst.msk [vmem:[%s9257_s1 + $0x70] sm:$0xff] %vm5374_vm0, %v5355_v20 }
 0x9d0   : > { %v5351_v3 = vpop.permute.xlu1 %5350 }
 0x9d1   : > { %5387 = vst.msk [vmem:[%s9257_s1 + $0x60] sm:$0xff] %vm5374_vm0, %v5351_v3 }
 0x9d8   : > { %v5353_v16 = vpop.permute.xlu0 %5352 }
 0x9d9   : > { %5388 = vst.msk [vmem:[%s9257_s1 + $0x68] sm:$0xff] %vm5374_vm0, %v5353_v16 }
 0x9e4   : > { %v5357_v59 = vpop.permute.xlu1 %5356 }
 0x9e5   : > { %5390 = vst.msk [vmem:[%s9257_s1 + $0x78] sm:$0xff] %vm5374_vm0, %v5357_v59 }
 0x9e6   : > { %6483 = shalt.err (!%p6480_p10)
}
 0x9e7   : > { %s6550_s17 = smov 128   ;;  %s6551_s1 = smov 8  }
 0x9e8   : > { %5581 = dma.vmem_to_hbm [thread:$0]  (%p6688_p7), %s5405_s24, 2048, %s5407_s21, %s5392_s15, %s6550_s17, %s6550_s17, %s6551_s1  }
 0x9e9 PF: > { %s5421_s20 = sand.u32 1, %s6522_s30   ;;  %p13135_p12 = scmp.ge.s32.totalorder %s6534_s12, 2 }
 0x9ea   : > { %s5422_s19 = scalar_lea.sflag [#allocation4], %s5421_s20 }
 0x9eb   : > { %p5598_p13 = pnand %p13135_p12, %p6637_p6 }
 0x9ed   : > { %p5599_p0 = pneg %p5598_p13 }
 0x9ef   : > { %6517 = dma.done.wait (%p5599_p0), %s5422_s19, 2048  }
 0x9f0   : > { %6519 = vsyncadd (%p5599_p0), %s5422_s19, 4294965248  ;;  %p21_p3 = scmp.ge.s32.totalorder %s6674_s29, 4   ;;  %s13136_s30 = smov %s6526_s10 }
 0x9f1   : > { %s13137_s10 = smov %s6530_s11  ;;  %s13138_s11 = smov %s6684_s26 }
 0x9f2   : > { %s13139_s12 = smov %s6674_s29  ;;  %23 = sbr.rel (!%p21_p3) target bundleno = 9 (0x9), region = 113 }
 0x9f7   :  { %5428 = vsyncpa [#allocation3], 1 }
 0x9f8   :  { %5430 = vsyncpa [#allocation3 + $0x1], 1 }
 0x9f9   :  { %5431 = vsyncpa [#allocation6], 1 }
 0x9fa   :  { %5432 = vsyncpa [#allocation4], 1 }
 0x9fb   :  { %5434 = vsyncpa [#allocation4 + $0x1], 1 }

</bundles_post_ra>
